<compile_context>
chip_gen: v6e
topology: v6e:2x2x1
jax: 0.10.0
libtpu: 0.0.40
codegen_flags: <defaults>
</compile_context>

<pallas_src>
import functools

import jax
import jax.numpy as jnp
from jax import lax
from jax.experimental import pallas as pl
from jax.experimental.pallas import tpu as pltpu


def _round_up(v, m):
    return (v + m - 1) // m * m


def _global_sa_kernel(offs_ref, x_ref, pos_ref, w1x_ref, w1p_ref, b1_ref,
                      w2_ref, b2_ref, out_ref, *, num_batches, tile_n):
    """One grid step: pointwise MLP on one tile of points + segment max-pool.

    Grid = (num_cores, tiles_per_core); axis 0 is "parallel", axis 1 is the
    sequential point-tile reduction onto the VMEM-resident output block.

    offs_ref : (num_batches+1,) int32 SMEM (scalar prefetch); rows with
               global index in [offs[b], offs[b+1]) belong to batch b.
    x_ref    : (tile_n, C)      f32 point features
    pos_ref  : (tile_n, 3)      f32 point coordinates
    w1x/w1p  : (C, H_pad) / (3, H_pad) f32 — first Linear split over [x, pos]
    b1       : (1, H_pad)       f32
    w2       : (H_pad, C_out_pad) bf16
    b2       : (1, C_out_pad)   f32
    out_ref  : (B_pad, C_out_pad) f32 per-core running max (accumulator).
    """
    c = pl.program_id(0)
    i = pl.program_id(1)

    @pl.when(i == 0)
    def _init():
        # 0.0 (not -inf) is a valid max identity here: the final ReLU
        # guarantees h >= 0.  Empty batches cleanly report 0 rows.
        out_ref[...] = jnp.zeros_like(out_ref)

    # ---- pointwise MLP ----
    # layer 1 in f32 (K is only 4 / 3); layer 2 bf16 operands, f32 MXU accum.
    h = jnp.dot(x_ref[...], w1x_ref[...], preferred_element_type=jnp.float32)
    h += jnp.dot(pos_ref[...], w1p_ref[...], preferred_element_type=jnp.float32)
    h = jnp.maximum(h + b1_ref[...], 0.0)
    h = jnp.dot(h.astype(w2_ref.dtype), w2_ref[...],
                preferred_element_type=jnp.float32)
    h = jnp.maximum(h + b2_ref[...], 0.0)            # (tile_n, C_out_pad) >= 0

    # ---- segment (per-batch) max over this tile ----
    # `batch` is sorted, so a tile intersects only the batches whose
    # [offs[b], offs[b+1]) range overlaps its global row range; every other
    # batch is skipped by pl.when on the SMEM scalars.  Rows past N (boundary
    # tiles) have global id >= offs[num_batches] and match no batch.
    row0 = (c * pl.num_programs(1) + i) * tile_n
    rows = lax.broadcasted_iota(jnp.int32, (tile_n, 1), 0) + row0

    for b in range(num_batches):                      # static; bodies gated
        lo = offs_ref[b]
        hi = offs_ref[b + 1]

        @pl.when(jnp.logical_and(lo < row0 + tile_n, hi > row0))
        def _update(b=b, lo=lo, hi=hi):
            m = jnp.logical_and(rows >= lo, rows < hi)          # (tile_n, 1)
            seg = jnp.max(jnp.where(m, h, 0.0), axis=0, keepdims=True)
            out_ref[pl.ds(b, 1), :] = jnp.maximum(out_ref[pl.ds(b, 1), :], seg)


def global_sa_module(x, pos, batch, params, *, num_batches,
                     tile_n=1024, num_cores=1):
    """JAX wrapper mirroring GlobalSAModule.forward -> (x, pos, batch).

    `batch` must be sorted ascending (torch_geometric convention): pooling is
    driven by sorted-segment offsets delivered through scalar prefetch.
    num_cores=1 for single-TensorCore parts (v5e/v6e); pass 2 on v7x.
    """
    w1, b1, w2, b2 = params
    n, c_x = x.shape
    c_pos = pos.shape[1]
    hdim = w1.shape[1]
    c_out = w2.shape[1]

    # lane-dense padded channel sizes (weights / activations only)
    h_pad = _round_up(hdim, 128)
    c_out_pad = _round_up(c_out, 128)
    b_pad = _round_up(max(num_batches, 8), 8)

    # keep the tile from ballooning the grid for small point clouds
    tile_n = max(8, min(tile_n, _round_up(n, 8)))
    tiles_total = pl.cdiv(n, tile_n)
    tiles_per_core = pl.cdiv(tiles_total, num_cores)

    # sorted-batch segment offsets: rows [offs[b], offs[b+1]) belong to batch b
    # TODO(synk): assumes `batch` is sorted ascending; add a mask-based
    # fallback if unsorted batch vectors can occur.
    counts = jnp.bincount(batch.astype(jnp.int32), length=num_batches)
    offsets = jnp.concatenate(
        [jnp.zeros((1,), jnp.int32), jnp.cumsum(counts)]).astype(jnp.int32)

    # split / pad the MLP params (tiny, one-time)
    w1f = w1.astype(jnp.float32)
    w1x = jnp.pad(w1f[:c_x], ((0, 0), (0, h_pad - hdim)))
    w1p = jnp.pad(w1f[c_x:], ((0, 0), (0, h_pad - hdim)))
    b1p = jnp.pad(b1.astype(jnp.float32).reshape(1, -1),
                  ((0, 0), (0, h_pad - hdim)))
    w2p = jnp.pad(w2.astype(jnp.float32),
                  ((0, h_pad - hdim), (0, c_out_pad - c_out))).astype(jnp.bfloat16)
    b2p = jnp.pad(b2.astype(jnp.float32).reshape(1, -1),
                  ((0, 0), (0, c_out_pad - c_out)))

    kernel = functools.partial(_global_sa_kernel,
                               num_batches=num_batches, tile_n=tile_n)

    partials = pl.pallas_call(
        kernel,
        out_shape=jax.ShapeDtypeStruct((num_cores, b_pad, c_out_pad),
                                       jnp.float32),
        grid_spec=pltpu.PrefetchScalarGridSpec(
            num_scalar_prefetch=1,
            grid=(num_cores, tiles_per_core),
            in_specs=[
                pl.BlockSpec((tile_n, c_x),
                             lambda c, i, offs: (c * tiles_per_core + i, 0)),
                pl.BlockSpec((tile_n, c_pos),
                             lambda c, i, offs: (c * tiles_per_core + i, 0)),
                pl.BlockSpec((c_x, h_pad), lambda c, i, offs: (0, 0)),     # W1x
                pl.BlockSpec((c_pos, h_pad), lambda c, i, offs: (0, 0)),   # W1p
                pl.BlockSpec((1, h_pad), lambda c, i, offs: (0, 0)),       # b1
                pl.BlockSpec((h_pad, c_out_pad), lambda c, i, offs: (0, 0)),  # W2
                pl.BlockSpec((1, c_out_pad), lambda c, i, offs: (0, 0)),   # b2
            ],
            out_specs=pl.BlockSpec((None, b_pad, c_out_pad),
                                   lambda c, i, offs: (c, 0, 0)),
        ),
        compiler_params=pltpu.CompilerParams(
            # axis 0: independent per-core partials; axis 1: reduction onto
            # the resident output block -> must stay arbitrary.
            dimension_semantics=("parallel", "arbitrary"),
        ),
    )(offsets, x.astype(jnp.float32), pos.astype(jnp.float32),
      w1x, w1p, b1p, w2p, b2p)

    # tiny cross-core merge (no-op for num_cores=1) + strip padding
    pooled = jnp.max(partials, axis=0)[:num_batches, :c_out]
    pos_out = jnp.zeros((num_batches, 3), dtype=pos.dtype)
    batch_out = jnp.arange(num_batches, dtype=jnp.int32)
    return pooled, pos_out, batch_out


def _reference(x, pos, batch, params, num_batches):
    """Pure-JAX reference with the same layer-2 bf16-operand numerics."""
    w1, b1, w2, b2 = params
    xcat = jnp.concatenate([x, pos], axis=1).astype(jnp.float32)
    h = jnp.maximum(jnp.dot(xcat, w1.astype(jnp.float32))
                    + b1.reshape(1, -1), 0.0)
    h = jnp.dot(h.astype(jnp.bfloat16), w2.astype(jnp.bfloat16),
                preferred_element_type=jnp.float32)
    h = jnp.maximum(h + b2.reshape(1, -1), 0.0)
    return jax.ops.segment_max(h, batch, num_segments=num_batches)


if __name__ == "__main__":
    key = jax.random.PRNGKey(0)
    k1, k2, k3, k4, k5, k6 = jax.random.split(key, 6)

    # small point cloud: N points, C feature channels, B batches
    N, C, B = 4500, 4, 2
    H, C_OUT = 32, 64
    C_CAT = C + 3

    x = jax.random.normal(k1, (N, C), jnp.float32)
    pos = jax.random.normal(k2, (N, 3), jnp.float32)
    # points sorted by batch (first half batch 0, second half batch 1)
    batch = jnp.concatenate([jnp.zeros(N // 2, jnp.int32),
                             jnp.ones(N - N // 2, jnp.int32)])

    # deterministic MLP params: Linear(C+3->H) ReLU, Linear(H->C_OUT) ReLU
    w1 = jax.random.normal(k3, (C_CAT, H), jnp.float32) * 0.1
    b1 = jax.random.normal(k4, (1, H), jnp.float32) * 0.1
    w2 = jax.random.normal(k5, (H, C_OUT), jnp.float32) * 0.1
    b2 = jax.random.normal(k6, (1, C_OUT), jnp.float32) * 0.1
    params = (w1, b1, w2, b2)

    out_x, out_pos, out_batch = global_sa_module(
        x, pos, batch, params, num_batches=B, tile_n=1024, num_cores=1)
    jax.block_until_ready((out_x, out_pos, out_batch))

    # silent correctness check against pure-JAX reference
    ref = _reference(x, pos, batch, params, B)
    assert out_x.shape == (B, C_OUT)
    assert out_pos.shape == (B, 3) and out_batch.shape == (B,)
    assert jnp.allclose(out_x, ref, rtol=1e-3, atol=1e-3), \
        float(jnp.max(jnp.abs(out_x - ref)))
    assert bool(jnp.all(out_pos == 0)) and bool(jnp.all(out_batch == jnp.arange(B)))

    print("KERNEL_OK")
</pallas_src>

<mosaic_0001>
module attributes {stable_mosaic.version = 11 : i64} {
  func.func @_global_sa_kernel(%arg0: i32, %arg1: i32, %arg2: memref<3xi32, #tpu.memory_space<smem>>, %arg3: memref<1024x4xf32, #tpu.memory_space<vmem>>, %arg4: memref<1024x3xf32, #tpu.memory_space<vmem>>, %arg5: memref<4x128xf32, #tpu.memory_space<vmem>>, %arg6: memref<3x128xf32, #tpu.memory_space<vmem>>, %arg7: memref<1x128xf32, #tpu.memory_space<vmem>>, %arg8: memref<128x128xbf16, #tpu.memory_space<vmem>>, %arg9: memref<1x128xf32, #tpu.memory_space<vmem>>, %arg10: memref<1x8x128xf32, #tpu.memory_space<vmem>>) attributes {dimension_semantics = [#tpu.dimension_semantics<parallel>, #tpu.dimension_semantics<arbitrary>], iteration_bounds = array<i64: 1, 5>, scalar_prefetch = 1 : i64, scratch_operands = 0 : i64, tpu.core_type = #tpu.core_type<tc>, window_params = [{transform_indices = @transform_0, window_bounds = array<i64: 1024, 4>}, {transform_indices = @transform_1, window_bounds = array<i64: 1024, 3>}, {pipeline_mode = #tpu.pipeline_mode<synchronous>, transform_indices = @transform_2, window_bounds = array<i64: 4, 128>}, {pipeline_mode = #tpu.pipeline_mode<synchronous>, transform_indices = @transform_3, window_bounds = array<i64: 3, 128>}, {pipeline_mode = #tpu.pipeline_mode<synchronous>, transform_indices = @transform_4, window_bounds = array<i64: 1, 128>}, {pipeline_mode = #tpu.pipeline_mode<synchronous>, transform_indices = @transform_5, window_bounds = array<i64: 128, 128>}, {pipeline_mode = #tpu.pipeline_mode<synchronous>, transform_indices = @transform_6, window_bounds = array<i64: 1, 128>}, {transform_indices = @transform_7, window_bounds = array<i64: 1, 8, 128>}]} {
    %c0_i32 = arith.constant 0 : i32
    %0 = arith.cmpi eq, %arg1, %c0_i32 : i32
    %1 = arith.extui %0 : i1 to i32
    %c0_i32_0 = arith.constant 0 : i32
    %2 = arith.cmpi ne, %1, %c0_i32_0 : i32
    scf.if %2 {
      %cst_24 = arith.constant 0.000000e+00 : f32
      %45 = vector.broadcast %cst_24 : f32 to vector<8x128xf32>
      %c0_25 = arith.constant 0 : index
      %c0_26 = arith.constant 0 : index
      %c0_27 = arith.constant 0 : index
      %46 = vector.load %arg10[%c0_25, %c0_26, %c0_27] : memref<1x8x128xf32, #tpu.memory_space<vmem>>, vector<1x8x128xf32>
      %47 = vector.shape_cast %46 : vector<1x8x128xf32> to vector<8x128xf32>
      %48 = vector.shape_cast %45 : vector<8x128xf32> to vector<1x8x128xf32>
      tpu.vector_store %arg10[%c0_25, %c0_26, %c0_27], %48 {strides = array<i32>} : memref<1x8x128xf32, #tpu.memory_space<vmem>>, vector<1x8x128xf32>,
    } else {
    }
    %c0 = arith.constant 0 : index
    %c0_1 = arith.constant 0 : index
    %3 = vector.load %arg3[%c0, %c0_1] : memref<1024x4xf32, #tpu.memory_space<vmem>>, vector<1024x4xf32>
    %c0_2 = arith.constant 0 : index
    %c0_3 = arith.constant 0 : index
    %4 = vector.load %arg5[%c0_2, %c0_3] : memref<4x128xf32, #tpu.memory_space<vmem>>, vector<4x128xf32>
    %cst = arith.constant dense<0.000000e+00> : vector<1024x128xf32>
    %5 = tpu.matmul %3, %4, %cst {dimension_numbers = #tpu.dot_dimension_numbers<[1], [0], [0], [1], [0, 0, 1, 1], [], []>} : vector<1024x4xf32>, vector<4x128xf32>, vector<1024x128xf32> -> vector<1024x128xf32>
    %c0_4 = arith.constant 0 : index
    %c0_5 = arith.constant 0 : index
    %6 = vector.load %arg4[%c0_4, %c0_5] : memref<1024x3xf32, #tpu.memory_space<vmem>>, vector<1024x3xf32>
    %c0_6 = arith.constant 0 : index
    %c0_7 = arith.constant 0 : index
    %7 = vector.load %arg6[%c0_6, %c0_7] : memref<3x128xf32, #tpu.memory_space<vmem>>, vector<3x128xf32>
    %cst_8 = arith.constant dense<0.000000e+00> : vector<1024x128xf32>
    %8 = tpu.matmul %6, %7, %cst_8 {dimension_numbers = #tpu.dot_dimension_numbers<[1], [0], [0], [1], [0, 0, 1, 1], [], []>} : vector<1024x3xf32>, vector<3x128xf32>, vector<1024x128xf32> -> vector<1024x128xf32>
    %9 = arith.addf %5, %8 : vector<1024x128xf32>
    %c0_9 = arith.constant 0 : index
    %c0_10 = arith.constant 0 : index
    %10 = vector.load %arg7[%c0_9, %c0_10] : memref<1x128xf32, #tpu.memory_space<vmem>>, vector<1x128xf32>
    %11 = vector.broadcast %10 : vector<1x128xf32> to vector<1024x128xf32>
    %12 = arith.addf %9, %11 : vector<1024x128xf32>
    %cst_11 = arith.constant 0.000000e+00 : f32
    %13 = vector.broadcast %cst_11 : f32 to vector<1024x128xf32>
    %14 = arith.maximumf %12, %13 : vector<1024x128xf32>
    %15 = arith.truncf %14 : vector<1024x128xf32> to vector<1024x128xbf16>
    %c0_12 = arith.constant 0 : index
    %c0_13 = arith.constant 0 : index
    %16 = vector.load %arg8[%c0_12, %c0_13] : memref<128x128xbf16, #tpu.memory_space<vmem>>, vector<128x128xbf16>
    %cst_14 = arith.constant dense<0.000000e+00> : vector<1024x128xf32>
    %17 = tpu.matmul %15, %16, %cst_14 {dimension_numbers = #tpu.dot_dimension_numbers<[1], [0], [0], [1], [0, 0, 1, 1], [], []>} : vector<1024x128xbf16>, vector<128x128xbf16>, vector<1024x128xf32> -> vector<1024x128xf32>
    %c0_15 = arith.constant 0 : index
    %c0_16 = arith.constant 0 : index
    %18 = vector.load %arg9[%c0_15, %c0_16] : memref<1x128xf32, #tpu.memory_space<vmem>>, vector<1x128xf32>
    %19 = vector.broadcast %18 : vector<1x128xf32> to vector<1024x128xf32>
    %20 = arith.addf %17, %19 : vector<1024x128xf32>
    %cst_17 = arith.constant 0.000000e+00 : f32
    %21 = vector.broadcast %cst_17 : f32 to vector<1024x128xf32>
    %22 = arith.maximumf %20, %21 : vector<1024x128xf32>
    %c5_i32 = arith.constant 5 : i32
    %23 = arith.muli %arg0, %c5_i32 : i32
    %24 = arith.addi %23, %arg1 : i32
    %c1024_i32 = arith.constant 1024 : i32
    %25 = arith.muli %24, %c1024_i32 : i32
    %26 = tpu.iota {dimensions = array<i32: 0>} : vector<1024x1xi32>
    %27 = vector.broadcast %25 : i32 to vector<1024x1xi32>
    %28 = arith.addi %26, %27 : vector<1024x1xi32>
    %c0_18 = arith.constant 0 : index
    %29 = memref.load %arg2[%c0_18] : memref<3xi32, #tpu.memory_space<smem>>
    %c1 = arith.constant 1 : index
    %30 = memref.load %arg2[%c1] : memref<3xi32, #tpu.memory_space<smem>>
    %c1024_i32_19 = arith.constant 1024 : i32
    %31 = arith.addi %25, %c1024_i32_19 : i32
    %32 = arith.cmpi slt, %29, %31 : i32
    %33 = arith.cmpi sgt, %30, %25 : i32
    %34 = arith.andi %32, %33 : i1
    %35 = arith.extui %34 : i1 to i32
    %c0_i32_20 = arith.constant 0 : i32
    %36 = arith.cmpi ne, %35, %c0_i32_20 : i32
    scf.if %36 {
      %45 = vector.broadcast %29 : i32 to vector<1024x1xi32>
      %46 = arith.cmpi sge, %28, %45 : vector<1024x1xi32>
      %47 = vector.broadcast %30 : i32 to vector<1024x1xi32>
      %48 = arith.cmpi slt, %28, %47 : vector<1024x1xi32>
      %49 = arith.andi %46, %48 : vector<1024x1xi1>
      %cst_24 = arith.constant 0.000000e+00 : f32
      %50 = vector.shape_cast %49 : vector<1024x1xi1> to vector<1024x1xi1>
      %51 = vector.broadcast %50 : vector<1024x1xi1> to vector<1024x128xi1>
      %52 = vector.broadcast %cst_24 : f32 to vector<1024x128xf32>
      %53 = arith.select %51, %22, %52 : vector<1024x128xi1>, vector<1024x128xf32>
      %cst_25 = arith.constant dense<0xFF800000> : vector<128xf32>
      %54 = vector.multi_reduction <maximumf>, %53, %cst_25 [0] : vector<1024x128xf32> to vector<128xf32>
      %55 = vector.shape_cast %54 : vector<128xf32> to vector<1x128xf32>
      %c0_26 = arith.constant 0 : index
      %c0_27 = arith.constant 0 : index
      %c0_28 = arith.constant 0 : index
      %56 = vector.load %arg10[%c0_26, %c0_27, %c0_28] : memref<1x8x128xf32, #tpu.memory_space<vmem>>, vector<1x1x128xf32>
      %57 = vector.shape_cast %56 : vector<1x1x128xf32> to vector<1x128xf32>
      %58 = arith.maximumf %57, %55 : vector<1x128xf32>
      %c0_29 = arith.constant 0 : index
      %c0_30 = arith.constant 0 : index
      %c0_31 = arith.constant 0 : index
      %59 = vector.load %arg10[%c0_29, %c0_30, %c0_31] : memref<1x8x128xf32, #tpu.memory_space<vmem>>, vector<1x1x128xf32>
      %60 = vector.shape_cast %59 : vector<1x1x128xf32> to vector<1x128xf32>
      %61 = vector.shape_cast %58 : vector<1x128xf32> to vector<1x1x128xf32>
      tpu.vector_store %arg10[%c0_29, %c0_30, %c0_31], %61 {strides = array<i32>} : memref<1x8x128xf32, #tpu.memory_space<vmem>>, vector<1x1x128xf32>,
    } else {
    }
    %c1_21 = arith.constant 1 : index
    %37 = memref.load %arg2[%c1_21] : memref<3xi32, #tpu.memory_space<smem>>
    %c2 = arith.constant 2 : index
    %38 = memref.load %arg2[%c2] : memref<3xi32, #tpu.memory_space<smem>>
    %c1024_i32_22 = arith.constant 1024 : i32
    %39 = arith.addi %25, %c1024_i32_22 : i32
    %40 = arith.cmpi slt, %37, %39 : i32
    %41 = arith.cmpi sgt, %38, %25 : i32
    %42 = arith.andi %40, %41 : i1
    %43 = arith.extui %42 : i1 to i32
    %c0_i32_23 = arith.constant 0 : i32
    %44 = arith.cmpi ne, %43, %c0_i32_23 : i32
    scf.if %44 {
      %45 = vector.broadcast %37 : i32 to vector<1024x1xi32>
      %46 = arith.cmpi sge, %28, %45 : vector<1024x1xi32>
      %47 = vector.broadcast %38 : i32 to vector<1024x1xi32>
      %48 = arith.cmpi slt, %28, %47 : vector<1024x1xi32>
      %49 = arith.andi %46, %48 : vector<1024x1xi1>
      %cst_24 = arith.constant 0.000000e+00 : f32
      %50 = vector.shape_cast %49 : vector<1024x1xi1> to vector<1024x1xi1>
      %51 = vector.broadcast %50 : vector<1024x1xi1> to vector<1024x128xi1>
      %52 = vector.broadcast %cst_24 : f32 to vector<1024x128xf32>
      %53 = arith.select %51, %22, %52 : vector<1024x128xi1>, vector<1024x128xf32>
      %cst_25 = arith.constant dense<0xFF800000> : vector<128xf32>
      %54 = vector.multi_reduction <maximumf>, %53, %cst_25 [0] : vector<1024x128xf32> to vector<128xf32>
      %55 = vector.shape_cast %54 : vector<128xf32> to vector<1x128xf32>
      %c0_26 = arith.constant 0 : index
      %c1_27 = arith.constant 1 : index
      %c0_28 = arith.constant 0 : index
      %56 = vector.load %arg10[%c0_26, %c1_27, %c0_28] : memref<1x8x128xf32, #tpu.memory_space<vmem>>, vector<1x1x128xf32>
      %57 = vector.shape_cast %56 : vector<1x1x128xf32> to vector<1x128xf32>
      %58 = arith.maximumf %57, %55 : vector<1x128xf32>
      %c0_29 = arith.constant 0 : index
      %c1_30 = arith.constant 1 : index
      %c0_31 = arith.constant 0 : index
      %59 = vector.load %arg10[%c0_29, %c1_30, %c0_31] : memref<1x8x128xf32, #tpu.memory_space<vmem>>, vector<1x1x128xf32>
      %60 = vector.shape_cast %59 : vector<1x1x128xf32> to vector<1x128xf32>
      %61 = vector.shape_cast %58 : vector<1x128xf32> to vector<1x1x128xf32>
      tpu.vector_store %arg10[%c0_29, %c1_30, %c0_31], %61 {strides = array<i32>} : memref<1x8x128xf32, #tpu.memory_space<vmem>>, vector<1x1x128xf32>,
    } else {
    }
    return
  }
  func.func @transform_0(%arg0: i32, %arg1: i32, %arg2: memref<3xi32, #tpu.memory_space<smem>>) -> (i32, i32) {
    %c5_i32 = arith.constant 5 : i32
    %0 = arith.muli %arg0, %c5_i32 : i32
    %1 = arith.addi %0, %arg1 : i32
    %c0_i32 = arith.constant 0 : i32
    %c0_i32_0 = arith.constant 0 : i32
    return %1, %c0_i32 : i32, i32
  }
  func.func @transform_1(%arg0: i32, %arg1: i32, %arg2: memref<3xi32, #tpu.memory_space<smem>>) -> (i32, i32) {
    %c5_i32 = arith.constant 5 : i32
    %0 = arith.muli %arg0, %c5_i32 : i32
    %1 = arith.addi %0, %arg1 : i32
    %c0_i32 = arith.constant 0 : i32
    %c0_i32_0 = arith.constant 0 : i32
    return %1, %c0_i32 : i32, i32
  }
  func.func @transform_2(%arg0: i32, %arg1: i32, %arg2: memref<3xi32, #tpu.memory_space<smem>>) -> (i32, i32) {
    %c0_i32 = arith.constant 0 : i32
    %c0_i32_0 = arith.constant 0 : i32
    %c0_i32_1 = arith.constant 0 : i32
    return %c0_i32, %c0_i32_0 : i32, i32
  }
  func.func @transform_3(%arg0: i32, %arg1: i32, %arg2: memref<3xi32, #tpu.memory_space<smem>>) -> (i32, i32) {
    %c0_i32 = arith.constant 0 : i32
    %c0_i32_0 = arith.constant 0 : i32
    %c0_i32_1 = arith.constant 0 : i32
    return %c0_i32, %c0_i32_0 : i32, i32
  }
  func.func @transform_4(%arg0: i32, %arg1: i32, %arg2: memref<3xi32, #tpu.memory_space<smem>>) -> (i32, i32) {
    %c0_i32 = arith.constant 0 : i32
    %c0_i32_0 = arith.constant 0 : i32
    %c0_i32_1 = arith.constant 0 : i32
    return %c0_i32, %c0_i32_0 : i32, i32
  }
  func.func @transform_5(%arg0: i32, %arg1: i32, %arg2: memref<3xi32, #tpu.memory_space<smem>>) -> (i32, i32) {
    %c0_i32 = arith.constant 0 : i32
    %c0_i32_0 = arith.constant 0 : i32
    %c0_i32_1 = arith.constant 0 : i32
    return %c0_i32, %c0_i32_0 : i32, i32
  }
  func.func @transform_6(%arg0: i32, %arg1: i32, %arg2: memref<3xi32, #tpu.memory_space<smem>>) -> (i32, i32) {
    %c0_i32 = arith.constant 0 : i32
    %c0_i32_0 = arith.constant 0 : i32
    %c0_i32_1 = arith.constant 0 : i32
    return %c0_i32, %c0_i32_0 : i32, i32
  }
  func.func @transform_7(%arg0: i32, %arg1: i32, %arg2: memref<3xi32, #tpu.memory_space<smem>>) -> (i32, i32, i32) {
    %c0_i32 = arith.constant 0 : i32
    %c0_i32_0 = arith.constant 0 : i32
    %c0_i32_1 = arith.constant 0 : i32
    return %arg0, %c0_i32, %c0_i32_0 : i32, i32, i32
  }
}

</mosaic_0001>

<bundles_post_ra>
// kernel: tpu_custom_call.1
= control target key start
LH: loop header
LB: loop body
LE: loop exit
PB: predicated region body
PF: predicated region fallthrough
CT: control target
= control target key end

     0   :  { %s13862_s0 = inlined_call_operand.vmem [shape: s32[3], index: 0, kind: input, shape index: {}]   ;;  %s13863_s1 = inlined_call_operand.vmem [shape: f32[4500,4], index: 1, kind: input, shape index: {}]   ;;  %s13864_s2 = inlined_call_operand.vmem [shape: f32[4500,3], index: 2, kind: input, shape index: {}]   ;;  %s13865_s3 = inlined_call_operand.vmem [shape: f32[4,128], index: 3, kind: input, shape index: {}]   ;;  %s13866_s4 = inlined_call_operand.vmem [shape: f32[3,128], index: 4, kind: input, shape index: {}]   ;;  %s13867_s5 = inlined_call_operand.vmem [shape: f32[1,128], index: 5, kind: input, shape index: {}]   ;;  %s13868_s6 = inlined_call_operand.vmem [shape: bf16[128,128], index: 6, kind: input, shape index: {}]   ;;  %s13869_s7 = inlined_call_operand.vmem [shape: f32[1,128], index: 7, kind: input, shape index: {}]   ;;  %s13870_s8 = inlined_call_operand.hbm [shape: f32[1,8,128], index: 8, kind: output, shape index: {}]  }
   0x1   :  { %s13_s29 = sshll.u32 %s13862_s0, 4  ;;  %s14_s29 = int_to_ptr.vmem [resolvable:$true] %s13_s29 }
   0x2   :  { %s7257_s30 = scalar_lea.vmem %s14_s29, 16  ;;  %p7262_p1 = scmp.lt.s32.totalorder %s14_s29, %s14_s29 }
   0x3   :  { %p7258_p0 = scmp.ne.s32.totalorder %s14_s29, %s7257_s30  ;;  %p7263_p2 = scmp.lt.s32.totalorder %s7257_s30, %s7257_s30 }
   0x5   :  { %p7264_p3 = por %p7263_p2, %p7262_p1 }
   0x7   :  { %p7265_p4 = pnand %p7264_p3, %p7258_p0 }
   0x9   :  { %7268 = shalt.err (!%p7265_p4)  }
   0xa   :  { %s7323_s9 = smov [#allocation3]  }
   0xb   :  { %16 = dma.vmem_to_smem %s14_s29, 16, %s7323_s9, [#allocation2] }
   0xc   :  { %7305 = dma.done.wait [#allocation2], 16 }
   0xd   :  { %7306 = vsyncadd [#allocation2], 4294967280 }
   0xe   :  { %18 = sfence }
   0xf   :  { %19 = vsyncpa [#allocation5], 0  ;;  %s7374_s10 = smov 0   ;;  %s7376_s11 = smov 0  }
  0x10   :  { %s7378_s12 = smov 0  }
  0x11 LB: > { %s6065_s0 = sadd.s32 4294967295, %s7321_s12   ;;  %s34_s13 = sadd.s32 1, %s7317_s11  ;;  %s7321_s12 = sphi %s7378_s12, %s25_s12   ;;  %s7317_s11 = sphi %s7376_s11, %s16591_s11   ;;  %s7313_s10 = sphi %s7374_s10, %s16590_s10  }
  0x12   : > { %p35_p5 = scmp.ge.s32.totalorder %s34_s13, 5  ;;  %p6068_p6 = scmp.ge.s32.totalorder %s7321_s12, 1 }
  0x13   : > { %p301_p7 = scmp.lt.s32.totalorder %s7321_s12, 6 }
  0x14   : > { %s16593_s13 = smov (%p35_p5, %s34_s13), 0 }
  0x15   : > { %p302_p8 = pnand %p6068_p6, %p301_p7 }
  0x17   : > { %305 = sbr.rel (%p302_p8) target bundleno = 1539 (0x603), region = 48 }
  0x1c   : > { %s6069_s14 = sshll.u32 %s7313_s10, 7  ;;  %p6073_p10 = scmp.ne.s32.totalorder %s7313_s10, 0 }
  0x1d   : > { %p352_p9 = scmp.lt.s32.totalorder %s6069_s14, 562 }
  0x1e   : > { %385 = sbr.rel (%p6073_p10) target bundleno = 37 (0x25), region = 52 }
  0x1f   : > { %s16595_s14 = smov (!%p352_p9, %s6069_s14), 562 }
  0x20   : > { %s6070_s15 = sshll.u32 %s16595_s14, 3 }
  0x21   : > { %s7399_s18 = scalar_lea.vmem %s13863_s1, %s6070_s15  ;;  %s7404_s21 = scalar_lea.vmem %s13864_s2, %s6070_s15 }
  0x23   : > { %v7324_v0 = vmov 0.0  }
  0x24   : > { %386 = vst [vmem:[#allocation4] sm:$0xff] %v7324_v0 }
  0x25 PF: > { %v644_v1 = vld [vmem:[%s13866_s4] sm:$0x7]  ;;  %vm1030_vm0 = vcmask 1042432   ;;  %vm645_vm1 = vcmask 23552   ;;  %v581_v3 = vld [vmem:[%s7404_s21 + $0x208] sm:$0xff]  ;;  %vm2124_vm2 = vcmask 1043456  }
  0x26   : > { %v580_v2 = vld [vmem:[%s7404_s21 + $0x200] sm:$0xff]  ;;  %7212 = vmatprep.subr.msk.mxu1 %vm1030_vm0, %v644_v1  ;;  %v582_v5 = vld [vmem:[%s7404_s21 + $0x210] sm:$0xff]  ;;  %6680 = vmatprep.subr.msk.mxu0 %vm1030_vm0, %v644_v1  ;;  %v583_v6 = vld [vmem:[%s7404_s21 + $0x218] sm:$0xff]  ;;  %vm1739_vm3 = vcmask 31744   ;;  %s8690_s30 = sld [smem:[#allocation3]]  ;;  %s8703_s14 = sshll.u32 %s7313_s10, 10 }
  0x27   : > { %6778 = vmatprep.mubr.msk.f32.mxu1 %vm645_vm1, %v580_v2  ;;  %v515_v4 = vld [vmem:[%s13865_s3] sm:$0xf]  ;;  %7213 = vmatpush3.msk.msra.mxu1 %vm1030_vm0, %v644_v1  ;;  %v585_v8 = vld [vmem:[%s7404_s21 + $0x228] sm:$0xff]  ;;  %v586_v9 = vld [vmem:[%s7404_s21 + $0x230] sm:$0xff]  ;;  %s8692_s9 = sld [smem:[#allocation3 + $0x1]]  ;;  %s4167_s15 = sadd.s32 1024, %s8703_s14 }
  0x28   : > { %6779 = vmatmul.mubr.msk.f32.vlgmr.msra.gmra.mxu1 %vm645_vm1, %v581_v3  ;;  %6874 = vmatprep.subr.msk.mxu1 %vm2124_vm2, %v515_v4  ;;  %v584_v7 = vld [vmem:[%s7404_s21 + $0x220] sm:$0xff]  ;;  %v587_v10 = vld [vmem:[%s7404_s21 + $0x238] sm:$0xff]  ;;  %v589_v12 = vld [vmem:[%s7404_s21 + $0x248] sm:$0xff] }
  0x29   : > { %6875 = vmatpush3.msk.msra.mxu1 %vm2124_vm2, %v515_v4  ;;  %6781 = vmatprep.mubr.msk.f32.mxu1 %vm645_vm1, %v582_v5  ;;  %v588_v11 = vld [vmem:[%s7404_s21 + $0x240] sm:$0xff]  ;;  %v590_v13 = vld [vmem:[%s7404_s21 + $0x250] sm:$0xff]  ;;  %v591_v14 = vld [vmem:[%s7404_s21 + $0x258] sm:$0xff] }
  0x2a   : > { %6681 = vmatpush3.msk.msra.mxu0 %vm1030_vm0, %v644_v1  ;;  %v592_v15 = vld [vmem:[%s7404_s21 + $0x260] sm:$0xff]  ;;  %v517_v17 = vld [vmem:[%s7404_s21 + $0x8] sm:$0xff]  ;;  %v518_v18 = vld [vmem:[%s7404_s21 + $0x10] sm:$0xff] }
  0x2b   : > { %v516_v16 = vld [vmem:[%s7404_s21] sm:$0xff]  ;;  %v593_v19 = vld [vmem:[%s7404_s21 + $0x268] sm:$0xff]  ;;  %v594_v20 = vld [vmem:[%s7404_s21 + $0x270] sm:$0xff] }
  0x2c   : > { %6782 = vmatmul.mubr.msk.f32.gmra.mxu1 %vm645_vm1, %v583_v6  ;;  %6682 = vmatprep.mubr.msk.f32.mxu0 %vm645_vm1, %v516_v16  ;;  %v519_v21 = vld [vmem:[%s7404_s21 + $0x18] sm:$0xff]  ;;  %v520_v22 = vld [vmem:[%s7404_s21 + $0x20] sm:$0xff]  ;;  %v521_v25 = vld [vmem:[%s7404_s21 + $0x28] sm:$0xff]  ;;  %p8721_p11 = scmp.lt.s32.totalorder %s8690_s30, %s4167_s15 }
  0x2d   : > { %6784 = vmatprep.mubr.msk.f32.mxu1 %vm645_vm1, %v584_v7  ;;  %6683 = vmatmul.mubr.msk.f32.vlgmr.msra.gmra.mxu0 %vm645_vm1, %v517_v17  ;;  %v595_v23 = vld [vmem:[%s7404_s21 + $0x278] sm:$0xff]  ;;  %v596_v24 = vld [vmem:[%s7404_s21 + $0x280] sm:$0xff]  ;;  %v522_v26 = vld [vmem:[%s7404_s21 + $0x30] sm:$0xff]  ;;  %p4169_p12 = scmp.gt.s32.totalorder %s8692_s9, %s8703_s14 }
  0x2e   : > { %6685 = vmatprep.mubr.msk.f32.mxu0 %vm645_vm1, %v518_v18  ;;  %v597_v27 = vld [vmem:[%s7404_s21 + $0x288] sm:$0xff]  ;;  %v598_v28 = vld [vmem:[%s7404_s21 + $0x290] sm:$0xff]  ;;  %v523_v29 = vld [vmem:[%s7404_s21 + $0x38] sm:$0xff] }
  0x2f   : > { %v524_v30 = vld [vmem:[%s7404_s21 + $0x40] sm:$0xff]  ;;  %v599_v31 = vld [vmem:[%s7404_s21 + $0x298] sm:$0xff]  ;;  %v525_v33 = vld [vmem:[%s7404_s21 + $0x48] sm:$0xff]  ;;  %p8763_p13 = pnand %p4169_p12, %p8721_p11 }
  0x30   : > { %6785 = vmatmul.mubr.msk.f32.gmra.mxu1 %vm645_vm1, %v585_v8  ;;  %v600_v32 = vld [vmem:[%s7404_s21 + $0x2a0] sm:$0xff]  ;;  %v526_v34 = vld [vmem:[%s7404_s21 + $0x50] sm:$0xff]  ;;  %v601_v35 = vld [vmem:[%s7404_s21 + $0x2a8] sm:$0xff] }
  0x31   : > { %6787 = vmatprep.mubr.msk.f32.mxu1 %vm645_vm1, %v586_v9  ;;  %6686 = vmatmul.mubr.msk.f32.gmra.mxu0 %vm645_vm1, %v519_v21  ;;  %v602_v36 = vld [vmem:[%s7404_s21 + $0x2b0] sm:$0xff]  ;;  %v527_v37 = vld [vmem:[%s7404_s21 + $0x58] sm:$0xff]  ;;  %v528_v38 = vld [vmem:[%s7404_s21 + $0x60] sm:$0xff] }
  0x32   : > { %6688 = vmatprep.mubr.msk.f32.mxu0 %vm645_vm1, %v520_v22  ;;  %v603_v39 = vld [vmem:[%s7404_s21 + $0x2b8] sm:$0xff]  ;;  %v604_v40 = vld [vmem:[%s7404_s21 + $0x2c0] sm:$0xff]  ;;  %v529_v41 = vld [vmem:[%s7404_s21 + $0x68] sm:$0xff] }
  0x33   : > { %v530_v42 = vld [vmem:[%s7404_s21 + $0x70] sm:$0xff]  ;;  %v605_v43 = vld [vmem:[%s7404_s21 + $0x2c8] sm:$0xff]  ;;  %v531_v45 = vld [vmem:[%s7404_s21 + $0x78] sm:$0xff] }
  0x34   : > { %6788 = vmatmul.mubr.msk.f32.gmra.mxu1 %vm645_vm1, %v587_v10  ;;  %v606_v44 = vld [vmem:[%s7404_s21 + $0x2d0] sm:$0xff]  ;;  %v532_v46 = vld [vmem:[%s7404_s21 + $0x80] sm:$0xff]  ;;  %v607_v47 = vld [vmem:[%s7404_s21 + $0x2d8] sm:$0xff] }
  0x35   : > { %6790 = vmatprep.mubr.msk.f32.mxu1 %vm645_vm1, %v588_v11  ;;  %6689 = vmatmul.mubr.msk.f32.gmra.mxu0 %vm645_vm1, %v521_v25  ;;  %v608_v48 = vld [vmem:[%s7404_s21 + $0x2e0] sm:$0xff]  ;;  %v533_v49 = vld [vmem:[%s7404_s21 + $0x88] sm:$0xff]  ;;  %v534_v50 = vld [vmem:[%s7404_s21 + $0x90] sm:$0xff] }
  0x36   : > { %6691 = vmatprep.mubr.msk.f32.mxu0 %vm645_vm1, %v522_v26  ;;  %v609_v51 = vld [vmem:[%s7404_s21 + $0x2e8] sm:$0xff]  ;;  %v610_v52 = vld [vmem:[%s7404_s21 + $0x2f0] sm:$0xff]  ;;  %v535_v53 = vld [vmem:[%s7404_s21 + $0x98] sm:$0xff] }
  0x37   : > { %v536_v54 = vld [vmem:[%s7404_s21 + $0xa0] sm:$0xff]  ;;  %v611_v55 = vld [vmem:[%s7404_s21 + $0x2f8] sm:$0xff]  ;;  %v537_v57 = vld [vmem:[%s7404_s21 + $0xa8] sm:$0xff] }
  0x38   : > { %6791 = vmatmul.mubr.msk.f32.gmra.mxu1 %vm645_vm1, %v589_v12  ;;  %v612_v56 = vld [vmem:[%s7404_s21 + $0x300] sm:$0xff]  ;;  %v538_v58 = vld [vmem:[%s7404_s21 + $0xb0] sm:$0xff]  ;;  %v613_v59 = vld [vmem:[%s7404_s21 + $0x308] sm:$0xff] }
  0x39   : > { %6793 = vmatprep.mubr.msk.f32.mxu1 %vm645_vm1, %v590_v13  ;;  %6692 = vmatmul.mubr.msk.f32.gmra.mxu0 %vm645_vm1, %v523_v29  ;;  %v614_v60 = vld [vmem:[%s7404_s21 + $0x310] sm:$0xff]  ;;  %v539_v61 = vld [vmem:[%s7404_s21 + $0xb8] sm:$0xff]  ;;  %v540_v62 = vld [vmem:[%s7404_s21 + $0xc0] sm:$0xff] }
  0x3a   : > { %6694 = vmatprep.mubr.msk.f32.mxu0 %vm645_vm1, %v524_v30  ;;  %v615_v63 = vld [vmem:[%s7404_s21 + $0x318] sm:$0xff]  ;;  %v616_v0 = vld [vmem:[%s7404_s21 + $0x320] sm:$0xff]  ;;  %v541_v1 = vld [vmem:[%s7404_s21 + $0xc8] sm:$0xff] }
  0x3b   : > { %v542_v2 = vld [vmem:[%s7404_s21 + $0xd0] sm:$0xff]  ;;  %v617_v3 = vld [vmem:[%s7404_s21 + $0x328] sm:$0xff]  ;;  %v543_v5 = vld [vmem:[%s7404_s21 + $0xd8] sm:$0xff] }
  0x3c   : > { %6794 = vmatmul.mubr.msk.f32.gmra.mxu1 %vm645_vm1, %v591_v14  ;;  %v618_v4 = vld [vmem:[%s7404_s21 + $0x330] sm:$0xff]  ;;  %v544_v6 = vld [vmem:[%s7404_s21 + $0xe0] sm:$0xff]  ;;  %v619_v7 = vld [vmem:[%s7404_s21 + $0x338] sm:$0xff] }
  0x3d   : > { %6796 = vmatprep.mubr.msk.f32.mxu1 %vm645_vm1, %v592_v15  ;;  %6695 = vmatmul.mubr.msk.f32.gmra.mxu0 %vm645_vm1, %v525_v33  ;;  %v620_v8 = vld [vmem:[%s7404_s21 + $0x340] sm:$0xff]  ;;  %v545_v9 = vld [vmem:[%s7404_s21 + $0xe8] sm:$0xff]  ;;  %v546_v10 = vld [vmem:[%s7404_s21 + $0xf0] sm:$0xff] }
  0x3e   : > { %6697 = vmatprep.mubr.msk.f32.mxu0 %vm645_vm1, %v526_v34  ;;  %v621_v11 = vld [vmem:[%s7404_s21 + $0x348] sm:$0xff]  ;;  %v622_v12 = vld [vmem:[%s7404_s21 + $0x350] sm:$0xff]  ;;  %v547_v13 = vld [vmem:[%s7404_s21 + $0xf8] sm:$0xff] }
  0x3f   : > { %v7247_v14 = vld [vmem:[%s13868_s6 + $0x38] sm:$0xff]   ;;  %v548_v15 = vld [vmem:[%s7404_s21 + $0x100] sm:$0xff]  ;;  %v549_v18 = vld [vmem:[%s7404_s21 + $0x108] sm:$0xff] }
  0x40   : > { %6797 = vmatmul.mubr.msk.f32.gmra.mxu1 %vm645_vm1, %v593_v19  ;;  %7068 = vmatprep.subr.bf16.mxu0 %v7247_v14  ;;  %v623_v16 = vld [vmem:[%s7404_s21 + $0x358] sm:$0xff]  ;;  %v624_v17 = vld [vmem:[%s7404_s21 + $0x360] sm:$0xff]  ;;  %v550_v19 = vld [vmem:[%s7404_s21 + $0x110] sm:$0xff] }
  0x41   : > { %6799 = vmatprep.mubr.msk.f32.mxu1 %vm645_vm1, %v594_v20  ;;  %6698 = vmatmul.mubr.msk.f32.gmra.mxu0 %vm645_vm1, %v527_v37  ;;  %v625_v20 = vld [vmem:[%s7404_s21 + $0x368] sm:$0xff]  ;;  %v626_v21 = vld [vmem:[%s7404_s21 + $0x370] sm:$0xff]  ;;  %v551_v22 = vld [vmem:[%s7404_s21 + $0x118] sm:$0xff] }
  0x42   : > { %6700 = vmatprep.mubr.msk.f32.mxu0 %vm645_vm1, %v528_v38  ;;  %7069 = vmatpush3.bf16.msra.mxu0 %v7247_v14  ;;  %v628_v25 = vld [vmem:[%s7404_s21 + $0x380] sm:$0xff]  ;;  %v553_v26 = vld [vmem:[%s7404_s21 + $0x128] sm:$0xff]  ;;  %v630_v29 = vld [vmem:[%s7404_s21 + $0x390] sm:$0xff] }
  0x43   : > { %v555_v30 = vld [vmem:[%s7404_s21 + $0x138] sm:$0xff]  ;;  %v632_v34 = vld [vmem:[%s7404_s21 + $0x3a0] sm:$0xff]  ;;  %v633_v37 = vld [vmem:[%s7404_s21 + $0x3a8] sm:$0xff] }
  0x44   : > { %6800 = vmatmul.mubr.msk.f32.gmra.mxu1 %vm645_vm1, %v595_v23  ;;  %v552_v23 = vld [vmem:[%s7404_s21 + $0x120] sm:$0xff]  ;;  %v631_v33 = vld [vmem:[%s7404_s21 + $0x398] sm:$0xff]  ;;  %v634_v38 = vld [vmem:[%s7404_s21 + $0x3b0] sm:$0xff] }
  0x45   : > { %6802 = vmatprep.mubr.msk.f32.mxu1 %vm645_vm1, %v596_v24  ;;  %6701 = vmatmul.mubr.msk.f32.gmra.mxu0 %vm645_vm1, %v529_v41  ;;  %v627_v24 = vld [vmem:[%s7404_s21 + $0x378] sm:$0xff]  ;;  %v578_v14 = vld [vmem:[%s7404_s21 + $0x1f0] sm:$0xff] }
  0x46   : > { %6703 = vmatprep.mubr.msk.f32.mxu0 %vm645_vm1, %v530_v42  ;;  %v635_v41 = vld [vmem:[%s7404_s21 + $0x3b8] sm:$0xff]  ;;  %v636_v42 = vld [vmem:[%s7404_s21 + $0x3c0] sm:$0xff] }
  0x48   : > { %6803 = vmatmul.mubr.msk.f32.gmra.mxu1 %vm645_vm1, %v597_v27  ;;  %v554_v27 = vld [vmem:[%s7404_s21 + $0x130] sm:$0xff] }
  0x49   : > { %6805 = vmatprep.mubr.msk.f32.mxu1 %vm645_vm1, %v598_v28  ;;  %6704 = vmatmul.mubr.msk.f32.gmra.mxu0 %vm645_vm1, %v531_v45  ;;  %v629_v28 = vld [vmem:[%s7404_s21 + $0x388] sm:$0xff] }
  0x4a   : > { %6706 = vmatprep.mubr.msk.f32.mxu0 %vm645_vm1, %v532_v46  ;;  %v637_v45 = vld [vmem:[%s7404_s21 + $0x3c8] sm:$0xff]  ;;  %v638_v46 = vld [vmem:[%s7404_s21 + $0x3d0] sm:$0xff] }
  0x4c   : > { %6806 = vmatmul.mubr.msk.f32.gmra.mxu1 %vm645_vm1, %v599_v31  ;;  %v7248_v31 = vld [vmem:[%s13868_s6 + $0x30] sm:$0xff]  }
  0x4d   : > { %6808 = vmatprep.mubr.msk.f32.mxu1 %vm645_vm1, %v600_v32  ;;  %6707 = vmatmul.mubr.msk.f32.gmra.mxu0 %vm645_vm1, %v533_v49  ;;  %v556_v32 = vld [vmem:[%s7404_s21 + $0x140] sm:$0xff] }
  0x4e   : > { %6709 = vmatprep.mubr.msk.f32.mxu0 %vm645_vm1, %v534_v50  ;;  %7070 = vmatprep.subr.bf16.mxu0 %v7248_v31  ;;  %v564_v49 = vld [vmem:[%s7404_s21 + $0x180] sm:$0xff]  ;;  %v639_v50 = vld [vmem:[%s7404_s21 + $0x3d8] sm:$0xff] }
  0x4f   : > { %7071 = vmatpush3.bf16.msra.mxu0 %v7248_v31  ;;  %v409_v31 = vld [vmem:[%s7399_s18 + $0xb0] sm:$0xff] }
  0x50   : > { %6809 = vmatmul.mubr.msk.f32.gmra.mxu1 %vm645_vm1, %v601_v35  ;;  %v557_v35 = vld [vmem:[%s7404_s21 + $0x148] sm:$0xff] }
  0x51   : > { %6811 = vmatprep.mubr.msk.f32.mxu1 %vm645_vm1, %v602_v36  ;;  %6710 = vmatmul.mubr.msk.f32.gmra.mxu0 %vm645_vm1, %v535_v53  ;;  %v558_v36 = vld [vmem:[%s7404_s21 + $0x150] sm:$0xff] }
  0x52   : > { %6712 = vmatprep.mubr.msk.f32.mxu0 %vm645_vm1, %v536_v54  ;;  %v566_v53 = vld [vmem:[%s7404_s21 + $0x190] sm:$0xff]  ;;  %v641_v54 = vld [vmem:[%s7404_s21 + $0x3e8] sm:$0xff] }
  0x54   : > { %6812 = vmatmul.mubr.msk.f32.gmra.mxu1 %vm645_vm1, %v603_v39  ;;  %v559_v39 = vld [vmem:[%s7404_s21 + $0x158] sm:$0xff] }
  0x55   : > { %6814 = vmatprep.mubr.msk.f32.mxu1 %vm645_vm1, %v604_v40  ;;  %6713 = vmatmul.mubr.msk.f32.gmra.mxu0 %vm645_vm1, %v537_v57  ;;  %v560_v40 = vld [vmem:[%s7404_s21 + $0x160] sm:$0xff] }
  0x56   : > { %6715 = vmatprep.mubr.msk.f32.mxu0 %vm645_vm1, %v538_v58  ;;  %v568_v57 = vld [vmem:[%s7404_s21 + $0x1a0] sm:$0xff]  ;;  %v643_v58 = vld [vmem:[%s7404_s21 + $0x3f8] sm:$0xff] }
  0x58   : > { %6815 = vmatmul.mubr.msk.f32.gmra.mxu1 %vm645_vm1, %v605_v43  ;;  %v561_v43 = vld [vmem:[%s7404_s21 + $0x168] sm:$0xff] }
  0x59   : > { %6817 = vmatprep.mubr.msk.f32.mxu1 %vm645_vm1, %v606_v44  ;;  %6716 = vmatmul.mubr.msk.f32.gmra.mxu0 %vm645_vm1, %v539_v61  ;;  %v562_v44 = vld [vmem:[%s7404_s21 + $0x170] sm:$0xff] }
  0x5a   : > { %6718 = vmatprep.mubr.msk.f32.mxu0 %vm645_vm1, %v540_v62  ;;  %v570_v61 = vld [vmem:[%s7404_s21 + $0x1b0] sm:$0xff]  ;;  %v388_v62 = vld [vmem:[%s7399_s18 + $0x8] sm:$0xff] }
  0x5c   : > { %6818 = vmatmul.mubr.msk.f32.gmra.mxu1 %vm645_vm1, %v607_v47  ;;  %v563_v47 = vld [vmem:[%s7404_s21 + $0x178] sm:$0xff] }
  0x5d   : > { %6820 = vmatprep.mubr.msk.f32.mxu1 %vm645_vm1, %v608_v48  ;;  %6719 = vmatmul.mubr.msk.f32.gmra.mxu0 %vm645_vm1, %v541_v1  ;;  %v7249_v48 = vld [vmem:[%s13868_s6 + $0x28] sm:$0xff]   ;;  %v7250_v1 = vld [vmem:[%s13868_s6 + $0x20] sm:$0xff]  }
  0x5e   : > { %6721 = vmatprep.mubr.msk.f32.mxu0 %vm645_vm1, %v542_v2  ;;  %7072 = vmatprep.subr.bf16.mxu0 %v7249_v48  ;;  %v572_v2 = vld [vmem:[%s7404_s21 + $0x1c0] sm:$0xff] }
  0x5f   : > { %7073 = vmatpush3.bf16.msra.mxu0 %v7249_v48 }
  0x60   : > { %6821 = vmatmul.mubr.msk.f32.gmra.mxu1 %vm645_vm1, %v609_v51  ;;  %v640_v51 = vld [vmem:[%s7404_s21 + $0x3e0] sm:$0xff]  ;;  %7074 = vmatprep.subr.bf16.mxu0 %v7250_v1 }
  0x61   : > { %6823 = vmatprep.mubr.msk.f32.mxu1 %vm645_vm1, %v610_v52  ;;  %6722 = vmatmul.mubr.msk.f32.gmra.mxu0 %vm645_vm1, %v543_v5  ;;  %v565_v52 = vld [vmem:[%s7404_s21 + $0x188] sm:$0xff] }
  0x62   : > { %6724 = vmatprep.mubr.msk.f32.mxu0 %vm645_vm1, %v544_v6  ;;  %v573_v5 = vld [vmem:[%s7404_s21 + $0x1c8] sm:$0xff]  ;;  %v574_v6 = vld [vmem:[%s7404_s21 + $0x1d0] sm:$0xff] }
  0x63   : > { %7075 = vmatpush3.bf16.msra.mxu0 %v7250_v1  ;;  %v431_v1 = vld [vmem:[%s7399_s18 + $0x160] sm:$0xff] }
  0x64   : > { %6824 = vmatmul.mubr.msk.f32.gmra.mxu1 %vm645_vm1, %v611_v55  ;;  %v642_v55 = vld [vmem:[%s7404_s21 + $0x3f0] sm:$0xff] }
  0x65   : > { %6826 = vmatprep.mubr.msk.f32.mxu1 %vm645_vm1, %v612_v56  ;;  %6725 = vmatmul.mubr.msk.f32.gmra.mxu0 %vm645_vm1, %v545_v9  ;;  %v567_v56 = vld [vmem:[%s7404_s21 + $0x198] sm:$0xff] }
  0x66   : > { %6727 = vmatprep.mubr.msk.f32.mxu0 %vm645_vm1, %v546_v10  ;;  %v575_v9 = vld [vmem:[%s7404_s21 + $0x1d8] sm:$0xff]  ;;  %v576_v10 = vld [vmem:[%s7404_s21 + $0x1e0] sm:$0xff] }
  0x68   : > { %6827 = vmatmul.mubr.msk.f32.gmra.mxu1 %vm645_vm1, %v613_v59  ;;  %v387_v59 = vld [vmem:[%s7399_s18] sm:$0xff] }
  0x69   : > { %6829 = vmatprep.mubr.msk.f32.mxu1 %vm645_vm1, %v614_v60  ;;  %6728 = vmatmul.mubr.msk.f32.gmra.mxu0 %vm645_vm1, %v547_v13  ;;  %v569_v60 = vld [vmem:[%s7404_s21 + $0x1a8] sm:$0xff] }
  0x6a   : > { %6730 = vmatprep.mubr.msk.f32.mxu0 %vm645_vm1, %v548_v15  ;;  %v577_v13 = vld [vmem:[%s7404_s21 + $0x1e8] sm:$0xff] }
  0x6b   : > { %v396_v15 = vld [vmem:[%s7399_s18 + $0x48] sm:$0xff] }
  0x6c   : > { %6830 = vmatmul.mubr.msk.f32.gmra.mxu1 %vm645_vm1, %v615_v63  ;;  %v389_v63 = vld [vmem:[%s7399_s18 + $0x10] sm:$0xff] }
  0x6d   : > { %6832 = vmatprep.mubr.msk.f32.mxu1 %vm645_vm1, %v616_v0  ;;  %6731 = vmatmul.mubr.msk.f32.gmra.mxu0 %vm645_vm1, %v549_v18  ;;  %v571_v0 = vld [vmem:[%s7404_s21 + $0x1b8] sm:$0xff] }
  0x6e   : > { %6733 = vmatprep.mubr.msk.f32.mxu0 %vm645_vm1, %v550_v19  ;;  %v7251_v18 = vld [vmem:[%s13868_s6 + $0x18] sm:$0xff]  }
  0x6f   : > { %7076 = vmatprep.subr.bf16.mxu0 %v7251_v18  ;;  %v398_v19 = vld [vmem:[%s7399_s18 + $0x58] sm:$0xff] }
  0x70   : > { %6833 = vmatmul.mubr.msk.f32.gmra.mxu1 %vm645_vm1, %v617_v3  ;;  %v390_v3 = vld [vmem:[%s7399_s18 + $0x18] sm:$0xff]  ;;  %7077 = vmatpush3.bf16.msra.mxu0 %v7251_v18  ;;  %v437_v18 = vld [vmem:[%s7399_s18 + $0x190] sm:$0xff] }
  0x71   : > { %6835 = vmatprep.mubr.msk.f32.mxu1 %vm645_vm1, %v618_v4  ;;  %6734 = vmatmul.mubr.msk.f32.gmra.mxu0 %vm645_vm1, %v551_v22  ;;  %v391_v4 = vld [vmem:[%s7399_s18 + $0x20] sm:$0xff]  ;;  %v401_v22 = vld [vmem:[%s7399_s18 + $0x70] sm:$0xff] }
  0x72   : > { %6736 = vmatprep.mubr.msk.f32.mxu0 %vm645_vm1, %v552_v23  ;;  %v402_v23 = vld [vmem:[%s7399_s18 + $0x78] sm:$0xff] }
  0x74   : > { %6836 = vmatmul.mubr.msk.f32.gmra.mxu1 %vm645_vm1, %v619_v7  ;;  %v392_v7 = vld [vmem:[%s7399_s18 + $0x28] sm:$0xff] }
  0x75   : > { %6838 = vmatprep.mubr.msk.f32.mxu1 %vm645_vm1, %v620_v8  ;;  %6737 = vmatmul.mubr.msk.f32.gmra.mxu0 %vm645_vm1, %v553_v26  ;;  %v393_v8 = vld [vmem:[%s7399_s18 + $0x30] sm:$0xff] }
  0x76   : > { %6739 = vmatprep.mubr.msk.f32.mxu0 %vm645_vm1, %v554_v27  ;;  %v405_v26 = vld [vmem:[%s7399_s18 + $0x90] sm:$0xff] }
  0x77   : > { %v7252_v27 = vld [vmem:[%s13868_s6 + $0x10] sm:$0xff]  }
  0x78   : > { %6839 = vmatmul.mubr.msk.f32.gmra.mxu1 %vm645_vm1, %v621_v11  ;;  %v394_v11 = vld [vmem:[%s7399_s18 + $0x38] sm:$0xff]  ;;  %7078 = vmatprep.subr.bf16.mxu0 %v7252_v27 }
  0x79   : > { %6841 = vmatprep.mubr.msk.f32.mxu1 %vm645_vm1, %v622_v12  ;;  %6740 = vmatmul.mubr.msk.f32.gmra.mxu0 %vm645_vm1, %v555_v30  ;;  %v395_v12 = vld [vmem:[%s7399_s18 + $0x40] sm:$0xff]  ;;  %v408_v30 = vld [vmem:[%s7399_s18 + $0xa8] sm:$0xff] }
  0x7a   : > { %6742 = vmatprep.mubr.msk.f32.mxu0 %vm645_vm1, %v556_v32  ;;  %7079 = vmatpush3.bf16.msra.mxu0 %v7252_v27  ;;  %v410_v32 = vld [vmem:[%s7399_s18 + $0xb8] sm:$0xff]  ;;  %v440_v27 = vld [vmem:[%s7399_s18 + $0x1a8] sm:$0xff] }
  0x7c   : > { %6842 = vmatmul.mubr.msk.f32.gmra.mxu1 %vm645_vm1, %v623_v16  ;;  %v397_v16 = vld [vmem:[%s7399_s18 + $0x50] sm:$0xff] }
  0x7d   : > { %6844 = vmatprep.mubr.msk.f32.mxu1 %vm645_vm1, %v624_v17  ;;  %6743 = vmatmul.mubr.msk.f32.gmra.mxu0 %vm645_vm1, %v557_v35  ;;  %v579_v17 = vld [vmem:[%s7404_s21 + $0x1f8] sm:$0xff]  ;;  %v413_v35 = vld [vmem:[%s7399_s18 + $0xd0] sm:$0xff] }
  0x7e   : > { %6745 = vmatprep.mubr.msk.f32.mxu0 %vm645_vm1, %v558_v36  ;;  %v7253_v36 = vld [vmem:[%s13868_s6 + $0x8] sm:$0xff]  }
  0x7f   : > { %7080 = vmatprep.subr.bf16.mxu0 %v7253_v36 }
  0x80   : > { %6845 = vmatmul.mubr.msk.f32.gmra.mxu1 %vm645_vm1, %v625_v20  ;;  %v399_v20 = vld [vmem:[%s7399_s18 + $0x60] sm:$0xff]  ;;  %7081 = vmatpush3.bf16.msra.mxu0 %v7253_v36 }
  0x81   : > { %6847 = vmatprep.mubr.msk.f32.mxu1 %vm645_vm1, %v626_v21  ;;  %6746 = vmatmul.mubr.msk.f32.gmra.mxu0 %vm645_vm1, %v559_v39  ;;  %v400_v21 = vld [vmem:[%s7399_s18 + $0x68] sm:$0xff] }
  0x82   : > { %6748 = vmatprep.mubr.msk.f32.mxu0 %vm645_vm1, %v560_v40  ;;  %v416_v39 = vld [vmem:[%s7399_s18 + $0xe8] sm:$0xff]  ;;  %v417_v40 = vld [vmem:[%s7399_s18 + $0xf0] sm:$0xff] }
  0x84   : > { %6848 = vmatmul.mubr.msk.f32.gmra.mxu1 %vm645_vm1, %v627_v24  ;;  %v403_v24 = vld [vmem:[%s7399_s18 + $0x80] sm:$0xff] }
  0x85   : > { %6850 = vmatprep.mubr.msk.f32.mxu1 %vm645_vm1, %v628_v25  ;;  %6749 = vmatmul.mubr.msk.f32.gmra.mxu0 %vm645_vm1, %v561_v43  ;;  %v404_v25 = vld [vmem:[%s7399_s18 + $0x88] sm:$0xff] }
  0x86   : > { %6751 = vmatprep.mubr.msk.f32.mxu0 %vm645_vm1, %v562_v44  ;;  %v420_v43 = vld [vmem:[%s7399_s18 + $0x108] sm:$0xff]  ;;  %v421_v44 = vld [vmem:[%s7399_s18 + $0x110] sm:$0xff] }
  0x88   : > { %6851 = vmatmul.mubr.msk.f32.gmra.mxu1 %vm645_vm1, %v629_v28  ;;  %v406_v28 = vld [vmem:[%s7399_s18 + $0x98] sm:$0xff] }
  0x89   : > { %6853 = vmatprep.mubr.msk.f32.mxu1 %vm645_vm1, %v630_v29  ;;  %6752 = vmatmul.mubr.msk.f32.gmra.mxu0 %vm645_vm1, %v563_v47  ;;  %v407_v29 = vld [vmem:[%s7399_s18 + $0xa0] sm:$0xff]  ;;  %v422_v47 = vld [vmem:[%s7399_s18 + $0x118] sm:$0xff] }
  0x8a   : > { %6754 = vmatprep.mubr.msk.f32.mxu0 %vm645_vm1, %v564_v49  ;;  %v423_v49 = vld [vmem:[%s7399_s18 + $0x120] sm:$0xff] }
  0x8c   : > { %6854 = vmatmul.mubr.msk.f32.gmra.mxu1 %vm645_vm1, %v631_v33  ;;  %v411_v33 = vld [vmem:[%s7399_s18 + $0xc0] sm:$0xff] }
  0x8d   : > { %6856 = vmatprep.mubr.msk.f32.mxu1 %vm645_vm1, %v632_v34  ;;  %6755 = vmatmul.mubr.msk.f32.gmra.mxu0 %vm645_vm1, %v565_v52  ;;  %v412_v34 = vld [vmem:[%s7399_s18 + $0xc8] sm:$0xff] }
  0x8e   : > { %6757 = vmatprep.mubr.msk.f32.mxu0 %vm645_vm1, %v566_v53  ;;  %v425_v53 = vld [vmem:[%s7399_s18 + $0x130] sm:$0xff] }
  0x90   : > { %6857 = vmatmul.mubr.msk.f32.gmra.mxu1 %vm645_vm1, %v633_v37  ;;  %v414_v37 = vld [vmem:[%s7399_s18 + $0xd8] sm:$0xff] }
  0x91   : > { %6859 = vmatprep.mubr.msk.f32.mxu1 %vm645_vm1, %v634_v38  ;;  %6758 = vmatmul.mubr.msk.f32.gmra.mxu0 %vm645_vm1, %v567_v56  ;;  %v415_v38 = vld [vmem:[%s7399_s18 + $0xe0] sm:$0xff] }
  0x92   : > { %6760 = vmatprep.mubr.msk.f32.mxu0 %vm645_vm1, %v568_v57  ;;  %v427_v57 = vld [vmem:[%s7399_s18 + $0x140] sm:$0xff] }
  0x94   : > { %6860 = vmatmul.mubr.msk.f32.gmra.mxu1 %vm645_vm1, %v635_v41  ;;  %v418_v41 = vld [vmem:[%s7399_s18 + $0xf8] sm:$0xff] }
  0x95   : > { %6862 = vmatprep.mubr.msk.f32.mxu1 %vm645_vm1, %v636_v42  ;;  %6761 = vmatmul.mubr.msk.f32.gmra.mxu0 %vm645_vm1, %v569_v60  ;;  %v419_v42 = vld [vmem:[%s7399_s18 + $0x100] sm:$0xff] }
  0x96   : > { %6763 = vmatprep.mubr.msk.f32.mxu0 %vm645_vm1, %v570_v61  ;;  %v429_v61 = vld [vmem:[%s7399_s18 + $0x150] sm:$0xff] }
  0x98   : > { %6863 = vmatmul.mubr.msk.f32.gmra.mxu1 %vm645_vm1, %v637_v45  ;;  %v7254_v45 = vld [vmem:[%s13868_s6] sm:$0xff]  }
  0x99   : > { %6865 = vmatprep.mubr.msk.f32.mxu1 %vm645_vm1, %v638_v46  ;;  %6764 = vmatmul.mubr.msk.f32.gmra.mxu0 %vm645_vm1, %v571_v0 }
  0x9a   : > { %6766 = vmatprep.mubr.msk.f32.mxu0 %vm645_vm1, %v572_v2  ;;  %7082 = vmatprep.subr.bf16.mxu0 %v7254_v45 }
  0x9b   : > { %7083 = vmatpush3.bf16.msra.mxu0 %v7254_v45  ;;  %v447_v45 = vld [vmem:[%s7399_s18 + $0x1e0] sm:$0xff] }
  0x9c   : > { %6866 = vmatmul.mubr.msk.f32.gmra.mxu1 %vm645_vm1, %v639_v50 }
  0x9d   : > { %6868 = vmatprep.mubr.msk.f32.mxu1 %vm645_vm1, %v640_v51  ;;  %6767 = vmatmul.mubr.msk.f32.gmra.mxu0 %vm645_vm1, %v573_v5  ;;  %v424_v51 = vld [vmem:[%s7399_s18 + $0x128] sm:$0xff] }
  0x9e   : > { %6769 = vmatprep.mubr.msk.f32.mxu0 %vm645_vm1, %v574_v6  ;;  %v433_v6 = vld [vmem:[%s7399_s18 + $0x170] sm:$0xff] }
  0xa0   : > { %6869 = vmatmul.mubr.msk.f32.gmra.mxu1 %vm645_vm1, %v641_v54 }
  0xa1   : > { %6871 = vmatprep.mubr.msk.f32.mxu1 %vm645_vm1, %v642_v55  ;;  %6770 = vmatmul.mubr.msk.f32.gmra.mxu0 %vm645_vm1, %v575_v9  ;;  %v426_v55 = vld [vmem:[%s7399_s18 + $0x138] sm:$0xff] }
  0xa2   : > { %6772 = vmatprep.mubr.msk.f32.mxu0 %vm645_vm1, %v576_v10  ;;  %v434_v9 = vld [vmem:[%s7399_s18 + $0x178] sm:$0xff] }
  0xa4   : > { %6872 = vmatmul.mubr.msk.f32.gmra.mxu1 %vm645_vm1, %v643_v58 }
  0xa5   : > { %6876 = vmatprep.mubr.msk.f32.mxu1 %vm1739_vm3, %v387_v59  ;;  %6773 = vmatmul.mubr.msk.f32.gmra.mxu0 %vm645_vm1, %v577_v13  ;;  %v428_v59 = vld [vmem:[%s7399_s18 + $0x148] sm:$0xff] }
  0xa6   : > { %6775 = vmatprep.mubr.msk.f32.mxu0 %vm645_vm1, %v578_v14 }
  0xa8   : > { %6877 = vmatmul.mubr.msk.f32.vlgmr.msra.gmra.mxu1 %vm1739_vm3, %v388_v62 }
  0xa9   : > { %6879 = vmatprep.mubr.msk.f32.mxu1 %vm1739_vm3, %v389_v63  ;;  %6776 = vmatmul.mubr.msk.f32.gmra.mxu0 %vm645_vm1, %v579_v17  ;;  %v430_v63 = vld [vmem:[%s7399_s18 + $0x158] sm:$0xff] }
  0xac   : > { %6880 = vmatmul.mubr.msk.f32.gmra.mxu1 %vm1739_vm3, %v390_v3  ;;  %v432_v3 = vld [vmem:[%s7399_s18 + $0x168] sm:$0xff] }
  0xad   : > { %6882 = vmatprep.mubr.msk.f32.mxu1 %vm1739_vm3, %v391_v4 }
  0xb0   : > { %6883 = vmatmul.mubr.msk.f32.gmra.mxu1 %vm1739_vm3, %v392_v7 }
  0xb1   : > { %6885 = vmatprep.mubr.msk.f32.mxu1 %vm1739_vm3, %v393_v8 }
  0xb4   : > { %6886 = vmatmul.mubr.msk.f32.gmra.mxu1 %vm1739_vm3, %v394_v11 }
  0xb5   : > { %6888 = vmatprep.mubr.msk.f32.mxu1 %vm1739_vm3, %v395_v12  ;;  %v435_v12 = vld [vmem:[%s7399_s18 + $0x180] sm:$0xff] }
  0xb8   : > { %6889 = vmatmul.mubr.msk.f32.gmra.mxu1 %vm1739_vm3, %v396_v15  ;;  %v436_v15 = vld [vmem:[%s7399_s18 + $0x188] sm:$0xff] }
  0xb9   : > { %6891 = vmatprep.mubr.msk.f32.mxu1 %vm1739_vm3, %v397_v16 }
  0xbc   : > { %6892 = vmatmul.mubr.msk.f32.gmra.mxu1 %vm1739_vm3, %v398_v19 }
  0xbd   : > { %6894 = vmatprep.mubr.msk.f32.mxu1 %vm1739_vm3, %v399_v20 }
  0xc0   : > { %6895 = vmatmul.mubr.msk.f32.gmra.mxu1 %vm1739_vm3, %v400_v21  ;;  %v438_v21 = vld [vmem:[%s7399_s18 + $0x198] sm:$0xff] }
  0xc1   : > { %6897 = vmatprep.mubr.msk.f32.mxu1 %vm1739_vm3, %v401_v22 }
  0xc4   : > { %6898 = vmatmul.mubr.msk.f32.gmra.mxu1 %vm1739_vm3, %v402_v23 }
  0xc5   : > { %6900 = vmatprep.mubr.msk.f32.mxu1 %vm1739_vm3, %v403_v24  ;;  %v439_v24 = vld [vmem:[%s7399_s18 + $0x1a0] sm:$0xff] }
  0xc8   : > { %6901 = vmatmul.mubr.msk.f32.gmra.mxu1 %vm1739_vm3, %v404_v25 }
  0xc9   : > { %6903 = vmatprep.mubr.msk.f32.mxu1 %vm1739_vm3, %v405_v26 }
  0xcc   : > { %6904 = vmatmul.mubr.msk.f32.gmra.mxu1 %vm1739_vm3, %v406_v28 }
  0xcd   : > { %6906 = vmatprep.mubr.msk.f32.mxu1 %vm1739_vm3, %v407_v29 }
  0xd0   : > { %6907 = vmatmul.mubr.msk.f32.gmra.mxu1 %vm1739_vm3, %v408_v30  ;;  %v441_v30 = vld [vmem:[%s7399_s18 + $0x1b0] sm:$0xff] }
  0xd1   : > { %6909 = vmatprep.mubr.msk.f32.mxu1 %vm1739_vm3, %v409_v31 }
  0xd4   : > { %6910 = vmatmul.mubr.msk.f32.gmra.mxu1 %vm1739_vm3, %v410_v32 }
  0xd5   : > { %6912 = vmatprep.mubr.msk.f32.mxu1 %vm1739_vm3, %v411_v33  ;;  %v442_v33 = vld [vmem:[%s7399_s18 + $0x1b8] sm:$0xff] }
  0xd8   : > { %6913 = vmatmul.mubr.msk.f32.gmra.mxu1 %vm1739_vm3, %v412_v34 }
  0xd9   : > { %6915 = vmatprep.mubr.msk.f32.mxu1 %vm1739_vm3, %v413_v35  ;;  %v443_v35 = vld [vmem:[%s7399_s18 + $0x1c0] sm:$0xff] }
  0xdc   : > { %6916 = vmatmul.mubr.msk.f32.gmra.mxu1 %vm1739_vm3, %v414_v37 }
  0xdd   : > { %6918 = vmatprep.mubr.msk.f32.mxu1 %vm1739_vm3, %v415_v38  ;;  %v444_v38 = vld [vmem:[%s7399_s18 + $0x1c8] sm:$0xff] }
  0xe0   : > { %6919 = vmatmul.mubr.msk.f32.gmra.mxu1 %vm1739_vm3, %v416_v39 }
  0xe1   : > { %6921 = vmatprep.mubr.msk.f32.mxu1 %vm1739_vm3, %v417_v40  ;;  %v445_v40 = vld [vmem:[%s7399_s18 + $0x1d0] sm:$0xff] }
  0xe4   : > { %6922 = vmatmul.mubr.msk.f32.gmra.mxu1 %vm1739_vm3, %v418_v41 }
  0xe5   : > { %6924 = vmatprep.mubr.msk.f32.mxu1 %vm1739_vm3, %v419_v42 }
  0xe8   : > { %v7765_v46 = vpop.f32.mrf.mxu1  ;;  %6925 = vmatmul.mubr.msk.f32.gmra.mxu1 %vm1739_vm3, %v420_v43  ;;  %v446_v43 = vld [vmem:[%s7399_s18 + $0x1d8] sm:$0xff] }
  0xe9   : > { %6927 = vmatprep.mubr.msk.f32.mxu1 %vm1739_vm3, %v421_v44 }
  0xea   : > { %v7770_v48 = vpop.f32.mrf.mxu1 }
  0xec   : > { %v7773_v50 = vpop.f32.mrf.mxu1  ;;  %6928 = vmatmul.mubr.msk.f32.gmra.mxu1 %vm1739_vm3, %v422_v47 }
  0xed   : > { %6930 = vmatprep.mubr.msk.f32.mxu1 %vm1739_vm3, %v423_v49  ;;  %v7810_v4 = vpop.f32.mrf.mxu0 }
  0xee   : > { %v7778_v52 = vpop.f32.mrf.mxu1 }
  0xef   : > { %v7815_v7 = vpop.f32.mrf.mxu0 }
  0xf0   : > { %v7781_v54 = vpop.f32.mrf.mxu1  ;;  %6931 = vmatmul.mubr.msk.f32.gmra.mxu1 %vm1739_vm3, %v424_v51  ;;  %v448_v51 = vld [vmem:[%s7399_s18 + $0x1e8] sm:$0xff] }
  0xf1   : > { %6933 = vmatprep.mubr.msk.f32.mxu1 %vm1739_vm3, %v425_v53  ;;  %v7822_v10 = vpop.f32.mrf.mxu0 }
  0xf2   : > { %v7786_v56 = vpop.f32.mrf.mxu1 }
  0xf3   : > { %v7827_v13 = vpop.f32.mrf.mxu0 }
  0xf4   : > { %v7789_v58 = vpop.f32.mrf.mxu1  ;;  %6934 = vmatmul.mubr.msk.f32.gmra.mxu1 %vm1739_vm3, %v426_v55  ;;  %v449_v55 = vld [vmem:[%s7399_s18 + $0x1f0] sm:$0xff] }
  0xf5   : > { %6936 = vmatprep.mubr.msk.f32.mxu1 %vm1739_vm3, %v427_v57  ;;  %v7834_v16 = vpop.f32.mrf.mxu0 }
  0xf6   : > { %v7794_v60 = vpop.f32.mrf.mxu1 }
  0xf7   : > { %v7839_v19 = vpop.f32.mrf.mxu0 }
  0xf8   : > { %v7797_v62 = vpop.f32.mrf.mxu1  ;;  %6937 = vmatmul.mubr.msk.f32.gmra.mxu1 %vm1739_vm3, %v428_v59 }
  0xf9   : > { %6939 = vmatprep.mubr.msk.f32.mxu1 %vm1739_vm3, %v429_v61  ;;  %v7846_v22 = vpop.f32.mrf.mxu0  ;;  %v450_v61 = vld [vmem:[%s7399_s18 + $0x1f8] sm:$0xff] }
  0xfa   : > { %v7802_v0 = vpop.f32.mrf.mxu1 }
  0xfb   : > { %v7851_v25 = vpop.f32.mrf.mxu0 }
  0xfc   : > { %v7805_v2 = vpop.f32.mrf.mxu1  ;;  %6940 = vmatmul.mubr.msk.f32.gmra.mxu1 %vm1739_vm3, %v430_v63 }
  0xfd   : > { %6942 = vmatprep.mubr.msk.f32.mxu1 %vm1739_vm3, %v431_v1  ;;  %v7858_v28 = vpop.f32.mrf.mxu0  ;;  %v451_v1 = vld [vmem:[%s7399_s18 + $0x200] sm:$0xff] }
  0xfe   : > { %v7812_v5 = vpop.f32.mrf.mxu1 }
  0xff   : > { %v7863_v31 = vpop.f32.mrf.mxu0 }
 0x100   : > { %v7817_v8 = vpop.f32.mrf.mxu1  ;;  %6943 = vmatmul.mubr.msk.f32.gmra.mxu1 %vm1739_vm3, %v432_v3 }
 0x101   : > { %6945 = vmatprep.mubr.msk.f32.mxu1 %vm1739_vm3, %v433_v6  ;;  %v7873_v36 = vpop.f32.mrf.mxu0 }
 0x102   : > { %v7824_v11 = vpop.f32.mrf.mxu1 }
 0x103   : > { %v7883_v41 = vpop.f32.mrf.mxu0 }
 0x104   : > { %v7829_v14 = vpop.f32.mrf.mxu1  ;;  %6946 = vmatmul.mubr.msk.f32.gmra.mxu1 %vm1739_vm3, %v434_v9  ;;  %v452_v9 = vld [vmem:[%s7399_s18 + $0x208] sm:$0xff] }
 0x105   : > { %6948 = vmatprep.mubr.msk.f32.mxu1 %vm1739_vm3, %v435_v12  ;;  %v7893_v47 = vpop.f32.mrf.mxu0 }
 0x106   : > { %v7836_v17 = vpop.f32.mrf.mxu1 }
 0x107   : > { %14317 = vst [vmem:[#allocation8_spill] sm:$0xff] %v7836_v17  ;;  %v7903_v57 = vpop.f32.mrf.mxu0 }
 0x108   : > { %v7841_v20 = vpop.f32.mrf.mxu1  ;;  %6949 = vmatmul.mubr.msk.f32.gmra.mxu1 %vm1739_vm3, %v436_v15  ;;  %v453_v15 = vld [vmem:[%s7399_s18 + $0x210] sm:$0xff] }
 0x109   : > { %14318 = vst [vmem:[#allocation9_spill] sm:$0xff] %v7841_v20  ;;  %6951 = vmatprep.mubr.msk.f32.mxu1 %vm1739_vm3, %v437_v18  ;;  %v7913_v3 = vpop.f32.mrf.mxu0 }
 0x10a   : > { %v7848_v23 = vpop.f32.mrf.mxu1 }
 0x10b   : > { %14319 = vst [vmem:[#allocation10_spill] sm:$0xff] %v7848_v23  ;;  %v7923_v18 = vpop.f32.mrf.mxu0 }
 0x10c   : > { %v7853_v26 = vpop.f32.mrf.mxu1  ;;  %6952 = vmatmul.mubr.msk.f32.gmra.mxu1 %vm1739_vm3, %v438_v21 }
 0x10d   : > { %14320 = vst [vmem:[#allocation11_spill] sm:$0xff] %v7853_v26  ;;  %6954 = vmatprep.mubr.msk.f32.mxu1 %vm1739_vm3, %v439_v24  ;;  %v454_v24 = vld [vmem:[%s7399_s18 + $0x218] sm:$0xff] }
 0x10e   : > { %v7860_v29 = vpop.f32.mrf.mxu1 }
 0x10f   : > { %14321 = vst [vmem:[#allocation12_spill] sm:$0xff] %v7860_v29 }
 0x110   : > { %v7865_v32 = vpop.f32.mrf.mxu1  ;;  %6955 = vmatmul.mubr.msk.f32.gmra.mxu1 %vm1739_vm3, %v440_v27 }
 0x111   : > { %14322 = vst [vmem:[#allocation13_spill] sm:$0xff] %v7865_v32  ;;  %6957 = vmatprep.mubr.msk.f32.mxu1 %vm1739_vm3, %v441_v30  ;;  %v455_v30 = vld [vmem:[%s7399_s18 + $0x220] sm:$0xff] }
 0x112   : > { %v7870_v34 = vpop.f32.mrf.mxu1 }
 0x113   : > { %14323 = vst [vmem:[#allocation14_spill] sm:$0xff] %v7870_v34 }
 0x114   : > { %v7875_v37 = vpop.f32.mrf.mxu1  ;;  %6958 = vmatmul.mubr.msk.f32.gmra.mxu1 %vm1739_vm3, %v442_v33  ;;  %v7933_v33 = vpop.f32.mrf.mxu0 }
 0x115   : > { %14324 = vst [vmem:[#allocation15_spill] sm:$0xff] %v7875_v37  ;;  %6960 = vmatprep.mubr.msk.f32.mxu1 %vm1739_vm3, %v443_v35 }
 0x116   : > { %v7880_v39 = vpop.f32.mrf.mxu1 }
 0x117   : > { %14325 = vst [vmem:[#allocation16_spill] sm:$0xff] %v7880_v39 }
 0x118   : > { %v7885_v42 = vpop.f32.mrf.mxu1  ;;  %6961 = vmatmul.mubr.msk.f32.gmra.mxu1 %vm1739_vm3, %v444_v38  ;;  %v456_v38 = vld [vmem:[%s7399_s18 + $0x228] sm:$0xff] }
 0x119   : > { %14326 = vst [vmem:[#allocation17_spill] sm:$0xff] %v7885_v42  ;;  %6963 = vmatprep.mubr.msk.f32.mxu1 %vm1739_vm3, %v445_v40 }
 0x11a   : > { %v7890_v44 = vpop.f32.mrf.mxu1 }
 0x11b   : > { %14327 = vst [vmem:[#allocation18_spill] sm:$0xff] %v7890_v44 }
 0x11c   : > { %v7895_v49 = vpop.f32.mrf.mxu1  ;;  %6964 = vmatmul.mubr.msk.f32.gmra.mxu1 %vm1739_vm3, %v446_v43  ;;  %v457_v43 = vld [vmem:[%s7399_s18 + $0x230] sm:$0xff] }
 0x11d   : > { %14328 = vst [vmem:[#allocation19_spill] sm:$0xff] %v7895_v49  ;;  %6966 = vmatprep.mubr.msk.f32.mxu1 %vm1739_vm3, %v447_v45  ;;  %v7943_v45 = vpop.f32.mrf.mxu0 }
 0x11e   : > { %v7900_v53 = vpop.f32.mrf.mxu1 }
 0x11f   : > { %14329 = vst [vmem:[#allocation20_spill] sm:$0xff] %v7900_v53 }
 0x120   : > { %v7905_v59 = vpop.f32.mrf.mxu1  ;;  %6967 = vmatmul.mubr.msk.f32.gmra.mxu1 %vm1739_vm3, %v448_v51 }
 0x121   : > { %14330 = vst [vmem:[#allocation21_spill] sm:$0xff] %v7905_v59  ;;  %6969 = vmatprep.mubr.msk.f32.mxu1 %vm1739_vm3, %v449_v55  ;;  %v458_v55 = vld [vmem:[%s7399_s18 + $0x238] sm:$0xff] }
 0x122   : > { %v7910_v63 = vpop.f32.mrf.mxu1 }
 0x123   : > { %14331 = vst [vmem:[#allocation22_spill] sm:$0xff] %v7910_v63 }
 0x124   : > { %v7915_v6 = vpop.f32.mrf.mxu1  ;;  %6970 = vmatmul.mubr.msk.f32.gmra.mxu1 %vm1739_vm3, %v450_v61 }
 0x125   : > { %14332 = vst [vmem:[#allocation23_spill] sm:$0xff] %v7915_v6  ;;  %6972 = vmatprep.mubr.msk.f32.mxu1 %vm1739_vm3, %v451_v1  ;;  %v459_v1 = vld [vmem:[%s7399_s18 + $0x240] sm:$0xff] }
 0x126   : > { %v7920_v12 = vpop.f32.mrf.mxu1 }
 0x127   : > { %14333 = vst [vmem:[#allocation24_spill] sm:$0xff] %v7920_v12 }
 0x128   : > { %v7925_v21 = vpop.f32.mrf.mxu1  ;;  %6973 = vmatmul.mubr.msk.f32.gmra.mxu1 %vm1739_vm3, %v452_v9  ;;  %v7953_v9 = vpop.f32.mrf.mxu0 }
 0x129   : > { %14334 = vst [vmem:[#allocation25_spill] sm:$0xff] %v7925_v21  ;;  %6975 = vmatprep.mubr.msk.f32.mxu1 %vm1739_vm3, %v453_v15 }
 0x12a   : > { %v7930_v27 = vpop.f32.mrf.mxu1 }
 0x12b   : > { %14335 = vst [vmem:[#allocation26_spill] sm:$0xff] %v7930_v27 }
 0x12c   : > { %v7935_v35 = vpop.f32.mrf.mxu1  ;;  %6976 = vmatmul.mubr.msk.f32.gmra.mxu1 %vm1739_vm3, %v454_v24  ;;  %v460_v24 = vld [vmem:[%s7399_s18 + $0x248] sm:$0xff] }
 0x12d   : > { %14336 = vst [vmem:[#allocation27_spill] sm:$0xff] %v7935_v35  ;;  %6978 = vmatprep.mubr.msk.f32.mxu1 %vm1739_vm3, %v455_v30 }
 0x12e   : > { %v7940_v40 = vpop.f32.mrf.mxu1 }
 0x12f   : > { %14337 = vst [vmem:[#allocation28_spill] sm:$0xff] %v7940_v40 }
 0x130   : > { %v7945_v51 = vpop.f32.mrf.mxu1  ;;  %6979 = vmatmul.mubr.msk.f32.gmra.mxu1 %vm1739_vm3, %v456_v38  ;;  %v461_v38 = vld [vmem:[%s7399_s18 + $0x250] sm:$0xff] }
 0x131   : > { %14338 = vst [vmem:[#allocation29_spill] sm:$0xff] %v7945_v51  ;;  %6981 = vmatprep.mubr.msk.f32.mxu1 %vm1739_vm3, %v457_v43  ;;  %v7963_v43 = vpop.f32.mrf.mxu0 }
 0x132   : > { %v7950_v61 = vpop.f32.mrf.mxu1 }
 0x133   : > { %14339 = vst [vmem:[#allocation30_spill] sm:$0xff] %v7950_v61  ;;  %v463_v61 = vld [vmem:[%s7399_s18 + $0x260] sm:$0xff] }
 0x134   : > { %v7955_v15 = vpop.f32.mrf.mxu1  ;;  %6982 = vmatmul.mubr.msk.f32.gmra.mxu1 %vm1739_vm3, %v458_v55 }
 0x135   : > { %14340 = vst [vmem:[#allocation31_spill] sm:$0xff] %v7955_v15  ;;  %6984 = vmatprep.mubr.msk.f32.mxu1 %vm1739_vm3, %v459_v1  ;;  %v462_v15 = vld [vmem:[%s7399_s18 + $0x258] sm:$0xff]  ;;  %v7973_v1 = vpop.f32.mrf.mxu0 }
 0x136   : > { %v7960_v30 = vpop.f32.mrf.mxu1 }
 0x137   : > { %14341 = vst [vmem:[#allocation32_spill] sm:$0xff] %v7960_v30  ;;  %v465_v30 = vld [vmem:[%s7399_s18 + $0x270] sm:$0xff] }
 0x138   : > { %v7965_v51 = vpop.f32.mrf.mxu1  ;;  %6985 = vmatmul.mubr.msk.f32.gmra.mxu1 %vm1739_vm3, %v460_v24 }
 0x139   : > { %14342 = vst [vmem:[#allocation33_spill] sm:$0xff] %v7965_v51  ;;  %6987 = vmatprep.mubr.msk.f32.mxu1 %vm1739_vm3, %v461_v38  ;;  %v464_v51 = vld [vmem:[%s7399_s18 + $0x268] sm:$0xff]  ;;  %v7983_v38 = vpop.f32.mrf.mxu0 }
 0x13a   : > { %v7970_v55 = vpop.f32.mrf.mxu1 }
 0x13b   : > { %14343 = vst [vmem:[#allocation34_spill] sm:$0xff] %v7970_v55  ;;  %v467_v55 = vld [vmem:[%s7399_s18 + $0x280] sm:$0xff] }
 0x13c   : > { %v7975_v40 = vpop.f32.mrf.mxu1  ;;  %6988 = vmatmul.mubr.msk.f32.gmra.mxu1 %vm1739_vm3, %v462_v15 }
 0x13d   : > { %14344 = vst [vmem:[#allocation35_spill] sm:$0xff] %v7975_v40  ;;  %6990 = vmatprep.mubr.msk.f32.mxu1 %vm1739_vm3, %v463_v61  ;;  %v466_v40 = vld [vmem:[%s7399_s18 + $0x278] sm:$0xff]  ;;  %v7993_v61 = vpop.f32.mrf.mxu0 }
 0x13e   : > { %v7980_v24 = vpop.f32.mrf.mxu1 }
 0x13f   : > { %14345 = vst [vmem:[#allocation36_spill] sm:$0xff] %v7980_v24  ;;  %v469_v24 = vld [vmem:[%s7399_s18 + $0x290] sm:$0xff] }
 0x140   : > { %v7985_v35 = vpop.f32.mrf.mxu1  ;;  %6991 = vmatmul.mubr.msk.f32.gmra.mxu1 %vm1739_vm3, %v464_v51 }
 0x141   : > { %14346 = vst [vmem:[#allocation37_spill] sm:$0xff] %v7985_v35  ;;  %6993 = vmatprep.mubr.msk.f32.mxu1 %vm1739_vm3, %v465_v30  ;;  %v468_v35 = vld [vmem:[%s7399_s18 + $0x288] sm:$0xff]  ;;  %v8003_v30 = vpop.f32.mrf.mxu0 }
 0x142   : > { %v7990_v15 = vpop.f32.mrf.mxu1 }
 0x143   : > { %14347 = vst [vmem:[#allocation38_spill] sm:$0xff] %v7990_v15  ;;  %v471_v15 = vld [vmem:[%s7399_s18 + $0x2a0] sm:$0xff] }
 0x144   : > { %v7995_v27 = vpop.f32.mrf.mxu1  ;;  %6994 = vmatmul.mubr.msk.f32.gmra.mxu1 %vm1739_vm3, %v466_v40 }
 0x145   : > { %14348 = vst [vmem:[#allocation39_spill] sm:$0xff] %v7995_v27  ;;  %6996 = vmatprep.mubr.msk.f32.mxu1 %vm1739_vm3, %v467_v55  ;;  %v470_v27 = vld [vmem:[%s7399_s18 + $0x298] sm:$0xff]  ;;  %v8013_v55 = vpop.f32.mrf.mxu0 }
 0x146   : > { %v8000_v51 = vpop.f32.mrf.mxu1 }
 0x147   : > { %14349 = vst [vmem:[#allocation40_spill] sm:$0xff] %v8000_v51  ;;  %v473_v51 = vld [vmem:[%s7399_s18 + $0x2b0] sm:$0xff] }
 0x148   : > { %v8005_v21 = vpop.f32.mrf.mxu1  ;;  %6997 = vmatmul.mubr.msk.f32.gmra.mxu1 %vm1739_vm3, %v468_v35 }
 0x149   : > { %14350 = vst [vmem:[#allocation41_spill] sm:$0xff] %v8005_v21  ;;  %6999 = vmatprep.mubr.msk.f32.mxu1 %vm1739_vm3, %v469_v24  ;;  %v472_v21 = vld [vmem:[%s7399_s18 + $0x2a8] sm:$0xff]  ;;  %v8023_v24 = vpop.f32.mrf.mxu0 }
 0x14a   : > { %v8010_v40 = vpop.f32.mrf.mxu1 }
 0x14b   : > { %14351 = vst [vmem:[#allocation42_spill] sm:$0xff] %v8010_v40  ;;  %v475_v40 = vld [vmem:[%s7399_s18 + $0x2c0] sm:$0xff] }
 0x14c   : > { %v8015_v12 = vpop.f32.mrf.mxu1  ;;  %7000 = vmatmul.mubr.msk.f32.gmra.mxu1 %vm1739_vm3, %v470_v27 }
 0x14d   : > { %14352 = vst [vmem:[#allocation43_spill] sm:$0xff] %v8015_v12  ;;  %7002 = vmatprep.mubr.msk.f32.mxu1 %vm1739_vm3, %v471_v15  ;;  %v474_v12 = vld [vmem:[%s7399_s18 + $0x2b8] sm:$0xff]  ;;  %v8033_v15 = vpop.f32.mrf.mxu0 }
 0x14e   : > { %v8020_v35 = vpop.f32.mrf.mxu1 }
 0x14f   : > { %14353 = vst [vmem:[#allocation44_spill] sm:$0xff] %v8020_v35  ;;  %v477_v35 = vld [vmem:[%s7399_s18 + $0x2d0] sm:$0xff] }
 0x150   : > { %v8025_v6 = vpop.f32.mrf.mxu1  ;;  %7003 = vmatmul.mubr.msk.f32.gmra.mxu1 %vm1739_vm3, %v472_v21 }
 0x151   : > { %14354 = vst [vmem:[#allocation45_spill] sm:$0xff] %v8025_v6  ;;  %7005 = vmatprep.mubr.msk.f32.mxu1 %vm1739_vm3, %v473_v51  ;;  %v476_v6 = vld [vmem:[%s7399_s18 + $0x2c8] sm:$0xff]  ;;  %v8043_v51 = vpop.f32.mrf.mxu0 }
 0x152   : > { %v8030_v27 = vpop.f32.mrf.mxu1 }
 0x153   : > { %14355 = vst [vmem:[#allocation46_spill] sm:$0xff] %v8030_v27  ;;  %v479_v27 = vld [vmem:[%s7399_s18 + $0x2e0] sm:$0xff] }
 0x154   : > { %v8035_v63 = vpop.f32.mrf.mxu1  ;;  %7006 = vmatmul.mubr.msk.f32.gmra.mxu1 %vm1739_vm3, %v474_v12 }
 0x155   : > { %14356 = vst [vmem:[#allocation47_spill] sm:$0xff] %v8035_v63  ;;  %7008 = vmatprep.mubr.msk.f32.mxu1 %vm1739_vm3, %v475_v40  ;;  %v478_v63 = vld [vmem:[%s7399_s18 + $0x2d8] sm:$0xff]  ;;  %v8053_v40 = vpop.f32.mrf.mxu0 }
 0x156   : > { %v8040_v21 = vpop.f32.mrf.mxu1 }
 0x157   : > { %14357 = vst [vmem:[#allocation48_spill] sm:$0xff] %v8040_v21  ;;  %v481_v21 = vld [vmem:[%s7399_s18 + $0x2f0] sm:$0xff] }
 0x158   : > { %v8045_v59 = vpop.f32.mrf.mxu1  ;;  %7009 = vmatmul.mubr.msk.f32.gmra.mxu1 %vm1739_vm3, %v476_v6 }
 0x159   : > { %14358 = vst [vmem:[#allocation49_spill] sm:$0xff] %v8045_v59  ;;  %7011 = vmatprep.mubr.msk.f32.mxu1 %vm1739_vm3, %v477_v35  ;;  %v480_v59 = vld [vmem:[%s7399_s18 + $0x2e8] sm:$0xff]  ;;  %v8063_v35 = vpop.f32.mrf.mxu0 }
 0x15a   : > { %v8050_v12 = vpop.f32.mrf.mxu1 }
 0x15b   : > { %14359 = vst [vmem:[#allocation50_spill] sm:$0xff] %v8050_v12  ;;  %v482_v12 = vld [vmem:[%s7399_s18 + $0x2f8] sm:$0xff] }
 0x15c   : > { %v8055_v53 = vpop.f32.mrf.mxu1  ;;  %7012 = vmatmul.mubr.msk.f32.gmra.mxu1 %vm1739_vm3, %v478_v63  ;;  %v483_v63 = vld [vmem:[%s7399_s18 + $0x300] sm:$0xff] }
 0x15d   : > { %14360 = vst [vmem:[#allocation51_spill] sm:$0xff] %v8055_v53  ;;  %7014 = vmatprep.mubr.msk.f32.mxu1 %vm1739_vm3, %v479_v27  ;;  %v8073_v27 = vpop.f32.mrf.mxu0 }
 0x15e   : > { %v8060_v6 = vpop.f32.mrf.mxu1 }
 0x15f   : > { %14361 = vst [vmem:[#allocation52_spill] sm:$0xff] %v8060_v6  ;;  %v484_v6 = vld [vmem:[%s7399_s18 + $0x308] sm:$0xff]  ;;  %v8083_v42 = vpop.f32.mrf.mxu0 }
 0x160   : > { %v8065_v49 = vpop.f32.mrf.mxu1  ;;  %7015 = vmatmul.mubr.msk.f32.gmra.mxu1 %vm1739_vm3, %v480_v59  ;;  %v485_v59 = vld [vmem:[%s7399_s18 + $0x310] sm:$0xff] }
 0x161   : > { %14362 = vst [vmem:[#allocation53_spill] sm:$0xff] %v8065_v49  ;;  %7017 = vmatprep.mubr.msk.f32.mxu1 %vm1739_vm3, %v481_v21  ;;  %v8095_v39 = vpop.f32.mrf.mxu0 }
 0x162   : > { %v8070_v53 = vpop.f32.mrf.mxu1 }
 0x163   : > { %14363 = vst [vmem:[#allocation54_spill] sm:$0xff] %v8070_v53  ;;  %v8088_v53 = vld [vmem:[%s13867_s5] ss:$0 sm:$0xff]  ;;  %v8105_v26 = vpop.f32.mrf.mxu0 }
 0x164   : > { %v8075_v44 = vpop.f32.mrf.mxu1  ;;  %7018 = vmatmul.mubr.msk.f32.gmra.mxu1 %vm1739_vm3, %v482_v12 }
 0x165   : > { %14364 = vst [vmem:[#allocation55_spill] sm:$0xff] %v8075_v44  ;;  %7020 = vmatprep.mubr.msk.f32.mxu1 %vm1739_vm3, %v483_v63  ;;  %v486_v63 = vld [vmem:[%s7399_s18 + $0x318] sm:$0xff] }
 0x166   : > { %v8080_v49 = vpop.f32.mrf.mxu1 }
 0x167   : > { %14365 = vst [vmem:[#allocation56_spill] sm:$0xff] %v8080_v49  ;;  %v487_v49 = vld [vmem:[%s7399_s18 + $0x320] sm:$0xff] }
 0x168   : > { %v6878_v21 = vpop.f32.mrf.mxu1  ;;  %7021 = vmatmul.mubr.msk.f32.gmra.mxu1 %vm1739_vm3, %v484_v6 }
 0x169   : > { %v2200_v12 = vadd.f32 %v6878_v21, %v7810_v4  ;;  %7023 = vmatprep.mubr.msk.f32.mxu1 %vm1739_vm3, %v485_v59  ;;  %v488_v4 = vld [vmem:[%s7399_s18 + $0x328] sm:$0xff]  ;;  %v489_v21 = vld [vmem:[%s7399_s18 + $0x330] sm:$0xff] }
 0x16a   : > { %v2194_v44 = vpop.f32.mrf.mxu1 }
 0x16b   : > { %v2841_v37 = vadd.f32 %v8088_v53, %v2200_v12  ;;  %v2195_v34 = vadd.f32 %v2194_v44, %v7815_v7 }
 0x16c   : > { %v6881_v32 = vpop.f32.mrf.mxu1  ;;  %7024 = vmatmul.mubr.msk.f32.gmra.mxu1 %vm1739_vm3, %v486_v63 }
 0x16d   : > { %v2840_v29 = vadd.f32 %v8088_v53, %v2195_v34  ;;  %v2210_v6 = vadd.f32 %v6881_v32, %v7822_v10  ;;  %7026 = vmatprep.mubr.msk.f32.mxu1 %vm1739_vm3, %v487_v49  ;;  %v2969_v23 = vmax.f32 %v2841_v37, 0.0  ;;  %v490_v49 = vld [vmem:[%s7399_s18 + $0x338] sm:$0xff]  ;;  %v491_v37 = vld [vmem:[%s7399_s18 + $0x340] sm:$0xff] }
 0x16e   : > { %v2204_v59 = vpop.f32.mrf.mxu1 }
 0x16f   : > { %v2968_v12 = vmax.f32 %v2840_v29, 0.0  ;;  %v2843_v7 = vadd.f32 %v8088_v53, %v2210_v6  ;;  %v2205_v44 = vadd.f32 %v2204_v59, %v7827_v13  ;;  %v8115_v29 = vpop.f32.mrf.mxu0 }
 0x170   : > { %v6884_v63 = vpop.f32.mrf.mxu1  ;;  %7027 = vmatmul.mubr.msk.f32.gmra.mxu1 %vm1739_vm3, %v488_v4 }
 0x171   : > { %v2842_v10 = vadd.f32 %v8088_v53, %v2205_v44  ;;  %v2220_v32 = vadd.f32 %v6884_v63, %v7834_v16  ;;  %7029 = vmatprep.mubr.msk.f32.mxu1 %vm1739_vm3, %v489_v21  ;;  %v3096_v34 = vpack.c.bf16 %v2969_v23, %v2968_v12  ;;  %v2971_v6 = vmax.f32 %v2843_v7, 0.0  ;;  %v492_v12 = vld [vmem:[%s7399_s18 + $0x348] sm:$0xff]  ;;  %v493_v7 = vld [vmem:[%s7399_s18 + $0x350] sm:$0xff]  ;;  %v8125_v63 = vpop.f32.mrf.mxu0 }
 0x172   : > { %v2214_v20 = vpop.f32.mrf.mxu1 }
 0x173   : > { %v2970_v17 = vmax.f32 %v2842_v10, 0.0  ;;  %v2845_v13 = vadd.f32 %v8088_v53, %v2220_v32  ;;  %v2215_v4 = vadd.f32 %v2214_v20, %v7839_v19  ;;  %7084 = vmatprep.mubr.bf16.mxu0 %v3096_v34 }
 0x174   : > { %v6887_v59 = vpop.f32.mrf.mxu1  ;;  %7030 = vmatmul.mubr.msk.f32.gmra.mxu1 %vm1739_vm3, %v490_v49 }
 0x175   : > { %v3097_v16 = vpack.c.bf16 %v2971_v6, %v2970_v17  ;;  %v2844_v23 = vadd.f32 %v8088_v53, %v2215_v4  ;;  %v2230_v21 = vadd.f32 %v6887_v59, %v7846_v22  ;;  %7032 = vmatprep.mubr.msk.f32.mxu1 %vm1739_vm3, %v491_v37  ;;  %v2973_v10 = vmax.f32 %v2845_v13, 0.0  ;;  %v494_v37 = vld [vmem:[%s7399_s18 + $0x358] sm:$0xff]  ;;  %v495_v13 = vld [vmem:[%s7399_s18 + $0x360] sm:$0xff]  ;;  %v8135_v4 = vpop.f32.mrf.mxu0 }
 0x176   : > { %v2224_v44 = vpop.f32.mrf.mxu1 }
 0x177   : > { %v2972_v19 = vmax.f32 %v2844_v23, 0.0  ;;  %v2847_v20 = vadd.f32 %v8088_v53, %v2230_v21  ;;  %v2225_v32 = vadd.f32 %v2224_v44, %v7851_v25  ;;  %7085 = vmatmul.mubr.bf16.vlgmr.msra.gmra.mxu0 %v3097_v16 }
 0x178   : > { %v6890_v17 = vpop.f32.mrf.mxu1  ;;  %7033 = vmatmul.mubr.msk.f32.gmra.mxu1 %vm1739_vm3, %v492_v12 }
 0x179   : > { %v2846_v22 = vadd.f32 %v8088_v53, %v2225_v32  ;;  %v2240_v34 = vadd.f32 %v6890_v17, %v7858_v28  ;;  %7035 = vmatprep.mubr.msk.f32.mxu1 %vm1739_vm3, %v493_v7  ;;  %v3098_v49 = vpack.c.bf16 %v2973_v10, %v2972_v19  ;;  %v2975_v59 = vmax.f32 %v2847_v20, 0.0  ;;  %v496_v7 = vld [vmem:[%s7399_s18 + $0x368] sm:$0xff]  ;;  %v497_v19 = vld [vmem:[%s7399_s18 + $0x370] sm:$0xff]  ;;  %v8145_v20 = vpop.f32.mrf.mxu0 }
 0x17a   : > { %v2234_v6 = vpop.f32.mrf.mxu1 }
 0x17b   : > { %v2974_v25 = vmax.f32 %v2846_v22, 0.0  ;;  %v2849_v16 = vadd.f32 %v8088_v53, %v2240_v34  ;;  %v2235_v23 = vadd.f32 %v2234_v6, %v7863_v31  ;;  %7088 = vmatprep.mubr.bf16.mxu0 %v3098_v49  ;;  %v498_v6 = vld [vmem:[%s7399_s18 + $0x378] sm:$0xff] }
 0x17c   : > { %v6893_v21 = vpop.f32.mrf.mxu1  ;;  %7036 = vmatmul.mubr.msk.f32.gmra.mxu1 %vm1739_vm3, %v494_v37 }
 0x17d   : > { %v2848_v28 = vadd.f32 %v8088_v53, %v2235_v23  ;;  %v2250_v12 = vadd.f32 %v6893_v21, %v7873_v36  ;;  %7038 = vmatprep.mubr.msk.f32.mxu1 %vm1739_vm3, %v495_v13  ;;  %v3099_v44 = vpack.c.bf16 %v2975_v59, %v2974_v25  ;;  %v2977_v32 = vmax.f32 %v2849_v16, 0.0  ;;  %v499_v59 = vld [vmem:[%s7399_s18 + $0x380] sm:$0xff]  ;;  %v8155_v25 = vpop.f32.mrf.mxu0 }
 0x17e   : > { %v2244_v10 = vpop.f32.mrf.mxu1 }
 0x17f   : > { %v2976_v31 = vmax.f32 %v2848_v28, 0.0  ;;  %v2851_v17 = vadd.f32 %v8088_v53, %v2250_v12  ;;  %v2245_v22 = vadd.f32 %v2244_v10, %v7883_v41  ;;  %7089 = vmatmul.mubr.bf16.gmra.mxu0 %v3099_v44 }
 0x180   : > { %v6896_v34 = vpop.f32.mrf.mxu1  ;;  %7039 = vmatmul.mubr.msk.f32.gmra.mxu1 %vm1739_vm3, %v496_v7  ;;  %v500_v7 = vld [vmem:[%s7399_s18 + $0x388] sm:$0xff] }
 0x181   : > { %v2850_v36 = vadd.f32 %v8088_v53, %v2245_v22  ;;  %v2260_v49 = vadd.f32 %v6896_v34, %v7893_v47  ;;  %7041 = vmatprep.mubr.msk.f32.mxu1 %vm1739_vm3, %v497_v19  ;;  %v3100_v37 = vpack.c.bf16 %v2977_v32, %v2976_v31  ;;  %v2979_v16 = vmax.f32 %v2851_v17, 0.0  ;;  %v501_v19 = vld [vmem:[%s7399_s18 + $0x390] sm:$0xff]  ;;  %v8165_v32 = vpop.f32.mrf.mxu0 }
 0x182   : > { %v2254_v13 = vpop.f32.mrf.mxu1 }
 0x183   : > { %v2978_v41 = vmax.f32 %v2850_v36, 0.0  ;;  %v2853_v23 = vadd.f32 %v8088_v53, %v2260_v49  ;;  %v2255_v21 = vadd.f32 %v2254_v13, %v7903_v57  ;;  %7092 = vmatprep.mubr.bf16.mxu0 %v3100_v37  ;;  %v502_v37 = vld [vmem:[%s7399_s18 + $0x398] sm:$0xff]  ;;  %v503_v13 = vld [vmem:[%s7399_s18 + $0x3a0] sm:$0xff] }
 0x184   : > { %v6899_v28 = vpop.f32.mrf.mxu1  ;;  %7042 = vmatmul.mubr.msk.f32.gmra.mxu1 %vm1739_vm3, %v498_v6 }
 0x185   : > { %v2852_v47 = vadd.f32 %v8088_v53, %v2255_v21  ;;  %v2270_v12 = vadd.f32 %v6899_v28, %v7913_v3  ;;  %7044 = vmatprep.mubr.msk.f32.mxu1 %vm1739_vm3, %v499_v59  ;;  %v3101_v44 = vpack.c.bf16 %v2979_v16, %v2978_v41  ;;  %v2981_v31 = vmax.f32 %v2853_v23, 0.0  ;;  %v8175_v59 = vpop.f32.mrf.mxu0 }
 0x186   : > { %v2264_v10 = vpop.f32.mrf.mxu1 }
 0x187   : > { %v2980_v57 = vmax.f32 %v2852_v47, 0.0  ;;  %v2855_v17 = vadd.f32 %v8088_v53, %v2270_v12  ;;  %v2265_v22 = vadd.f32 %v2264_v10, %v7923_v18  ;;  %7093 = vmatmul.mubr.bf16.gmra.mxu0 %v3101_v44  ;;  %v504_v12 = vld [vmem:[%s7399_s18 + $0x3a8] sm:$0xff]  ;;  %v8185_v10 = vpop.f32.mrf.mxu0 }
 0x188   : > { %v6902_v34 = vpop.f32.mrf.mxu1  ;;  %7045 = vmatmul.mubr.msk.f32.gmra.mxu1 %vm1739_vm3, %v500_v7  ;;  %v505_v7 = vld [vmem:[%s7399_s18 + $0x3b0] sm:$0xff] }
 0x189   : > { %v2854_v3 = vadd.f32 %v8088_v53, %v2265_v22  ;;  %v2280_v36 = vadd.f32 %v6902_v34, %v7933_v33  ;;  %7047 = vmatprep.mubr.msk.f32.mxu1 %vm1739_vm3, %v501_v19  ;;  %v3102_v49 = vpack.c.bf16 %v2981_v31, %v2980_v57  ;;  %v2983_v16 = vmax.f32 %v2855_v17, 0.0 }
 0x18a   : > { %v2274_v6 = vpop.f32.mrf.mxu1 }
 0x18b   : > { %v2982_v18 = vmax.f32 %v2854_v3, 0.0  ;;  %v2857_v41 = vadd.f32 %v8088_v53, %v2280_v36  ;;  %v2275_v23 = vadd.f32 %v2274_v6, %v7943_v45  ;;  %7096 = vmatprep.mubr.bf16.mxu0 %v3102_v49  ;;  %v506_v3 = vld [vmem:[%s7399_s18 + $0x3b8] sm:$0xff]  ;;  %v507_v49 = vld [vmem:[%s7399_s18 + $0x3c0] sm:$0xff] }
 0x18c   : > { %v6905_v21 = vpop.f32.mrf.mxu1  ;;  %7048 = vmatmul.mubr.msk.f32.gmra.mxu1 %vm1739_vm3, %v502_v37  ;;  %v8195_v37 = vpop.f32.mrf.mxu0 }
 0x18d   : > { %v2856_v33 = vadd.f32 %v8088_v53, %v2275_v23  ;;  %v2290_v28 = vadd.f32 %v6905_v21, %v7953_v9  ;;  %7050 = vmatprep.mubr.msk.f32.mxu1 %vm1739_vm3, %v503_v13  ;;  %v3103_v47 = vpack.c.bf16 %v2983_v16, %v2982_v18  ;;  %v2985_v19 = vmax.f32 %v2857_v41, 0.0  ;;  %v508_v21 = vld [vmem:[%s7399_s18 + $0x3c8] sm:$0xff] }
 0x18e   : > { %v2284_v44 = vpop.f32.mrf.mxu1 }
 0x18f   : > { %v2984_v45 = vmax.f32 %v2856_v33, 0.0  ;;  %v2859_v31 = vadd.f32 %v8088_v53, %v2290_v28  ;;  %v2285_v57 = vadd.f32 %v2284_v44, %v7963_v43  ;;  %7097 = vmatmul.mubr.bf16.gmra.mxu0 %v3103_v47  ;;  %v509_v28 = vld [vmem:[%s7399_s18 + $0x3d0] sm:$0xff]  ;;  %v8205_v47 = vpop.f32.mrf.mxu0 }
 0x190   : > { %v6908_v17 = vpop.f32.mrf.mxu1  ;;  %7051 = vmatmul.mubr.msk.f32.gmra.mxu1 %vm1739_vm3, %v504_v12 }
 0x191   : > { %v2858_v9 = vadd.f32 %v8088_v53, %v2285_v57  ;;  %v2300_v22 = vadd.f32 %v6908_v17, %v7973_v1  ;;  %7053 = vmatprep.mubr.msk.f32.mxu1 %vm1739_vm3, %v505_v7  ;;  %v3104_v34 = vpack.c.bf16 %v2985_v19, %v2984_v45  ;;  %v2987_v6 = vmax.f32 %v2859_v31, 0.0  ;;  %v510_v57 = vld [vmem:[%s7399_s18 + $0x3d8] sm:$0xff] }
 0x192   : > { %v2294_v36 = vpop.f32.mrf.mxu1 }
 0x193   : > { %v2986_v43 = vmax.f32 %v2858_v9, 0.0  ;;  %v2861_v13 = vadd.f32 %v8088_v53, %v2300_v22  ;;  %v2295_v16 = vadd.f32 %v2294_v36, %v7983_v38  ;;  %7100 = vmatprep.mubr.bf16.mxu0 %v3104_v34  ;;  %v511_v9 = vld [vmem:[%s7399_s18 + $0x3e0] sm:$0xff]  ;;  %v8215_v22 = vpop.f32.mrf.mxu0 }
 0x194   : > { %v6911_v18 = vpop.f32.mrf.mxu1  ;;  %7054 = vmatmul.mubr.msk.f32.gmra.mxu1 %vm1739_vm3, %v506_v3 }
 0x195   : > { %v2860_v1 = vadd.f32 %v8088_v53, %v2295_v16  ;;  %v2310_v41 = vadd.f32 %v6911_v18, %v7993_v61  ;;  %7056 = vmatprep.mubr.msk.f32.mxu1 %vm1739_vm3, %v507_v49  ;;  %v3105_v23 = vpack.c.bf16 %v2987_v6, %v2986_v43  ;;  %v2989_v12 = vmax.f32 %v2861_v13, 0.0  ;;  %v512_v13 = vld [vmem:[%s7399_s18 + $0x3e8] sm:$0xff]  ;;  %v513_v18 = vld [vmem:[%s7399_s18 + $0x3f0] sm:$0xff] }
 0x196   : > { %v2304_v33 = vpop.f32.mrf.mxu1 }
 0x197   : > { %v2988_v38 = vmax.f32 %v2860_v1, 0.0  ;;  %v2863_v44 = vadd.f32 %v8088_v53, %v2310_v41  ;;  %v2305_v7 = vadd.f32 %v2304_v33, %v8003_v30  ;;  %7101 = vmatmul.mubr.bf16.gmra.mxu0 %v3105_v23  ;;  %v8225_v1 = vpop.f32.mrf.mxu0 }
 0x198   : > { %v6914_v19 = vpop.f32.mrf.mxu1  ;;  %7057 = vmatmul.mubr.msk.f32.gmra.mxu1 %vm1739_vm3, %v508_v21 }
 0x199   : > { %v2862_v61 = vadd.f32 %v8088_v53, %v2305_v7  ;;  %v2320_v45 = vadd.f32 %v6914_v19, %v8013_v55  ;;  %7059 = vmatprep.mubr.msk.f32.mxu1 %vm1739_vm3, %v509_v28  ;;  %v3106_v31 = vpack.c.bf16 %v2989_v12, %v2988_v38  ;;  %v2991_v34 = vmax.f32 %v2863_v44, 0.0  ;;  %v514_v38 = vld [vmem:[%s7399_s18 + $0x3f8] sm:$0xff]  ;;  %v8234_v7 = vpop.f32.mrf.mxu0 }
 0x19a   : > { %v2314_v17 = vpop.f32.mrf.mxu1 }
 0x19b   : > { %v2990_v30 = vmax.f32 %v2862_v61, 0.0  ;;  %v2865_v3 = vadd.f32 %v8088_v53, %v2320_v45  ;;  %v2315_v36 = vadd.f32 %v2314_v17, %v8023_v24  ;;  %7104 = vmatprep.mubr.bf16.mxu0 %v3106_v31 }
 0x19c   : > { %v6917_v49 = vpop.f32.mrf.mxu1  ;;  %7060 = vmatmul.mubr.msk.f32.gmra.mxu1 %vm1739_vm3, %v510_v57 }
 0x19d   : > { %v2864_v55 = vadd.f32 %v8088_v53, %v2315_v36  ;;  %v2330_v6 = vadd.f32 %v6917_v49, %v8033_v15  ;;  %7062 = vmatprep.mubr.msk.f32.mxu1 %vm1739_vm3, %v511_v9  ;;  %v3107_v43 = vpack.c.bf16 %v2991_v34, %v2990_v30  ;;  %v2993_v41 = vmax.f32 %v2865_v3, 0.0  ;;  %v8241_v34 = vpop.f32.mrf.mxu0 }
 0x19e   : > { %v2324_v16 = vpop.f32.mrf.mxu1 }
 0x19f   : > { %v2992_v23 = vmax.f32 %v2864_v55, 0.0  ;;  %v2867_v24 = vadd.f32 %v8088_v53, %v2330_v6  ;;  %v2325_v21 = vadd.f32 %v2324_v16, %v8043_v51  ;;  %7105 = vmatmul.mubr.bf16.gmra.mxu0 %v3107_v43  ;;  %v8247_v16 = vpop.f32.mrf.mxu0 }
 0x1a0   : > { %v6920_v33 = vpop.f32.mrf.mxu1  ;;  %7063 = vmatmul.mubr.msk.f32.gmra.mxu1 %vm1739_vm3, %v512_v13 }
 0x1a1   : > { %v2866_v15 = vadd.f32 %v8088_v53, %v2325_v21  ;;  %v2340_v28 = vadd.f32 %v6920_v33, %v8053_v40  ;;  %7065 = vmatprep.mubr.msk.f32.mxu1 %vm1739_vm3, %v513_v18  ;;  %v3108_v12 = vpack.c.bf16 %v2993_v41, %v2992_v23  ;;  %v2995_v19 = vmax.f32 %v2867_v24, 0.0 }
 0x1a2   : > { %v2334_v44 = vpop.f32.mrf.mxu1 }
 0x1a3   : > { %v2994_v61 = vmax.f32 %v2866_v15, 0.0  ;;  %v2869_v45 = vadd.f32 %v8088_v53, %v2340_v28  ;;  %v2335_v51 = vadd.f32 %v2334_v44, %v8063_v35  ;;  %7108 = vmatprep.mubr.bf16.mxu0 %v3108_v12  ;;  %v8253_v28 = vpop.f32.mrf.mxu0 }
 0x1a4   : > { %v6923_v31 = vpop.f32.mrf.mxu1  ;;  %7066 = vmatmul.mubr.msk.f32.gmra.mxu1 %vm1739_vm3, %v514_v38 }
 0x1a5   : > { %v2868_v57 = vadd.f32 %v8088_v53, %v2335_v51  ;;  %v2350_v40 = vadd.f32 %v6923_v31, %v8073_v27  ;;  %v3109_v17 = vpack.c.bf16 %v2995_v19, %v2994_v61  ;;  %v2997_v30 = vmax.f32 %v2869_v45, 0.0  ;;  %v8259_v31 = vpop.f32.mrf.mxu0 }
 0x1a6   : > { %v2344_v9 = vpop.f32.mrf.mxu1 }
 0x1a7   : > { %v2996_v3 = vmax.f32 %v2868_v57, 0.0  ;;  %v2871_v36 = vadd.f32 %v8088_v53, %v2350_v40  ;;  %v2345_v49 = vadd.f32 %v2344_v9, %v8083_v42  ;;  %7109 = vmatmul.mubr.bf16.gmra.mxu0 %v3109_v17 }
 0x1a8   : > { %v6926_v35 = vpop.f32.mrf.mxu1 }
 0x1a9   : > { %v2870_v55 = vadd.f32 %v8088_v53, %v2345_v49  ;;  %v2360_v6 = vadd.f32 %v6926_v35, %v8095_v39  ;;  %v3110_v43 = vpack.c.bf16 %v2997_v30, %v2996_v3  ;;  %v2999_v27 = vmax.f32 %v2871_v36, 0.0  ;;  %v8265_v49 = vpop.f32.mrf.mxu0 }
 0x1aa   : > { %v2354_v13 = vpop.f32.mrf.mxu1 }
 0x1ab   : > { %v2998_v18 = vmax.f32 %v2870_v55, 0.0  ;;  %v2873_v41 = vadd.f32 %v8088_v53, %v2360_v6  ;;  %v2355_v23 = vadd.f32 %v2354_v13, %v8105_v26  ;;  %7112 = vmatprep.mubr.bf16.mxu0 %v3110_v43 }
 0x1ac   : > { %v6929_v24 = vpop.f32.mrf.mxu1 }
 0x1ad   : > { %v2872_v42 = vadd.f32 %v8088_v53, %v2355_v23  ;;  %v2370_v21 = vadd.f32 %v6929_v24, %v8115_v29  ;;  %v3111_v33 = vpack.c.bf16 %v2999_v27, %v2998_v18  ;;  %v3001_v39 = vmax.f32 %v2873_v41, 0.0  ;;  %v8271_v41 = vpop.f32.mrf.mxu0 }
 0x1ae   : > { %v2364_v15 = vpop.f32.mrf.mxu1 }
 0x1af   : > { %v3000_v12 = vmax.f32 %v2872_v42, 0.0  ;;  %v2875_v38 = vadd.f32 %v8088_v53, %v2370_v21  ;;  %v2365_v44 = vadd.f32 %v2364_v15, %v8125_v63  ;;  %7113 = vmatmul.mubr.bf16.gmra.mxu0 %v3111_v33 }
 0x1b0   : > { %v6932_v19 = vpop.f32.mrf.mxu1 }
 0x1b1   : > { %v2874_v26 = vadd.f32 %v8088_v53, %v2365_v44  ;;  %v2380_v61 = vadd.f32 %v6932_v19, %v8135_v4  ;;  %v3112_v45 = vpack.c.bf16 %v3001_v39, %v3000_v12  ;;  %v3003_v29 = vmax.f32 %v2875_v38, 0.0  ;;  %v1360_v12 = vpop.f32.mrf.mxu0 }
 0x1b2   : > { %v2374_v51 = vpop.f32.mrf.mxu1 }
 0x1b3   : > { %v3002_v57 = vmax.f32 %v2874_v26, 0.0  ;;  %v2877_v40 = vadd.f32 %v8088_v53, %v2380_v61  ;;  %v2375_v17 = vadd.f32 %v2374_v51, %v8145_v20  ;;  %7116 = vmatprep.mubr.bf16.mxu0 %v3112_v45 }
 0x1b4   : > { %v6935_v9 = vpop.f32.mrf.mxu1 }
 0x1b5   : > { %v2876_v63 = vadd.f32 %v8088_v53, %v2375_v17  ;;  %v2390_v30 = vadd.f32 %v6935_v9, %v8155_v25  ;;  %v3113_v3 = vpack.c.bf16 %v3003_v29, %v3002_v57  ;;  %v3005_v4 = vmax.f32 %v2877_v40, 0.0  ;;  %v6765_v29 = vpop.f32.mrf.mxu0 }
 0x1b6   : > { %v2384_v36 = vpop.f32.mrf.mxu1 }
 0x1b7   : > { %v3004_v35 = vmax.f32 %v2876_v63, 0.0  ;;  %v2879_v55 = vadd.f32 %v8088_v53, %v2390_v30  ;;  %v2385_v6 = vadd.f32 %v2384_v36, %v8165_v32  ;;  %7117 = vmatmul.mubr.bf16.gmra.mxu0 %v3113_v3  ;;  %v1370_v36 = vpop.f32.mrf.mxu0 }
 0x1b8   : > { %v6938_v43 = vpop.f32.mrf.mxu1 }
 0x1b9   : > { %v2878_v20 = vadd.f32 %v8088_v53, %v2385_v6  ;;  %v2400_v13 = vadd.f32 %v6938_v43, %v8175_v59  ;;  %v3114_v27 = vpack.c.bf16 %v3005_v4, %v3004_v35  ;;  %v3007_v25 = vmax.f32 %v2879_v55, 0.0 }
 0x1ba   : > { %v2394_v18 = vpop.f32.mrf.mxu1 }
 0x1bb   : > { %v3006_v23 = vmax.f32 %v2878_v20, 0.0  ;;  %v2881_v24 = vadd.f32 %v8088_v53, %v2400_v13  ;;  %v2395_v42 = vadd.f32 %v2394_v18, %v8185_v10  ;;  %7120 = vmatprep.mubr.bf16.mxu0 %v3114_v27  ;;  %v6768_v27 = vpop.f32.mrf.mxu0 }
 0x1bc   : > { %v6941_v21 = vpop.f32.mrf.mxu1 }
 0x1bd   : > { %v2880_v32 = vadd.f32 %v8088_v53, %v2395_v42  ;;  %v2410_v33 = vadd.f32 %v6941_v21, %v8195_v37  ;;  %v3115_v15 = vpack.c.bf16 %v3007_v25, %v3006_v23  ;;  %v3009_v59 = vmax.f32 %v2881_v24, 0.0 }
 0x1be   : > { %v2404_v39 = vpop.f32.mrf.mxu1 }
 0x1bf   : > { %v3008_v38 = vmax.f32 %v2880_v32, 0.0  ;;  %v2883_v44 = vadd.f32 %v8088_v53, %v2410_v33  ;;  %v2405_v19 = vadd.f32 %v2404_v39, %v8205_v47  ;;  %7121 = vmatmul.mubr.bf16.gmra.mxu0 %v3115_v15  ;;  %v1380_v33 = vpop.f32.mrf.mxu0 }
 0x1c0   : > { %v6944_v26 = vpop.f32.mrf.mxu1 }
 0x1c1   : > { %v2882_v61 = vadd.f32 %v8088_v53, %v2405_v19  ;;  %v2420_v10 = vadd.f32 %v6944_v26, %v8215_v22  ;;  %v3116_v45 = vpack.c.bf16 %v3009_v59, %v3008_v38  ;;  %v3011_v57 = vmax.f32 %v2883_v44, 0.0 }
 0x1c2   : > { %v2414_v51 = vpop.f32.mrf.mxu1 }
 0x1c3   : > { %v3010_v37 = vmax.f32 %v2882_v61, 0.0  ;;  %v2885_v40 = vadd.f32 %v8088_v53, %v2420_v10  ;;  %v2415_v17 = vadd.f32 %v2414_v51, %v8225_v1  ;;  %7124 = vmatprep.mubr.bf16.mxu0 %v3116_v45  ;;  %v6771_v61 = vpop.f32.mrf.mxu0 }
 0x1c4   : > { %v6947_v9 = vpop.f32.mrf.mxu1 }
 0x1c5   : > { %v2884_v63 = vadd.f32 %v8088_v53, %v2415_v17  ;;  %v2430_v47 = vadd.f32 %v6947_v9, %v8234_v7  ;;  %v3117_v30 = vpack.c.bf16 %v3011_v57, %v3010_v37  ;;  %v3013_v4 = vmax.f32 %v2885_v40, 0.0  ;;  %v1390_v9 = vpop.f32.mrf.mxu0 }
 0x1c6   : > { %v2424_v3 = vpop.f32.mrf.mxu1 }
 0x1c7   : > { %v3012_v22 = vmax.f32 %v2884_v63, 0.0  ;;  %v2887_v35 = vadd.f32 %v8088_v53, %v2430_v47  ;;  %v2425_v55 = vadd.f32 %v2424_v3, %v8241_v34  ;;  %7125 = vmatmul.mubr.bf16.gmra.mxu0 %v3117_v30 }
 0x1c8   : > { %v6950_v6 = vpop.f32.mrf.mxu1 }
 0x1c9   : > { %v2886_v43 = vadd.f32 %v8088_v53, %v2425_v55  ;;  %v2440_v1 = vadd.f32 %v6950_v6, %v8247_v16  ;;  %v3118_v20 = vpack.c.bf16 %v3013_v4, %v3012_v22  ;;  %v3015_v18 = vmax.f32 %v2887_v35, 0.0  ;;  %v6774_v55 = vpop.f32.mrf.mxu0 }
 0x1ca   : > { %v2434_v13 = vpop.f32.mrf.mxu1 }
 0x1cb   : > { %v3014_v7 = vmax.f32 %v2886_v43, 0.0  ;;  %v2889_v25 = vadd.f32 %v8088_v53, %v2440_v1  ;;  %v2435_v23 = vadd.f32 %v2434_v13, %v8253_v28  ;;  %7128 = vmatprep.mubr.bf16.mxu0 %v3118_v20 }
 0x1cc   : > { %v6953_v24 = vpop.f32.mrf.mxu1 }
 0x1cd   : > { %v2888_v42 = vadd.f32 %v8088_v53, %v2435_v23  ;;  %v2450_v34 = vadd.f32 %v6953_v24, %v8259_v31  ;;  %v3119_v21 = vpack.c.bf16 %v3015_v18, %v3014_v7  ;;  %v3017_v15 = vmax.f32 %v2889_v25, 0.0  ;;  %v1400_v25 = vpop.f32.mrf.mxu0 }
 0x1ce   : > { %v2444_v32 = vpop.f32.mrf.mxu1 }
 0x1cf   : > { %v3016_v16 = vmax.f32 %v2888_v42, 0.0  ;;  %v2891_v39 = vadd.f32 %v8088_v53, %v2450_v34  ;;  %v2445_v59 = vadd.f32 %v2444_v32, %v8265_v49  ;;  %7129 = vmatmul.mubr.bf16.gmra.mxu0 %v3119_v21 }
 0x1d0   : > { %v6956_v38 = vpop.f32.mrf.mxu1 }
 0x1d1   : > { %v2890_v44 = vadd.f32 %v8088_v53, %v2445_v59  ;;  %v2460_v28 = vadd.f32 %v6956_v38, %v8271_v41  ;;  %v3120_v19 = vpack.c.bf16 %v3017_v15, %v3016_v16  ;;  %v3019_v10 = vmax.f32 %v2891_v39, 0.0  ;;  %v6777_v16 = vpop.f32.mrf.mxu0 }
 0x1d2   : > { %v2454_v26 = vpop.f32.mrf.mxu1 }
 0x1d3   : > { %v3018_v31 = vmax.f32 %v2890_v44, 0.0  ;;  %v2893_v45 = vadd.f32 %v8088_v53, %v2460_v28  ;;  %v2455_v51 = vadd.f32 %v2454_v26, %v1360_v12  ;;  %7132 = vmatprep.mubr.bf16.mxu0 %v3120_v19 }
 0x1d4   : > { %v6959_v57 = vpop.f32.mrf.mxu1 }
 0x1d5   : > { %v3121_v37 = vpack.c.bf16 %v3019_v10, %v3018_v31  ;;  %v2892_v40 = vadd.f32 %v8088_v53, %v2455_v51  ;;  %v2470_v49 = vadd.f32 %v6959_v57, %v6765_v29  ;;  %v3021_v63 = vmax.f32 %v2893_v45, 0.0  ;;  %v1410_v10 = vpop.f32.mrf.mxu0 }
 0x1d6   : > { %v2464_v17 = vpop.f32.mrf.mxu1 }
 0x1d7   : > { %v3020_v47 = vmax.f32 %v2892_v40, 0.0  ;;  %v2895_v41 = vadd.f32 %v8088_v53, %v2470_v49  ;;  %v2465_v30 = vadd.f32 %v2464_v17, %v1370_v36  ;;  %7133 = vmatmul.mubr.bf16.gmra.mxu0 %v3121_v37 }
 0x1d8   : > { %v6962_v3 = vpop.f32.mrf.mxu1 }
 0x1d9   : > { %v2894_v4 = vadd.f32 %v8088_v53, %v2465_v30  ;;  %v2480_v22 = vadd.f32 %v6962_v3, %v6768_v27  ;;  %v3122_v35 = vpack.c.bf16 %v3021_v63, %v3020_v47  ;;  %v3023_v6 = vmax.f32 %v2895_v41, 0.0 }
 0x1da   : > { %v2474_v12 = vpop.f32.mrf.mxu1 }
 0x1db   : > { %v3022_v43 = vmax.f32 %v2894_v4, 0.0  ;;  %v2897_v1 = vadd.f32 %v8088_v53, %v2480_v22  ;;  %v2475_v29 = vadd.f32 %v2474_v12, %v1380_v33  ;;  %7136 = vmatprep.mubr.bf16.mxu0 %v3122_v35 }
 0x1dc   : > { %v6965_v20 = vpop.f32.mrf.mxu1 }
 0x1dd   : > { %v3123_v13 = vpack.c.bf16 %v3023_v6, %v3022_v43  ;;  %v2896_v18 = vadd.f32 %v8088_v53, %v2475_v29  ;;  %v2490_v7 = vadd.f32 %v6965_v20, %v6771_v61  ;;  %v3025_v23 = vmax.f32 %v2897_v1, 0.0 }
 0x1de   : > { %v2484_v36 = vpop.f32.mrf.mxu1 }
 0x1df   : > { %v3024_v24 = vmax.f32 %v2896_v18, 0.0  ;;  %v2899_v27 = vadd.f32 %v8088_v53, %v2490_v7  ;;  %v2485_v42 = vadd.f32 %v2484_v36, %v1390_v9  ;;  %7137 = vmatmul.mubr.bf16.gmra.mxu0 %v3123_v13 }
 0x1e0   : > { %v6968_v34 = vpop.f32.mrf.mxu1 }
 0x1e1   : > { %v2898_v21 = vadd.f32 %v8088_v53, %v2485_v42  ;;  %v2500_v32 = vadd.f32 %v6968_v34, %v6774_v55  ;;  %v3124_v15 = vpack.c.bf16 %v3025_v23, %v3024_v24  ;;  %v3027_v39 = vmax.f32 %v2899_v27, 0.0 }
 0x1e2   : > { %v2494_v33 = vpop.f32.mrf.mxu1 }
 0x1e3   : > { %v3026_v59 = vmax.f32 %v2898_v21, 0.0  ;;  %v2901_v38 = vadd.f32 %v8088_v53, %v2500_v32  ;;  %v2495_v44 = vadd.f32 %v2494_v33, %v1400_v25  ;;  %7140 = vmatprep.mubr.bf16.mxu0 %v3124_v15 }
 0x1e4   : > { %v6971_v28 = vpop.f32.mrf.mxu1 }
 0x1e5   : > { %v3125_v19 = vpack.c.bf16 %v3027_v39, %v3026_v59  ;;  %v2900_v26 = vadd.f32 %v8088_v53, %v2495_v44  ;;  %v2510_v61 = vadd.f32 %v6971_v28, %v6777_v16  ;;  %v3029_v45 = vmax.f32 %v2901_v38, 0.0 }
 0x1e6   : > { %v2504_v31 = vpop.f32.mrf.mxu1 }
 0x1e7   : > { %v3028_v51 = vmax.f32 %v2900_v26, 0.0  ;;  %v2903_v57 = vadd.f32 %v8088_v53, %v2510_v61  ;;  %v2505_v37 = vadd.f32 %v2504_v31, %v1410_v10  ;;  %7141 = vmatmul.mubr.bf16.gmra.mxu0 %v3125_v19 }
 0x1e8   : > { %v6974_v40 = vpop.f32.mrf.mxu1 }
 0x1e9   : > { %v2902_v49 = vadd.f32 %v8088_v53, %v2505_v37  ;;  %v2520_v17 = vadd.f32 %v6974_v40, %v7765_v46  ;;  %v3126_v9 = vpack.c.bf16 %v3029_v45, %v3028_v51  ;;  %v3031_v47 = vmax.f32 %v2903_v57, 0.0 }
 0x1ea   : > { %v2514_v63 = vpop.f32.mrf.mxu1 }
 0x1eb   : > { %v3030_v41 = vmax.f32 %v2902_v49, 0.0  ;;  %v2905_v30 = vadd.f32 %v8088_v53, %v2520_v17  ;;  %v2515_v3 = vadd.f32 %v2514_v63, %v7770_v48  ;;  %7144 = vmatprep.mubr.bf16.mxu0 %v3126_v9 }
 0x1ec   : > { %v6977_v4 = vpop.f32.mrf.mxu1 }
 0x1ed   : > { %v3127_v22 = vpack.c.bf16 %v3031_v47, %v3030_v41  ;;  %v2904_v35 = vadd.f32 %v8088_v53, %v2515_v3  ;;  %v2530_v12 = vadd.f32 %v6977_v4, %v7773_v50  ;;  %v3033_v6 = vmax.f32 %v2905_v30, 0.0 }
 0x1ee   : > { %v2524_v55 = vpop.f32.mrf.mxu1 }
 0x1ef   : > { %v3032_v43 = vmax.f32 %v2904_v35, 0.0  ;;  %v2907_v46 = vadd.f32 %v8088_v53, %v2530_v12  ;;  %v2525_v1 = vadd.f32 %v2524_v55, %v7778_v52  ;;  %7145 = vmatmul.mubr.bf16.gmra.mxu0 %v3127_v22  ;;  %v14366_v22 = vld [vmem:[#allocation8_spill] sm:$0xff] }
 0x1f0   : > { %v6980_v29 = vpop.f32.mrf.mxu1 }
 0x1f1   : > { %v2906_v20 = vadd.f32 %v8088_v53, %v2525_v1  ;;  %v2540_v48 = vadd.f32 %v6980_v29, %v7781_v54  ;;  %v3128_v13 = vpack.c.bf16 %v3033_v6, %v3032_v43  ;;  %v3035_v7 = vmax.f32 %v2907_v46, 0.0  ;;  %v14367_v6 = vld [vmem:[#allocation9_spill] sm:$0xff] }
 0x1f2   : > { %v2534_v18 = vpop.f32.mrf.mxu1 }
 0x1f3   : > { %v3034_v36 = vmax.f32 %v2906_v20, 0.0  ;;  %v2909_v25 = vadd.f32 %v8088_v53, %v2540_v48  ;;  %v2535_v50 = vadd.f32 %v2534_v18, %v7786_v56  ;;  %7148 = vmatprep.mubr.bf16.mxu0 %v3128_v13 }
 0x1f4   : > { %v6983_v23 = vpop.f32.mrf.mxu1 }
 0x1f5   : > { %v3129_v24 = vpack.c.bf16 %v3035_v7, %v3034_v36  ;;  %v2908_v27 = vadd.f32 %v8088_v53, %v2535_v50  ;;  %v2550_v52 = vadd.f32 %v6983_v23, %v7789_v58  ;;  %v3037_v34 = vmax.f32 %v2909_v25, 0.0  ;;  %v14369_v36 = vld [vmem:[#allocation11_spill] sm:$0xff] }
 0x1f6   : > { %v2544_v42 = vpop.f32.mrf.mxu1 }
 0x1f7   : > { %v3036_v21 = vmax.f32 %v2908_v27, 0.0  ;;  %v2911_v54 = vadd.f32 %v8088_v53, %v2550_v52  ;;  %v2545_v32 = vadd.f32 %v2544_v42, %v7794_v60  ;;  %7149 = vmatmul.mubr.bf16.gmra.mxu0 %v3129_v24  ;;  %v14370_v52 = vld [vmem:[#allocation12_spill] sm:$0xff] }
 0x1f8   : > { %v6986_v15 = vpop.f32.mrf.mxu1 }
 0x1f9   : > { %v2910_v33 = vadd.f32 %v8088_v53, %v2545_v32  ;;  %v2560_v56 = vadd.f32 %v6986_v15, %v7797_v62  ;;  %v3130_v16 = vpack.c.bf16 %v3037_v34, %v3036_v21  ;;  %v3039_v59 = vmax.f32 %v2911_v54, 0.0  ;;  %v14371_v54 = vld [vmem:[#allocation13_spill] sm:$0xff] }
 0x1fa   : > { %v2554_v39 = vpop.f32.mrf.mxu1 }
 0x1fb   : > { %v3038_v38 = vmax.f32 %v2910_v33, 0.0  ;;  %v2913_v44 = vadd.f32 %v8088_v53, %v2560_v56  ;;  %v2555_v58 = vadd.f32 %v2554_v39, %v7802_v0  ;;  %7152 = vmatprep.mubr.bf16.mxu0 %v3130_v16  ;;  %v8353_v39 = vld [vmem:[%s13867_s5] ss:$0 sm:$0xff] }
 0x1fc   : > { %v6989_v28 = vpop.f32.mrf.mxu1 }
 0x1fd   : > { %v3131_v19 = vpack.c.bf16 %v3039_v59, %v3038_v38  ;;  %v2912_v26 = vadd.f32 %v8088_v53, %v2555_v58  ;;  %v2570_v60 = vadd.f32 %v6989_v28, %v7805_v2  ;;  %v3041_v10 = vmax.f32 %v2913_v44, 0.0  ;;  %v14372_v38 = vld [vmem:[#allocation14_spill] sm:$0xff] }
 0x1fe   : > { %v2564_v61 = vpop.f32.mrf.mxu1 }
 0x1ff   : > { %v3040_v31 = vmax.f32 %v2912_v26, 0.0  ;;  %v2915_v62 = vadd.f32 %v8088_v53, %v2570_v60  ;;  %v2565_v45 = vadd.f32 %v2564_v61, %v7812_v5  ;;  %7153 = vmatmul.mubr.bf16.gmra.mxu0 %v3131_v19  ;;  %v14373_v19 = vld [vmem:[#allocation15_spill] sm:$0xff] }
 0x200   : > { %v6992_v51 = vpop.f32.mrf.mxu1 }
 0x201   : > { %v2914_v57 = vadd.f32 %v8088_v53, %v2565_v45  ;;  %v2580_v0 = vadd.f32 %v6992_v51, %v7817_v8  ;;  %v3132_v37 = vpack.c.bf16 %v3041_v10, %v3040_v31  ;;  %v3043_v49 = vmax.f32 %v2915_v62, 0.0  ;;  %v14374_v62 = vld [vmem:[#allocation16_spill] sm:$0xff] }
 0x202   : > { %v2574_v40 = vpop.f32.mrf.mxu1 }
 0x203   : > { %v3042_v17 = vmax.f32 %v2914_v57, 0.0  ;;  %v2917_v9 = vadd.f32 %v8088_v53, %v2580_v0  ;;  %v2575_v2 = vadd.f32 %v2574_v40, %v7824_v11  ;;  %7156 = vmatprep.mubr.bf16.mxu0 %v3132_v37  ;;  %v14375_v0 = vld [vmem:[#allocation17_spill] sm:$0xff] }
 0x204   : > { %v6995_v63 = vpop.f32.mrf.mxu1 }
 0x205   : > { %v3133_v47 = vpack.c.bf16 %v3043_v49, %v3042_v17  ;;  %v2916_v41 = vadd.f32 %v8088_v53, %v2575_v2  ;;  %v2590_v5 = vadd.f32 %v6995_v63, %v7829_v14  ;;  %v3045_v3 = vmax.f32 %v2917_v9, 0.0  ;;  %v14368_v14 = vld [vmem:[#allocation10_spill] sm:$0xff] }
 0x206   : > { %v2584_v30 = vpop.f32.mrf.mxu1  ;;  %v14376_v63 = vld [vmem:[#allocation18_spill] sm:$0xff] }
 0x207   : > { %v3044_v4 = vmax.f32 %v2916_v41, 0.0  ;;  %v2919_v8 = vadd.f32 %v8088_v53, %v2590_v5  ;;  %v2585_v35 = vadd.f32 %v2584_v30, %v14366_v22  ;;  %7157 = vmatmul.mubr.bf16.gmra.mxu0 %v3133_v47 }
 0x208   : > { %v6998_v12 = vpop.f32.mrf.mxu1 }
 0x209   : > { %v2918_v55 = vadd.f32 %v8088_v53, %v2585_v35  ;;  %v2600_v11 = vadd.f32 %v6998_v12, %v14367_v6  ;;  %v3134_v43 = vpack.c.bf16 %v3045_v3, %v3044_v4  ;;  %v3047_v1 = vmax.f32 %v2919_v8, 0.0  ;;  %v14377_v3 = vld [vmem:[#allocation19_spill] sm:$0xff] }
 0x20a   : > { %v2594_v46 = vpop.f32.mrf.mxu1 }
 0x20b   : > { %v3046_v29 = vmax.f32 %v2918_v55, 0.0  ;;  %v2921_v20 = vadd.f32 %v8088_v53, %v2600_v11  ;;  %v2595_v48 = vadd.f32 %v2594_v46, %v14368_v14  ;;  %7160 = vmatprep.mubr.bf16.mxu0 %v3134_v43  ;;  %v14378_v55 = vld [vmem:[#allocation20_spill] sm:$0xff]  ;;  %v14379_v46 = vld [vmem:[#allocation21_spill] sm:$0xff] }
 0x20c   : > { %v7001_v13 = vpop.f32.mrf.mxu1 }
 0x20d   : > { %v3135_v18 = vpack.c.bf16 %v3047_v1, %v3046_v29  ;;  %v2920_v7 = vadd.f32 %v8088_v53, %v2595_v48  ;;  %v2610_v25 = vadd.f32 %v7001_v13, %v14369_v36  ;;  %v3049_v23 = vmax.f32 %v2921_v20, 0.0 }
 0x20e   : > { %v2604_v50 = vpop.f32.mrf.mxu1 }
 0x20f   : > { %v3048_v24 = vmax.f32 %v2920_v7, 0.0  ;;  %v2923_v27 = vadd.f32 %v8088_v53, %v2610_v25  ;;  %v2605_v42 = vadd.f32 %v2604_v50, %v14370_v52  ;;  %7161 = vmatmul.mubr.bf16.gmra.mxu0 %v3135_v18  ;;  %v14380_v18 = vld [vmem:[#allocation22_spill] sm:$0xff] }
 0x210   : > { %v7004_v34 = vpop.f32.mrf.mxu1 }
 0x211   : > { %v2922_v21 = vadd.f32 %v8088_v53, %v2605_v42  ;;  %v2620_v32 = vadd.f32 %v7004_v34, %v14371_v54  ;;  %v3136_v15 = vpack.c.bf16 %v3049_v23, %v3048_v24  ;;  %v3051_v56 = vmax.f32 %v2923_v27, 0.0  ;;  %v14381_v23 = vld [vmem:[#allocation23_spill] sm:$0xff] }
 0x212   : > { %v2614_v33 = vpop.f32.mrf.mxu1 }
 0x213   : > { %v3050_v16 = vmax.f32 %v2922_v21, 0.0  ;;  %v2925_v59 = vadd.f32 %v8353_v39, %v2620_v32  ;;  %v2615_v44 = vadd.f32 %v2614_v33, %v14372_v38  ;;  %7164 = vmatprep.mubr.bf16.mxu0 %v3136_v15  ;;  %v14382_v21 = vld [vmem:[#allocation24_spill] sm:$0xff]  ;;  %v14383_v33 = vld [vmem:[#allocation25_spill] sm:$0xff] }
 0x214   : > { %v7007_v58 = vpop.f32.mrf.mxu1 }
 0x215   : > { %v3137_v28 = vpack.c.bf16 %v3051_v56, %v3050_v16  ;;  %v2924_v53 = vadd.f32 %v8353_v39, %v2615_v44  ;;  %v2630_v26 = vadd.f32 %v7007_v58, %v14373_v19  ;;  %v3053_v61 = vmax.f32 %v2925_v59, 0.0 }
 0x216   : > { %v2624_v60 = vpop.f32.mrf.mxu1 }
 0x217   : > { %v3052_v10 = vmax.f32 %v2924_v53, 0.0  ;;  %v2927_v31 = vadd.f32 %v8353_v39, %v2630_v26  ;;  %v2625_v45 = vadd.f32 %v2624_v60, %v14374_v62  ;;  %7165 = vmatmul.mubr.bf16.gmra.mxu0 %v3137_v28  ;;  %v14384_v28 = vld [vmem:[#allocation26_spill] sm:$0xff] }
 0x218   : > { %v7010_v51 = vpop.f32.mrf.mxu1 }
 0x219   : > { %v2926_v57 = vadd.f32 %v8353_v39, %v2625_v45  ;;  %v2640_v37 = vadd.f32 %v7010_v51, %v14375_v0  ;;  %v3138_v40 = vpack.c.bf16 %v3053_v61, %v3052_v10  ;;  %v3055_v17 = vmax.f32 %v2927_v31, 0.0  ;;  %v14385_v61 = vld [vmem:[#allocation27_spill] sm:$0xff] }
 0x21a   : > { %v2634_v49 = vpop.f32.mrf.mxu1 }
 0x21b   : > { %v3054_v9 = vmax.f32 %v2926_v57, 0.0  ;;  %v2929_v2 = vadd.f32 %v8353_v39, %v2640_v37  ;;  %v2635_v47 = vadd.f32 %v2634_v49, %v14376_v63  ;;  %7168 = vmatprep.mubr.bf16.mxu0 %v3138_v40  ;;  %v14386_v57 = vld [vmem:[#allocation28_spill] sm:$0xff]  ;;  %v14387_v49 = vld [vmem:[#allocation29_spill] sm:$0xff] }
 0x21c   : > { %v7013_v41 = vpop.f32.mrf.mxu1 }
 0x21d   : > { %v3139_v5 = vpack.c.bf16 %v3055_v17, %v3054_v9  ;;  %v2928_v30 = vadd.f32 %v8353_v39, %v2635_v47  ;;  %v2650_v4 = vadd.f32 %v7013_v41, %v14377_v3  ;;  %v3057_v22 = vmax.f32 %v2929_v2, 0.0 }
 0x21e   : > { %v2644_v8 = vpop.f32.mrf.mxu1 }
 0x21f   : > { %v3056_v35 = vmax.f32 %v2928_v30, 0.0  ;;  %v2931_v12 = vadd.f32 %v8353_v39, %v2650_v4  ;;  %v2645_v6 = vadd.f32 %v2644_v8, %v14378_v55  ;;  %7169 = vmatmul.mubr.bf16.gmra.mxu0 %v3139_v5  ;;  %v14388_v5 = vld [vmem:[#allocation30_spill] sm:$0xff] }
 0x220   : > { %v7016_v11 = vpop.f32.mrf.mxu1 }
 0x221   : > { %v2930_v43 = vadd.f32 %v8353_v39, %v2645_v6  ;;  %v2660_v1 = vadd.f32 %v7016_v11, %v14379_v46  ;;  %v3140_v29 = vpack.c.bf16 %v3057_v22, %v3056_v35  ;;  %v3059_v14 = vmax.f32 %v2931_v12, 0.0  ;;  %v14389_v22 = vld [vmem:[#allocation31_spill] sm:$0xff]  ;;  %v14390_v46 = vld [vmem:[#allocation32_spill] sm:$0xff] }
 0x222   : > { %v2654_v20 = vpop.f32.mrf.mxu1  ;;  %v8394_v12 = vld [vmem:[%s13869_s7] ss:$0 sm:$0xff] }
 0x223   : > { %v3058_v48 = vmax.f32 %v2930_v43, 0.0  ;;  %v2933_v13 = vadd.f32 %v8353_v39, %v2660_v1  ;;  %v2655_v7 = vadd.f32 %v2654_v20, %v14380_v18  ;;  %7172 = vmatprep.mubr.bf16.mxu0 %v3140_v29 }
 0x224   : > { %v7019_v36 = vpop.f32.mrf.mxu1 }
 0x225   : > { %v3141_v25 = vpack.c.bf16 %v3059_v14, %v3058_v48  ;;  %v2932_v50 = vadd.f32 %v8353_v39, %v2655_v7  ;;  %v2670_v24 = vadd.f32 %v7019_v36, %v14381_v23  ;;  %v3061_v52 = vmax.f32 %v2933_v13, 0.0  ;;  %v14392_v13 = vld [vmem:[#allocation33_spill] sm:$0xff] }
 0x226   : > { %v2664_v27 = vpop.f32.mrf.mxu1 }
 0x227   : > { %v3060_v42 = vmax.f32 %v2932_v50, 0.0  ;;  %v2935_v34 = vadd.f32 %v8353_v39, %v2670_v24  ;;  %v2665_v54 = vadd.f32 %v2664_v27, %v14382_v21  ;;  %7173 = vmatmul.mubr.bf16.gmra.mxu0 %v3141_v25 }
 0x228   : > { %v7022_v32 = vpop.f32.mrf.mxu1 }
 0x229   : > { %v2934_v15 = vadd.f32 %v8353_v39, %v2665_v54  ;;  %v2680_v56 = vadd.f32 %v7022_v32, %v14383_v33  ;;  %v3142_v16 = vpack.c.bf16 %v3061_v52, %v3060_v42  ;;  %v3063_v38 = vmax.f32 %v2935_v34, 0.0  ;;  %v14394_v42 = vld [vmem:[#allocation34_spill] sm:$0xff] }
 0x22a   : > { %v2674_v59 = vpop.f32.mrf.mxu1 }
 0x22b   : > { %v3062_v44 = vmax.f32 %v2934_v15, 0.0  ;;  %v2937_v58 = vadd.f32 %v8353_v39, %v2680_v56  ;;  %v2675_v53 = vadd.f32 %v2674_v59, %v14384_v28  ;;  %7176 = vmatprep.mubr.bf16.mxu0 %v3142_v16  ;;  %v14396_v16 = vld [vmem:[#allocation35_spill] sm:$0xff] }
 0x22c   : > { %v7025_v19 = vpop.f32.mrf.mxu1 }
 0x22d   : > { %v3143_v26 = vpack.c.bf16 %v3063_v38, %v3062_v44  ;;  %v2936_v60 = vadd.f32 %v8353_v39, %v2675_v53  ;;  %v2690_v10 = vadd.f32 %v7025_v19, %v14385_v61  ;;  %v3065_v62 = vmax.f32 %v2937_v58, 0.0 }
 0x22e   : > { %v2684_v31 = vpop.f32.mrf.mxu1 }
 0x22f   : > { %v3064_v45 = vmax.f32 %v2936_v60, 0.0  ;;  %v2939_v51 = vadd.f32 %v8353_v39, %v2690_v10  ;;  %v2685_v0 = vadd.f32 %v2684_v31, %v14386_v57  ;;  %7177 = vmatmul.mubr.bf16.gmra.mxu0 %v3143_v26  ;;  %v14398_v60 = vld [vmem:[#allocation36_spill] sm:$0xff]  ;;  %v14400_v57 = vld [vmem:[#allocation37_spill] sm:$0xff] }
 0x230   : > { %v7028_v37 = vpop.f32.mrf.mxu1 }
 0x231   : > { %v2938_v40 = vadd.f32 %v8353_v39, %v2685_v0  ;;  %v2700_v17 = vadd.f32 %v7028_v37, %v14387_v49  ;;  %v3144_v9 = vpack.c.bf16 %v3065_v62, %v3064_v45  ;;  %v3067_v63 = vmax.f32 %v2939_v51, 0.0 }
 0x232   : > { %v2694_v2 = vpop.f32.mrf.mxu1 }
 0x233   : > { %v3066_v47 = vmax.f32 %v2938_v40, 0.0  ;;  %v2941_v41 = vadd.f32 %v8353_v39, %v2700_v17  ;;  %v2695_v30 = vadd.f32 %v2694_v2, %v14388_v5  ;;  %7180 = vmatprep.mubr.bf16.mxu0 %v3144_v9 }
 0x234   : > { %v7031_v3 = vpop.f32.mrf.mxu1 }
 0x235   : > { %v3145_v4 = vpack.c.bf16 %v3067_v63, %v3066_v47  ;;  %v2940_v8 = vadd.f32 %v8353_v39, %v2695_v30  ;;  %v2710_v35 = vadd.f32 %v7031_v3, %v14389_v22  ;;  %v3069_v6 = vmax.f32 %v2941_v41, 0.0  ;;  %v14402_v41 = vld [vmem:[#allocation38_spill] sm:$0xff] }
 0x236   : > { %v2704_v55 = vpop.f32.mrf.mxu1 }
 0x237   : > { %v3068_v11 = vmax.f32 %v2940_v8, 0.0  ;;  %v2943_v43 = vadd.f32 %v8353_v39, %v2710_v35  ;;  %v2705_v1 = vadd.f32 %v2704_v55, %v14390_v46  ;;  %v7086_v29 = vpop.f32.mrf.mxu0  ;;  %7181 = vmatmul.mubr.bf16.gmra.mxu0 %v3145_v4  ;;  %v14404_v55 = vld [vmem:[#allocation39_spill] sm:$0xff] }
 0x238   : > { %v8399_v20 = vadd.f32 %v7086_v29, %v8394_v12  ;;  %v7034_v14 = vpop.f32.mrf.mxu1 }
 0x239   : > { %v2942_v48 = vadd.f32 %v8353_v39, %v2705_v1  ;;  %v2720_v18 = vadd.f32 %v7034_v14, %v14392_v13  ;;  %v3265_v7 = vpop.f32.mrf.mxu0  ;;  %v3146_v36 = vpack.c.bf16 %v3069_v6, %v3068_v11  ;;  %v3071_v24 = vmax.f32 %v2943_v43, 0.0  ;;  %v14406_v13 = vld [vmem:[#allocation40_spill] sm:$0xff] }
 0x23a   : > { %14391 = vst [vmem:[#allocation8_spill] sm:$0xff] %v8399_v20  ;;  %v8405_v50 = vadd.f32 %v8394_v12, %v3265_v7  ;;  %v2714_v23 = vpop.f32.mrf.mxu1  ;;  %v14438_v43 = vld [vmem:[#allocation56_spill] sm:$0xff]  ;;  %v3907_v20 = vlaneseq }
 0x23b   : > { %v3070_v27 = vmax.f32 %v2942_v48, 0.0  ;;  %v2945_v52 = vadd.f32 %v8353_v39, %v2720_v18  ;;  %v2715_v34 = vadd.f32 %v2714_v23, %v14394_v42  ;;  %v7087_v21 = vpop.f32.mrf.mxu0  ;;  %7184 = vmatprep.mubr.bf16.mxu0 %v3146_v36 }
 0x23c   : > { %14393 = vst [vmem:[#allocation9_spill] sm:$0xff] %v8405_v50  ;;  %v8411_v32 = vadd.f32 %v7087_v21, %v8394_v12  ;;  %v7037_v15 = vpop.f32.mrf.mxu1 }
 0x23d   : > { %v3147_v33 = vpack.c.bf16 %v3071_v24, %v3070_v27  ;;  %v2944_v56 = vadd.f32 %v8353_v39, %v2715_v34  ;;  %v2730_v59 = vadd.f32 %v7037_v15, %v14396_v16  ;;  %v3268_v38 = vpop.f32.mrf.mxu0  ;;  %v3073_v53 = vmax.f32 %v2945_v52, 0.0  ;;  %v14408_v52 = vld [vmem:[#allocation41_spill] sm:$0xff] }
 0x23e   : > { %14395 = vst [vmem:[#allocation10_spill] sm:$0xff] %v8411_v32  ;;  %v8417_v58 = vadd.f32 %v8394_v12, %v3268_v38  ;;  %v2724_v28 = vpop.f32.mrf.mxu1 }
 0x23f   : > { %v3072_v19 = vmax.f32 %v2944_v56, 0.0  ;;  %v2947_v26 = vadd.f32 %v8353_v39, %v2730_v59  ;;  %v2725_v61 = vadd.f32 %v2724_v28, %v14398_v60  ;;  %v7090_v10 = vpop.f32.mrf.mxu0  ;;  %7185 = vmatmul.mubr.bf16.gmra.mxu0 %v3147_v33  ;;  %v14410_v28 = vld [vmem:[#allocation42_spill] sm:$0xff] }
 0x240   : > { %14397 = vst [vmem:[#allocation11_spill] sm:$0xff] %v8417_v58  ;;  %v8423_v62 = vadd.f32 %v7090_v10, %v8394_v12  ;;  %v7040_v45 = vpop.f32.mrf.mxu1 }
 0x241   : > { %v2946_v51 = vadd.f32 %v8353_v39, %v2725_v61  ;;  %v2740_v0 = vadd.f32 %v7040_v45, %v14400_v57  ;;  %v3281_v37 = vpop.f32.mrf.mxu0  ;;  %v3148_v40 = vpack.c.bf16 %v3073_v53, %v3072_v19  ;;  %v3075_v2 = vmax.f32 %v2947_v26, 0.0 }
 0x242   : > { %14399 = vst [vmem:[#allocation12_spill] sm:$0xff] %v8423_v62  ;;  %v8429_v17 = vadd.f32 %v8394_v12, %v3281_v37  ;;  %v2734_v9 = vpop.f32.mrf.mxu1 }
 0x243   : > { %v3074_v63 = vmax.f32 %v2946_v51, 0.0  ;;  %v2949_v47 = vadd.f32 %v8353_v39, %v2740_v0  ;;  %v2735_v5 = vadd.f32 %v2734_v9, %v14402_v41  ;;  %v7091_v30 = vpop.f32.mrf.mxu0  ;;  %7188 = vmatprep.mubr.bf16.mxu0 %v3148_v40  ;;  %v14412_v51 = vld [vmem:[#allocation43_spill] sm:$0xff]  ;;  %v14414_v41 = vld [vmem:[#allocation44_spill] sm:$0xff] }
 0x244   : > { %14401 = vst [vmem:[#allocation13_spill] sm:$0xff] %v8429_v17  ;;  %v8435_v4 = vadd.f32 %v7091_v30, %v8394_v12  ;;  %v7043_v8 = vpop.f32.mrf.mxu1 }
 0x245   : > { %v3149_v22 = vpack.c.bf16 %v3075_v2, %v3074_v63  ;;  %v2948_v35 = vadd.f32 %v8353_v39, %v2735_v5  ;;  %v2750_v6 = vadd.f32 %v7043_v8, %v14404_v55  ;;  %v3284_v11 = vpop.f32.mrf.mxu0  ;;  %v3077_v29 = vmax.f32 %v2949_v47, 0.0 }
 0x246   : > { %14403 = vst [vmem:[#allocation14_spill] sm:$0xff] %v8435_v4  ;;  %v8441_v46 = vadd.f32 %v8394_v12, %v3284_v11  ;;  %v2744_v1 = vpop.f32.mrf.mxu1 }
 0x247   : > { %v3076_v14 = vmax.f32 %v2948_v35, 0.0  ;;  %v2951_v48 = vadd.f32 %v8353_v39, %v2750_v6  ;;  %v2745_v18 = vadd.f32 %v2744_v1, %v14406_v13  ;;  %v7094_v7 = vpop.f32.mrf.mxu0  ;;  %7189 = vmatmul.mubr.bf16.gmra.mxu0 %v3149_v22  ;;  %v14416_v6 = vld [vmem:[#allocation45_spill] sm:$0xff] }
 0x248   : > { %14405 = vst [vmem:[#allocation15_spill] sm:$0xff] %v8441_v46  ;;  %v8447_v23 = vadd.f32 %v7094_v7, %v8394_v12  ;;  %v7046_v24 = vpop.f32.mrf.mxu1 }
 0x249   : > { %v2950_v27 = vadd.f32 %v8353_v39, %v2745_v18  ;;  %v2760_v42 = vadd.f32 %v7046_v24, %v14408_v52  ;;  %v3297_v34 = vpop.f32.mrf.mxu0  ;;  %v3150_v21 = vpack.c.bf16 %v3077_v29, %v3076_v14  ;;  %v3079_v16 = vmax.f32 %v2951_v48, 0.0 }
 0x24a   : > { %14407 = vst [vmem:[#allocation16_spill] sm:$0xff] %v8447_v23  ;;  %v8453_v33 = vadd.f32 %v8394_v12, %v3297_v34  ;;  %v2754_v56 = vpop.f32.mrf.mxu1 }
 0x24b   : > { %v3078_v59 = vmax.f32 %v2950_v27, 0.0  ;;  %v2953_v38 = vadd.f32 %v8353_v39, %v2760_v42  ;;  %v2755_v53 = vadd.f32 %v2754_v56, %v14410_v28  ;;  %v7095_v19 = vpop.f32.mrf.mxu0  ;;  %7192 = vmatprep.mubr.bf16.mxu0 %v3150_v21  ;;  %v14418_v27 = vld [vmem:[#allocation46_spill] sm:$0xff] }
 0x24c   : > { %14409 = vst [vmem:[#allocation17_spill] sm:$0xff] %v8453_v33  ;;  %v8459_v60 = vadd.f32 %v7095_v19, %v8394_v12  ;;  %v7049_v61 = vpop.f32.mrf.mxu1 }
 0x24d   : > { %v3151_v10 = vpack.c.bf16 %v3079_v16, %v3078_v59  ;;  %v2952_v45 = vadd.f32 %v8353_v39, %v2755_v53  ;;  %v2770_v57 = vadd.f32 %v7049_v61, %v14412_v51  ;;  %v3300_v0 = vpop.f32.mrf.mxu0  ;;  %v3081_v2 = vmax.f32 %v2953_v38, 0.0  ;;  %v14420_v38 = vld [vmem:[#allocation47_spill] sm:$0xff] }
 0x24e   : > { %14411 = vst [vmem:[#allocation18_spill] sm:$0xff] %v8459_v60  ;;  %v8465_v40 = vadd.f32 %v8394_v12, %v3300_v0  ;;  %v2764_v9 = vpop.f32.mrf.mxu1  ;;  %v14422_v0 = vld [vmem:[#allocation48_spill] sm:$0xff] }
 0x24f   : > { %v3080_v63 = vmax.f32 %v2952_v45, 0.0  ;;  %v2955_v47 = vadd.f32 %v8353_v39, %v2770_v57  ;;  %v2765_v5 = vadd.f32 %v2764_v9, %v14414_v41  ;;  %v7098_v30 = vpop.f32.mrf.mxu0  ;;  %7193 = vmatmul.mubr.bf16.gmra.mxu0 %v3151_v10 }
 0x250   : > { %14413 = vst [vmem:[#allocation19_spill] sm:$0xff] %v8465_v40  ;;  %v8471_v22 = vadd.f32 %v7098_v30, %v8394_v12  ;;  %v7052_v35 = vpop.f32.mrf.mxu1  ;;  %v14424_v30 = vld [vmem:[#allocation49_spill] sm:$0xff] }
 0x251   : > { %v2954_v55 = vadd.f32 %v8353_v39, %v2765_v5  ;;  %v2780_v11 = vadd.f32 %v7052_v35, %v14416_v6  ;;  %v3313_v1 = vpop.f32.mrf.mxu0  ;;  %v3152_v29 = vpack.c.bf16 %v3081_v2, %v3080_v63  ;;  %v3083_v18 = vmax.f32 %v2955_v47, 0.0 }
 0x252   : > { %14415 = vst [vmem:[#allocation20_spill] sm:$0xff] %v8471_v22  ;;  %v8477_v48 = vadd.f32 %v8394_v12, %v3313_v1  ;;  %v2774_v13 = vpop.f32.mrf.mxu1 }
 0x253   : > { %v3082_v7 = vmax.f32 %v2954_v55, 0.0  ;;  %v2957_v24 = vadd.f32 %v8353_v39, %v2780_v11  ;;  %v2775_v52 = vadd.f32 %v2774_v13, %v14418_v27  ;;  %v7099_v42 = vpop.f32.mrf.mxu0  ;;  %7196 = vmatprep.mubr.bf16.mxu0 %v3152_v29 }
 0x254   : > { %14417 = vst [vmem:[#allocation21_spill] sm:$0xff] %v8477_v48  ;;  %v8483_v21 = vadd.f32 %v7099_v42, %v8394_v12  ;;  %v7055_v56 = vpop.f32.mrf.mxu1 }
 0x255   : > { %v3153_v16 = vpack.c.bf16 %v3083_v18, %v3082_v7  ;;  %v2956_v59 = vadd.f32 %v8353_v39, %v2775_v52  ;;  %v2790_v28 = vadd.f32 %v7055_v56, %v14420_v38  ;;  %v3316_v53 = vpop.f32.mrf.mxu0  ;;  %v3085_v45 = vmax.f32 %v2957_v24, 0.0  ;;  %v14426_v24 = vld [vmem:[#allocation50_spill] sm:$0xff] }
 0x256   : > { %14419 = vst [vmem:[#allocation22_spill] sm:$0xff] %v8483_v21  ;;  %v8489_v61 = vadd.f32 %v8394_v12, %v3316_v53  ;;  %v2784_v10 = vpop.f32.mrf.mxu1 }
 0x257   : > { %v3084_v51 = vmax.f32 %v2956_v59, 0.0  ;;  %v2959_v57 = vadd.f32 %v8353_v39, %v2790_v28  ;;  %v2785_v9 = vadd.f32 %v2784_v10, %v14422_v0  ;;  %v7102_v2 = vpop.f32.mrf.mxu0  ;;  %7197 = vmatmul.mubr.bf16.gmra.mxu0 %v3153_v16  ;;  %v14428_v28 = vld [vmem:[#allocation51_spill] sm:$0xff] }
 0x258   : > { %14421 = vst [vmem:[#allocation23_spill] sm:$0xff] %v8489_v61  ;;  %v8495_v47 = vadd.f32 %v7102_v2, %v8394_v12  ;;  %v7058_v41 = vpop.f32.mrf.mxu1 }
 0x259   : > { %v2958_v5 = vadd.f32 %v8353_v39, %v2785_v9  ;;  %v2800_v35 = vadd.f32 %v7058_v41, %v14424_v30  ;;  %v3329_v55 = vpop.f32.mrf.mxu0  ;;  %v3154_v6 = vpack.c.bf16 %v3085_v45, %v3084_v51  ;;  %v3087_v13 = vmax.f32 %v2959_v57, 0.0  ;;  %v14430_v41 = vld [vmem:[#allocation52_spill] sm:$0xff] }
 0x25a   : > { %14423 = vst [vmem:[#allocation24_spill] sm:$0xff] %v8495_v47  ;;  %v8501_v1 = vadd.f32 %v8394_v12, %v3329_v55  ;;  %v2794_v29 = vpop.f32.mrf.mxu1 }
 0x25b   : > { %v3086_v18 = vmax.f32 %v2958_v5, 0.0  ;;  %v2961_v7 = vadd.f32 %v8353_v39, %v2800_v35  ;;  %v2795_v27 = vadd.f32 %v2794_v29, %v14426_v24  ;;  %v7103_v52 = vpop.f32.mrf.mxu0  ;;  %7200 = vmatprep.mubr.bf16.mxu0 %v3154_v6 }
 0x25c   : > { %14425 = vst [vmem:[#allocation25_spill] sm:$0xff] %v8501_v1  ;;  %v8507_v56 = vadd.f32 %v7103_v52, %v8394_v12  ;;  %v7061_v16 = vpop.f32.mrf.mxu1 }
 0x25d   : > { %v3155_v59 = vpack.c.bf16 %v3087_v13, %v3086_v18  ;;  %v2960_v38 = vadd.f32 %v8353_v39, %v2795_v27  ;;  %v2810_v53 = vadd.f32 %v7061_v16, %v14428_v28  ;;  %v3332_v10 = vpop.f32.mrf.mxu0  ;;  %v3089_v0 = vmax.f32 %v2961_v7, 0.0  ;;  %v14432_v13 = vld [vmem:[#allocation53_spill] sm:$0xff] }
 0x25e   : > { %14427 = vst [vmem:[#allocation26_spill] sm:$0xff] %v8507_v56  ;;  %v8513_v51 = vadd.f32 %v8394_v12, %v3332_v10  ;;  %v2804_v57 = vpop.f32.mrf.mxu1 }
 0x25f   : > { %v3088_v9 = vmax.f32 %v2960_v38, 0.0  ;;  %v2963_v2 = vadd.f32 %v8353_v39, %v2810_v53  ;;  %v2805_v5 = vadd.f32 %v2804_v57, %v14430_v41  ;;  %v7106_v30 = vpop.f32.mrf.mxu0  ;;  %7201 = vmatmul.mubr.bf16.gmra.mxu0 %v3155_v59  ;;  %v14434_v53 = vld [vmem:[#allocation54_spill] sm:$0xff] }
 0x260   : > { %14429 = vst [vmem:[#allocation27_spill] sm:$0xff] %v8513_v51  ;;  %v8519_v55 = vadd.f32 %v7106_v30, %v8394_v12  ;;  %v7064_v6 = vpop.f32.mrf.mxu1 }
 0x261   : > { %v2962_v29 = vadd.f32 %v8353_v39, %v2805_v5  ;;  %v2820_v18 = vadd.f32 %v7064_v6, %v14432_v13  ;;  %v3345_v24 = vpop.f32.mrf.mxu0  ;;  %v3156_v27 = vpack.c.bf16 %v3089_v0, %v3088_v9  ;;  %v3091_v38 = vmax.f32 %v2963_v2, 0.0  ;;  %v14436_v6 = vld [vmem:[#allocation55_spill] sm:$0xff] }
 0x262   : > { %14431 = vst [vmem:[#allocation28_spill] sm:$0xff] %v8519_v55  ;;  %v8525_v52 = vadd.f32 %v8394_v12, %v3345_v24  ;;  %v2814_v16 = vpop.f32.mrf.mxu1 }
 0x263   : > { %v3090_v59 = vmax.f32 %v2962_v29, 0.0  ;;  %v2965_v28 = vadd.f32 %v8353_v39, %v2820_v18  ;;  %v2815_v10 = vadd.f32 %v2814_v16, %v14434_v53  ;;  %v7107_v57 = vpop.f32.mrf.mxu0  ;;  %7204 = vmatprep.mubr.bf16.mxu0 %v3156_v27 }
 0x264   : > { %14433 = vst [vmem:[#allocation29_spill] sm:$0xff] %v8525_v52  ;;  %v8531_v5 = vadd.f32 %v7107_v57, %v8394_v12  ;;  %v7067_v0 = vpop.f32.mrf.mxu1 }
 0x265   : > { %v3157_v9 = vpack.c.bf16 %v3091_v38, %v3090_v59  ;;  %v2964_v30 = vadd.f32 %v8353_v39, %v2815_v10  ;;  %v2830_v13 = vadd.f32 %v7067_v0, %v14436_v6  ;;  %v3348_v24 = vpop.f32.mrf.mxu0  ;;  %v3093_v16 = vmax.f32 %v2965_v28, 0.0 }
 0x266   : > { %14435 = vst [vmem:[#allocation30_spill] sm:$0xff] %v8531_v5  ;;  %v8537_v29 = vadd.f32 %v8394_v12, %v3348_v24  ;;  %v2824_v18 = vpop.f32.mrf.mxu1 }
 0x267   : > { %v3092_v27 = vmax.f32 %v2964_v30, 0.0  ;;  %v2967_v53 = vadd.f32 %v8353_v39, %v2830_v13  ;;  %v2825_v57 = vadd.f32 %v2824_v18, %v14438_v43  ;;  %v7110_v44 = vpop.f32.mrf.mxu0  ;;  %7205 = vmatmul.mubr.bf16.gmra.mxu0 %v3157_v9 }
 0x268   : > { %14437 = vst [vmem:[#allocation31_spill] sm:$0xff] %v8537_v29  ;;  %v8543_v59 = vadd.f32 %v7110_v44, %v8394_v12 }
 0x269   : > { %v2966_v10 = vadd.f32 %v8353_v39, %v2825_v57  ;;  %v3361_v0 = vpop.f32.mrf.mxu0  ;;  %v3158_v6 = vpack.c.bf16 %v3093_v16, %v3092_v27  ;;  %v3095_v30 = vmax.f32 %v2967_v53, 0.0 }
 0x26a   : > { %14439 = vst [vmem:[#allocation32_spill] sm:$0xff] %v8543_v59  ;;  %v8548_v28 = vadd.f32 %v8394_v12, %v3361_v0 }
 0x26b   : > { %v3094_v13 = vmax.f32 %v2966_v10, 0.0  ;;  %v7111_v49 = vpop.f32.mrf.mxu0  ;;  %7208 = vmatprep.mubr.bf16.mxu0 %v3158_v6 }
 0x26c   : > { %14440 = vst [vmem:[#allocation33_spill] sm:$0xff] %v8548_v28  ;;  %v8552_v9 = vadd.f32 %v7111_v49, %v8394_v12 }
 0x26d   : > { %v3159_v44 = vpack.c.bf16 %v3095_v30, %v3094_v13  ;;  %v3364_v18 = vpop.f32.mrf.mxu0 }
 0x26e   : > { %14441 = vst [vmem:[#allocation34_spill] sm:$0xff] %v8552_v9  ;;  %v8556_v16 = vadd.f32 %v8394_v12, %v3364_v18 }
 0x26f   : > { %v7114_v27 = vpop.f32.mrf.mxu0  ;;  %7209 = vmatmul.mubr.bf16.gmra.mxu0 %v3159_v44 }
 0x270   : > { %14442 = vst [vmem:[#allocation35_spill] sm:$0xff] %v8556_v16  ;;  %v8560_v53 = vadd.f32 %v7114_v27, %v8394_v12 }
 0x271   : > { %v3377_v10 = vpop.f32.mrf.mxu0 }
 0x272   : > { %14443 = vst [vmem:[#allocation36_spill] sm:$0xff] %v8560_v53  ;;  %v8564_v49 = vadd.f32 %v8394_v12, %v3377_v10 }
 0x273   : > { %v7115_v6 = vpop.f32.mrf.mxu0 }
 0x274   : > { %14444 = vst [vmem:[#allocation37_spill] sm:$0xff] %v8564_v49  ;;  %v8568_v13 = vadd.f32 %v7115_v6, %v8394_v12 }
 0x275   : > { %v3380_v18 = vpop.f32.mrf.mxu0 }
 0x276   : > { %14445 = vst [vmem:[#allocation38_spill] sm:$0xff] %v8568_v13  ;;  %v8572_v25 = vadd.f32 %v8394_v12, %v3380_v18 }
 0x277   : > { %v7118_v27 = vpop.f32.mrf.mxu0 }
 0x278   : > { %14446 = vst [vmem:[#allocation39_spill] sm:$0xff] %v8572_v25  ;;  %v8576_v31 = vadd.f32 %v7118_v27, %v8394_v12 }
 0x279   : > { %v3393_v10 = vpop.f32.mrf.mxu0 }
 0x27a   : > { %14447 = vst [vmem:[#allocation40_spill] sm:$0xff] %v8576_v31  ;;  %v8580_v54 = vadd.f32 %v8394_v12, %v3393_v10 }
 0x27b   : > { %v7119_v6 = vpop.f32.mrf.mxu0 }
 0x27c   : > { %14448 = vst [vmem:[#allocation41_spill] sm:$0xff] %v8580_v54  ;;  %v8584_v44 = vadd.f32 %v7119_v6, %v8394_v12 }
 0x27d   : > { %v3396_v18 = vpop.f32.mrf.mxu0 }
 0x27e   : > { %14449 = vst [vmem:[#allocation42_spill] sm:$0xff] %v8584_v44  ;;  %v8588_v36 = vadd.f32 %v8394_v12, %v3396_v18 }
 0x27f   : > { %v7122_v27 = vpop.f32.mrf.mxu0 }
 0x280   : > { %14450 = vst [vmem:[#allocation43_spill] sm:$0xff] %v8588_v36  ;;  %v8592_v3 = vadd.f32 %v7122_v27, %v8394_v12 }
 0x281   : > { %v3409_v10 = vpop.f32.mrf.mxu0 }
 0x282   : > { %14451 = vst [vmem:[#allocation44_spill] sm:$0xff] %v8592_v3  ;;  %v8596_v0 = vadd.f32 %v8394_v12, %v3409_v10 }
 0x283   : > { %v7123_v6 = vpop.f32.mrf.mxu0 }
 0x284   : > { %14452 = vst [vmem:[#allocation45_spill] sm:$0xff] %v8596_v0  ;;  %v8600_v30 = vadd.f32 %v7123_v6, %v8394_v12 }
 0x285   : > { %v3412_v18 = vpop.f32.mrf.mxu0 }
 0x286   : > { %14453 = vst [vmem:[#allocation46_spill] sm:$0xff] %v8600_v30  ;;  %v8604_v39 = vadd.f32 %v8394_v12, %v3412_v18 }
 0x287   : > { %v7126_v27 = vpop.f32.mrf.mxu0 }
 0x288   : > { %14454 = vst [vmem:[#allocation47_spill] sm:$0xff] %v8604_v39  ;;  %v8608_v24 = vadd.f32 %v7126_v27, %v8394_v12 }
 0x289   : > { %v3425_v10 = vpop.f32.mrf.mxu0 }
 0x28a   : > { %14455 = vst [vmem:[#allocation48_spill] sm:$0xff] %v8608_v24  ;;  %v8612_v57 = vadd.f32 %v8394_v12, %v3425_v10 }
 0x28b   : > { %v7127_v6 = vpop.f32.mrf.mxu0 }
 0x28c   : > { %14456 = vst [vmem:[#allocation49_spill] sm:$0xff] %v8612_v57  ;;  %v8616_v43 = vadd.f32 %v7127_v6, %v8394_v12 }
 0x28d   : > { %v3428_v18 = vpop.f32.mrf.mxu0 }
 0x28e   : > { %14457 = vst [vmem:[#allocation50_spill] sm:$0xff] %v8616_v43  ;;  %v8620_v2 = vadd.f32 %v8394_v12, %v3428_v18 }
 0x28f   : > { %v7130_v27 = vpop.f32.mrf.mxu0 }
 0x290   : > { %14458 = vst [vmem:[#allocation51_spill] sm:$0xff] %v8620_v2  ;;  %v8624_v7 = vadd.f32 %v7130_v27, %v8394_v12 }
 0x291   : > { %v3441_v10 = vpop.f32.mrf.mxu0 }
 0x292   : > { %14459 = vst [vmem:[#allocation52_spill] sm:$0xff] %v8624_v7  ;;  %v8628_v38 = vadd.f32 %v8394_v12, %v3441_v10 }
 0x293   : > { %v7131_v6 = vpop.f32.mrf.mxu0 }
 0x294   : > { %14460 = vst [vmem:[#allocation53_spill] sm:$0xff] %v8628_v38  ;;  %v8632_v41 = vadd.f32 %v7131_v6, %v8394_v12 }
 0x295   : > { %v3444_v18 = vpop.f32.mrf.mxu0 }
 0x296   : > { %14461 = vst [vmem:[#allocation54_spill] sm:$0xff] %v8632_v41  ;;  %v8636_v45 = vadd.f32 %v8394_v12, %v3444_v18 }
 0x297   : > { %v7134_v27 = vpop.f32.mrf.mxu0 }
 0x298   : > { %14462 = vst [vmem:[#allocation55_spill] sm:$0xff] %v8636_v45  ;;  %v8640_v11 = vadd.f32 %v7134_v27, %v8394_v12 }
 0x299   : > { %v3457_v10 = vpop.f32.mrf.mxu0 }
 0x29a   : > { %14463 = vst [vmem:[#allocation56_spill] sm:$0xff] %v8640_v11  ;;  %v8644_v35 = vadd.f32 %v8394_v12, %v3457_v10 }
 0x29b   : > { %v7135_v6 = vpop.f32.mrf.mxu0 }
 0x29c   : > { %14464 = vst [vmem:[#allocation57_spill] sm:$0xff] %v8644_v35  ;;  %v8648_v42 = vadd.f32 %v7135_v6, %v8394_v12 }
 0x29d   : > { %v3460_v18 = vpop.f32.mrf.mxu0 }
 0x29e   : > { %14465 = vst [vmem:[#allocation58_spill] sm:$0xff] %v8648_v42  ;;  %v8652_v19 = vadd.f32 %v8394_v12, %v3460_v18 }
 0x29f   : > { %v7138_v27 = vpop.f32.mrf.mxu0 }
 0x2a0   : > { %14466 = vst [vmem:[#allocation59_spill] sm:$0xff] %v8652_v19  ;;  %v8656_v14 = vadd.f32 %v7138_v27, %v8394_v12 }
 0x2a1   : > { %v3473_v10 = vpop.f32.mrf.mxu0 }
 0x2a2   : > { %14467 = vst [vmem:[#allocation60_spill] sm:$0xff] %v8656_v14  ;;  %v8660_v63 = vadd.f32 %v8394_v12, %v3473_v10 }
 0x2a3   : > { %v7139_v6 = vpop.f32.mrf.mxu0 }
 0x2a4   : > { %14468 = vst [vmem:[#allocation61_spill] sm:$0xff] %v8660_v63  ;;  %v8664_v34 = vadd.f32 %v7139_v6, %v8394_v12 }
 0x2a5   : > { %v3476_v18 = vpop.f32.mrf.mxu0 }
 0x2a6   : > { %14469 = vst [vmem:[#allocation62_spill] sm:$0xff] %v8664_v34  ;;  %v8668_v37 = vadd.f32 %v8394_v12, %v3476_v18 }
 0x2a7   : > { %v7142_v27 = vpop.f32.mrf.mxu0 }
 0x2a8   : > { %14470 = vst [vmem:[#allocation63_spill] sm:$0xff] %v8668_v37  ;;  %v8672_v15 = vadd.f32 %v7142_v27, %v8394_v12 }
 0x2a9   : > { %v3489_v10 = vpop.f32.mrf.mxu0 }
 0x2aa   : > { %14471 = vst [vmem:[#allocation64_spill] sm:$0xff] %v8672_v15  ;;  %v8676_v8 = vadd.f32 %v8394_v12, %v3489_v10 }
 0x2ab   : > { %v7143_v6 = vpop.f32.mrf.mxu0 }
 0x2ac   : > { %14472 = vst [vmem:[#allocation65_spill] sm:$0xff] %v8676_v8  ;;  %v8680_v26 = vadd.f32 %v7143_v6, %v8394_v12 }
 0x2ad   : > { %v3492_v18 = vpop.f32.mrf.mxu0 }
 0x2ae   : > { %14473 = vst [vmem:[#allocation66_spill] sm:$0xff] %v8680_v26  ;;  %v8684_v4 = vadd.f32 %v8394_v12, %v3492_v18 }
 0x2af   : > { %v7146_v27 = vpop.f32.mrf.mxu0 }
 0x2b0   : > { %14474 = vst [vmem:[#allocation67_spill] sm:$0xff] %v8684_v4  ;;  %v8688_v32 = vadd.f32 %v7146_v27, %v8394_v12  ;;  %v8705_v27 = vshrl.u32 %v3907_v20, 7 }
 0x2b1   : > { %v3505_v10 = vpop.f32.mrf.mxu0 }
 0x2b2   : > { %14475 = vst [vmem:[#allocation68_spill] sm:$0xff] %v8688_v32  ;;  %v8696_v62 = vadd.f32 %v8394_v12, %v3505_v10  ;;  %v8713_v58 = vadd.s32 8, %v8705_v27  ;;  %v8726_v50 = vadd.s32 24, %v8705_v27  ;;  %v8729_v10 = vadd.s32 32, %v8705_v27 }
 0x2b3   : > { %v7147_v18 = vpop.f32.mrf.mxu0  ;;  %v8744_v26 = vadd.s32 56, %v8705_v27  ;;  %v8747_v15 = vadd.s32 64, %v8705_v27  ;;  %v8750_v8 = vadd.s32 72, %v8705_v27  ;;  %v8753_v34 = vadd.s32 80, %v8705_v27 }
 0x2b4   : > { %14476 = vst [vmem:[#allocation69_spill] sm:$0xff] %v8696_v62  ;;  %v8700_v46 = vadd.f32 %v7147_v18, %v8394_v12  ;;  %v8716_v18 = vadd.s32 16, %v8705_v27  ;;  %v8756_v14 = vadd.s32 88, %v8705_v27  ;;  %v8759_v32 = vadd.s32 96, %v8705_v27 }
 0x2b5   : > { %v3508_v17 = vpop.f32.mrf.mxu0  ;;  %v8772_v37 = vadd.s32 104, %v8705_v27  ;;  %v8775_v63 = vadd.s32 112, %v8705_v27  ;;  %v8778_v11 = vadd.s32 120, %v8705_v27  ;;  %v8781_v19 = vadd.s32 128, %v8705_v27 }
 0x2b6   : > { %14477 = vst [vmem:[#allocation70_spill] sm:$0xff] %v8700_v46  ;;  %v8710_v6 = vadd.f32 %v8394_v12, %v3508_v17  ;;  %v8732_v17 = vadd.s32 40, %v8705_v27  ;;  %v8735_v46 = vadd.s32 48, %v8705_v27  ;;  %v8784_v35 = vadd.s32 136, %v8705_v27 }
 0x2b7   : > { %v7150_v20 = vpop.f32.mrf.mxu0  ;;  %v8794_v41 = vadd.s32 152, %v8705_v27  ;;  %v8797_v7 = vadd.s32 160, %v8705_v27  ;;  %v8800_v38 = vadd.s32 168, %v8705_v27  ;;  %v8803_v43 = vadd.s32 176, %v8705_v27 }
 0x2b8   : > { %14478 = vst [vmem:[#allocation71_spill] sm:$0xff] %v8710_v6  ;;  %v8741_v62 = vadd.f32 %v7150_v20, %v8394_v12  ;;  %v8787_v20 = vadd.s32 144, %v8705_v27  ;;  %v8806_v24 = vadd.s32 184, %v8705_v27  ;;  %v8816_v2 = vadd.s32 200, %v8705_v27 }
 0x2b9   : > { %v3521_v4 = vpop.f32.mrf.mxu0  ;;  %v8819_v57 = vadd.s32 208, %v8705_v27  ;;  %v8822_v3 = vadd.s32 216, %v8705_v27  ;;  %v8825_v39 = vadd.s32 224, %v8705_v27  ;;  %v8828_v0 = vadd.s32 232, %v8705_v27 }
 0x2ba   : > { %14480 = vst [vmem:[#allocation72_spill] sm:$0xff] %v8741_v62  ;;  %v8769_v6 = vadd.f32 %v8394_v12, %v3521_v4  ;;  %v8809_v4 = vadd.s32 192, %v8705_v27  ;;  %v8838_v44 = vadd.s32 248, %v8705_v27  ;;  %v8841_v31 = vadd.s32 256, %v8705_v27 }
 0x2bb   : > { %v7151_v42 = vpop.f32.mrf.mxu0  ;;  %v8844_v54 = vadd.s32 264, %v8705_v27  ;;  %v8847_v13 = vadd.s32 272, %v8705_v27  ;;  %v8850_v53 = vadd.s32 280, %v8705_v27  ;;  %v8860_v25 = vadd.s32 296, %v8705_v27 }
 0x2bc   : > { %14482 = vst [vmem:[#allocation73_spill] sm:$0xff] %v8769_v6  ;;  %v8791_v62 = vadd.f32 %v7151_v42, %v8394_v12  ;;  %v8831_v42 = vadd.s32 240, %v8705_v27  ;;  %v8863_v49 = vadd.s32 304, %v8705_v27  ;;  %v8866_v59 = vadd.s32 312, %v8705_v27 }
 0x2bd   : > { %v3524_v45 = vpop.f32.mrf.mxu0  ;;  %v8869_v16 = vadd.s32 320, %v8705_v27  ;;  %v8872_v28 = vadd.s32 328, %v8705_v27  ;;  %v8882_v5 = vadd.s32 344, %v8705_v27  ;;  %v8885_v55 = vadd.s32 352, %v8705_v27 }
 0x2be   : > { %14483 = vst [vmem:[#allocation74_spill] sm:$0xff] %v8791_v62  ;;  %v8813_v6 = vadd.f32 %v8394_v12, %v3524_v45  ;;  %v8853_v45 = vadd.s32 288, %v8705_v27  ;;  %v8888_v52 = vadd.s32 360, %v8705_v27  ;;  %v8891_v56 = vadd.s32 368, %v8705_v27 }
 0x2bf   : > { %v7154_v30 = vpop.f32.mrf.mxu0  ;;  %v8894_v47 = vadd.s32 376, %v8705_v27  ;;  %v8904_v51 = vadd.s32 392, %v8705_v27  ;;  %v8907_v1 = vadd.s32 400, %v8705_v27  ;;  %v8910_v22 = vadd.s32 408, %v8705_v27 }
 0x2c0   : > { %14484 = vst [vmem:[#allocation75_spill] sm:$0xff] %v8813_v6  ;;  %v8835_v62 = vadd.f32 %v7154_v30, %v8394_v12  ;;  %v8875_v30 = vadd.s32 336, %v8705_v27  ;;  %v8913_v61 = vadd.s32 416, %v8705_v27  ;;  %v8916_v48 = vadd.s32 424, %v8705_v27 }
 0x2c1   : > { %v3537_v36 = vpop.f32.mrf.mxu0  ;;  %v8926_v60 = vadd.s32 440, %v8705_v27  ;;  %v8929_v23 = vadd.s32 448, %v8705_v27  ;;  %v8932_v33 = vadd.s32 456, %v8705_v27 }
 0x2c2   : > { %14485 = vst [vmem:[#allocation76_spill] sm:$0xff] %v8835_v62  ;;  %v8857_v6 = vadd.f32 %v8394_v12, %v3537_v36  ;;  %v8897_v36 = vadd.s32 384, %v8705_v27  ;;  %14489 = vst [vmem:[#allocation80_spill] sm:$0xff] %v8916_v48  ;;  %v8935_v48 = vadd.s32 464, %v8705_v27 }
 0x2c3   : > { %v7155_v9 = vpop.f32.mrf.mxu0  ;;  %14492 = vst [vmem:[#allocation83_spill] sm:$0xff] %v8926_v60  ;;  %14493 = vst [vmem:[#allocation84_spill] sm:$0xff] %v8929_v23  ;;  %v8948_v23 = vadd.s32 488, %v8705_v27  ;;  %v8951_v60 = vadd.s32 496, %v8705_v27 }
 0x2c4   : > { %14486 = vst [vmem:[#allocation77_spill] sm:$0xff] %v8857_v6  ;;  %v8879_v62 = vadd.f32 %v7155_v9, %v8394_v12  ;;  %v8919_v9 = vadd.s32 432, %v8705_v27  ;;  %14494 = vst [vmem:[#allocation85_spill] sm:$0xff] %v8932_v33 }
 0x2c5   : > { %v3540_v29 = vpop.f32.mrf.mxu0  ;;  %14495 = vst [vmem:[#allocation86_spill] sm:$0xff] %v8935_v48  ;;  %14499 = vst [vmem:[#allocation90_spill] sm:$0xff] %v8948_v23  ;;  %v8954_v48 = vadd.s32 504, %v8705_v27  ;;  %v8973_v23 = vadd.s32 544, %v8705_v27 }
 0x2c6   : > { %14487 = vst [vmem:[#allocation78_spill] sm:$0xff] %v8879_v62  ;;  %v8901_v6 = vadd.f32 %v8394_v12, %v3540_v29  ;;  %14490 = vst [vmem:[#allocation81_spill] sm:$0xff] %v8919_v9  ;;  %v8938_v9 = vadd.s32 472, %v8705_v27  ;;  %v8941_v29 = vadd.s32 480, %v8705_v27 }
 0x2c7   : > { %v7158_v21 = vpop.f32.mrf.mxu0  ;;  %14500 = vst [vmem:[#allocation91_spill] sm:$0xff] %v8951_v60  ;;  %14501 = vst [vmem:[#allocation92_spill] sm:$0xff] %v8954_v48  ;;  %v8970_v60 = vadd.s32 536, %v8705_v27 }
 0x2c8   : > { %14488 = vst [vmem:[#allocation79_spill] sm:$0xff] %v8901_v6  ;;  %v8923_v62 = vadd.f32 %v7158_v21, %v8394_v12  ;;  %14496 = vst [vmem:[#allocation87_spill] sm:$0xff] %v8938_v9  ;;  %v8957_v9 = vadd.s32 512, %v8705_v27  ;;  %v8963_v21 = vadd.s32 528, %v8705_v27 }
 0x2c9   : > { %v3553_v40 = vpop.f32.mrf.mxu0  ;;  %14497 = vst [vmem:[#allocation88_spill] sm:$0xff] %v8941_v29  ;;  %v8960_v29 = vadd.s32 520, %v8705_v27  ;;  %14506 = vst [vmem:[#allocation97_spill] sm:$0xff] %v8970_v60  ;;  %v8995_v60 = vadd.s32 592, %v8705_v27 }
 0x2ca   : > { %14491 = vst [vmem:[#allocation82_spill] sm:$0xff] %v8923_v62  ;;  %v8945_v6 = vadd.f32 %v8394_v12, %v3553_v40  ;;  %14502 = vst [vmem:[#allocation93_spill] sm:$0xff] %v8957_v9  ;;  %v8976_v9 = vadd.s32 552, %v8705_v27  ;;  %v8985_v40 = vadd.s32 576, %v8705_v27 }
 0x2cb   : > { %v7159_v33 = vpop.f32.mrf.mxu0  ;;  %14503 = vst [vmem:[#allocation94_spill] sm:$0xff] %v8960_v29  ;;  %14504 = vst [vmem:[#allocation95_spill] sm:$0xff] %v8963_v21  ;;  %v8979_v29 = vadd.s32 560, %v8705_v27  ;;  %v8982_v21 = vadd.s32 568, %v8705_v27 }
 0x2cc   : > { %14498 = vst [vmem:[#allocation89_spill] sm:$0xff] %v8945_v6  ;;  %v8967_v62 = vadd.f32 %v7159_v33, %v8394_v12  ;;  %14507 = vst [vmem:[#allocation98_spill] sm:$0xff] %v8973_v23  ;;  %v8992_v23 = vadd.s32 584, %v8705_v27  ;;  %v9007_v33 = vadd.s32 624, %v8705_v27 }
 0x2cd   : > { %v3556_v48 = vpop.f32.mrf.mxu0  ;;  %14508 = vst [vmem:[#allocation99_spill] sm:$0xff] %v8976_v9  ;;  %14509 = vst [vmem:[#allocation100_spill] sm:$0xff] %v8979_v29  ;;  %v8998_v29 = vadd.s32 600, %v8705_v27 }
 0x2ce   : > { %14505 = vst [vmem:[#allocation96_spill] sm:$0xff] %v8967_v62  ;;  %14510 = vst [vmem:[#allocation101_spill] sm:$0xff] %v8982_v21  ;;  %v8989_v6 = vadd.f32 %v8394_v12, %v3556_v48  ;;  %v9001_v21 = vadd.s32 608, %v8705_v27  ;;  %v9029_v48 = vadd.s32 672, %v8705_v27 }
 0x2cf   : > { %14511 = vst [vmem:[#allocation102_spill] sm:$0xff] %v8985_v40  ;;  %14513 = vst [vmem:[#allocation104_spill] sm:$0xff] %v8992_v23  ;;  %v7162_v9 = vpop.f32.mrf.mxu0  ;;  %v9004_v40 = vadd.s32 616, %v8705_v27  ;;  %v9017_v23 = vadd.s32 640, %v8705_v27 }
 0x2d0   : > { %14512 = vst [vmem:[#allocation103_spill] sm:$0xff] %v8989_v6  ;;  %14514 = vst [vmem:[#allocation105_spill] sm:$0xff] %v8995_v60  ;;  %v9011_v62 = vadd.f32 %v7162_v9, %v8394_v12  ;;  %v9014_v60 = vadd.s32 632, %v8705_v27  ;;  %v9051_v9 = vadd.s32 720, %v8705_v27 }
 0x2d1   : > { %14515 = vst [vmem:[#allocation106_spill] sm:$0xff] %v8998_v29  ;;  %14516 = vst [vmem:[#allocation107_spill] sm:$0xff] %v9001_v21  ;;  %v3569_v29 = vpop.f32.mrf.mxu0  ;;  %v9020_v21 = vadd.s32 648, %v8705_v27 }
 0x2d2   : > { %14517 = vst [vmem:[#allocation108_spill] sm:$0xff] %v9004_v40  ;;  %14518 = vst [vmem:[#allocation109_spill] sm:$0xff] %v9007_v33  ;;  %v9023_v40 = vadd.s32 656, %v8705_v27  ;;  %v9026_v33 = vadd.s32 664, %v8705_v27  ;;  %v9033_v6 = vadd.f32 %v8394_v12, %v3569_v29  ;;  %v9073_v29 = vadd.s32 768, %v8705_v27 }
 0x2d3   : > { %14519 = vst [vmem:[#allocation110_spill] sm:$0xff] %v9011_v62  ;;  %14520 = vst [vmem:[#allocation111_spill] sm:$0xff] %v9014_v60  ;;  %v9039_v60 = vadd.s32 688, %v8705_v27 }
 0x2d4   : > { %14521 = vst [vmem:[#allocation112_spill] sm:$0xff] %v9017_v23  ;;  %14522 = vst [vmem:[#allocation113_spill] sm:$0xff] %v9020_v21  ;;  %v9036_v23 = vadd.s32 680, %v8705_v27  ;;  %v7163_v21 = vpop.f32.mrf.mxu0 }
 0x2d5   : > { %14523 = vst [vmem:[#allocation114_spill] sm:$0xff] %v9023_v40  ;;  %14524 = vst [vmem:[#allocation115_spill] sm:$0xff] %v9026_v33  ;;  %v9042_v40 = vadd.s32 696, %v8705_v27  ;;  %v9045_v33 = vadd.s32 704, %v8705_v27  ;;  %v9055_v62 = vadd.f32 %v7163_v21, %v8394_v12  ;;  %v9095_v21 = vadd.s32 816, %v8705_v27 }
 0x2d6   : > { %14525 = vst [vmem:[#allocation116_spill] sm:$0xff] %v9029_v48  ;;  %14526 = vst [vmem:[#allocation117_spill] sm:$0xff] %v9033_v6  ;;  %v9048_v48 = vadd.s32 712, %v8705_v27 }
 0x2d7   : > { %14527 = vst [vmem:[#allocation118_spill] sm:$0xff] %v9036_v23  ;;  %14528 = vst [vmem:[#allocation119_spill] sm:$0xff] %v9039_v60  ;;  %v9058_v60 = vadd.s32 728, %v8705_v27  ;;  %v9061_v23 = vadd.s32 736, %v8705_v27 }
 0x2d8   : > { %14529 = vst [vmem:[#allocation120_spill] sm:$0xff] %v9042_v40  ;;  %14530 = vst [vmem:[#allocation121_spill] sm:$0xff] %v9045_v33  ;;  %v3572_v40 = vpop.f32.mrf.mxu0  ;;  %v9064_v33 = vadd.s32 744, %v8705_v27 }
 0x2d9   : > { %14531 = vst [vmem:[#allocation122_spill] sm:$0xff] %v9048_v48  ;;  %14532 = vst [vmem:[#allocation123_spill] sm:$0xff] %v9051_v9  ;;  %v9067_v48 = vadd.s32 752, %v8705_v27  ;;  %v9070_v9 = vadd.s32 760, %v8705_v27  ;;  %v9077_v6 = vadd.f32 %v8394_v12, %v3572_v40  ;;  %v9117_v40 = vadd.s32 864, %v8705_v27 }
 0x2da   : > { %14533 = vst [vmem:[#allocation124_spill] sm:$0xff] %v9055_v62  ;;  %14534 = vst [vmem:[#allocation125_spill] sm:$0xff] %v9058_v60  ;;  %v9083_v60 = vadd.s32 784, %v8705_v27 }
 0x2db   : > { %14535 = vst [vmem:[#allocation126_spill] sm:$0xff] %v9061_v23  ;;  %14536 = vst [vmem:[#allocation127_spill] sm:$0xff] %v9064_v33  ;;  %v9080_v23 = vadd.s32 776, %v8705_v27  ;;  %v7166_v33 = vpop.f32.mrf.mxu0 }
 0x2dc   : > { %14537 = vst [vmem:[#allocation128_spill] sm:$0xff] %v9067_v48  ;;  %14538 = vst [vmem:[#allocation129_spill] sm:$0xff] %v9070_v9  ;;  %v9086_v48 = vadd.s32 792, %v8705_v27  ;;  %v9089_v9 = vadd.s32 800, %v8705_v27  ;;  %v9099_v62 = vadd.f32 %v7166_v33, %v8394_v12  ;;  %v9139_v33 = vadd.s32 912, %v8705_v27 }
 0x2dd   : > { %14539 = vst [vmem:[#allocation130_spill] sm:$0xff] %v9073_v29  ;;  %14540 = vst [vmem:[#allocation131_spill] sm:$0xff] %v9077_v6  ;;  %v9092_v29 = vadd.s32 808, %v8705_v27 }
 0x2de   : > { %14541 = vst [vmem:[#allocation132_spill] sm:$0xff] %v9080_v23  ;;  %14542 = vst [vmem:[#allocation133_spill] sm:$0xff] %v9083_v60  ;;  %v9102_v60 = vadd.s32 824, %v8705_v27  ;;  %v9105_v23 = vadd.s32 832, %v8705_v27 }
 0x2df   : > { %14543 = vst [vmem:[#allocation134_spill] sm:$0xff] %v9086_v48  ;;  %14544 = vst [vmem:[#allocation135_spill] sm:$0xff] %v9089_v9  ;;  %v3585_v48 = vpop.f32.mrf.mxu0  ;;  %v9108_v9 = vadd.s32 840, %v8705_v27 }
 0x2e0   : > { %14545 = vst [vmem:[#allocation136_spill] sm:$0xff] %v9092_v29  ;;  %14546 = vst [vmem:[#allocation137_spill] sm:$0xff] %v9095_v21  ;;  %v9111_v29 = vadd.s32 848, %v8705_v27  ;;  %v9114_v21 = vadd.s32 856, %v8705_v27  ;;  %v9121_v6 = vadd.f32 %v8394_v12, %v3585_v48  ;;  %v9167_v48 = vld [vmem:[%s13869_s7] ss:$0 sm:$0xff] }
 0x2e1   : > { %14547 = vst [vmem:[#allocation138_spill] sm:$0xff] %v9099_v62  ;;  %14548 = vst [vmem:[#allocation139_spill] sm:$0xff] %v9102_v60  ;;  %v9127_v60 = vadd.s32 880, %v8705_v27 }
 0x2e2   : > { %14549 = vst [vmem:[#allocation140_spill] sm:$0xff] %v9105_v23  ;;  %14550 = vst [vmem:[#allocation141_spill] sm:$0xff] %v9108_v9  ;;  %v9124_v23 = vadd.s32 872, %v8705_v27  ;;  %v7167_v9 = vpop.f32.mrf.mxu0 }
 0x2e3   : > { %14551 = vst [vmem:[#allocation142_spill] sm:$0xff] %v9111_v29  ;;  %14552 = vst [vmem:[#allocation143_spill] sm:$0xff] %v9114_v21  ;;  %v9130_v29 = vadd.s32 888, %v8705_v27  ;;  %v9133_v21 = vadd.s32 896, %v8705_v27  ;;  %v9143_v62 = vadd.f32 %v7167_v9, %v8394_v12  ;;  %v9161_v12 = vadd.s32 960, %v8705_v27 }
 0x2e4   : > { %14553 = vst [vmem:[#allocation144_spill] sm:$0xff] %v9117_v40  ;;  %14554 = vst [vmem:[#allocation145_spill] sm:$0xff] %v9121_v6  ;;  %v9136_v40 = vadd.s32 904, %v8705_v27  ;;  %v9182_v9 = vadd.s32 992, %v8705_v27 }
 0x2e5   : > { %14555 = vst [vmem:[#allocation146_spill] sm:$0xff] %v9124_v23  ;;  %14556 = vst [vmem:[#allocation147_spill] sm:$0xff] %v9127_v60  ;;  %v9146_v60 = vadd.s32 920, %v8705_v27  ;;  %v9149_v23 = vadd.s32 928, %v8705_v27 }
 0x2e6   : > { %14557 = vst [vmem:[#allocation148_spill] sm:$0xff] %v9130_v29  ;;  %14558 = vst [vmem:[#allocation149_spill] sm:$0xff] %v9133_v21  ;;  %v3588_v29 = vpop.f32.mrf.mxu0  ;;  %v9152_v21 = vadd.s32 936, %v8705_v27 }
 0x2e7   : > { %14559 = vst [vmem:[#allocation150_spill] sm:$0xff] %v9136_v40  ;;  %14560 = vst [vmem:[#allocation151_spill] sm:$0xff] %v9139_v33  ;;  %v9155_v40 = vadd.s32 944, %v8705_v27  ;;  %v9158_v33 = vadd.s32 952, %v8705_v27  ;;  %v9170_v6 = vadd.f32 %v9167_v48, %v3588_v29 }
 0x2e8   : > { %14561 = vst [vmem:[#allocation152_spill] sm:$0xff] %v9143_v62  ;;  %14562 = vst [vmem:[#allocation153_spill] sm:$0xff] %v9146_v60  ;;  %v9185_v62 = vadd.s32 1000, %v8705_v27  ;;  %v9198_v60 = vstv %s8703_s14 }
 0x2e9   : > { %14563 = vst [vmem:[#allocation154_spill] sm:$0xff] %v9149_v23  ;;  %14564 = vst [vmem:[#allocation155_spill] sm:$0xff] %v9152_v21  ;;  %v9173_v21 = vadd.s32 968, %v8705_v27  ;;  %v9179_v23 = vadd.s32 984, %v8705_v27  ;;  %v9210_v29 = vadd.s32 %v9198_v60, %v8716_v18  ;;  %v9230_v18 = vadd.s32 %v9198_v60, %v8735_v46 }
 0x2ea   : > { %14565 = vst [vmem:[#allocation156_spill] sm:$0xff] %v9155_v40  ;;  %14566 = vst [vmem:[#allocation157_spill] sm:$0xff] %v9158_v33  ;;  %v9176_v40 = vadd.s32 976, %v8705_v27  ;;  %v7170_v33 = vpop.f32.mrf.mxu0  ;;  %v9250_v46 = vadd.s32 %v9198_v60, %v8753_v34  ;;  %v9270_v34 = vadd.s32 %v9198_v60, %v8778_v11  ;;  %v9290_v11 = vadd.s32 %v9198_v60, %v8794_v41 }
 0x2eb   : > { %14567 = vst [vmem:[#allocation158_spill] sm:$0xff] %v9161_v12  ;;  %14568 = vst [vmem:[#allocation159_spill] sm:$0xff] %v9170_v6  ;;  %v9188_v12 = vadd.s32 1008, %v8705_v27  ;;  %v9310_v41 = vadd.s32 %v9198_v60, %v8806_v24 }
 0x2ec   : > { %14569 = vst [vmem:[#allocation160_spill] sm:$0xff] %v9173_v21  ;;  %14570 = vst [vmem:[#allocation161_spill] sm:$0xff] %v9176_v40  ;;  %v9192_v21 = vadd.f32 %v9167_v48, %v7170_v33  ;;  %v9195_v40 = vadd.s32 1016, %v8705_v27  ;;  %v9214_v33 = vadd.s32 %v9198_v60, %v8726_v50  ;;  %v9234_v50 = vadd.s32 %v9198_v60, %v8744_v26 }
 0x2ed   : > { %14571 = vst [vmem:[#allocation162_spill] sm:$0xff] %v9179_v23  ;;  %14572 = vst [vmem:[#allocation163_spill] sm:$0xff] %v9182_v9  ;;  %v3601_v23 = vpop.f32.mrf.mxu0  ;;  %v9202_v9 = vadd.s32 %v9198_v60, %v8705_v27  ;;  %v9222_v27 = vadd.s32 %v9198_v60, %v8729_v10  ;;  %v9242_v10 = vadd.s32 %v9198_v60, %v8750_v8 }
 0x2ee   : > { %14573 = vst [vmem:[#allocation164_spill] sm:$0xff] %v9185_v62  ;;  %14574 = vst [vmem:[#allocation165_spill] sm:$0xff] %v9192_v21  ;;  %v9206_v62 = vadd.s32 %v9198_v60, %v8713_v58  ;;  %v9226_v58 = vadd.s32 %v9198_v60, %v8732_v17  ;;  %v9254_v26 = vadd.s32 %v9198_v60, %v8756_v14 }
 0x2ef   : > { %14575 = vst [vmem:[#allocation166_spill] sm:$0xff] %v9195_v40  ;;  %14576 = vst [vmem:[#allocation167_spill] sm:$0xff] %v9202_v9  ;;  %v9218_v40 = vadd.f32 %v9167_v48, %v3601_v23  ;;  %v9238_v23 = vadd.s32 %v9198_v60, %v8747_v15  ;;  %v9258_v15 = vadd.s32 %v9198_v60, %v8759_v32 }
 0x2f0   : > { %14577 = vst [vmem:[#allocation168_spill] sm:$0xff] %v9206_v62  ;;  %14578 = vst [vmem:[#allocation169_spill] sm:$0xff] %v9210_v29  ;;  %v7171_v62 = vpop.f32.mrf.mxu0  ;;  %v9262_v8 = vadd.s32 %v9198_v60, %v8772_v37  ;;  %v9278_v32 = vadd.s32 %v9198_v60, %v8781_v19  ;;  %v9282_v37 = vadd.s32 %v9198_v60, %v8784_v35 }
 0x2f1   : > { %14579 = vst [vmem:[#allocation170_spill] sm:$0xff] %v9214_v33  ;;  %14580 = vst [vmem:[#allocation171_spill] sm:$0xff] %v9218_v40  ;;  %v9246_v6 = vadd.f32 %v9167_v48, %v7171_v62  ;;  %v9266_v62 = vadd.s32 %v9198_v60, %v8775_v63  ;;  %v9286_v63 = vadd.s32 %v9198_v60, %v8787_v20 }
 0x2f2   : > { %14581 = vst [vmem:[#allocation172_spill] sm:$0xff] %v9222_v27  ;;  %14582 = vst [vmem:[#allocation173_spill] sm:$0xff] %v9226_v58  ;;  %v3604_v21 = vpop.f32.mrf.mxu0  ;;  %v9298_v19 = vadd.s32 %v9198_v60, %v8800_v38  ;;  %v9306_v20 = vadd.s32 %v9198_v60, %v8803_v43  ;;  %v9318_v38 = vadd.s32 %v9198_v60, %v8816_v2 }
 0x2f3   : > { %14583 = vst [vmem:[#allocation174_spill] sm:$0xff] %v9230_v18  ;;  %14584 = vst [vmem:[#allocation175_spill] sm:$0xff] %v9234_v50  ;;  %v9274_v17 = vadd.f32 %v9167_v48, %v3604_v21  ;;  %v9294_v21 = vadd.s32 %v9198_v60, %v8797_v7  ;;  %v9314_v7 = vadd.s32 %v9198_v60, %v8809_v4 }
 0x2f4   : > { %14585 = vst [vmem:[#allocation176_spill] sm:$0xff] %v9238_v23  ;;  %14586 = vst [vmem:[#allocation177_spill] sm:$0xff] %v9242_v10  ;;  %v7174_v40 = vpop.f32.mrf.mxu0  ;;  %v9326_v43 = vadd.s32 %v9198_v60, %v8822_v3  ;;  %v9334_v4 = vadd.s32 %v9198_v60, %v8825_v39  ;;  %v9338_v2 = vadd.s32 %v9198_v60, %v8828_v0 }
 0x2f5   : > { %14587 = vst [vmem:[#allocation178_spill] sm:$0xff] %v9246_v6  ;;  %14588 = vst [vmem:[#allocation179_spill] sm:$0xff] %v9250_v46  ;;  %v9302_v14 = vadd.f32 %v9167_v48, %v7174_v40  ;;  %v9322_v40 = vadd.s32 %v9198_v60, %v8819_v57  ;;  %v9342_v57 = vadd.s32 %v9198_v60, %v8831_v42 }
 0x2f6   : > { %14589 = vst [vmem:[#allocation180_spill] sm:$0xff] %v9254_v26  ;;  %14590 = vst [vmem:[#allocation181_spill] sm:$0xff] %v9258_v15  ;;  %v3617_v6 = vpop.f32.mrf.mxu0  ;;  %v9346_v3 = vadd.s32 %v9198_v60, %v8838_v44  ;;  %v9354_v39 = vadd.s32 %v9198_v60, %v8844_v54  ;;  %v9362_v42 = vadd.s32 %v9198_v60, %v8847_v13 }
 0x2f7   : > { %14591 = vst [vmem:[#allocation182_spill] sm:$0xff] %v9262_v8  ;;  %14592 = vst [vmem:[#allocation183_spill] sm:$0xff] %v9266_v62  ;;  %v9330_v35 = vadd.f32 %v9167_v48, %v3617_v6  ;;  %v9350_v6 = vadd.s32 %v9198_v60, %v8841_v31  ;;  %v9366_v44 = vadd.s32 %v9198_v60, %v8850_v53 }
 0x2f8   : > { %14593 = vst [vmem:[#allocation184_spill] sm:$0xff] %v9270_v34  ;;  %14594 = vst [vmem:[#allocation185_spill] sm:$0xff] %v9274_v17  ;;  %v7175_v17 = vpop.f32.mrf.mxu0  ;;  %v9370_v31 = vadd.s32 %v9198_v60, %v8853_v45  ;;  %v9374_v54 = vadd.s32 %v9198_v60, %v8860_v25  ;;  %v9382_v13 = vadd.s32 %v9198_v60, %v8866_v59 }
 0x2f9   : > { %14595 = vst [vmem:[#allocation186_spill] sm:$0xff] %v9278_v32  ;;  %14596 = vst [vmem:[#allocation187_spill] sm:$0xff] %v9282_v37  ;;  %v9358_v24 = vadd.f32 %v9167_v48, %v7175_v17  ;;  %v9378_v17 = vadd.s32 %v9198_v60, %v8863_v49  ;;  %v9390_v45 = vadd.s32 %v9198_v60, %v8869_v16 }
 0x2fa   : > { %14597 = vst [vmem:[#allocation188_spill] sm:$0xff] %v9286_v63  ;;  %14598 = vst [vmem:[#allocation189_spill] sm:$0xff] %v9290_v11  ;;  %v9394_v25 = vadd.s32 %v9198_v60, %v8872_v28  ;;  %v9398_v49 = vadd.s32 %v9198_v60, %v8875_v30  ;;  %v9402_v59 = vadd.s32 %v9198_v60, %v8882_v5 }
 0x2fb   : > { %14599 = vst [vmem:[#allocation190_spill] sm:$0xff] %v9294_v21  ;;  %14600 = vst [vmem:[#allocation191_spill] sm:$0xff] %v9298_v19  ;;  %v9410_v16 = vadd.s32 %v9198_v60, %v8888_v52  ;;  %v9418_v30 = vadd.s32 %v9198_v60, %v8891_v56  ;;  %v9422_v5 = vadd.s32 %v9198_v60, %v8894_v47  ;;  %v14644_v47 = vld [vmem:[#allocation84_spill] sm:$0xff] }
 0x2fc   : > { %14601 = vst [vmem:[#allocation192_spill] sm:$0xff] %v9302_v14  ;;  %14602 = vst [vmem:[#allocation193_spill] sm:$0xff] %v9306_v20  ;;  %v3620_v14 = vpop.f32.mrf.mxu0  ;;  %v9430_v52 = vadd.s32 %v9198_v60, %v8904_v51  ;;  %v9438_v56 = vadd.s32 %v9198_v60, %v8910_v22  ;;  %v14642_v22 = vld [vmem:[#allocation83_spill] sm:$0xff] }
 0x2fd   : > { %14603 = vst [vmem:[#allocation194_spill] sm:$0xff] %v9310_v41  ;;  %14604 = vst [vmem:[#allocation195_spill] sm:$0xff] %v9314_v7  ;;  %v9386_v0 = vadd.f32 %v9167_v48, %v3620_v14  ;;  %v9406_v14 = vadd.s32 %v9198_v60, %v8885_v55  ;;  %v9426_v55 = vadd.s32 %v9198_v60, %v8897_v36 }
 0x2fe   : > { %14605 = vst [vmem:[#allocation196_spill] sm:$0xff] %v9318_v38  ;;  %14606 = vst [vmem:[#allocation197_spill] sm:$0xff] %v9322_v40  ;;  %v9446_v36 = vadd.s32 %v9198_v60, %v8913_v61 }
 0x2ff   : > { %14607 = vst [vmem:[#allocation198_spill] sm:$0xff] %v9326_v43  ;;  %14608 = vst [vmem:[#allocation199_spill] sm:$0xff] %v9330_v35  ;;  %v7178_v35 = vpop.f32.mrf.mxu0 }
 0x300   : > { %14609 = vst [vmem:[#allocation200_spill] sm:$0xff] %v9334_v4  ;;  %14610 = vst [vmem:[#allocation201_spill] sm:$0xff] %v9338_v2  ;;  %v9414_v53 = vadd.f32 %v9167_v48, %v7178_v35  ;;  %v9434_v35 = vadd.s32 %v9198_v60, %v8907_v1  ;;  %v14640_v1 = vld [vmem:[#allocation81_spill] sm:$0xff] }
 0x301   : > { %14611 = vst [vmem:[#allocation202_spill] sm:$0xff] %v9342_v57  ;;  %14612 = vst [vmem:[#allocation203_spill] sm:$0xff] %v9346_v3  ;;  %v14662_v57 = vld [vmem:[#allocation93_spill] sm:$0xff] }
 0x302   : > { %14613 = vst [vmem:[#allocation204_spill] sm:$0xff] %v9350_v6  ;;  %14614 = vst [vmem:[#allocation205_spill] sm:$0xff] %v9354_v39 }
 0x303   : > { %14615 = vst [vmem:[#allocation206_spill] sm:$0xff] %v9358_v24  ;;  %14616 = vst [vmem:[#allocation207_spill] sm:$0xff] %v9362_v42  ;;  %v3633_v24 = vpop.f32.mrf.mxu0 }
 0x304   : > { %14617 = vst [vmem:[#allocation208_spill] sm:$0xff] %v9366_v44  ;;  %14618 = vst [vmem:[#allocation209_spill] sm:$0xff] %v9370_v31  ;;  %v9442_v28 = vadd.f32 %v9167_v48, %v3633_v24  ;;  %v9462_v24 = vadd.s32 %v9198_v60, %v14644_v47  ;;  %v14649_v31 = vld [vmem:[#allocation86_spill] sm:$0xff]  ;;  %v14651_v44 = vld [vmem:[#allocation87_spill] sm:$0xff] }
 0x305   : > { %14619 = vst [vmem:[#allocation210_spill] sm:$0xff] %v9374_v54  ;;  %14620 = vst [vmem:[#allocation211_spill] sm:$0xff] %v9378_v17  ;;  %v9458_v17 = vadd.s32 %v9198_v60, %v14642_v22  ;;  %v9478_v22 = vadd.s32 %v9198_v60, %v14651_v44  ;;  %v14653_v47 = vld [vmem:[#allocation88_spill] sm:$0xff]  ;;  %v14670_v44 = vld [vmem:[#allocation98_spill] sm:$0xff] }
 0x306   : > { %14621 = vst [vmem:[#allocation212_spill] sm:$0xff] %v9382_v13  ;;  %14622 = vst [vmem:[#allocation213_spill] sm:$0xff] %v9386_v0  ;;  %v14638_v0 = vld [vmem:[#allocation80_spill] sm:$0xff]  ;;  %v9454_v13 = vadd.s32 %v9198_v60, %v14640_v1  ;;  %v9474_v1 = vadd.s32 %v9198_v60, %v14649_v31  ;;  %v9482_v39 = vadd.s32 %v9198_v60, %v14653_v47 }
 0x307   : > { %14623 = vst [vmem:[#allocation214_spill] sm:$0xff] %v9390_v45  ;;  %14624 = vst [vmem:[#allocation215_spill] sm:$0xff] %v9394_v25  ;;  %v9450_v51 = vadd.s32 %v9198_v60, %v14638_v0  ;;  %v7179_v45 = vpop.f32.mrf.mxu0  ;;  %v14657_v0 = vld [vmem:[#allocation91_spill] sm:$0xff]  ;;  %v9502_v47 = vadd.s32 %v9198_v60, %v14662_v57 }
 0x308   : > { %14625 = vst [vmem:[#allocation216_spill] sm:$0xff] %v9398_v49  ;;  %14626 = vst [vmem:[#allocation217_spill] sm:$0xff] %v9402_v59  ;;  %v9470_v54 = vadd.f32 %v9167_v48, %v7179_v45  ;;  %v9490_v45 = vadd.s32 %v9198_v60, %v14657_v0  ;;  %v14666_v0 = vld [vmem:[#allocation95_spill] sm:$0xff] }
 0x309   : > { %14627 = vst [vmem:[#allocation218_spill] sm:$0xff] %v9406_v14  ;;  %14628 = vst [vmem:[#allocation219_spill] sm:$0xff] %v9410_v16  ;;  %v3636_v42 = vpop.f32.mrf.mxu0 }
 0x30a   : > { %14629 = vst [vmem:[#allocation220_spill] sm:$0xff] %v9414_v53  ;;  %14630 = vst [vmem:[#allocation221_spill] sm:$0xff] %v9418_v30  ;;  %v14646_v53 = vld [vmem:[#allocation85_spill] sm:$0xff]  ;;  %v9498_v3 = vadd.f32 %v9167_v48, %v3636_v42  ;;  %v9518_v42 = vadd.s32 %v9198_v60, %v14670_v44  ;;  %v14679_v44 = vld [vmem:[#allocation102_spill] sm:$0xff] }
 0x30b   : > { %14631 = vst [vmem:[#allocation222_spill] sm:$0xff] %v9422_v5  ;;  %14632 = vst [vmem:[#allocation223_spill] sm:$0xff] %v9426_v55  ;;  %v9466_v61 = vadd.s32 %v9198_v60, %v14646_v53  ;;  %v14655_v53 = vld [vmem:[#allocation90_spill] sm:$0xff] }
 0x30c   : > { %14633 = vst [vmem:[#allocation224_spill] sm:$0xff] %v9430_v52  ;;  %14634 = vst [vmem:[#allocation225_spill] sm:$0xff] %v9434_v35  ;;  %v9486_v6 = vadd.s32 %v9198_v60, %v14655_v53 }
 0x30d   : > { %14635 = vst [vmem:[#allocation226_spill] sm:$0xff] %v9438_v56  ;;  %14636 = vst [vmem:[#allocation227_spill] sm:$0xff] %v9442_v28  ;;  %v14659_v28 = vld [vmem:[#allocation92_spill] sm:$0xff] }
 0x30e   : > { %14637 = vst [vmem:[#allocation228_spill] sm:$0xff] %v9446_v36  ;;  %14639 = vst [vmem:[#allocation80_spill] sm:$0xff] %v9450_v51  ;;  %v9494_v31 = vadd.s32 %v9198_v60, %v14659_v28  ;;  %v14668_v28 = vld [vmem:[#allocation97_spill] sm:$0xff] }
 0x30f   : > { %14641 = vst [vmem:[#allocation81_spill] sm:$0xff] %v9454_v13  ;;  %14643 = vst [vmem:[#allocation83_spill] sm:$0xff] %v9458_v17 }
 0x310   : > { %14645 = vst [vmem:[#allocation84_spill] sm:$0xff] %v9462_v24  ;;  %14647 = vst [vmem:[#allocation85_spill] sm:$0xff] %v9466_v61 }
 0x311   : > { %14648 = vst [vmem:[#allocation229_spill] sm:$0xff] %v9470_v54  ;;  %14650 = vst [vmem:[#allocation86_spill] sm:$0xff] %v9474_v1  ;;  %v14672_v54 = vld [vmem:[#allocation99_spill] sm:$0xff] }
 0x312   : > { %14652 = vst [vmem:[#allocation87_spill] sm:$0xff] %v9478_v22  ;;  %14654 = vst [vmem:[#allocation88_spill] sm:$0xff] %v9482_v39  ;;  %v14664_v39 = vld [vmem:[#allocation94_spill] sm:$0xff]  ;;  %v9522_v57 = vadd.s32 %v9198_v60, %v14672_v54  ;;  %v14681_v54 = vld [vmem:[#allocation104_spill] sm:$0xff] }
 0x313   : > { %14656 = vst [vmem:[#allocation90_spill] sm:$0xff] %v9486_v6  ;;  %14658 = vst [vmem:[#allocation91_spill] sm:$0xff] %v9490_v45  ;;  %v9506_v53 = vadd.s32 %v9198_v60, %v14664_v39  ;;  %v7182_v6 = vpop.f32.mrf.mxu0  ;;  %v9510_v45 = vadd.s32 %v9198_v60, %v14666_v0  ;;  %v14683_v39 = vld [vmem:[#allocation105_spill] sm:$0xff] }
 0x314   : > { %14660 = vst [vmem:[#allocation92_spill] sm:$0xff] %v9494_v31  ;;  %14661 = vst [vmem:[#allocation230_spill] sm:$0xff] %v9498_v3  ;;  %v9514_v31 = vadd.s32 %v9198_v60, %v14668_v28  ;;  %v14685_v3 = vld [vmem:[#allocation106_spill] sm:$0xff] }
 0x315   : > { %14663 = vst [vmem:[#allocation93_spill] sm:$0xff] %v9502_v47  ;;  %14665 = vst [vmem:[#allocation94_spill] sm:$0xff] %v9506_v53  ;;  %v9526_v53 = vadd.f32 %v9167_v48, %v7182_v6  ;;  %v14675_v47 = vld [vmem:[#allocation100_spill] sm:$0xff]  ;;  %v9546_v6 = vadd.s32 %v9198_v60, %v14683_v39  ;;  %v14692_v39 = vld [vmem:[#allocation109_spill] sm:$0xff] }
 0x316   : > { %14667 = vst [vmem:[#allocation95_spill] sm:$0xff] %v9510_v45  ;;  %14669 = vst [vmem:[#allocation97_spill] sm:$0xff] %v9514_v31  ;;  %v9530_v0 = vadd.s32 %v9198_v60, %v14675_v47  ;;  %v14677_v45 = vld [vmem:[#allocation101_spill] sm:$0xff]  ;;  %v3649_v31 = vpop.f32.mrf.mxu0  ;;  %v9550_v47 = vadd.s32 %v9198_v60, %v14685_v3  ;;  %v14694_v3 = vld [vmem:[#allocation111_spill] sm:$0xff] }
 0x317   : > { %14671 = vst [vmem:[#allocation98_spill] sm:$0xff] %v9518_v42  ;;  %14673 = vst [vmem:[#allocation99_spill] sm:$0xff] %v9522_v57  ;;  %v9534_v28 = vadd.s32 %v9198_v60, %v14677_v45  ;;  %v9538_v42 = vadd.s32 %v9198_v60, %v14679_v44  ;;  %v9542_v57 = vadd.s32 %v9198_v60, %v14681_v54  ;;  %v14696_v45 = vld [vmem:[#allocation112_spill] sm:$0xff] }
 0x318   : > { %14674 = vst [vmem:[#allocation231_spill] sm:$0xff] %v9526_v53  ;;  %14676 = vst [vmem:[#allocation100_spill] sm:$0xff] %v9530_v0  ;;  %v14688_v0 = vld [vmem:[#allocation107_spill] sm:$0xff]  ;;  %v14698_v53 = vld [vmem:[#allocation113_spill] sm:$0xff] }
 0x319   : > { %14678 = vst [vmem:[#allocation101_spill] sm:$0xff] %v9534_v28  ;;  %14680 = vst [vmem:[#allocation102_spill] sm:$0xff] %v9538_v42  ;;  %v9554_v28 = vadd.f32 %v9167_v48, %v3649_v31  ;;  %v9558_v44 = vadd.s32 %v9198_v60, %v14688_v0  ;;  %v14690_v42 = vld [vmem:[#allocation108_spill] sm:$0xff]  ;;  %v9574_v31 = vadd.s32 %v9198_v60, %v14696_v45 }
 0x31a   : > { %14682 = vst [vmem:[#allocation104_spill] sm:$0xff] %v9542_v57  ;;  %14684 = vst [vmem:[#allocation105_spill] sm:$0xff] %v9546_v6  ;;  %v9562_v54 = vadd.s32 %v9198_v60, %v14690_v42  ;;  %v7183_v57 = vpop.f32.mrf.mxu0  ;;  %v9566_v6 = vadd.s32 %v9198_v60, %v14692_v39  ;;  %v9578_v0 = vadd.s32 %v9198_v60, %v14698_v53  ;;  %v14705_v45 = vld [vmem:[#allocation116_spill] sm:$0xff]  ;;  %v14707_v53 = vld [vmem:[#allocation118_spill] sm:$0xff] }
 0x31b   : > { %14686 = vst [vmem:[#allocation106_spill] sm:$0xff] %v9550_v47  ;;  %14687 = vst [vmem:[#allocation232_spill] sm:$0xff] %v9554_v28  ;;  %v9570_v47 = vadd.s32 %v9198_v60, %v14694_v3  ;;  %v14709_v42 = vld [vmem:[#allocation119_spill] sm:$0xff]  ;;  %v14711_v28 = vld [vmem:[#allocation120_spill] sm:$0xff] }
 0x31c   : > { %14689 = vst [vmem:[#allocation107_spill] sm:$0xff] %v9558_v44  ;;  %14691 = vst [vmem:[#allocation108_spill] sm:$0xff] %v9562_v54  ;;  %v9582_v54 = vadd.f32 %v9167_v48, %v7183_v57  ;;  %v14701_v44 = vld [vmem:[#allocation114_spill] sm:$0xff]  ;;  %v9602_v57 = vadd.s32 %v9198_v60, %v14709_v42  ;;  %v14718_v42 = vld [vmem:[#allocation123_spill] sm:$0xff] }
 0x31d   : > { %14693 = vst [vmem:[#allocation109_spill] sm:$0xff] %v9566_v6  ;;  %14695 = vst [vmem:[#allocation111_spill] sm:$0xff] %v9570_v47  ;;  %v9586_v39 = vadd.s32 %v9198_v60, %v14701_v44  ;;  %v14703_v6 = vld [vmem:[#allocation115_spill] sm:$0xff]  ;;  %v3652_v47 = vpop.f32.mrf.mxu0  ;;  %v9606_v44 = vadd.s32 %v9198_v60, %v14711_v28  ;;  %v14720_v28 = vld [vmem:[#allocation125_spill] sm:$0xff] }
 0x31e   : > { %14697 = vst [vmem:[#allocation112_spill] sm:$0xff] %v9574_v31  ;;  %14699 = vst [vmem:[#allocation113_spill] sm:$0xff] %v9578_v0  ;;  %v9590_v3 = vadd.s32 %v9198_v60, %v14703_v6  ;;  %v9594_v31 = vadd.s32 %v9198_v60, %v14705_v45  ;;  %v9598_v0 = vadd.s32 %v9198_v60, %v14707_v53  ;;  %v14722_v6 = vld [vmem:[#allocation126_spill] sm:$0xff] }
 0x31f   : > { %14700 = vst [vmem:[#allocation233_spill] sm:$0xff] %v9582_v54  ;;  %14702 = vst [vmem:[#allocation114_spill] sm:$0xff] %v9586_v39  ;;  %v14714_v39 = vld [vmem:[#allocation121_spill] sm:$0xff]  ;;  %v14724_v54 = vld [vmem:[#allocation127_spill] sm:$0xff] }
 0x320   : > { %14704 = vst [vmem:[#allocation115_spill] sm:$0xff] %v9590_v3  ;;  %14706 = vst [vmem:[#allocation116_spill] sm:$0xff] %v9594_v31  ;;  %v9610_v3 = vadd.f32 %v9167_v48, %v3652_v47  ;;  %v9614_v45 = vadd.s32 %v9198_v60, %v14714_v39  ;;  %v14716_v31 = vld [vmem:[#allocation122_spill] sm:$0xff]  ;;  %v9630_v47 = vadd.s32 %v9198_v60, %v14722_v6 }
 0x321   : > { %14708 = vst [vmem:[#allocation118_spill] sm:$0xff] %v9598_v0  ;;  %14710 = vst [vmem:[#allocation119_spill] sm:$0xff] %v9602_v57  ;;  %v9618_v53 = vadd.s32 %v9198_v60, %v14716_v31  ;;  %v7186_v0 = vpop.f32.mrf.mxu0  ;;  %v9622_v57 = vadd.s32 %v9198_v60, %v14718_v42  ;;  %v9634_v39 = vadd.s32 %v9198_v60, %v14724_v54  ;;  %v14731_v6 = vld [vmem:[#allocation130_spill] sm:$0xff]  ;;  %v14733_v54 = vld [vmem:[#allocation132_spill] sm:$0xff] }
 0x322   : > { %14712 = vst [vmem:[#allocation120_spill] sm:$0xff] %v9606_v44  ;;  %14713 = vst [vmem:[#allocation234_spill] sm:$0xff] %v9610_v3  ;;  %v9626_v44 = vadd.s32 %v9198_v60, %v14720_v28  ;;  %v14735_v31 = vld [vmem:[#allocation133_spill] sm:$0xff]  ;;  %v14737_v3 = vld [vmem:[#allocation134_spill] sm:$0xff] }
 0x323   : > { %14715 = vst [vmem:[#allocation121_spill] sm:$0xff] %v9614_v45  ;;  %14717 = vst [vmem:[#allocation122_spill] sm:$0xff] %v9618_v53  ;;  %v9638_v53 = vadd.f32 %v9167_v48, %v7186_v0  ;;  %v14727_v45 = vld [vmem:[#allocation128_spill] sm:$0xff]  ;;  %v9658_v0 = vadd.s32 %v9198_v60, %v14735_v31  ;;  %v14744_v31 = vld [vmem:[#allocation137_spill] sm:$0xff] }
 0x324   : > { %14719 = vst [vmem:[#allocation123_spill] sm:$0xff] %v9622_v57  ;;  %14721 = vst [vmem:[#allocation125_spill] sm:$0xff] %v9626_v44  ;;  %v9642_v42 = vadd.s32 %v9198_v60, %v14727_v45  ;;  %v14729_v57 = vld [vmem:[#allocation129_spill] sm:$0xff]  ;;  %v3665_v44 = vpop.f32.mrf.mxu0  ;;  %v9662_v45 = vadd.s32 %v9198_v60, %v14737_v3  ;;  %v14746_v3 = vld [vmem:[#allocation139_spill] sm:$0xff] }
 0x325   : > { %14723 = vst [vmem:[#allocation126_spill] sm:$0xff] %v9630_v47  ;;  %14725 = vst [vmem:[#allocation127_spill] sm:$0xff] %v9634_v39  ;;  %v9646_v28 = vadd.s32 %v9198_v60, %v14729_v57  ;;  %v9650_v47 = vadd.s32 %v9198_v60, %v14731_v6  ;;  %v9654_v39 = vadd.s32 %v9198_v60, %v14733_v54  ;;  %v14748_v57 = vld [vmem:[#allocation140_spill] sm:$0xff] }
 0x326   : > { %14726 = vst [vmem:[#allocation235_spill] sm:$0xff] %v9638_v53  ;;  %14728 = vst [vmem:[#allocation128_spill] sm:$0xff] %v9642_v42  ;;  %v14740_v42 = vld [vmem:[#allocation135_spill] sm:$0xff]  ;;  %v14750_v53 = vld [vmem:[#allocation141_spill] sm:$0xff] }
 0x327   : > { %14730 = vst [vmem:[#allocation129_spill] sm:$0xff] %v9646_v28  ;;  %14732 = vst [vmem:[#allocation130_spill] sm:$0xff] %v9650_v47  ;;  %v9666_v28 = vadd.f32 %v9167_v48, %v3665_v44  ;;  %v9670_v6 = vadd.s32 %v9198_v60, %v14740_v42  ;;  %v14742_v47 = vld [vmem:[#allocation136_spill] sm:$0xff]  ;;  %v9686_v44 = vadd.s32 %v9198_v60, %v14748_v57 }
 0x328   : > { %14734 = vst [vmem:[#allocation132_spill] sm:$0xff] %v9654_v39  ;;  %14736 = vst [vmem:[#allocation133_spill] sm:$0xff] %v9658_v0  ;;  %v9674_v54 = vadd.s32 %v9198_v60, %v14742_v47  ;;  %v7187_v39 = vpop.f32.mrf.mxu0  ;;  %v9678_v0 = vadd.s32 %v9198_v60, %v14744_v31  ;;  %v9690_v42 = vadd.s32 %v9198_v60, %v14750_v53  ;;  %v14757_v57 = vld [vmem:[#allocation144_spill] sm:$0xff]  ;;  %v14759_v53 = vld [vmem:[#allocation146_spill] sm:$0xff] }
 0x329   : > { %14738 = vst [vmem:[#allocation134_spill] sm:$0xff] %v9662_v45  ;;  %14739 = vst [vmem:[#allocation236_spill] sm:$0xff] %v9666_v28  ;;  %v9682_v45 = vadd.s32 %v9198_v60, %v14746_v3  ;;  %v14761_v47 = vld [vmem:[#allocation147_spill] sm:$0xff]  ;;  %v14763_v28 = vld [vmem:[#allocation148_spill] sm:$0xff] }
 0x32a   : > { %14741 = vst [vmem:[#allocation135_spill] sm:$0xff] %v9670_v6  ;;  %14743 = vst [vmem:[#allocation136_spill] sm:$0xff] %v9674_v54  ;;  %v9694_v54 = vadd.f32 %v9167_v48, %v7187_v39  ;;  %v14753_v6 = vld [vmem:[#allocation142_spill] sm:$0xff]  ;;  %v9714_v39 = vadd.s32 %v9198_v60, %v14761_v47  ;;  %v14770_v47 = vld [vmem:[#allocation151_spill] sm:$0xff] }
 0x32b   : > { %14745 = vst [vmem:[#allocation137_spill] sm:$0xff] %v9678_v0  ;;  %14747 = vst [vmem:[#allocation139_spill] sm:$0xff] %v9682_v45  ;;  %v9698_v31 = vadd.s32 %v9198_v60, %v14753_v6  ;;  %v14755_v0 = vld [vmem:[#allocation143_spill] sm:$0xff]  ;;  %v3668_v45 = vpop.f32.mrf.mxu0  ;;  %v9718_v6 = vadd.s32 %v9198_v60, %v14763_v28  ;;  %v14772_v28 = vld [vmem:[#allocation153_spill] sm:$0xff] }
 0x32c   : > { %14749 = vst [vmem:[#allocation140_spill] sm:$0xff] %v9686_v44  ;;  %14751 = vst [vmem:[#allocation141_spill] sm:$0xff] %v9690_v42  ;;  %v9702_v3 = vadd.s32 %v9198_v60, %v14755_v0  ;;  %v9706_v44 = vadd.s32 %v9198_v60, %v14757_v57  ;;  %v9710_v42 = vadd.s32 %v9198_v60, %v14759_v53  ;;  %v14774_v0 = vld [vmem:[#allocation154_spill] sm:$0xff] }
 0x32d   : > { %14752 = vst [vmem:[#allocation237_spill] sm:$0xff] %v9694_v54  ;;  %14754 = vst [vmem:[#allocation142_spill] sm:$0xff] %v9698_v31  ;;  %v14766_v31 = vld [vmem:[#allocation149_spill] sm:$0xff]  ;;  %v14776_v54 = vld [vmem:[#allocation155_spill] sm:$0xff] }
 0x32e   : > { %14756 = vst [vmem:[#allocation143_spill] sm:$0xff] %v9702_v3  ;;  %14758 = vst [vmem:[#allocation144_spill] sm:$0xff] %v9706_v44  ;;  %v9722_v3 = vadd.f32 %v9167_v48, %v3668_v45  ;;  %v9726_v57 = vadd.s32 %v9198_v60, %v14766_v31  ;;  %v14768_v44 = vld [vmem:[#allocation150_spill] sm:$0xff]  ;;  %v9742_v45 = vadd.s32 %v9198_v60, %v14774_v0 }
 0x32f   : > { %14760 = vst [vmem:[#allocation146_spill] sm:$0xff] %v9710_v42  ;;  %14762 = vst [vmem:[#allocation147_spill] sm:$0xff] %v9714_v39  ;;  %v9730_v53 = vadd.s32 %v9198_v60, %v14768_v44  ;;  %v7190_v42 = vpop.f32.mrf.mxu0  ;;  %v9734_v39 = vadd.s32 %v9198_v60, %v14770_v47  ;;  %v9746_v31 = vadd.s32 %v9198_v60, %v14776_v54  ;;  %v14783_v0 = vld [vmem:[#allocation158_spill] sm:$0xff]  ;;  %v14785_v54 = vld [vmem:[#allocation160_spill] sm:$0xff] }
 0x330   : > { %14764 = vst [vmem:[#allocation148_spill] sm:$0xff] %v9718_v6  ;;  %14765 = vst [vmem:[#allocation238_spill] sm:$0xff] %v9722_v3  ;;  %v9738_v6 = vadd.s32 %v9198_v60, %v14772_v28  ;;  %v14787_v44 = vld [vmem:[#allocation161_spill] sm:$0xff]  ;;  %v14789_v3 = vld [vmem:[#allocation162_spill] sm:$0xff] }
 0x331   : > { %14767 = vst [vmem:[#allocation149_spill] sm:$0xff] %v9726_v57  ;;  %14769 = vst [vmem:[#allocation150_spill] sm:$0xff] %v9730_v53  ;;  %v9750_v53 = vadd.f32 %v9167_v48, %v7190_v42  ;;  %v14779_v57 = vld [vmem:[#allocation156_spill] sm:$0xff]  ;;  %v9770_v42 = vadd.s32 %v9198_v60, %v14787_v44  ;;  %v9790_v44 = vadd.s32 %v9198_v60, %v9188_v12 }
 0x332   : > { %14771 = vst [vmem:[#allocation151_spill] sm:$0xff] %v9734_v39  ;;  %14773 = vst [vmem:[#allocation153_spill] sm:$0xff] %v9738_v6  ;;  %v9754_v47 = vadd.s32 %v9198_v60, %v14779_v57  ;;  %v14781_v39 = vld [vmem:[#allocation157_spill] sm:$0xff]  ;;  %v3681_v6 = vpop.f32.mrf.mxu0  ;;  %v9774_v57 = vadd.s32 %v9198_v60, %v14789_v3  ;;  %v14797_v3 = vld [vmem:[#allocation166_spill] sm:$0xff] }
 0x333   : > { %14775 = vst [vmem:[#allocation154_spill] sm:$0xff] %v9742_v45  ;;  %14777 = vst [vmem:[#allocation155_spill] sm:$0xff] %v9746_v31  ;;  %v9758_v28 = vadd.s32 %v9198_v60, %v14781_v39  ;;  %v9762_v45 = vadd.s32 %v9198_v60, %v14783_v0  ;;  %v9766_v31 = vadd.s32 %v9198_v60, %v14785_v54 }
 0x334   : > { %14778 = vst [vmem:[#allocation239_spill] sm:$0xff] %v9750_v53  ;;  %14780 = vst [vmem:[#allocation156_spill] sm:$0xff] %v9754_v47  ;;  %v14792_v47 = vld [vmem:[#allocation163_spill] sm:$0xff] }
 0x335   : > { %14782 = vst [vmem:[#allocation157_spill] sm:$0xff] %v9758_v28  ;;  %14784 = vst [vmem:[#allocation158_spill] sm:$0xff] %v9762_v45  ;;  %v9778_v28 = vadd.f32 %v9167_v48, %v3681_v6  ;;  %v9782_v0 = vadd.s32 %v9198_v60, %v14792_v47  ;;  %v14794_v45 = vld [vmem:[#allocation164_spill] sm:$0xff] }
 0x336   : > { %14786 = vst [vmem:[#allocation160_spill] sm:$0xff] %v9766_v31  ;;  %14788 = vst [vmem:[#allocation161_spill] sm:$0xff] %v9770_v42  ;;  %v9786_v54 = vadd.s32 %v9198_v60, %v14794_v45  ;;  %v7191_v31 = vpop.f32.mrf.mxu0 }
 0x337   : > { %14790 = vst [vmem:[#allocation162_spill] sm:$0xff] %v9774_v57  ;;  %14791 = vst [vmem:[#allocation240_spill] sm:$0xff] %v9778_v28  ;;  %v9794_v57 = vadd.s32 %v9198_v60, %v14797_v3  ;;  %v9798_v39 = vadd.f32 %v9167_v48, %v7191_v31 }
 0x338   : > { %14793 = vst [vmem:[#allocation163_spill] sm:$0xff] %v9782_v0  ;;  %14795 = vst [vmem:[#allocation164_spill] sm:$0xff] %v9786_v54  ;;  %v3684_v47 = vpop.f32.mrf.mxu0 }
 0x339   : > { %14796 = vst [vmem:[#allocation241_spill] sm:$0xff] %v9790_v44  ;;  %14798 = vst [vmem:[#allocation166_spill] sm:$0xff] %v9794_v57  ;;  %v9802_v45 = vadd.f32 %v9167_v48, %v3684_v47 }
 0x33a   : > { %14799 = vst [vmem:[#allocation242_spill] sm:$0xff] %v9798_v39  ;;  %v7194_v54 = vpop.f32.mrf.mxu0 }
 0x33b   : > { %14800 = vst [vmem:[#allocation243_spill] sm:$0xff] %v9802_v45  ;;  %v9806_v12 = vadd.f32 %v9167_v48, %v7194_v54 }
 0x33c   : > { %v3697_v44 = vpop.f32.mrf.mxu0 }
 0x33d   : > { %14801 = vst [vmem:[#allocation244_spill] sm:$0xff] %v9806_v12  ;;  %v9810_v3 = vadd.f32 %v9167_v48, %v3697_v44 }
 0x33e   : > { %v7195_v31 = vpop.f32.mrf.mxu0 }
 0x33f   : > { %14802 = vst [vmem:[#allocation245_spill] sm:$0xff] %v9810_v3  ;;  %v9814_v53 = vadd.f32 %v9167_v48, %v7195_v31 }
 0x340   : > { %v3700_v47 = vpop.f32.mrf.mxu0 }
 0x341   : > { %14803 = vst [vmem:[#allocation246_spill] sm:$0xff] %v9814_v53  ;;  %v9818_v0 = vadd.f32 %v9167_v48, %v3700_v47 }
 0x342   : > { %v7198_v54 = vpop.f32.mrf.mxu0 }
 0x343   : > { %14804 = vst [vmem:[#allocation247_spill] sm:$0xff] %v9818_v0  ;;  %v9822_v60 = vadd.f32 %v9167_v48, %v7198_v54 }
 0x344   : > { %v3713_v44 = vpop.f32.mrf.mxu0 }
 0x345   : > { %14805 = vst [vmem:[#allocation248_spill] sm:$0xff] %v9822_v60  ;;  %v9826_v6 = vadd.f32 %v9167_v48, %v3713_v44 }
 0x346   : > { %v7199_v31 = vpop.f32.mrf.mxu0 }
 0x347   : > { %14806 = vst [vmem:[#allocation249_spill] sm:$0xff] %v9826_v6  ;;  %v9830_v39 = vadd.f32 %v9167_v48, %v7199_v31 }
 0x348   : > { %v3716_v47 = vpop.f32.mrf.mxu0 }
 0x349   : > { %14807 = vst [vmem:[#allocation250_spill] sm:$0xff] %v9830_v39  ;;  %v9834_v45 = vadd.f32 %v9167_v48, %v3716_v47 }
 0x34a   : > { %v7202_v54 = vpop.f32.mrf.mxu0 }
 0x34b   : > { %14808 = vst [vmem:[#allocation251_spill] sm:$0xff] %v9834_v45  ;;  %v9838_v12 = vadd.f32 %v9167_v48, %v7202_v54 }
 0x34c   : > { %v3729_v44 = vpop.f32.mrf.mxu0 }
 0x34d   : > { %14809 = vst [vmem:[#allocation252_spill] sm:$0xff] %v9838_v12  ;;  %v9842_v3 = vadd.f32 %v9167_v48, %v3729_v44 }
 0x34e   : > { %v7203_v31 = vpop.f32.mrf.mxu0 }
 0x34f   : > { %14810 = vst [vmem:[#allocation253_spill] sm:$0xff] %v9842_v3  ;;  %v9846_v53 = vadd.f32 %v9167_v48, %v7203_v31 }
 0x350   : > { %v3732_v47 = vpop.f32.mrf.mxu0 }
 0x351   : > { %14811 = vst [vmem:[#allocation254_spill] sm:$0xff] %v9846_v53  ;;  %v9850_v0 = vadd.f32 %v9167_v48, %v3732_v47 }
 0x352   : > { %v7206_v54 = vpop.f32.mrf.mxu0 }
 0x353   : > { %14812 = vst [vmem:[#allocation255_spill] sm:$0xff] %v9850_v0  ;;  %v9854_v60 = vadd.f32 %v9167_v48, %v7206_v54 }
 0x354   : > { %v3745_v44 = vpop.f32.mrf.mxu0 }
 0x355   : > { %14813 = vst [vmem:[#allocation256_spill] sm:$0xff] %v9854_v60  ;;  %v9858_v6 = vadd.f32 %v9167_v48, %v3745_v44 }
 0x356   : > { %v7207_v31 = vpop.f32.mrf.mxu0 }
 0x357   : > { %14814 = vst [vmem:[#allocation257_spill] sm:$0xff] %v9858_v6  ;;  %v9862_v39 = vadd.f32 %v9167_v48, %v7207_v31 }
 0x358   : > { %v3748_v47 = vpop.f32.mrf.mxu0 }
 0x359   : > { %14815 = vst [vmem:[#allocation258_spill] sm:$0xff] %v9862_v39  ;;  %v9866_v45 = vadd.f32 %v9167_v48, %v3748_v47 }
 0x35a   : > { %v7210_v54 = vpop.f32.mrf.mxu0 }
 0x35b   : > { %14816 = vst [vmem:[#allocation259_spill] sm:$0xff] %v9866_v45  ;;  %v9870_v12 = vadd.f32 %v9167_v48, %v7210_v54 }
 0x35c   : > { %v3761_v44 = vpop.f32.mrf.mxu0 }
 0x35d   : > { %14817 = vst [vmem:[#allocation260_spill] sm:$0xff] %v9870_v12  ;;  %v9874_v3 = vadd.f32 %v9167_v48, %v3761_v44 }
 0x35e   : > { %v7211_v31 = vpop.f32.mrf.mxu0 }
 0x35f   : > { %14818 = vst [vmem:[#allocation261_spill] sm:$0xff] %v9874_v3  ;;  %v9878_v53 = vadd.f32 %v9167_v48, %v7211_v31  ;;  %4173 = sbr.rel (%p8763_p13) target bundleno = 1189 (0x4a5), region = 56 }
 0x360   : > { %v3764_v47 = vpop.f32.mrf.mxu0 }
 0x361   : > { %14819 = vst [vmem:[#allocation262_spill] sm:$0xff] %v9878_v53  ;;  %v9882_v0 = vadd.f32 %v9167_v48, %v3764_v47 }
 0x363   : > { %14820 = vst [vmem:[#allocation263_spill] sm:$0xff] %v9882_v0 }
 0x364   : > { %v9888_v44 = vstv %s8690_s30  ;;  %v14821_v31 = vld [vmem:[#allocation168_spill] sm:$0xff]  ;;  %v9895_v60 = vstv %s8692_s9  ;;  %v14822_v48 = vmov 0  ;;  %v14824_v47 = vmov 0  ;;  %v15100_v0 = vld [vmem:[#allocation210_spill] sm:$0xff]  ;;  %v15118_v45 = vld [vmem:[#allocation211_spill] sm:$0xff] }
 0x365   : > { %vm4175_vm4 = vcmp.ge.s32.totalorder %v9202_v9, %v9888_v44  ;;  %vm4176_vm5 = vcmp.ge.s32.totalorder %v14821_v31, %v9888_v44  ;;  %vm4177_vm6 = vcmp.ge.s32.totalorder %v9210_v29, %v9888_v44  ;;  %vm4304_vm7 = vcmp.lt.s32.totalorder %v9202_v9, %v9895_v60  ;;  %v15084_v12 = vld [vmem:[#allocation104_spill] sm:$0xff]  ;;  %v15101_v3 = vld [vmem:[#allocation106_spill] sm:$0xff] }
 0x366   : > { %vm4305_vm8 = vcmp.lt.s32.totalorder %v14821_v31, %v9895_v60  ;;  %vm4306_vm9 = vcmp.lt.s32.totalorder %v9210_v29, %v9895_v60  ;;  %vm4178_vm10 = vcmp.ge.s32.totalorder %v9214_v33, %v9888_v44  ;;  %vm4307_vm11 = vcmp.lt.s32.totalorder %v9214_v33, %v9895_v60  ;;  %vm9909_vm12 = vmand %vm4175_vm4, %vm4304_vm7  ;;  %v14846_v33 = vld [vmem:[#allocation16_spill] sm:$0xff] }
 0x367   : > { %v14823_v48 = vsel %vm9909_vm12, 4294967295, %v14822_v48  ;;  %vm4179_vm13 = vcmp.ge.s32.totalorder %v9222_v27, %v9888_v44  ;;  %vm4308_vm14 = vcmp.lt.s32.totalorder %v9222_v27, %v9895_v60  ;;  %vm9917_vm15 = vmand %vm4176_vm5, %vm4305_vm8  ;;  %vm4180_vm0 = vcmp.ge.s32.totalorder %v9226_v58, %v9888_v44  ;;  %v15119_v28 = vld [vmem:[#allocation108_spill] sm:$0xff] }
 0x368   : > { %v14825_v47 = vsel %vm9917_vm15, 4294967295, %v14824_v47  ;;  %vm4309_vm1 = vcmp.lt.s32.totalorder %v9226_v58, %v9895_v60  ;;  %vm9925_vm2 = vmand %vm4177_vm6, %vm4306_vm9  ;;  %v14826_v31 = vmov 0  ;;  %vm4181_vm3 = vcmp.ge.s32.totalorder %v9230_v18, %v9888_v44 }
 0x369   : > { %v14827_v31 = vsel %vm9925_vm2, 4294967295, %v14826_v31  ;;  %vm4310_vm4 = vcmp.lt.s32.totalorder %v9230_v18, %v9895_v60  ;;  %vm9933_vm5 = vmand %vm4178_vm10, %vm4307_vm11  ;;  %v14828_v39 = vmov 0  ;;  %vm4182_vm7 = vcmp.ge.s32.totalorder %v9234_v50, %v9888_v44 }
 0x36a   : > { %v14829_v39 = vsel %vm9933_vm5, 4294967295, %v14828_v39  ;;  %vm4311_vm8 = vcmp.lt.s32.totalorder %v9234_v50, %v9895_v60  ;;  %vm9941_vm6 = vmand %vm4179_vm13, %vm4308_vm14  ;;  %v14830_v54 = vmov 0  ;;  %v14832_v6 = vmov 0 }
 0x36b   : > { %v14831_v54 = vsel %vm9941_vm6, 4294967295, %v14830_v54  ;;  %vm9945_vm9 = vmand %vm4180_vm0, %vm4309_vm1  ;;  %v14834_v18 = vmov 0  ;;  %v14836_v58 = vmov 0  ;;  %vm4183_vm11 = vcmp.ge.s32.totalorder %v9238_v23, %v9888_v44 }
 0x36c   : > { %v14833_v6 = vsel %vm9945_vm9, 4294967295, %v14832_v6  ;;  %vm9949_vm2 = vmand %vm4181_vm3, %vm4310_vm4  ;;  %vm4312_vm13 = vcmp.lt.s32.totalorder %v9238_v23, %v9895_v60  ;;  %vm4184_vm14 = vcmp.ge.s32.totalorder %v9242_v10, %v9888_v44  ;;  %vm4313_vm0 = vcmp.lt.s32.totalorder %v9242_v10, %v9895_v60  ;;  %v14844_v10 = vld [vmem:[#allocation19_spill] sm:$0xff] }
 0x36d   : > { %v14835_v18 = vsel %vm9949_vm2, 4294967295, %v14834_v18  ;;  %vm9953_vm10 = vmand %vm4182_vm7, %vm4311_vm8  ;;  %vm4185_vm1 = vcmp.ge.s32.totalorder %v9250_v46, %v9888_v44  ;;  %vm4314_vm3 = vcmp.lt.s32.totalorder %v9250_v46, %v9895_v60  ;;  %vm4186_vm7 = vcmp.ge.s32.totalorder %v9254_v26, %v9888_v44 }
 0x36e   : > { %v14837_v58 = vsel %vm9953_vm10, 4294967295, %v14836_v58  ;;  %vm9969_vm4 = vmand %vm4183_vm11, %vm4312_vm13  ;;  %vm4315_vm8 = vcmp.lt.s32.totalorder %v9254_v26, %v9895_v60  ;;  %vm4187_vm5 = vcmp.ge.s32.totalorder %v9258_v15, %v9888_v44  ;;  %vm4316_vm2 = vcmp.lt.s32.totalorder %v9258_v15, %v9895_v60  ;;  %v14842_v26 = vld [vmem:[#allocation17_spill] sm:$0xff] }
 0x36f   : > { %vm4441_vm10 = vmand %vm4184_vm14, %vm4313_vm0  ;;  %vm4188_vm11 = vcmp.ge.s32.totalorder %v9262_v8, %v9888_v44  ;;  %vm4317_vm13 = vcmp.lt.s32.totalorder %v9262_v8, %v9895_v60  ;;  %vm4189_vm15 = vcmp.ge.s32.totalorder %v9266_v62, %v9888_v44  ;;  %vm4190_vm6 = vcmp.ge.s32.totalorder %v9270_v34, %v9888_v44 }
 0x370   : > { %vm4442_vm9 = vmand %vm4185_vm1, %vm4314_vm3  ;;  %vm4318_vm14 = vcmp.lt.s32.totalorder %v9266_v62, %v9895_v60  ;;  %vm4319_vm12 = vcmp.lt.s32.totalorder %v9270_v34, %v9895_v60  ;;  %v14843_v46 = vmax.f32 %v14842_v26, 0.0  ;;  %v14845_v23 = vmax.f32 %v14844_v10, 0.0  ;;  %v15067_v34 = vld [vmem:[#allocation101_spill] sm:$0xff] }
 0x371   : > { %vm4443_vm0 = vmand %vm4186_vm7, %vm4315_vm8  ;;  %v14847_v29 = vmax.f32 %v14846_v33, 0.0  ;;  %vm4191_vm3 = vcmp.ge.s32.totalorder %v9278_v32, %v9888_v44  ;;  %v14852_v33 = vld [vmem:[#allocation18_spill] sm:$0xff]  ;;  %vm4193_vm7 = vcmp.ge.s32.totalorder %v9286_v63, %v9888_v44  ;;  %vm4322_vm8 = vcmp.lt.s32.totalorder %v9286_v63, %v9895_v60  ;;  %v15049_v63 = vld [vmem:[#allocation207_spill] sm:$0xff] }
 0x372   : > { %vm9993_vm1 = vmand %vm4187_vm5, %vm4316_vm2  ;;  %v4824_v8 = vsel %vm9969_vm4, %v14843_v46, 0.0  ;;  %v4825_v27 = vsel %vm4441_vm10, %v14845_v23, 0.0  ;;  %vm4320_vm2 = vcmp.lt.s32.totalorder %v9278_v32, %v9895_v60  ;;  %vm4192_vm4 = vcmp.ge.s32.totalorder %v9282_v37, %v9888_v44  ;;  %v15066_v32 = vld [vmem:[#allocation208_spill] sm:$0xff]  ;;  %v15083_v62 = vld [vmem:[#allocation209_spill] sm:$0xff] }
 0x373   : > { %v4826_v9 = vsel %vm4442_vm9, %v14847_v29, 0.0  ;;  %vm10009_vm5 = vmand %vm4188_vm11, %vm4317_vm13  ;;  %v4948_v26 = vmax.f32 %v4825_v27, %v4824_v8  ;;  %vm4321_vm10 = vcmp.lt.s32.totalorder %v9282_v37, %v9895_v60  ;;  %v14853_v50 = vmax.f32 %v14852_v33, 0.0  ;;  %v14858_v8 = vld [vmem:[#allocation21_spill] sm:$0xff]  ;;  %v15050_v37 = vld [vmem:[#allocation99_spill] sm:$0xff] }
 0x374   : > { %vm10020_vm9 = vmand %vm4189_vm15, %vm4318_vm14  ;;  %vm4194_vm15 = vcmp.ge.s32.totalorder %v9290_v11, %v9888_v44  ;;  %vm4323_vm13 = vcmp.lt.s32.totalorder %v9290_v11, %v9895_v60  ;;  %v14859_v33 = vmax.f32 %v14858_v8, 0.0  ;;  %v14877_v29 = vmov 0  ;;  %v15033_v11 = vld [vmem:[#allocation97_spill] sm:$0xff] }
 0x375   : > { %v4827_v23 = vsel %vm4443_vm0, %v14853_v50, 0.0  ;;  %vm10036_vm11 = vmand %vm4190_vm6, %vm4319_vm12  ;;  %v4949_v10 = vmax.f32 %v4826_v9, %v4948_v26  ;;  %vm4216_vm6 = vcmp.ge.s32.totalorder %v9394_v25, %v9888_v44  ;;  %vm4345_vm0 = vcmp.lt.s32.totalorder %v9394_v25, %v9895_v60 }
 0x376   : > { %vm10044_vm14 = vmand %vm4191_vm3, %vm4320_vm2  ;;  %v4828_v50 = vsel %vm9993_vm1, %v14859_v33, 0.0  ;;  %vm4324_vm2 = vcmp.lt.s32.totalorder %v9294_v21, %v9895_v60  ;;  %vm4218_vm1 = vcmp.ge.s32.totalorder %v9402_v59, %v9888_v44  ;;  %vm4347_vm12 = vcmp.lt.s32.totalorder %v9402_v59, %v9895_v60 }
 0x377   : > { %vm10061_vm3 = vmand %vm4192_vm4, %vm4321_vm10  ;;  %v4950_v26 = vmax.f32 %v4827_v23, %v4949_v10  ;;  %v14864_v23 = vld [vmem:[#allocation23_spill] sm:$0xff]  ;;  %v14888_v27 = vmov 0  ;;  %v14902_v46 = vmov 0  ;;  %v14916_v9 = vmov 0 }
 0x378   : > { %vm10077_vm4 = vmand %vm4193_vm7, %vm4322_vm8  ;;  %v14865_v10 = vmax.f32 %v14864_v23, 0.0  ;;  %vm4325_vm8 = vcmp.lt.s32.totalorder %v9298_v19, %v9895_v60  ;;  %v14868_v23 = vmov 0  ;;  %v14930_v15 = vmov 0 }
 0x379   : > { %vm10097_vm7 = vmand %vm4194_vm15, %vm4323_vm13  ;;  %v4951_v53 = vmax.f32 %v4828_v50, %v4950_v26  ;;  %v14870_v50 = vld [vmem:[#allocation20_spill] sm:$0xff]  ;;  %vm14876_vm13 = vcmp.ge.s32.totalorder %v9398_v49, %v9888_v44  ;;  %v14944_v33 = vmov 0 }
 0x37a   : > { %v4829_v8 = vsel %vm10009_vm5, %v14865_v10, 0.0  ;;  %vm10113_vm15 = vmand %vm4216_vm6, %vm4345_vm0  ;;  %v14871_v26 = vmax.f32 %v14870_v50, 0.0  ;;  %vm14872_vm6 = vcmp.ge.s32.totalorder %v9294_v21, %v9888_v44  ;;  %v14958_v50 = vmov 0  ;;  %v15032_v21 = vld [vmem:[#allocation205_spill] sm:$0xff] }
 0x37b   : > { %v14869_v23 = vsel %vm10113_vm15, 4294967295, %v14868_v23  ;;  %vm10133_vm0 = vmand %vm14872_vm6, %vm4324_vm2  ;;  %vm14890_vm2 = vcmp.lt.s32.totalorder %v9410_v16, %v9895_v60 }
 0x37c   : > { %v4830_v10 = vsel %vm10020_vm9, %v14871_v26, 0.0  ;;  %vm14875_vm9 = vcmp.lt.s32.totalorder %v9398_v49, %v9895_v60  ;;  %v4952_v26 = vmax.f32 %v4829_v8, %v4951_v53  ;;  %v14879_v49 = vmov 0  ;;  %v14881_v8 = vld [vmem:[#allocation22_spill] sm:$0xff] }
 0x37d   : > { %vm10143_vm5 = vmand %vm14876_vm13, %vm14875_vm9  ;;  %v14882_v53 = vmax.f32 %v14881_v8, 0.0  ;;  %vm14887_vm9 = vcmp.ge.s32.totalorder %v9406_v14, %v9888_v44  ;;  %v14972_v8 = vmov 0 }
 0x37e   : > { %v14878_v29 = vsel %vm10143_vm5, 4294967295, %v14877_v29  ;;  %vm10159_vm13 = vmand %vm4218_vm1, %vm4347_vm12  ;;  %vm14883_vm12 = vcmp.ge.s32.totalorder %v9298_v19, %v9888_v44  ;;  %v15016_v19 = vld [vmem:[#allocation94_spill] sm:$0xff] }
 0x37f   : > { %v14880_v49 = vsel %vm10159_vm13, 4294967295, %v14879_v49  ;;  %v4831_v25 = vsel %vm10036_vm11, %v14882_v53, 0.0  ;;  %vm10179_vm1 = vmand %vm14883_vm12, %vm4325_vm8  ;;  %vm14886_vm11 = vcmp.lt.s32.totalorder %v9406_v14, %v9895_v60  ;;  %v4953_v53 = vmax.f32 %v4830_v10, %v4952_v26  ;;  %v14894_v10 = vld [vmem:[#allocation25_spill] sm:$0xff] }
 0x380   : > { %vm10189_vm10 = vmand %vm14887_vm9, %vm14886_vm11  ;;  %vm14891_vm13 = vcmp.ge.s32.totalorder %v9410_v16, %v9888_v44  ;;  %v14892_v14 = vmov 0  ;;  %v14895_v26 = vmax.f32 %v14894_v10, 0.0  ;;  %vm14901_vm11 = vcmp.ge.s32.totalorder %v9418_v30, %v9888_v44 }
 0x381   : > { %v14889_v27 = vsel %vm10189_vm10, 4294967295, %v14888_v27  ;;  %vm10205_vm9 = vmand %vm14891_vm13, %vm14890_vm2  ;;  %vm14896_vm2 = vcmp.lt.s32.totalorder %v9306_v20, %v9895_v60  ;;  %vm14897_vm13 = vcmp.ge.s32.totalorder %v9306_v20, %v9888_v44  ;;  %vm14905_vm10 = vcmp.ge.s32.totalorder %v9422_v5, %v9888_v44  ;;  %v15015_v20 = vld [vmem:[#allocation204_spill] sm:$0xff] }
 0x382   : > { %v14893_v14 = vsel %vm10205_vm9, 4294967295, %v14892_v14  ;;  %v4832_v59 = vsel %vm10044_vm14, %v14895_v26, 0.0  ;;  %vm10225_vm8 = vmand %vm14897_vm13, %vm14896_vm2  ;;  %vm14900_vm14 = vcmp.lt.s32.totalorder %v9418_v30, %v9895_v60  ;;  %v4954_v26 = vmax.f32 %v4831_v25, %v4953_v53  ;;  %v14908_v25 = vld [vmem:[#allocation27_spill] sm:$0xff] }
 0x383   : > { %vm10235_vm6 = vmand %vm14901_vm11, %vm14900_vm14  ;;  %vm14904_vm9 = vcmp.lt.s32.totalorder %v9422_v5, %v9895_v60  ;;  %v14906_v30 = vmov 0  ;;  %v14909_v53 = vmax.f32 %v14908_v25, 0.0  ;;  %vm14915_vm14 = vcmp.ge.s32.totalorder %v9426_v55, %v9888_v44 }
 0x384   : > { %v14903_v46 = vsel %vm10235_vm6, 4294967295, %v14902_v46  ;;  %vm10251_vm11 = vmand %vm14905_vm10, %vm14904_vm9  ;;  %vm14910_vm10 = vcmp.lt.s32.totalorder %v9310_v41, %v9895_v60  ;;  %vm14911_vm9 = vcmp.ge.s32.totalorder %v9310_v41, %v9888_v44  ;;  %vm14919_vm6 = vcmp.ge.s32.totalorder %v9430_v52, %v9888_v44  ;;  %v14999_v41 = vld [vmem:[#allocation92_spill] sm:$0xff] }
 0x385   : > { %v14907_v30 = vsel %vm10251_vm11, 4294967295, %v14906_v30  ;;  %v4833_v16 = vsel %vm10061_vm3, %v14909_v53, 0.0  ;;  %vm10271_vm2 = vmand %vm14911_vm9, %vm14910_vm10  ;;  %vm14914_vm3 = vcmp.lt.s32.totalorder %v9426_v55, %v9895_v60  ;;  %v4955_v53 = vmax.f32 %v4832_v59, %v4954_v26  ;;  %v14922_v59 = vld [vmem:[#allocation24_spill] sm:$0xff] }
 0x386   : > { %vm10281_vm12 = vmand %vm14915_vm14, %vm14914_vm3  ;;  %vm14918_vm11 = vcmp.lt.s32.totalorder %v9430_v52, %v9895_v60  ;;  %v14920_v55 = vmov 0  ;;  %v14923_v26 = vmax.f32 %v14922_v59, 0.0  ;;  %vm14929_vm3 = vcmp.ge.s32.totalorder %v9434_v35, %v9888_v44 }
 0x387   : > { %v14917_v9 = vsel %vm10281_vm12, 4294967295, %v14916_v9  ;;  %vm10297_vm14 = vmand %vm14919_vm6, %vm14918_vm11  ;;  %vm14924_vm6 = vcmp.lt.s32.totalorder %v9314_v7, %v9895_v60  ;;  %vm14925_vm11 = vcmp.ge.s32.totalorder %v9314_v7, %v9888_v44  ;;  %vm14933_vm12 = vcmp.ge.s32.totalorder %v9438_v56, %v9888_v44  ;;  %v14998_v7 = vld [vmem:[#allocation203_spill] sm:$0xff] }
 0x388   : > { %v14921_v55 = vsel %vm10297_vm14, 4294967295, %v14920_v55  ;;  %v4834_v5 = vsel %vm10077_vm4, %v14923_v26, 0.0  ;;  %vm10317_vm10 = vmand %vm14925_vm11, %vm14924_vm6  ;;  %vm14928_vm4 = vcmp.lt.s32.totalorder %v9434_v35, %v9895_v60  ;;  %v4956_v26 = vmax.f32 %v4833_v16, %v4955_v53  ;;  %v14936_v16 = vld [vmem:[#allocation26_spill] sm:$0xff] }
 0x389   : > { %vm10327_vm13 = vmand %vm14929_vm3, %vm14928_vm4  ;;  %vm14932_vm14 = vcmp.lt.s32.totalorder %v9438_v56, %v9895_v60  ;;  %v14934_v35 = vmov 0  ;;  %v14937_v53 = vmax.f32 %v14936_v16, 0.0  ;;  %vm14943_vm4 = vcmp.ge.s32.totalorder %v9446_v36, %v9888_v44 }
 0x38a   : > { %v14931_v15 = vsel %vm10327_vm13, 4294967295, %v14930_v15  ;;  %vm10343_vm3 = vmand %vm14933_vm12, %vm14932_vm14  ;;  %vm14938_vm12 = vcmp.lt.s32.totalorder %v9318_v38, %v9895_v60  ;;  %vm14939_vm14 = vcmp.ge.s32.totalorder %v9318_v38, %v9888_v44  ;;  %vm14947_vm13 = vcmp.ge.s32.totalorder %v9450_v51, %v9888_v44  ;;  %v14982_v38 = vld [vmem:[#allocation90_spill] sm:$0xff] }
 0x38b   : > { %v14935_v35 = vsel %vm10343_vm3, 4294967295, %v14934_v35  ;;  %v4835_v52 = vsel %vm10097_vm7, %v14937_v53, 0.0  ;;  %vm10363_vm6 = vmand %vm14939_vm14, %vm14938_vm12  ;;  %vm14942_vm7 = vcmp.lt.s32.totalorder %v9446_v36, %v9895_v60  ;;  %v4957_v53 = vmax.f32 %v4834_v5, %v4956_v26  ;;  %v14950_v5 = vld [vmem:[#allocation29_spill] sm:$0xff] }
 0x38c   : > { %vm10373_vm9 = vmand %vm14943_vm4, %vm14942_vm7  ;;  %vm14946_vm3 = vcmp.lt.s32.totalorder %v9450_v51, %v9895_v60  ;;  %v14948_v36 = vmov 0  ;;  %v14951_v26 = vmax.f32 %v14950_v5, 0.0  ;;  %vm14957_vm7 = vcmp.ge.s32.totalorder %v9454_v13, %v9888_v44 }
 0x38d   : > { %v14945_v33 = vsel %vm10373_vm9, 4294967295, %v14944_v33  ;;  %vm10389_vm4 = vmand %vm14947_vm13, %vm14946_vm3  ;;  %vm14952_vm13 = vcmp.lt.s32.totalorder %v9322_v40, %v9895_v60  ;;  %vm14953_vm3 = vcmp.ge.s32.totalorder %v9322_v40, %v9888_v44  ;;  %vm14961_vm9 = vcmp.ge.s32.totalorder %v9458_v17, %v9888_v44  ;;  %v14981_v40 = vld [vmem:[#allocation202_spill] sm:$0xff] }
 0x38e   : > { %v14949_v36 = vsel %vm10389_vm4, 4294967295, %v14948_v36  ;;  %v4836_v56 = vsel %vm10133_vm0, %v14951_v26, 0.0  ;;  %vm10409_vm12 = vmand %vm14953_vm3, %vm14952_vm13  ;;  %vm14956_vm0 = vcmp.lt.s32.totalorder %v9454_v13, %v9895_v60  ;;  %v4958_v26 = vmax.f32 %v4835_v52, %v4957_v53  ;;  %v14964_v52 = vld [vmem:[#allocation31_spill] sm:$0xff] }
 0x38f   : > { %vm10419_vm11 = vmand %vm14957_vm7, %vm14956_vm0  ;;  %vm14960_vm4 = vcmp.lt.s32.totalorder %v9458_v17, %v9895_v60  ;;  %v14962_v13 = vmov 0  ;;  %v14965_v53 = vmax.f32 %v14964_v52, 0.0  ;;  %vm14971_vm0 = vcmp.ge.s32.totalorder %v9462_v24, %v9888_v44  ;;  %v14974_v17 = vld [vmem:[#allocation88_spill] sm:$0xff] }
 0x390   : > { %v14959_v50 = vsel %vm10419_vm11, 4294967295, %v14958_v50  ;;  %vm10435_vm7 = vmand %vm14961_vm9, %vm14960_vm4  ;;  %vm14966_vm9 = vcmp.lt.s32.totalorder %v9326_v43, %v9895_v60  ;;  %vm14967_vm4 = vcmp.ge.s32.totalorder %v9326_v43, %v9888_v44  ;;  %vm14976_vm11 = vcmp.ge.s32.totalorder %v9466_v61, %v9888_v44 }
 0x391   : > { %v14963_v13 = vsel %vm10435_vm7, 4294967295, %v14962_v13  ;;  %v4837_v51 = vsel %vm10179_vm1, %v14965_v53, 0.0  ;;  %vm10455_vm13 = vmand %vm14967_vm4, %vm14966_vm9  ;;  %vm14970_vm1 = vcmp.lt.s32.totalorder %v9462_v24, %v9895_v60  ;;  %v4959_v53 = vmax.f32 %v4836_v56, %v4958_v26  ;;  %v14979_v56 = vld [vmem:[#allocation28_spill] sm:$0xff] }
 0x392   : > { %vm10465_vm14 = vmand %vm14971_vm0, %vm14970_vm1  ;;  %vm14975_vm7 = vcmp.lt.s32.totalorder %v9466_v61, %v9895_v60  ;;  %v14977_v24 = vmov 0  ;;  %v14980_v26 = vmax.f32 %v14979_v56, 0.0  ;;  %vm14988_vm1 = vcmp.ge.s32.totalorder %v9474_v1, %v9888_v44  ;;  %v14991_v61 = vld [vmem:[#allocation91_spill] sm:$0xff] }
 0x393   : > { %v14973_v8 = vsel %vm10465_vm14, 4294967295, %v14972_v8  ;;  %vm10481_vm0 = vmand %vm14976_vm11, %vm14975_vm7  ;;  %vm14983_vm11 = vcmp.lt.s32.totalorder %v9334_v4, %v9895_v60  ;;  %vm14984_vm7 = vcmp.ge.s32.totalorder %v9334_v4, %v9888_v44  ;;  %v14989_v10 = vmov 0 }
 0x394   : > { %v14978_v24 = vsel %vm10481_vm0, 4294967295, %v14977_v24  ;;  %v4838_v43 = vsel %vm10225_vm8, %v14980_v26, 0.0  ;;  %vm10501_vm9 = vmand %vm14984_vm7, %vm14983_vm11  ;;  %vm14987_vm8 = vcmp.lt.s32.totalorder %v9474_v1, %v9895_v60  ;;  %v4960_v26 = vmax.f32 %v4837_v51, %v4959_v53  ;;  %v14996_v51 = vld [vmem:[#allocation30_spill] sm:$0xff] }
 0x395   : > { %vm10511_vm3 = vmand %vm14988_vm1, %vm14987_vm8  ;;  %vm14992_vm0 = vcmp.lt.s32.totalorder %v9478_v22, %v9895_v60  ;;  %vm14993_vm14 = vcmp.ge.s32.totalorder %v9478_v22, %v9888_v44  ;;  %v14994_v1 = vmov 0  ;;  %v14997_v53 = vmax.f32 %v14996_v51, 0.0  ;;  %v15008_v22 = vld [vmem:[#allocation93_spill] sm:$0xff] }
 0x396   : > { %v14990_v10 = vsel %vm10511_vm3, 4294967295, %v14989_v10  ;;  %vm10527_vm1 = vmand %vm14993_vm14, %vm14992_vm0  ;;  %vm15000_vm14 = vcmp.lt.s32.totalorder %v9338_v2, %v9895_v60  ;;  %vm15001_vm0 = vcmp.ge.s32.totalorder %v9338_v2, %v9888_v44  ;;  %vm15005_vm8 = vcmp.ge.s32.totalorder %v14974_v17, %v9888_v44 }
 0x397   : > { %v14995_v1 = vsel %vm10527_vm1, 4294967295, %v14994_v1  ;;  %v4839_v4 = vsel %vm10271_vm2, %v14997_v53, 0.0  ;;  %vm10547_vm11 = vmand %vm15001_vm0, %vm15000_vm14  ;;  %vm15004_vm2 = vcmp.lt.s32.totalorder %v14974_v17, %v9895_v60  ;;  %v15006_v25 = vmov 0 }
 0x398   : > { %vm10557_vm4 = vmand %vm15005_vm8, %vm15004_vm2  ;;  %v4961_v53 = vmax.f32 %v4838_v43, %v4960_v26  ;;  %vm15009_vm1 = vcmp.lt.s32.totalorder %v14982_v38, %v9895_v60  ;;  %vm15010_vm3 = vcmp.ge.s32.totalorder %v14982_v38, %v9888_v44  ;;  %v15011_v17 = vmov 0  ;;  %v15013_v43 = vld [vmem:[#allocation33_spill] sm:$0xff] }
 0x399   : > { %v15007_v25 = vsel %vm10557_vm4, 4294967295, %v15006_v25  ;;  %vm10573_vm8 = vmand %vm15010_vm3, %vm15009_vm1  ;;  %v15014_v26 = vmax.f32 %v15013_v43, 0.0  ;;  %vm15017_vm3 = vcmp.lt.s32.totalorder %v14981_v40, %v9895_v60  ;;  %vm15018_vm1 = vcmp.ge.s32.totalorder %v14981_v40, %v9888_v44 }
 0x39a   : > { %v15012_v17 = vsel %vm10573_vm8, 4294967295, %v15011_v17  ;;  %vm10593_vm14 = vmand %vm15018_vm1, %vm15017_vm3  ;;  %vm15022_vm2 = vcmp.ge.s32.totalorder %v14991_v61, %v9888_v44  ;;  %v15023_v59 = vmov 0  ;;  %v4962_v43 = vmax.f32 %v4839_v4, %v4961_v53  ;;  %v15030_v4 = vld [vmem:[#allocation35_spill] sm:$0xff] }
 0x39b   : > { %v4840_v2 = vsel %vm10317_vm10, %v15014_v26, 0.0  ;;  %vm15021_vm10 = vcmp.lt.s32.totalorder %v14991_v61, %v9895_v60  ;;  %v15025_v26 = vld [vmem:[#allocation95_spill] sm:$0xff]  ;;  %vm15026_vm8 = vcmp.lt.s32.totalorder %v14999_v41, %v9895_v60  ;;  %vm15027_vm4 = vcmp.ge.s32.totalorder %v14999_v41, %v9888_v44 }
 0x39c   : > { %vm10603_vm7 = vmand %vm15022_vm2, %vm15021_vm10  ;;  %v15028_v40 = vmov 0  ;;  %v15031_v61 = vmax.f32 %v15030_v4, 0.0  ;;  %vm15039_vm10 = vcmp.ge.s32.totalorder %v15008_v22, %v9888_v44  ;;  %v15040_v16 = vmov 0 }
 0x39d   : > { %v15024_v59 = vsel %vm10603_vm7, 4294967295, %v15023_v59  ;;  %vm10619_vm2 = vmand %vm15027_vm4, %vm15026_vm8  ;;  %vm15034_vm4 = vcmp.lt.s32.totalorder %v14998_v7, %v9895_v60  ;;  %vm15035_vm8 = vcmp.ge.s32.totalorder %v14998_v7, %v9888_v44  ;;  %v4963_v4 = vmax.f32 %v4840_v2, %v4962_v43  ;;  %v15047_v2 = vld [vmem:[#allocation32_spill] sm:$0xff] }
 0x39e   : > { %v15029_v40 = vsel %vm10619_vm2, 4294967295, %v15028_v40  ;;  %v4841_v53 = vsel %vm10363_vm6, %v15031_v61, 0.0  ;;  %vm10639_vm3 = vmand %vm15035_vm8, %vm15034_vm4  ;;  %vm15038_vm6 = vcmp.lt.s32.totalorder %v15008_v22, %v9895_v60  ;;  %v15042_v61 = vld [vmem:[#allocation98_spill] sm:$0xff]  ;;  %vm15043_vm2 = vcmp.lt.s32.totalorder %v15016_v19, %v9895_v60 }
 0x39f   : > { %vm10649_vm0 = vmand %vm15039_vm10, %vm15038_vm6  ;;  %vm15044_vm7 = vcmp.ge.s32.totalorder %v15016_v19, %v9888_v44  ;;  %v15045_v7 = vmov 0  ;;  %v15048_v22 = vmax.f32 %v15047_v2, 0.0  ;;  %vm15056_vm6 = vcmp.ge.s32.totalorder %v15025_v26, %v9888_v44 }
 0x3a0   : > { %v15041_v16 = vsel %vm10649_vm0, 4294967295, %v15040_v16  ;;  %vm10665_vm10 = vmand %vm15044_vm7, %vm15043_vm2  ;;  %vm15051_vm7 = vcmp.lt.s32.totalorder %v15015_v20, %v9895_v60  ;;  %vm15052_vm2 = vcmp.ge.s32.totalorder %v15015_v20, %v9888_v44  ;;  %v15057_v5 = vmov 0 }
 0x3a1   : > { %v15046_v7 = vsel %vm10665_vm10, 4294967295, %v15045_v7  ;;  %v4842_v43 = vsel %vm10409_vm12, %v15048_v22, 0.0  ;;  %vm10685_vm4 = vmand %vm15052_vm2, %vm15051_vm7  ;;  %vm15055_vm12 = vcmp.lt.s32.totalorder %v15025_v26, %v9895_v60  ;;  %v4964_v2 = vmax.f32 %v4841_v53, %v4963_v4  ;;  %v15059_v22 = vld [vmem:[#allocation100_spill] sm:$0xff]  ;;  %v15064_v26 = vld [vmem:[#allocation34_spill] sm:$0xff] }
 0x3a2   : > { %vm10695_vm1 = vmand %vm15056_vm6, %vm15055_vm12  ;;  %vm15060_vm10 = vcmp.lt.s32.totalorder %v15033_v11, %v9895_v60  ;;  %vm15061_vm0 = vcmp.ge.s32.totalorder %v15033_v11, %v9888_v44  ;;  %v15062_v20 = vmov 0  ;;  %v15065_v53 = vmax.f32 %v15064_v26, 0.0 }
 0x3a3   : > { %v15058_v5 = vsel %vm10695_vm1, 4294967295, %v15057_v5  ;;  %vm10711_vm6 = vmand %vm15061_vm0, %vm15060_vm10  ;;  %vm15068_vm0 = vcmp.lt.s32.totalorder %v15032_v21, %v9895_v60  ;;  %vm15069_vm10 = vcmp.ge.s32.totalorder %v15032_v21, %v9888_v44  ;;  %vm15073_vm12 = vcmp.ge.s32.totalorder %v15042_v61, %v9888_v44 }
 0x3a4   : > { %v15063_v20 = vsel %vm10711_vm6, 4294967295, %v15062_v20  ;;  %v4843_v4 = vsel %vm10455_vm13, %v15065_v53, 0.0  ;;  %vm10731_vm7 = vmand %vm15069_vm10, %vm15068_vm0  ;;  %vm15072_vm13 = vcmp.lt.s32.totalorder %v15042_v61, %v9895_v60  ;;  %v15074_v52 = vmov 0  ;;  %v15076_v53 = vld [vmem:[#allocation102_spill] sm:$0xff]  ;;  %v15081_v61 = vld [vmem:[#allocation37_spill] sm:$0xff] }
 0x3a5   : > { %vm10741_vm8 = vmand %vm15073_vm12, %vm15072_vm13  ;;  %v4965_v26 = vmax.f32 %v4842_v43, %v4964_v2  ;;  %vm15077_vm6 = vcmp.lt.s32.totalorder %v15050_v37, %v9895_v60  ;;  %vm15078_vm1 = vcmp.ge.s32.totalorder %v15050_v37, %v9888_v44  ;;  %v15079_v21 = vmov 0 }
 0x3a6   : > { %v15075_v52 = vsel %vm10741_vm8, 4294967295, %v15074_v52  ;;  %vm10757_vm12 = vmand %vm15078_vm1, %vm15077_vm6  ;;  %v15082_v43 = vmax.f32 %v15081_v61, 0.0  ;;  %vm15085_vm1 = vcmp.lt.s32.totalorder %v15049_v63, %v9895_v60  ;;  %vm15086_vm6 = vcmp.ge.s32.totalorder %v15049_v63, %v9888_v44 }
 0x3a7   : > { %v15080_v21 = vsel %vm10757_vm12, 4294967295, %v15079_v21  ;;  %vm10777_vm0 = vmand %vm15086_vm6, %vm15085_vm1  ;;  %vm15090_vm13 = vcmp.ge.s32.totalorder %v15059_v22, %v9888_v44  ;;  %v15091_v56 = vmov 0  ;;  %v4966_v61 = vmax.f32 %v4843_v4, %v4965_v26 }
 0x3a8   : > { %v4844_v2 = vsel %vm10501_vm9, %v15082_v43, 0.0  ;;  %vm15089_vm9 = vcmp.lt.s32.totalorder %v15059_v22, %v9895_v60  ;;  %v15093_v43 = vld [vmem:[#allocation105_spill] sm:$0xff]  ;;  %vm15094_vm12 = vcmp.lt.s32.totalorder %v15067_v34, %v9895_v60  ;;  %vm15095_vm8 = vcmp.ge.s32.totalorder %v15067_v34, %v9888_v44  ;;  %v15098_v22 = vld [vmem:[#allocation39_spill] sm:$0xff] }
 0x3a9   : > { %vm10787_vm2 = vmand %vm15090_vm13, %vm15089_vm9  ;;  %v15096_v63 = vmov 0  ;;  %v15099_v4 = vmax.f32 %v15098_v22, 0.0  ;;  %vm15107_vm9 = vcmp.ge.s32.totalorder %v15076_v53, %v9888_v44  ;;  %v15108_v51 = vmov 0 }
 0x3aa   : > { %v15092_v56 = vsel %vm10787_vm2, 4294967295, %v15091_v56  ;;  %vm10803_vm13 = vmand %vm15095_vm8, %vm15094_vm12  ;;  %vm15102_vm8 = vcmp.lt.s32.totalorder %v15066_v32, %v9895_v60  ;;  %vm15103_vm12 = vcmp.ge.s32.totalorder %v15066_v32, %v9888_v44  ;;  %v4967_v22 = vmax.f32 %v4844_v2, %v4966_v61 }
 0x3ab   : > { %v15097_v63 = vsel %vm10803_vm13, 4294967295, %v15096_v63  ;;  %v4845_v26 = vsel %vm10547_vm11, %v15099_v4, 0.0  ;;  %vm10823_vm1 = vmand %vm15103_vm12, %vm15102_vm8  ;;  %vm15106_vm11 = vcmp.lt.s32.totalorder %v15076_v53, %v9895_v60  ;;  %v15110_v4 = vld [vmem:[#allocation107_spill] sm:$0xff]  ;;  %vm15111_vm13 = vcmp.lt.s32.totalorder %v15084_v12, %v9895_v60  ;;  %v15116_v53 = vld [vmem:[#allocation36_spill] sm:$0xff] }
 0x3ac   : > { %vm10833_vm10 = vmand %vm15107_vm9, %vm15106_vm11  ;;  %vm15112_vm2 = vcmp.ge.s32.totalorder %v15084_v12, %v9888_v44  ;;  %v15113_v32 = vmov 0  ;;  %v15117_v2 = vmax.f32 %v15116_v53, 0.0  ;;  %vm15125_vm11 = vcmp.ge.s32.totalorder %v15093_v43, %v9888_v44 }
 0x3ad   : > { %v15109_v51 = vsel %vm10833_vm10, 4294967295, %v15108_v51  ;;  %vm10849_vm9 = vmand %vm15112_vm2, %vm15111_vm13  ;;  %vm15120_vm2 = vcmp.lt.s32.totalorder %v15083_v62, %v9895_v60  ;;  %vm15121_vm13 = vcmp.ge.s32.totalorder %v15083_v62, %v9888_v44  ;;  %v15126_v38 = vmov 0 }
 0x3ae   : > { %v15114_v32 = vsel %vm10849_vm9, 4294967295, %v15113_v32  ;;  %v4846_v61 = vsel %vm10593_vm14, %v15117_v2, 0.0  ;;  %vm10869_vm8 = vmand %vm15121_vm13, %vm15120_vm2  ;;  %vm15124_vm14 = vcmp.lt.s32.totalorder %v15093_v43, %v9895_v60  ;;  %v4968_v53 = vmax.f32 %v4845_v26, %v4967_v22  ;;  %v15129_v2 = vld [vmem:[#allocation109_spill] sm:$0xff]  ;;  %v15135_v43 = vld [vmem:[#allocation38_spill] sm:$0xff] }
 0x3af   : > { %15115 = vst [vmem:[#allocation264_spill] sm:$0xff] %v15114_v32  ;;  %vm10879_vm6 = vmand %vm15125_vm11, %vm15124_vm14  ;;  %vm15130_vm9 = vcmp.lt.s32.totalorder %v15101_v3, %v9895_v60  ;;  %vm15131_vm10 = vcmp.ge.s32.totalorder %v15101_v3, %v9888_v44  ;;  %v15132_v62 = vmov 0  ;;  %v15136_v26 = vmax.f32 %v15135_v43, 0.0  ;;  %v15138_v32 = vld [vmem:[#allocation111_spill] sm:$0xff] }
 0x3b0   : > { %v15127_v38 = vsel %vm10879_vm6, 4294967295, %v15126_v38  ;;  %vm10895_vm11 = vmand %vm15131_vm10, %vm15130_vm9  ;;  %vm15139_vm10 = vcmp.lt.s32.totalorder %v15100_v0, %v9895_v60  ;;  %vm15140_vm9 = vcmp.ge.s32.totalorder %v15100_v0, %v9888_v44  ;;  %vm15144_vm14 = vcmp.ge.s32.totalorder %v15110_v4, %v9888_v44 }
 0x3b1   : > { %15128 = vst [vmem:[#allocation265_spill] sm:$0xff] %v15127_v38  ;;  %v15133_v62 = vsel %vm10895_vm11, 4294967295, %v15132_v62  ;;  %v4847_v22 = vsel %vm10639_vm3, %v15136_v26, 0.0  ;;  %v15137_v38 = vld [vmem:[#allocation212_spill] sm:$0xff]  ;;  %vm10915_vm2 = vmand %vm15140_vm9, %vm15139_vm10  ;;  %vm15143_vm3 = vcmp.lt.s32.totalorder %v15110_v4, %v9895_v60  ;;  %v15145_v41 = vmov 0  ;;  %v15153_v4 = vld [vmem:[#allocation41_spill] sm:$0xff] }
 0x3b2   : > { %15134 = vst [vmem:[#allocation266_spill] sm:$0xff] %v15133_v62  ;;  %vm10925_vm12 = vmand %vm15144_vm14, %vm15143_vm3  ;;  %v4969_v43 = vmax.f32 %v4846_v61, %v4968_v53  ;;  %v15148_v26 = vld [vmem:[#allocation112_spill] sm:$0xff]  ;;  %vm15149_vm11 = vcmp.lt.s32.totalorder %v15119_v28, %v9895_v60  ;;  %vm15150_vm6 = vcmp.ge.s32.totalorder %v15119_v28, %v9888_v44  ;;  %v15151_v0 = vmov 0  ;;  %v15156_v62 = vld [vmem:[#allocation113_spill] sm:$0xff] }
 0x3b3   : > { %v15146_v41 = vsel %vm10925_vm12, 4294967295, %v15145_v41  ;;  %vm10941_vm14 = vmand %vm15150_vm6, %vm15149_vm11  ;;  %v15154_v61 = vmax.f32 %v15153_v4, 0.0  ;;  %vm15157_vm6 = vcmp.lt.s32.totalorder %v15118_v45, %v9895_v60  ;;  %vm15158_vm11 = vcmp.ge.s32.totalorder %v15118_v45, %v9888_v44 }
 0x3b4   : > { %15147 = vst [vmem:[#allocation267_spill] sm:$0xff] %v15146_v41  ;;  %v15152_v0 = vsel %vm10941_vm14, 4294967295, %v15151_v0  ;;  %v15155_v41 = vld [vmem:[#allocation214_spill] sm:$0xff]  ;;  %vm10961_vm10 = vmand %vm15158_vm11, %vm15157_vm6  ;;  %vm15162_vm3 = vcmp.ge.s32.totalorder %v15129_v2, %v9888_v44  ;;  %v15163_v19 = vmov 0  ;;  %v4970_v4 = vmax.f32 %v4847_v22, %v4969_v43 }
 0x3b5   : > { %v4848_v53 = vsel %vm10685_vm4, %v15154_v61, 0.0  ;;  %vm15161_vm4 = vcmp.lt.s32.totalorder %v15129_v2, %v9895_v60  ;;  %v15166_v61 = vld [vmem:[#allocation114_spill] sm:$0xff]  ;;  %vm15167_vm14 = vcmp.lt.s32.totalorder %v15138_v32, %v9895_v60  ;;  %vm15168_vm12 = vcmp.ge.s32.totalorder %v15138_v32, %v9888_v44  ;;  %v15172_v2 = vld [vmem:[#allocation43_spill] sm:$0xff] }
 0x3b6   : > { %vm10971_vm13 = vmand %vm15162_vm3, %vm15161_vm4  ;;  %v15169_v45 = vmov 0  ;;  %v15173_v22 = vmax.f32 %v15172_v2, 0.0  ;;  %vm15175_vm11 = vcmp.lt.s32.totalorder %v15137_v38, %v9895_v60  ;;  %vm15179_vm6 = vcmp.lt.s32.totalorder %v15148_v26, %v9895_v60 }
 0x3b7   : > { %v15164_v19 = vsel %vm10971_vm13, 4294967295, %v15163_v19  ;;  %vm10987_vm3 = vmand %vm15168_vm12, %vm15167_vm14  ;;  %vm15176_vm12 = vcmp.ge.s32.totalorder %v15137_v38, %v9888_v44  ;;  %v15181_v11 = vmov 0  ;;  %v4971_v2 = vmax.f32 %v4848_v53, %v4970_v4  ;;  %v15191_v4 = vld [vmem:[#allocation118_spill] sm:$0xff] }
 0x3b8   : > { %15165 = vst [vmem:[#allocation268_spill] sm:$0xff] %v15164_v19  ;;  %v15170_v45 = vsel %vm10987_vm3, 4294967295, %v15169_v45  ;;  %v4849_v43 = vsel %vm10731_vm7, %v15173_v22, 0.0  ;;  %v15174_v19 = vld [vmem:[#allocation115_spill] sm:$0xff]  ;;  %vm11005_vm14 = vmand %vm15176_vm12, %vm15175_vm11  ;;  %vm15180_vm7 = vcmp.ge.s32.totalorder %v15148_v26, %v9888_v44  ;;  %v15183_v22 = vld [vmem:[#allocation116_spill] sm:$0xff]  ;;  %vm15184_vm12 = vcmp.lt.s32.totalorder %v15156_v62, %v9895_v60 }
 0x3b9   : > { %15171 = vst [vmem:[#allocation269_spill] sm:$0xff] %v15170_v45  ;;  %vm11015_vm4 = vmand %vm15180_vm7, %vm15179_vm6  ;;  %vm4388_vm11 = vcmp.lt.s32.totalorder %v15183_v22, %v9895_v60  ;;  %vm15185_vm3 = vcmp.ge.s32.totalorder %v15156_v62, %v9888_v44  ;;  %v15186_v38 = vmov 0  ;;  %v15189_v26 = vld [vmem:[#allocation40_spill] sm:$0xff]  ;;  %vm4389_vm7 = vcmp.lt.s32.totalorder %v15191_v4, %v9895_v60 }
 0x3ba   : > { %v15182_v11 = vsel %vm11015_vm4, 4294967295, %v15181_v11  ;;  %vm11029_vm13 = vmand %vm15185_vm3, %vm15184_vm12  ;;  %v15190_v45 = vmax.f32 %v15189_v26, 0.0  ;;  %vm15192_vm9 = vcmp.lt.s32.totalorder %v15155_v41, %v9895_v60  ;;  %vm15193_vm3 = vcmp.ge.s32.totalorder %v15155_v41, %v9888_v44  ;;  %v15200_v26 = vld [vmem:[#allocation119_spill] sm:$0xff] }
 0x3bb   : > { %v15187_v38 = vsel %vm11029_vm13, 4294967295, %v15186_v38  ;;  %vm11047_vm12 = vmand %vm15193_vm3, %vm15192_vm9  ;;  %v15194_v62 = vmov 0  ;;  %vm15196_vm13 = vcmp.lt.s32.totalorder %v15166_v61, %v9895_v60  ;;  %v15198_v37 = vmov 0 }
 0x3bc   : > { %15188 = vst [vmem:[#allocation270_spill] sm:$0xff] %v15187_v38  ;;  %v4850_v53 = vsel %vm10777_vm0, %v15190_v45, 0.0  ;;  %v15195_v62 = vsel %vm11047_vm12, 4294967295, %v15194_v62  ;;  %vm15197_vm0 = vcmp.ge.s32.totalorder %v15166_v61, %v9888_v44  ;;  %v4972_v45 = vmax.f32 %v4849_v43, %v4971_v2  ;;  %v15206_v61 = vld [vmem:[#allocation42_spill] sm:$0xff]  ;;  %v15208_v2 = vld [vmem:[#allocation120_spill] sm:$0xff] }
 0x3bd   : > { %vm11057_vm6 = vmand %vm15197_vm0, %vm15196_vm13  ;;  %vm4261_vm4 = vcmp.ge.s32.totalorder %v15200_v26, %v9888_v44  ;;  %vm4390_vm9 = vcmp.lt.s32.totalorder %v15200_v26, %v9895_v60  ;;  %vm15201_vm3 = vcmp.lt.s32.totalorder %v15174_v19, %v9895_v60  ;;  %vm15202_vm5 = vcmp.ge.s32.totalorder %v15174_v19, %v9888_v44 }
 0x3be   : > { %v15199_v37 = vsel %vm11057_vm6, 4294967295, %v15198_v37  ;;  %vm11071_vm15 = vmand %vm15202_vm5, %vm15201_vm3  ;;  %v15203_v41 = vmov 0  ;;  %v15207_v38 = vmax.f32 %v15206_v61, 0.0  ;;  %vm4262_vm13 = vcmp.ge.s32.totalorder %v15208_v2, %v9888_v44 }
 0x3bf   : > { %v15204_v41 = vsel %vm11071_vm15, 4294967295, %v15203_v41  ;;  %vm4391_vm0 = vcmp.lt.s32.totalorder %v15208_v2, %v9895_v60  ;;  %vm15209_vm6 = vcmp.ge.s32.totalorder %v15183_v22, %v9888_v44  ;;  %v15210_v19 = vmov 0  ;;  %v15225_v2 = vld [vmem:[#allocation47_spill] sm:$0xff] }
 0x3c0   : > { %15205 = vst [vmem:[#allocation271_spill] sm:$0xff] %v15204_v41  ;;  %v4851_v43 = vsel %vm10823_vm1, %v15207_v38, 0.0  ;;  %vm11086_vm12 = vmand %vm15209_vm6, %vm4388_vm11  ;;  %v4973_v26 = vmax.f32 %v4850_v53, %v4972_v45  ;;  %v15212_v41 = vld [vmem:[#allocation121_spill] sm:$0xff]  ;;  %vm15213_vm3 = vcmp.ge.s32.totalorder %v15191_v4, %v9888_v44  ;;  %v15214_v34 = vmov 0  ;;  %v15218_v53 = vld [vmem:[#allocation122_spill] sm:$0xff] }
 0x3c1   : > { %v15211_v19 = vsel %vm11086_vm12, 4294967295, %v15210_v19  ;;  %vm4263_vm5 = vcmp.ge.s32.totalorder %v15212_v41, %v9888_v44  ;;  %vm4392_vm1 = vcmp.lt.s32.totalorder %v15212_v41, %v9895_v60  ;;  %vm11097_vm15 = vmand %vm15213_vm3, %vm4389_vm7  ;;  %v15216_v38 = vld [vmem:[#allocation45_spill] sm:$0xff]  ;;  %vm4264_vm11 = vcmp.ge.s32.totalorder %v15218_v53, %v9888_v44  ;;  %v15221_v41 = vld [vmem:[#allocation123_spill] sm:$0xff] }
 0x3c2   : > { %v15215_v34 = vsel %vm11097_vm15, 4294967295, %v15214_v34  ;;  %v15217_v22 = vmax.f32 %v15216_v38, 0.0  ;;  %vm4393_vm6 = vcmp.lt.s32.totalorder %v15218_v53, %v9895_v60  ;;  %vm11109_vm12 = vmand %vm4261_vm4, %vm4390_vm9  ;;  %v4974_v4 = vmax.f32 %v4851_v43, %v4973_v26  ;;  %v15227_v53 = vld [vmem:[#allocation125_spill] sm:$0xff] }
 0x3c3   : > { %vm4265_vm7 = vcmp.ge.s32.totalorder %v15221_v41, %v9888_v44  ;;  %vm4394_vm3 = vcmp.lt.s32.totalorder %v15221_v41, %v9895_v60  ;;  %vm11117_vm15 = vmand %vm4262_vm13, %vm4391_vm0  ;;  %v15222_v12 = vmov 0  ;;  %v15226_v38 = vmax.f32 %v15225_v2, 0.0  ;;  %v15230_v41 = vld [vmem:[#allocation126_spill] sm:$0xff]  ;;  %v15234_v2 = vld [vmem:[#allocation44_spill] sm:$0xff] }
 0x3c4   : > { %v4852_v61 = vsel %vm10869_vm8, %v15217_v22, 0.0  ;;  %v15223_v12 = vsel %vm11117_vm15, 4294967295, %v15222_v12  ;;  %vm4266_vm8 = vcmp.ge.s32.totalorder %v15227_v53, %v9888_v44  ;;  %vm4395_vm4 = vcmp.lt.s32.totalorder %v15227_v53, %v9895_v60  ;;  %vm11129_vm9 = vmand %vm4263_vm5, %vm4392_vm1 }
 0x3c5   : > { %15224 = vst [vmem:[#allocation272_spill] sm:$0xff] %v15223_v12  ;;  %v4853_v22 = vsel %vm10915_vm2, %v15226_v38, 0.0  ;;  %v4975_v26 = vmax.f32 %v4852_v61, %v4974_v4  ;;  %vm4267_vm13 = vcmp.ge.s32.totalorder %v15230_v41, %v9888_v44  ;;  %vm4396_vm0 = vcmp.lt.s32.totalorder %v15230_v41, %v9895_v60  ;;  %vm11137_vm15 = vmand %vm4264_vm11, %vm4393_vm6  ;;  %v15236_v12 = vld [vmem:[#allocation127_spill] sm:$0xff]  ;;  %v15239_v41 = vld [vmem:[#allocation128_spill] sm:$0xff] }
 0x3c6   : > { %v15231_v3 = vmov 0  ;;  %v15235_v38 = vmax.f32 %v15234_v2, 0.0  ;;  %vm4268_vm2 = vcmp.ge.s32.totalorder %v15236_v12, %v9888_v44  ;;  %vm4397_vm5 = vcmp.lt.s32.totalorder %v15236_v12, %v9895_v60  ;;  %vm11149_vm1 = vmand %vm4265_vm7, %vm4394_vm3  ;;  %v15243_v2 = vld [vmem:[#allocation46_spill] sm:$0xff] }
 0x3c7   : > { %v15232_v3 = vsel %vm11137_vm15, 4294967295, %v15231_v3  ;;  %v4976_v4 = vmax.f32 %v4853_v22, %v4975_v26  ;;  %vm4269_vm11 = vcmp.ge.s32.totalorder %v15239_v41, %v9888_v44  ;;  %vm4398_vm6 = vcmp.lt.s32.totalorder %v15239_v41, %v9895_v60  ;;  %vm11157_vm15 = vmand %vm4266_vm8, %vm4395_vm4  ;;  %v15248_v41 = vld [vmem:[#allocation130_spill] sm:$0xff] }
 0x3c8   : > { %15233 = vst [vmem:[#allocation273_spill] sm:$0xff] %v15232_v3  ;;  %v4854_v53 = vsel %vm10961_vm10, %v15235_v38, 0.0  ;;  %v15240_v28 = vmov 0  ;;  %v15244_v38 = vmax.f32 %v15243_v2, 0.0  ;;  %v15245_v3 = vld [vmem:[#allocation129_spill] sm:$0xff]  ;;  %vm11169_vm3 = vmand %vm4267_vm13, %vm4396_vm0  ;;  %v15246_v22 = vmov 0 }
 0x3c9   : > { %v15241_v28 = vsel %vm11157_vm15, 4294967295, %v15240_v28  ;;  %vm4270_vm10 = vcmp.ge.s32.totalorder %v15245_v3, %v9888_v44  ;;  %vm4399_vm7 = vcmp.lt.s32.totalorder %v15245_v3, %v9895_v60  ;;  %v15247_v22 = vsel %vm11169_vm3, 4294967295, %v15246_v22  ;;  %vm11177_vm15 = vmand %vm4268_vm2, %vm4397_vm5  ;;  %v15252_v2 = vld [vmem:[#allocation49_spill] sm:$0xff] }
 0x3ca   : > { %15242 = vst [vmem:[#allocation274_spill] sm:$0xff] %v15241_v28  ;;  %v4855_v12 = vsel %vm11005_vm14, %v15244_v38, 0.0  ;;  %v4977_v26 = vmax.f32 %v4854_v53, %v4976_v4  ;;  %vm4271_vm8 = vcmp.ge.s32.totalorder %v15248_v41, %v9888_v44  ;;  %vm4400_vm4 = vcmp.lt.s32.totalorder %v15248_v41, %v9895_v60  ;;  %v15255_v28 = vld [vmem:[#allocation132_spill] sm:$0xff]  ;;  %vm11189_vm3 = vmand %vm4269_vm11, %vm4398_vm6  ;;  %v15258_v41 = vld [vmem:[#allocation133_spill] sm:$0xff] }
 0x3cb   : > { %v15249_v32 = vmov 0  ;;  %v15253_v38 = vmax.f32 %v15252_v2, 0.0  ;;  %vm15254_vm14 = vnez %v15195_v62  ;;  %vm4272_vm13 = vcmp.ge.s32.totalorder %v15255_v28, %v9888_v44  ;;  %v15262_v2 = vld [vmem:[#allocation51_spill] sm:$0xff] }
 0x3cc   : > { %v15250_v32 = vsel %vm11177_vm15, 4294967295, %v15249_v32  ;;  %vm4401_vm0 = vcmp.lt.s32.totalorder %v15255_v28, %v9895_v60  ;;  %v15256_v53 = vmov 0  ;;  %v4978_v4 = vmax.f32 %v4855_v12, %v4977_v26  ;;  %vm11197_vm15 = vmand %vm4270_vm10, %vm4399_vm7 }
 0x3cd   : > { %15251 = vst [vmem:[#allocation275_spill] sm:$0xff] %v15250_v32  ;;  %v4856_v3 = vsel %vm15254_vm14, %v15253_v38, 0.0  ;;  %v15257_v53 = vsel %vm11189_vm3, 4294967295, %v15256_v53  ;;  %vm4273_vm2 = vcmp.ge.s32.totalorder %v15258_v41, %v9888_v44  ;;  %vm4402_vm5 = vcmp.lt.s32.totalorder %v15258_v41, %v9895_v60  ;;  %v15265_v32 = vld [vmem:[#allocation134_spill] sm:$0xff]  ;;  %vm11209_vm3 = vmand %vm4271_vm8, %vm4400_vm4  ;;  %v15268_v41 = vld [vmem:[#allocation135_spill] sm:$0xff] }
 0x3ce   : > { %v15259_v62 = vmov 0  ;;  %v15263_v38 = vmax.f32 %v15262_v2, 0.0  ;;  %vm15264_vm14 = vnez %v14869_v23  ;;  %vm4274_vm11 = vcmp.ge.s32.totalorder %v15265_v32, %v9888_v44  ;;  %v15272_v2 = vld [vmem:[#allocation48_spill] sm:$0xff] }
 0x3cf   : > { %v15260_v62 = vsel %vm11197_vm15, 4294967295, %v15259_v62  ;;  %vm4403_vm6 = vcmp.lt.s32.totalorder %v15265_v32, %v9895_v60  ;;  %v15266_v12 = vmov 0  ;;  %v4979_v26 = vmax.f32 %v4856_v3, %v4978_v4  ;;  %vm11217_vm15 = vmand %vm4272_vm13, %vm4401_vm0 }
 0x3d0   : > { %15261 = vst [vmem:[#allocation276_spill] sm:$0xff] %v15260_v62  ;;  %v4857_v28 = vsel %vm15264_vm14, %v15263_v38, 0.0  ;;  %v15267_v12 = vsel %vm11209_vm3, 4294967295, %v15266_v12  ;;  %vm4275_vm10 = vcmp.ge.s32.totalorder %v15268_v41, %v9888_v44  ;;  %vm4404_vm7 = vcmp.lt.s32.totalorder %v15268_v41, %v9895_v60  ;;  %v15275_v62 = vld [vmem:[#allocation136_spill] sm:$0xff]  ;;  %vm11229_vm3 = vmand %vm4273_vm2, %vm4402_vm5  ;;  %v15278_v41 = vld [vmem:[#allocation137_spill] sm:$0xff] }
 0x3d1   : > { %v15269_v23 = vmov 0  ;;  %v15273_v38 = vmax.f32 %v15272_v2, 0.0  ;;  %vm15274_vm14 = vnez %v14878_v29  ;;  %vm4276_vm8 = vcmp.ge.s32.totalorder %v15275_v62, %v9888_v44  ;;  %v15282_v2 = vld [vmem:[#allocation50_spill] sm:$0xff] }
 0x3d2   : > { %v15270_v23 = vsel %vm11217_vm15, 4294967295, %v15269_v23  ;;  %vm4405_vm4 = vcmp.lt.s32.totalorder %v15275_v62, %v9895_v60  ;;  %v15276_v3 = vmov 0  ;;  %v4980_v4 = vmax.f32 %v4857_v28, %v4979_v26  ;;  %vm11237_vm15 = vmand %vm4274_vm11, %vm4403_vm6 }
 0x3d3   : > { %15271 = vst [vmem:[#allocation277_spill] sm:$0xff] %v15270_v23  ;;  %v4858_v32 = vsel %vm15274_vm14, %v15273_v38, 0.0  ;;  %v15277_v3 = vsel %vm11229_vm3, 4294967295, %v15276_v3  ;;  %vm4277_vm13 = vcmp.ge.s32.totalorder %v15278_v41, %v9888_v44  ;;  %vm4406_vm0 = vcmp.lt.s32.totalorder %v15278_v41, %v9895_v60  ;;  %v15285_v23 = vld [vmem:[#allocation139_spill] sm:$0xff]  ;;  %vm11249_vm3 = vmand %vm4275_vm10, %vm4404_vm7  ;;  %v15288_v41 = vld [vmem:[#allocation140_spill] sm:$0xff] }
 0x3d4   : > { %v15279_v29 = vmov 0  ;;  %v15283_v38 = vmax.f32 %v15282_v2, 0.0  ;;  %vm15284_vm14 = vnez %v14880_v49  ;;  %vm4278_vm2 = vcmp.ge.s32.totalorder %v15285_v23, %v9888_v44  ;;  %v15292_v2 = vld [vmem:[#allocation53_spill] sm:$0xff] }
 0x3d5   : > { %v15280_v29 = vsel %vm11237_vm15, 4294967295, %v15279_v29  ;;  %vm4407_vm5 = vcmp.lt.s32.totalorder %v15285_v23, %v9895_v60  ;;  %v15286_v28 = vmov 0  ;;  %v4981_v26 = vmax.f32 %v4858_v32, %v4980_v4  ;;  %vm11257_vm15 = vmand %vm4276_vm8, %vm4405_vm4 }
 0x3d6   : > { %15281 = vst [vmem:[#allocation278_spill] sm:$0xff] %v15280_v29  ;;  %v4859_v62 = vsel %vm15284_vm14, %v15283_v38, 0.0  ;;  %v15287_v28 = vsel %vm11249_vm3, 4294967295, %v15286_v28  ;;  %vm4279_vm11 = vcmp.ge.s32.totalorder %v15288_v41, %v9888_v44  ;;  %vm4408_vm6 = vcmp.lt.s32.totalorder %v15288_v41, %v9895_v60  ;;  %v15295_v29 = vld [vmem:[#allocation141_spill] sm:$0xff]  ;;  %vm11269_vm3 = vmand %vm4277_vm13, %vm4406_vm0  ;;  %v15298_v41 = vld [vmem:[#allocation142_spill] sm:$0xff] }
 0x3d7   : > { %v15289_v49 = vmov 0  ;;  %v15293_v38 = vmax.f32 %v15292_v2, 0.0  ;;  %vm15294_vm14 = vnez %v14889_v27  ;;  %vm4280_vm10 = vcmp.ge.s32.totalorder %v15295_v29, %v9888_v44  ;;  %v15302_v2 = vld [vmem:[#allocation55_spill] sm:$0xff] }
 0x3d8   : > { %v15290_v49 = vsel %vm11257_vm15, 4294967295, %v15289_v49  ;;  %vm4409_vm7 = vcmp.lt.s32.totalorder %v15295_v29, %v9895_v60  ;;  %v15296_v32 = vmov 0  ;;  %v4982_v4 = vmax.f32 %v4859_v62, %v4981_v26  ;;  %vm11277_vm15 = vmand %vm4278_vm2, %vm4407_vm5 }
 0x3d9   : > { %15291 = vst [vmem:[#allocation279_spill] sm:$0xff] %v15290_v49  ;;  %v4860_v23 = vsel %vm15294_vm14, %v15293_v38, 0.0  ;;  %v15297_v32 = vsel %vm11269_vm3, 4294967295, %v15296_v32  ;;  %vm4281_vm8 = vcmp.ge.s32.totalorder %v15298_v41, %v9888_v44  ;;  %vm4410_vm4 = vcmp.lt.s32.totalorder %v15298_v41, %v9895_v60  ;;  %v15305_v49 = vld [vmem:[#allocation143_spill] sm:$0xff]  ;;  %vm11289_vm3 = vmand %vm4279_vm11, %vm4408_vm6  ;;  %v15308_v41 = vld [vmem:[#allocation144_spill] sm:$0xff] }
 0x3da   : > { %v15299_v27 = vmov 0  ;;  %v15303_v38 = vmax.f32 %v15302_v2, 0.0  ;;  %vm15304_vm14 = vnez %v14893_v14  ;;  %vm4282_vm13 = vcmp.ge.s32.totalorder %v15305_v49, %v9888_v44  ;;  %v15312_v2 = vld [vmem:[#allocation52_spill] sm:$0xff] }
 0x3db   : > { %v15300_v27 = vsel %vm11277_vm15, 4294967295, %v15299_v27  ;;  %vm4411_vm0 = vcmp.lt.s32.totalorder %v15305_v49, %v9895_v60  ;;  %v15306_v62 = vmov 0  ;;  %v4983_v26 = vmax.f32 %v4860_v23, %v4982_v4  ;;  %vm11297_vm15 = vmand %vm4280_vm10, %vm4409_vm7 }
 0x3dc   : > { %15301 = vst [vmem:[#allocation280_spill] sm:$0xff] %v15300_v27  ;;  %v4861_v29 = vsel %vm15304_vm14, %v15303_v38, 0.0  ;;  %v15307_v62 = vsel %vm11289_vm3, 4294967295, %v15306_v62  ;;  %vm4283_vm2 = vcmp.ge.s32.totalorder %v15308_v41, %v9888_v44  ;;  %vm4412_vm5 = vcmp.lt.s32.totalorder %v15308_v41, %v9895_v60  ;;  %v15315_v27 = vld [vmem:[#allocation146_spill] sm:$0xff]  ;;  %vm11309_vm3 = vmand %vm4281_vm8, %vm4410_vm4  ;;  %v15318_v41 = vld [vmem:[#allocation147_spill] sm:$0xff] }
 0x3dd   : > { %v15309_v14 = vmov 0  ;;  %v15313_v38 = vmax.f32 %v15312_v2, 0.0  ;;  %vm15314_vm14 = vnez %v14903_v46  ;;  %vm4284_vm11 = vcmp.ge.s32.totalorder %v15315_v27, %v9888_v44  ;;  %v15322_v2 = vld [vmem:[#allocation54_spill] sm:$0xff] }
 0x3de   : > { %v15310_v14 = vsel %vm11297_vm15, 4294967295, %v15309_v14  ;;  %vm4413_vm6 = vcmp.lt.s32.totalorder %v15315_v27, %v9895_v60  ;;  %v15316_v23 = vmov 0  ;;  %v4984_v4 = vmax.f32 %v4861_v29, %v4983_v26  ;;  %vm11317_vm15 = vmand %vm4282_vm13, %vm4411_vm0 }
 0x3df   : > { %15311 = vst [vmem:[#allocation281_spill] sm:$0xff] %v15310_v14  ;;  %v4862_v49 = vsel %vm15314_vm14, %v15313_v38, 0.0  ;;  %v15317_v23 = vsel %vm11309_vm3, 4294967295, %v15316_v23  ;;  %vm4285_vm10 = vcmp.ge.s32.totalorder %v15318_v41, %v9888_v44  ;;  %vm4414_vm7 = vcmp.lt.s32.totalorder %v15318_v41, %v9895_v60  ;;  %v15325_v14 = vld [vmem:[#allocation148_spill] sm:$0xff]  ;;  %vm11329_vm3 = vmand %vm4283_vm2, %vm4412_vm5  ;;  %v15328_v41 = vld [vmem:[#allocation149_spill] sm:$0xff] }
 0x3e0   : > { %v15319_v46 = vmov 0  ;;  %v15323_v38 = vmax.f32 %v15322_v2, 0.0  ;;  %vm15324_vm14 = vnez %v14907_v30  ;;  %vm4286_vm8 = vcmp.ge.s32.totalorder %v15325_v14, %v9888_v44  ;;  %v15332_v2 = vld [vmem:[#allocation57_spill] sm:$0xff] }
 0x3e1   : > { %v15320_v46 = vsel %vm11317_vm15, 4294967295, %v15319_v46  ;;  %vm4415_vm4 = vcmp.lt.s32.totalorder %v15325_v14, %v9895_v60  ;;  %v15326_v29 = vmov 0  ;;  %v4985_v26 = vmax.f32 %v4862_v49, %v4984_v4  ;;  %vm11337_vm15 = vmand %vm4284_vm11, %vm4413_vm6 }
 0x3e2   : > { %15321 = vst [vmem:[#allocation282_spill] sm:$0xff] %v15320_v46  ;;  %v4863_v27 = vsel %vm15324_vm14, %v15323_v38, 0.0  ;;  %v15327_v29 = vsel %vm11329_vm3, 4294967295, %v15326_v29  ;;  %vm4287_vm13 = vcmp.ge.s32.totalorder %v15328_v41, %v9888_v44  ;;  %vm4416_vm0 = vcmp.lt.s32.totalorder %v15328_v41, %v9895_v60  ;;  %v15335_v46 = vld [vmem:[#allocation150_spill] sm:$0xff]  ;;  %vm11349_vm3 = vmand %vm4285_vm10, %vm4414_vm7  ;;  %v15338_v41 = vld [vmem:[#allocation151_spill] sm:$0xff] }
 0x3e3   : > { %v15329_v30 = vmov 0  ;;  %v15333_v38 = vmax.f32 %v15332_v2, 0.0  ;;  %vm15334_vm14 = vnez %v14917_v9  ;;  %vm4288_vm2 = vcmp.ge.s32.totalorder %v15335_v46, %v9888_v44  ;;  %v15342_v2 = vld [vmem:[#allocation59_spill] sm:$0xff] }
 0x3e4   : > { %v15330_v30 = vsel %vm11337_vm15, 4294967295, %v15329_v30  ;;  %vm4417_vm5 = vcmp.lt.s32.totalorder %v15335_v46, %v9895_v60  ;;  %v15336_v49 = vmov 0  ;;  %v4986_v4 = vmax.f32 %v4863_v27, %v4985_v26  ;;  %vm11357_vm15 = vmand %vm4286_vm8, %vm4415_vm4 }
 0x3e5   : > { %15331 = vst [vmem:[#allocation283_spill] sm:$0xff] %v15330_v30  ;;  %v4864_v14 = vsel %vm15334_vm14, %v15333_v38, 0.0  ;;  %v15337_v49 = vsel %vm11349_vm3, 4294967295, %v15336_v49  ;;  %vm4289_vm11 = vcmp.ge.s32.totalorder %v15338_v41, %v9888_v44  ;;  %vm4418_vm6 = vcmp.lt.s32.totalorder %v15338_v41, %v9895_v60  ;;  %v15345_v30 = vld [vmem:[#allocation153_spill] sm:$0xff]  ;;  %vm11369_vm3 = vmand %vm4287_vm13, %vm4416_vm0  ;;  %v15348_v41 = vld [vmem:[#allocation154_spill] sm:$0xff] }
 0x3e6   : > { %v15339_v9 = vmov 0  ;;  %v15343_v38 = vmax.f32 %v15342_v2, 0.0  ;;  %vm15344_vm14 = vnez %v14921_v55  ;;  %vm4290_vm10 = vcmp.ge.s32.totalorder %v15345_v30, %v9888_v44  ;;  %v15352_v2 = vld [vmem:[#allocation56_spill] sm:$0xff] }
 0x3e7   : > { %v15340_v9 = vsel %vm11357_vm15, 4294967295, %v15339_v9  ;;  %vm4419_vm7 = vcmp.lt.s32.totalorder %v15345_v30, %v9895_v60  ;;  %v15346_v27 = vmov 0  ;;  %v4987_v26 = vmax.f32 %v4864_v14, %v4986_v4  ;;  %vm11377_vm15 = vmand %vm4288_vm2, %vm4417_vm5 }
 0x3e8   : > { %15341 = vst [vmem:[#allocation284_spill] sm:$0xff] %v15340_v9  ;;  %v4865_v46 = vsel %vm15344_vm14, %v15343_v38, 0.0  ;;  %v15347_v27 = vsel %vm11369_vm3, 4294967295, %v15346_v27  ;;  %vm4291_vm8 = vcmp.ge.s32.totalorder %v15348_v41, %v9888_v44  ;;  %vm4420_vm4 = vcmp.lt.s32.totalorder %v15348_v41, %v9895_v60  ;;  %v15355_v9 = vld [vmem:[#allocation155_spill] sm:$0xff]  ;;  %vm11389_vm3 = vmand %vm4289_vm11, %vm4418_vm6  ;;  %v15358_v41 = vld [vmem:[#allocation156_spill] sm:$0xff] }
 0x3e9   : > { %v15349_v55 = vmov 0  ;;  %v15353_v38 = vmax.f32 %v15352_v2, 0.0  ;;  %vm15354_vm14 = vnez %v14931_v15  ;;  %vm4292_vm13 = vcmp.ge.s32.totalorder %v15355_v9, %v9888_v44  ;;  %v15362_v2 = vld [vmem:[#allocation58_spill] sm:$0xff] }
 0x3ea   : > { %v15350_v55 = vsel %vm11377_vm15, 4294967295, %v15349_v55  ;;  %vm4421_vm0 = vcmp.lt.s32.totalorder %v15355_v9, %v9895_v60  ;;  %v15356_v14 = vmov 0  ;;  %v4988_v4 = vmax.f32 %v4865_v46, %v4987_v26  ;;  %vm11397_vm15 = vmand %vm4290_vm10, %vm4419_vm7 }
 0x3eb   : > { %15351 = vst [vmem:[#allocation285_spill] sm:$0xff] %v15350_v55  ;;  %v4866_v30 = vsel %vm15354_vm14, %v15353_v38, 0.0  ;;  %v15357_v14 = vsel %vm11389_vm3, 4294967295, %v15356_v14  ;;  %vm4293_vm2 = vcmp.ge.s32.totalorder %v15358_v41, %v9888_v44  ;;  %vm4422_vm5 = vcmp.lt.s32.totalorder %v15358_v41, %v9895_v60  ;;  %v15365_v55 = vld [vmem:[#allocation157_spill] sm:$0xff]  ;;  %vm11409_vm3 = vmand %vm4291_vm8, %vm4420_vm4  ;;  %v15368_v41 = vld [vmem:[#allocation158_spill] sm:$0xff] }
 0x3ec   : > { %v15359_v15 = vmov 0  ;;  %v15363_v38 = vmax.f32 %v15362_v2, 0.0  ;;  %vm15364_vm14 = vnez %v14935_v35  ;;  %vm4294_vm11 = vcmp.ge.s32.totalorder %v15365_v55, %v9888_v44  ;;  %v15371_v2 = vld [vmem:[#allocation61_spill] sm:$0xff] }
 0x3ed   : > { %v15360_v15 = vsel %vm11397_vm15, 4294967295, %v15359_v15  ;;  %vm4423_vm6 = vcmp.lt.s32.totalorder %v15365_v55, %v9895_v60  ;;  %v15366_v46 = vmov 0  ;;  %v4989_v26 = vmax.f32 %v4866_v30, %v4988_v4  ;;  %vm11417_vm15 = vmand %vm4292_vm13, %vm4421_vm0 }
 0x3ee   : > { %15361 = vst [vmem:[#allocation286_spill] sm:$0xff] %v15360_v15  ;;  %v4867_v9 = vsel %vm15364_vm14, %v15363_v38, 0.0  ;;  %v15367_v46 = vsel %vm11409_vm3, 4294967295, %v15366_v46  ;;  %vm4295_vm10 = vcmp.ge.s32.totalorder %v15368_v41, %v9888_v44  ;;  %vm4424_vm7 = vcmp.lt.s32.totalorder %v15368_v41, %v9895_v60  ;;  %v15374_v15 = vld [vmem:[#allocation160_spill] sm:$0xff]  ;;  %vm11429_vm3 = vmand %vm4293_vm2, %vm4422_vm5  ;;  %v15380_v41 = vld [vmem:[#allocation63_spill] sm:$0xff] }
 0x3ef   : > { %v15369_v35 = vmov 0  ;;  %v15372_v38 = vmax.f32 %v15371_v2, 0.0  ;;  %vm15373_vm14 = vnez %v14945_v33  ;;  %vm4296_vm8 = vcmp.ge.s32.totalorder %v15374_v15, %v9888_v44 }
 0x3f0   : > { %v15370_v35 = vsel %vm11417_vm15, 4294967295, %v15369_v35  ;;  %vm4425_vm4 = vcmp.lt.s32.totalorder %v15374_v15, %v9895_v60  ;;  %v15375_v30 = vmov 0  ;;  %v4990_v4 = vmax.f32 %v4867_v9, %v4989_v26  ;;  %vm11437_vm15 = vmand %vm4294_vm11, %vm4423_vm6 }
 0x3f1   : > { %v4868_v55 = vsel %vm15373_vm14, %v15372_v38, 0.0  ;;  %v15376_v30 = vsel %vm11429_vm3, 4294967295, %v15375_v30  ;;  %vm4297_vm13 = vcmp.ge.s32.totalorder %v9770_v42, %v9888_v44  ;;  %vm4426_vm0 = vcmp.lt.s32.totalorder %v9770_v42, %v9895_v60  ;;  %v15383_v38 = vld [vmem:[#allocation162_spill] sm:$0xff]  ;;  %vm11449_vm3 = vmand %vm4295_vm10, %vm4424_vm7  ;;  %v15386_v42 = vld [vmem:[#allocation163_spill] sm:$0xff] }
 0x3f2   : > { %v15377_v33 = vmov 0  ;;  %v15381_v2 = vmax.f32 %v15380_v41, 0.0  ;;  %vm15382_vm14 = vnez %v14949_v36  ;;  %vm4298_vm2 = vcmp.ge.s32.totalorder %v15383_v38, %v9888_v44  ;;  %v15390_v41 = vld [vmem:[#allocation60_spill] sm:$0xff] }
 0x3f3   : > { %v15378_v33 = vsel %vm11437_vm15, 4294967295, %v15377_v33  ;;  %vm4427_vm5 = vcmp.lt.s32.totalorder %v15383_v38, %v9895_v60  ;;  %v15384_v9 = vmov 0  ;;  %v4991_v26 = vmax.f32 %v4868_v55, %v4990_v4  ;;  %vm11457_vm15 = vmand %vm4296_vm8, %vm4425_vm4  ;;  %v15397_v4 = vld [vmem:[#allocation241_spill] sm:$0xff] }
 0x3f4   : > { %15379 = vst [vmem:[#allocation287_spill] sm:$0xff] %v15378_v33  ;;  %v4869_v15 = vsel %vm15382_vm14, %v15381_v2, 0.0  ;;  %v15385_v9 = vsel %vm11449_vm3, 4294967295, %v15384_v9  ;;  %vm4299_vm11 = vcmp.ge.s32.totalorder %v15386_v42, %v9888_v44  ;;  %vm4428_vm6 = vcmp.lt.s32.totalorder %v15386_v42, %v9895_v60  ;;  %v15393_v33 = vld [vmem:[#allocation164_spill] sm:$0xff]  ;;  %vm11469_vm3 = vmand %vm4297_vm13, %vm4426_vm0 }
 0x3f5   : > { %v15387_v36 = vmov 0  ;;  %v15391_v2 = vmax.f32 %v15390_v41, 0.0  ;;  %vm15392_vm14 = vnez %v14959_v50  ;;  %vm4300_vm10 = vcmp.ge.s32.totalorder %v15393_v33, %v9888_v44  ;;  %v15401_v41 = vld [vmem:[#allocation62_spill] sm:$0xff] }
 0x3f6   : > { %v15388_v36 = vsel %vm11457_vm15, 4294967295, %v15387_v36  ;;  %vm4429_vm7 = vcmp.lt.s32.totalorder %v15393_v33, %v9895_v60  ;;  %v15394_v55 = vmov 0  ;;  %v4992_v42 = vmax.f32 %v4869_v15, %v4991_v26  ;;  %vm11477_vm15 = vmand %vm4298_vm2, %vm4427_vm5 }
 0x3f7   : > { %15389 = vst [vmem:[#allocation288_spill] sm:$0xff] %v15388_v36  ;;  %v4870_v38 = vsel %vm15392_vm14, %v15391_v2, 0.0  ;;  %v15395_v55 = vsel %vm11469_vm3, 4294967295, %v15394_v55  ;;  %vm4301_vm8 = vcmp.ge.s32.totalorder %v15397_v4, %v9888_v44  ;;  %vm4430_vm4 = vcmp.lt.s32.totalorder %v15397_v4, %v9895_v60  ;;  %vm11489_vm3 = vmand %vm4299_vm11, %vm4428_vm6 }
 0x3f8   : > { %15396 = vst [vmem:[#allocation289_spill] sm:$0xff] %v15395_v55  ;;  %v15398_v50 = vmov 0  ;;  %v15402_v2 = vmax.f32 %v15401_v41, 0.0  ;;  %vm15403_vm14 = vnez %v14963_v13  ;;  %vm4302_vm13 = vcmp.ge.s32.totalorder %v9794_v57, %v9888_v44  ;;  %vm11493_vm2 = vmand %vm4300_vm10, %vm4429_vm7  ;;  %v15425_v55 = vld [vmem:[#allocation66_spill] sm:$0xff] }
 0x3f9   : > { %v15399_v50 = vsel %vm11477_vm15, 4294967295, %v15398_v50  ;;  %vm4431_vm0 = vcmp.lt.s32.totalorder %v9794_v57, %v9895_v60  ;;  %v15404_v15 = vmov 0  ;;  %v4993_v26 = vmax.f32 %v4870_v38, %v4992_v42  ;;  %v15419_v57 = vld [vmem:[#allocation67_spill] sm:$0xff] }
 0x3fa   : > { %15400 = vst [vmem:[#allocation290_spill] sm:$0xff] %v15399_v50  ;;  %v4871_v33 = vsel %vm15403_vm14, %v15402_v2, 0.0  ;;  %v15405_v15 = vsel %vm11489_vm3, 4294967295, %v15404_v15  ;;  %v15407_v4 = vmov 0  ;;  %v15410_v50 = vld [vmem:[#allocation65_spill] sm:$0xff]  ;;  %vm15412_vm5 = vnez %v14973_v8  ;;  %vm11501_vm14 = vmand %vm4301_vm8, %vm4430_vm4 }
 0x3fb   : > { %15406 = vst [vmem:[#allocation291_spill] sm:$0xff] %v15405_v15  ;;  %v15408_v4 = vsel %vm11493_vm2, 4294967295, %v15407_v4  ;;  %v15411_v41 = vmax.f32 %v15410_v50, 0.0  ;;  %v15413_v2 = vmov 0  ;;  %v4994_v44 = vmax.f32 %v4871_v33, %v4993_v26  ;;  %vm11505_vm15 = vmand %vm4302_vm13, %vm4431_vm0  ;;  %v15422_v15 = vld [vmem:[#allocation64_spill] sm:$0xff] }
 0x3fc   : > { %15409 = vst [vmem:[#allocation292_spill] sm:$0xff] %v15408_v4  ;;  %v15414_v2 = vsel %vm11501_vm14, 4294967295, %v15413_v2  ;;  %v15416_v60 = vmov 0  ;;  %v15420_v38 = vmax.f32 %v15419_v57, 0.0  ;;  %vm15421_vm11 = vnez %v14978_v24 }
 0x3fd   : > { %v4872_v13 = vsel %vm15412_vm5, %v15411_v41, 0.0  ;;  %15415 = vst [vmem:[#allocation293_spill] sm:$0xff] %v15414_v2  ;;  %v15417_v60 = vsel %vm11505_vm15, 4294967295, %v15416_v60  ;;  %v15423_v50 = vmax.f32 %v15422_v15, 0.0  ;;  %vm15424_vm6 = vnez %v14990_v10  ;;  %v15428_v2 = vld [vmem:[#allocation69_spill] sm:$0xff] }
 0x3fe   : > { %15418 = vst [vmem:[#allocation294_spill] sm:$0xff] %v15417_v60  ;;  %v4873_v42 = vsel %vm15421_vm11, %v15420_v38, 0.0  ;;  %v4995_v4 = vmax.f32 %v4872_v13, %v4994_v44  ;;  %v15426_v36 = vmax.f32 %v15425_v55, 0.0  ;;  %vm15427_vm10 = vnez %v14995_v1  ;;  %v15431_v38 = vld [vmem:[#allocation71_spill] sm:$0xff]  ;;  %v15434_v44 = vld [vmem:[#allocation68_spill] sm:$0xff] }
 0x3ff   : > { %v4874_v8 = vsel %vm15424_vm6, %v15423_v50, 0.0  ;;  %v15429_v60 = vmax.f32 %v15428_v2, 0.0  ;;  %vm15430_vm7 = vnez %v15007_v25  ;;  %v15432_v13 = vmax.f32 %v15431_v38, 0.0  ;;  %v15440_v25 = vld [vmem:[#allocation13_spill] sm:$0xff] }
 0x400   : > { %v4996_v41 = vmax.f32 %v4873_v42, %v4995_v4  ;;  %v4875_v33 = vsel %vm15427_vm10, %v15426_v36, 0.0  ;;  %vm15433_vm8 = vnez %v15012_v17  ;;  %v15435_v4 = vmax.f32 %v15434_v44, 0.0  ;;  %v15437_v36 = vld [vmem:[#allocation9_spill] sm:$0xff]  ;;  %v15443_v17 = vld [vmem:[#allocation70_spill] sm:$0xff]  ;;  %v15455_v44 = vld [vmem:[#allocation8_spill] sm:$0xff] }
 0x401   : > { %v4876_v57 = vsel %vm15430_vm7, %v15429_v60, 0.0  ;;  %v4877_v15 = vsel %vm15433_vm8, %v15432_v13, 0.0  ;;  %vm15436_vm4 = vnez %v15024_v59  ;;  %v15438_v42 = vmax.f32 %v15437_v36, 0.0  ;;  %v15461_v36 = vld [vmem:[#allocation75_spill] sm:$0xff] }
 0x402   : > { %v4997_v26 = vmax.f32 %v4874_v8, %v4996_v41  ;;  %v4878_v55 = vsel %vm15436_vm4, %v15435_v4, 0.0  ;;  %vm15439_vm13 = vnez %v14823_v48  ;;  %v15441_v60 = vmax.f32 %v15440_v25, 0.0  ;;  %v15449_v48 = vld [vmem:[#allocation15_spill] sm:$0xff] }
 0x403   : > { %v11537_v2 = vsel %vm15439_vm13, %v15438_v42, 0.0  ;;  %vm15442_vm0 = vnez %v14831_v54  ;;  %v15444_v8 = vmax.f32 %v15443_v17, 0.0  ;;  %vm15445_vm5 = vnez %v15029_v40  ;;  %v15452_v54 = vld [vmem:[#allocation73_spill] sm:$0xff]  ;;  %v15464_v17 = vld [vmem:[#allocation10_spill] sm:$0xff] }
 0x404   : > { %v4998_v24 = vmax.f32 %v4875_v33, %v4997_v26  ;;  %v11543_v50 = vsel %vm15442_vm0, %v15441_v60, 0.0  ;;  %v15446_v33 = vld [vmem:[#allocation11_spill] sm:$0xff]  ;;  %vm15448_vm11 = vnez %v14825_v47  ;;  %vm15451_vm6 = vnez %v14833_v6 }
 0x405   : > { %v4879_v41 = vsel %vm15445_vm5, %v15444_v8, 0.0  ;;  %v15447_v26 = vmax.f32 %v15446_v33, 0.0  ;;  %v15453_v13 = vmax.f32 %v15452_v54, 0.0  ;;  %vm15454_vm10 = vnez %v15041_v16  ;;  %v15470_v33 = vld [vmem:[#allocation72_spill] sm:$0xff]  ;;  %v15473_v54 = vld [vmem:[#allocation74_spill] sm:$0xff] }
 0x406   : > { %v4999_v10 = vmax.f32 %v4876_v57, %v4998_v24  ;;  %v15450_v24 = vmax.f32 %v15449_v48, 0.0  ;;  %v15456_v4 = vmax.f32 %v15455_v44, 0.0  ;;  %vm15457_vm7 = vnez %v14827_v31 }
 0x407   : > { %v11553_v57 = vsel %vm15448_vm11, %v15447_v26, 0.0  ;;  %vm15460_vm8 = vnez %v14835_v18  ;;  %v15462_v42 = vmax.f32 %v15461_v36, 0.0  ;;  %vm15463_vm4 = vnez %v15046_v7 }
 0x408   : > { %v5000_v1 = vmax.f32 %v4877_v15, %v4999_v10  ;;  %v11559_v38 = vsel %vm15451_vm6, %v15450_v24, 0.0  ;;  %v4880_v15 = vsel %vm15454_vm10, %v15453_v13, 0.0  ;;  %v4944_v10 = vmax.f32 %v11537_v2, %v11543_v50 }
 0x409   : > { %v11571_v47 = vsel %vm15457_vm7, %v15456_v4, 0.0  ;;  %v4881_v16 = vsel %vm15463_vm4, %v15462_v42, 0.0  ;;  %v4945_v60 = vmax.f32 %v11553_v57, %v11559_v38  ;;  %v15465_v8 = vmax.f32 %v15464_v17, 0.0 }
 0x40a   : > { %v5001_v59 = vmax.f32 %v4878_v55, %v5000_v1  ;;  %v15458_v55 = vld [vmem:[#allocation12_spill] sm:$0xff]  ;;  %vm15466_vm13 = vnez %v14829_v39  ;;  %vm15469_vm0 = vnez %v14837_v58  ;;  %v15471_v26 = vmax.f32 %v15470_v33, 0.0  ;;  %v15488_v33 = vld [vmem:[#allocation89_spill] sm:$0xff] }
 0x40b   : > { %v15459_v1 = vmax.f32 %v15458_v55, 0.0  ;;  %v11589_v31 = vsel %vm15466_vm13, %v15465_v8, 0.0  ;;  %vm15472_vm5 = vnez %v15058_v5  ;;  %v15474_v13 = vmax.f32 %v15473_v54, 0.0  ;;  %v15479_v55 = vld [vmem:[#allocation79_spill] sm:$0xff]  ;;  %v15485_v8 = vld [vmem:[#allocation78_spill] sm:$0xff] }
 0x40c   : > { %v5002_v40 = vmax.f32 %v4879_v41, %v5001_v59  ;;  %v15467_v41 = vld [vmem:[#allocation14_spill] sm:$0xff]  ;;  %v4882_v7 = vsel %vm15472_vm5, %v15471_v26, 0.0  ;;  %vm15475_vm11 = vnez %v15063_v20  ;;  %vm15478_vm6 = vnez %v15075_v52 }
 0x40d   : > { %v11577_v6 = vsel %vm15460_vm8, %v15459_v1, 0.0  ;;  %v15468_v59 = vmax.f32 %v15467_v41, 0.0  ;;  %v4883_v39 = vsel %vm15475_vm11, %v15474_v13, 0.0  ;;  %v15480_v1 = vmax.f32 %v15479_v55, 0.0  ;;  %v15493_v13 = vld [vmem:[#allocation264_spill] sm:$0xff] }
 0x40e   : > { %v5003_v25 = vmax.f32 %v4880_v15, %v5002_v40  ;;  %v4946_v24 = vmax.f32 %v11571_v47, %v11577_v6  ;;  %v15476_v40 = vld [vmem:[#allocation77_spill] sm:$0xff]  ;;  %vm15481_vm10 = vnez %v15080_v21  ;;  %vm15484_vm7 = vnez %v15092_v56 }
 0x40f   : > { %v11595_v18 = vsel %vm15469_vm0, %v15468_v59, 0.0  ;;  %v15477_v44 = vmax.f32 %v15476_v40, 0.0  ;;  %v4885_v36 = vsel %vm15481_vm10, %v15480_v1, 0.0  ;;  %v15486_v41 = vmax.f32 %v15485_v8, 0.0  ;;  %v15501_v1 = vld [vmem:[#allocation266_spill] sm:$0xff]  ;;  %v15507_v8 = vld [vmem:[#allocation131_spill] sm:$0xff] }
 0x410   : > { %v5004_v48 = vmax.f32 %v4881_v16, %v5003_v25  ;;  %v4947_v58 = vmax.f32 %v11589_v31, %v11595_v18  ;;  %v15482_v16 = vld [vmem:[#allocation76_spill] sm:$0xff]  ;;  %vm15487_vm8 = vnez %v15097_v63  ;;  %v15489_v26 = vmax.f32 %v15488_v33, 0.0  ;;  %v15510_v33 = vld [vmem:[#allocation110_spill] sm:$0xff] }
 0x411   : > { %v4884_v4 = vsel %vm15478_vm6, %v15477_v44, 0.0  ;;  %v15483_v25 = vmax.f32 %v15482_v16, 0.0  ;;  %v4887_v59 = vsel %vm15487_vm8, %v15486_v41, 0.0  ;;  %vm15490_vm4 = vnez %v15109_v51  ;;  %v15497_v44 = vld [vmem:[#allocation265_spill] sm:$0xff] }
 0x412   : > { %v5005_v15 = vmax.f32 %v4882_v7, %v5004_v48  ;;  %v4888_v7 = vsel %vm15490_vm4, %v15489_v26, 0.0  ;;  %v15491_v48 = vld [vmem:[#allocation103_spill] sm:$0xff]  ;;  %vm15494_vm13 = vnez %v15493_v13  ;;  %vm15498_vm0 = vnez %v15497_v44 }
 0x413   : > { %v4886_v20 = vsel %vm15484_vm7, %v15483_v25, 0.0  ;;  %v15492_v54 = vmax.f32 %v15491_v48, 0.0  ;;  %vm15502_vm5 = vnez %v15501_v1  ;;  %v15505_v25 = vld [vmem:[#allocation267_spill] sm:$0xff]  ;;  %v15508_v41 = vmax.f32 %v15507_v8, 0.0 }
 0x414   : > { %v5006_v5 = vmax.f32 %v4883_v39, %v5005_v15  ;;  %v15495_v15 = vld [vmem:[#allocation82_spill] sm:$0xff]  ;;  %vm15506_vm11 = vnez %v15505_v25  ;;  %vm15509_vm6 = vnez %v15152_v0  ;;  %v15511_v26 = vmax.f32 %v15510_v33, 0.0  ;;  %v15530_v8 = vld [vmem:[#allocation271_spill] sm:$0xff] }
 0x415   : > { %v4889_v39 = vsel %vm15494_vm13, %v15492_v54, 0.0  ;;  %v15496_v40 = vmax.f32 %v15495_v15, 0.0  ;;  %v15514_v54 = vld [vmem:[#allocation124_spill] sm:$0xff]  ;;  %vm15520_vm8 = vnez %v15182_v11  ;;  %vm15527_vm13 = vnez %v15199_v37 }
 0x416   : > { %v5007_v42 = vmax.f32 %v4884_v4, %v5006_v5  ;;  %v15499_v5 = vld [vmem:[#allocation96_spill] sm:$0xff]  ;;  %v15515_v13 = vmax.f32 %v15514_v54, 0.0  ;;  %v15538_v54 = vld [vmem:[#allocation165_spill] sm:$0xff] }
 0x417   : > { %v4890_v4 = vsel %vm15498_vm0, %v15496_v40, 0.0  ;;  %v15500_v55 = vmax.f32 %v15499_v5, 0.0  ;;  %v15518_v40 = vld [vmem:[#allocation145_spill] sm:$0xff]  ;;  %vm15531_vm0 = vnez %v15530_v8 }
 0x418   : > { %v5008_v17 = vmax.f32 %v4885_v36, %v5007_v42  ;;  %v15503_v42 = vld [vmem:[#allocation117_spill] sm:$0xff]  ;;  %v15519_v44 = vmax.f32 %v15518_v40, 0.0 }
 0x419   : > { %v4891_v36 = vsel %vm15502_vm5, %v15500_v55, 0.0  ;;  %v15504_v16 = vmax.f32 %v15503_v42, 0.0  ;;  %v15523_v55 = vld [vmem:[#allocation270_spill] sm:$0xff]  ;;  %vm15534_vm5 = vnez %v15211_v19 }
 0x41a   : > { %v5009_v52 = vmax.f32 %v4886_v20, %v5008_v17  ;;  %vm15524_vm4 = vnez %v15523_v55  ;;  %v15546_v55 = vld [vmem:[#allocation213_spill] sm:$0xff] }
 0x41b   : > { %v4892_v20 = vsel %vm15506_vm11, %v15504_v16, 0.0  ;;  %vm15537_vm11 = vnez %v15215_v34 }
 0x41c   : > { %v5010_v21 = vmax.f32 %v4887_v59, %v5009_v52  ;;  %v4893_v59 = vsel %vm15509_vm6, %v15508_v41, 0.0 }
 0x41e   : > { %v5011_v56 = vmax.f32 %v4888_v7, %v5010_v21  ;;  %v15512_v7 = vld [vmem:[#allocation268_spill] sm:$0xff] }
 0x41f   : > { %vm15513_vm10 = vnez %v15512_v7  ;;  %v15535_v7 = vld [vmem:[#allocation185_spill] sm:$0xff] }
 0x420   : > { %v5012_v63 = vmax.f32 %v4889_v39, %v5011_v56  ;;  %v4894_v21 = vsel %vm15513_vm10, %v15511_v26, 0.0  ;;  %v15516_v39 = vld [vmem:[#allocation269_spill] sm:$0xff] }
 0x421   : > { %vm15517_vm7 = vnez %v15516_v39 }
 0x422   : > { %v5013_v51 = vmax.f32 %v4890_v4, %v5012_v63  ;;  %v4895_v56 = vsel %vm15517_vm7, %v15515_v13, 0.0  ;;  %v4896_v4 = vsel %vm15520_vm8, %v15519_v44, 0.0  ;;  %v15521_v63 = vld [vmem:[#allocation159_spill] sm:$0xff]  ;;  %v15539_v13 = vmax.f32 %v15538_v54, 0.0  ;;  %v15542_v44 = vld [vmem:[#allocation272_spill] sm:$0xff] }
 0x423   : > { %v15522_v5 = vmax.f32 %v15521_v63, 0.0  ;;  %vm15543_vm6 = vnez %v15542_v44  ;;  %v15563_v54 = vld [vmem:[#allocation220_spill] sm:$0xff] }
 0x424   : > { %v5014_v17 = vmax.f32 %v4891_v36, %v5013_v51  ;;  %v15525_v51 = vld [vmem:[#allocation138_spill] sm:$0xff]  ;;  %v4902_v39 = vsel %vm11109_vm12, %v15539_v13, 0.0  ;;  %v15564_v13 = vmax.f32 %v15563_v54, 0.0  ;;  %v15568_v44 = vld [vmem:[#allocation276_spill] sm:$0xff]  ;;  %v15594_v54 = vld [vmem:[#allocation237_spill] sm:$0xff] }
 0x425   : > { %v4897_v1 = vsel %vm15524_vm4, %v15522_v5, 0.0  ;;  %v15526_v42 = vmax.f32 %v15525_v51, 0.0  ;;  %vm15569_vm8 = vnez %v15568_v44  ;;  %vm15572_vm4 = vnez %v15267_v12 }
 0x426   : > { %v5015_v52 = vmax.f32 %v4892_v20, %v5014_v17  ;;  %v15528_v20 = vld [vmem:[#allocation152_spill] sm:$0xff] }
 0x427   : > { %v4898_v16 = vsel %vm15527_vm13, %v15526_v42, 0.0  ;;  %v15529_v17 = vmax.f32 %v15528_v20, 0.0  ;;  %v15550_v42 = vld [vmem:[#allocation192_spill] sm:$0xff] }
 0x428   : > { %v5016_v48 = vmax.f32 %v4893_v59, %v5015_v52  ;;  %v15532_v59 = vld [vmem:[#allocation171_spill] sm:$0xff] }
 0x429   : > { %v4899_v41 = vsel %vm15531_vm0, %v15529_v17, 0.0  ;;  %v15533_v52 = vmax.f32 %v15532_v59, 0.0  ;;  %v15552_v17 = vld [vmem:[#allocation206_spill] sm:$0xff]  ;;  %v15556_v59 = vld [vmem:[#allocation227_spill] sm:$0xff]  ;;  %vm15579_vm0 = vnez %v15277_v3 }
 0x42a   : > { %v5017_v15 = vmax.f32 %v4894_v21, %v5016_v48  ;;  %v15536_v21 = vmax.f32 %v15535_v7, 0.0  ;;  %v15553_v8 = vmax.f32 %v15552_v17, 0.0  ;;  %v15559_v7 = vld [vmem:[#allocation230_spill] sm:$0xff] }
 0x42b   : > { %v4900_v33 = vsel %vm15534_vm5, %v15533_v52, 0.0  ;;  %v15557_v52 = vmax.f32 %v15556_v59, 0.0  ;;  %v15582_v17 = vld [vmem:[#allocation278_spill] sm:$0xff] }
 0x42c   : > { %v5018_v0 = vmax.f32 %v4895_v56, %v5017_v15  ;;  %v4901_v48 = vsel %vm15537_vm11, %v15536_v21, 0.0  ;;  %v15540_v15 = vld [vmem:[#allocation178_spill] sm:$0xff]  ;;  %v15560_v21 = vmax.f32 %v15559_v7, 0.0  ;;  %vm15583_vm5 = vnez %v15582_v17  ;;  %v15615_v17 = vld [vmem:[#allocation247_spill] sm:$0xff] }
 0x42d   : > { %v15541_v40 = vmax.f32 %v15540_v15, 0.0  ;;  %v15566_v15 = vld [vmem:[#allocation229_spill] sm:$0xff]  ;;  %vm15586_vm11 = vnez %v15287_v28 }
 0x42e   : > { %v5019_v36 = vmax.f32 %v4896_v4, %v5018_v0  ;;  %v15544_v0 = vld [vmem:[#allocation199_spill] sm:$0xff] }
 0x42f   : > { %v4903_v4 = vsel %vm15543_vm6, %v15541_v40, 0.0  ;;  %v15545_v63 = vmax.f32 %v15544_v0, 0.0  ;;  %v15567_v40 = vmax.f32 %v15566_v15, 0.0  ;;  %v15598_v15 = vld [vmem:[#allocation240_spill] sm:$0xff] }
 0x430   : > { %v5020_v25 = vmax.f32 %v4897_v1, %v5019_v36  ;;  %v15547_v1 = vmax.f32 %v15546_v55, 0.0  ;;  %v15548_v36 = vld [vmem:[#allocation273_spill] sm:$0xff] }
 0x431   : > { %v4904_v5 = vsel %vm11129_vm9, %v15545_v63, 0.0  ;;  %vm15549_vm10 = vnez %v15548_v36  ;;  %vm15558_vm9 = vnez %v15247_v22 }
 0x432   : > { %v5021_v11 = vmax.f32 %v4898_v16, %v5020_v25  ;;  %v4905_v51 = vsel %vm15549_vm10, %v15547_v1, 0.0  ;;  %v15551_v16 = vmax.f32 %v15550_v42, 0.0  ;;  %v15575_v1 = vld [vmem:[#allocation277_spill] sm:$0xff]  ;;  %vm15593_vm10 = vnez %v15297_v32 }
 0x433   : > { %vm15576_vm13 = vnez %v15575_v1 }
 0x434   : > { %v5022_v26 = vmax.f32 %v4899_v41, %v5021_v11  ;;  %v4906_v25 = vsel %vm11149_vm1, %v15551_v16, 0.0  ;;  %v15554_v41 = vld [vmem:[#allocation274_spill] sm:$0xff]  ;;  %vm15565_vm1 = vnez %v15257_v53 }
 0x435   : > { %vm15555_vm12 = vnez %v15554_v41  ;;  %v15584_v41 = vld [vmem:[#allocation236_spill] sm:$0xff] }
 0x436   : > { %v5023_v37 = vmax.f32 %v4900_v33, %v5022_v26  ;;  %v4907_v11 = vsel %vm15555_vm12, %v15553_v8, 0.0  ;;  %v4908_v33 = vsel %vm15558_vm9, %v15557_v52, 0.0  ;;  %v15587_v52 = vld [vmem:[#allocation238_spill] sm:$0xff]  ;;  %vm15600_vm9 = vnez %v15307_v62 }
 0x438   : > { %v5024_v56 = vmax.f32 %v4901_v48, %v5023_v37  ;;  %v15561_v48 = vld [vmem:[#allocation275_spill] sm:$0xff] }
 0x439   : > { %vm15562_vm7 = vnez %v15561_v48 }
 0x43a   : > { %v5025_v19 = vmax.f32 %v4902_v39, %v5024_v56  ;;  %v4909_v37 = vsel %vm15562_vm7, %v15560_v21, 0.0  ;;  %v4910_v39 = vsel %vm15565_vm1, %v15564_v13, 0.0  ;;  %v15591_v21 = vld [vmem:[#allocation235_spill] sm:$0xff]  ;;  %v15595_v13 = vmax.f32 %v15594_v54, 0.0 }
 0x43b   : > { %v15592_v48 = vmax.f32 %v15591_v21, 0.0  ;;  %vm15607_vm1 = vnez %v15317_v23  ;;  %v15626_v21 = vld [vmem:[#allocation249_spill] sm:$0xff]  ;;  %v15629_v54 = vld [vmem:[#allocation251_spill] sm:$0xff] }
 0x43c   : > { %v5026_v34 = vmax.f32 %v4903_v4, %v5025_v19  ;;  %v4911_v4 = vsel %vm15569_vm8, %v15567_v40, 0.0  ;;  %v15570_v19 = vld [vmem:[#allocation232_spill] sm:$0xff]  ;;  %v15599_v40 = vmax.f32 %v15598_v15, 0.0 }
 0x43d   : > { %v15571_v0 = vmax.f32 %v15570_v19, 0.0 }
 0x43e   : > { %v5027_v45 = vmax.f32 %v4904_v5, %v5026_v34  ;;  %v15573_v34 = vld [vmem:[#allocation234_spill] sm:$0xff]  ;;  %v4920_v44 = vsel %vm15600_vm9, %v15599_v40, 0.0  ;;  %vm15642_vm9 = vnez %v15367_v46 }
 0x43f   : > { %v4912_v63 = vsel %vm15572_vm4, %v15571_v0, 0.0  ;;  %v15574_v55 = vmax.f32 %v15573_v34, 0.0  ;;  %v15603_v0 = vld [vmem:[#allocation281_spill] sm:$0xff]  ;;  %vm15614_vm4 = vnez %v15327_v29 }
 0x440   : > { %v5028_v20 = vmax.f32 %v4905_v51, %v5027_v45  ;;  %v15577_v51 = vld [vmem:[#allocation231_spill] sm:$0xff]  ;;  %vm15604_vm7 = vnez %v15603_v0 }
 0x441   : > { %v4913_v36 = vsel %vm15576_vm13, %v15574_v55, 0.0  ;;  %v15578_v45 = vmax.f32 %v15577_v51, 0.0  ;;  %v15610_v51 = vld [vmem:[#allocation282_spill] sm:$0xff] }
 0x442   : > { %v5029_v43 = vmax.f32 %v4906_v25, %v5028_v20  ;;  %v15580_v25 = vld [vmem:[#allocation233_spill] sm:$0xff]  ;;  %vm15611_vm8 = vnez %v15610_v51 }
 0x443   : > { %v4914_v42 = vsel %vm15579_vm0, %v15578_v45, 0.0  ;;  %v15581_v20 = vmax.f32 %v15580_v25, 0.0  ;;  %vm15621_vm0 = vnez %v15337_v49 }
 0x444   : > { %v5030_v26 = vmax.f32 %v4907_v11, %v5029_v43  ;;  %v15585_v11 = vmax.f32 %v15584_v41, 0.0 }
 0x445   : > { %v4915_v8 = vsel %vm15583_vm5, %v15581_v20, 0.0 }
 0x446   : > { %v5031_v61 = vmax.f32 %v4908_v33, %v5030_v26  ;;  %v4916_v43 = vsel %vm15586_vm11, %v15585_v11, 0.0  ;;  %v15588_v33 = vmax.f32 %v15587_v52, 0.0  ;;  %v15589_v26 = vld [vmem:[#allocation279_spill] sm:$0xff]  ;;  %v15619_v11 = vld [vmem:[#allocation244_spill] sm:$0xff]  ;;  %vm15628_vm11 = vnez %v15347_v27 }
 0x447   : > { %vm15590_vm6 = vnez %v15589_v26 }
 0x448   : > { %v5032_v56 = vmax.f32 %v4909_v37, %v5031_v61  ;;  %v4917_v7 = vsel %vm15590_vm6, %v15588_v33, 0.0  ;;  %v4918_v37 = vsel %vm15593_vm10, %v15592_v48, 0.0  ;;  %v15622_v33 = vld [vmem:[#allocation246_spill] sm:$0xff]  ;;  %v15627_v48 = vmax.f32 %v15626_v21, 0.0 }
 0x449   : > { %v15623_v26 = vmax.f32 %v15622_v33, 0.0  ;;  %vm15635_vm10 = vnez %v15357_v14  ;;  %v15662_v33 = vld [vmem:[#allocation289_spill] sm:$0xff]  ;;  %v15666_v21 = vld [vmem:[#allocation290_spill] sm:$0xff] }
 0x44a   : > { %v5033_v22 = vmax.f32 %v4910_v39, %v5032_v56  ;;  %v15596_v39 = vld [vmem:[#allocation280_spill] sm:$0xff] }
 0x44b   : > { %vm15597_vm12 = vnez %v15596_v39  ;;  %v15631_v39 = vld [vmem:[#allocation285_spill] sm:$0xff] }
 0x44c   : > { %v5034_v5 = vmax.f32 %v4911_v4, %v5033_v22  ;;  %v4919_v56 = vsel %vm15597_vm12, %v15595_v13, 0.0  ;;  %v15601_v22 = vld [vmem:[#allocation243_spill] sm:$0xff]  ;;  %v15630_v13 = vmax.f32 %v15629_v54, 0.0  ;;  %vm15632_vm6 = vnez %v15631_v39 }
 0x44d   : > { %v15602_v19 = vmax.f32 %v15601_v22, 0.0 }
 0x44e   : > { %v5035_v53 = vmax.f32 %v4912_v63, %v5034_v5  ;;  %v15605_v5 = vld [vmem:[#allocation239_spill] sm:$0xff] }
 0x44f   : > { %v4921_v63 = vsel %vm15604_vm7, %v15602_v19, 0.0  ;;  %v15606_v34 = vmax.f32 %v15605_v5, 0.0  ;;  %v15638_v19 = vld [vmem:[#allocation286_spill] sm:$0xff]  ;;  %vm15645_vm7 = vnez %v15370_v35 }
 0x450   : > { %v5036_v16 = vmax.f32 %v4913_v36, %v5035_v53  ;;  %v15608_v36 = vld [vmem:[#allocation242_spill] sm:$0xff]  ;;  %vm15639_vm12 = vnez %v15638_v19 }
 0x451   : > { %v4922_v55 = vsel %vm15607_vm1, %v15606_v34, 0.0  ;;  %v15609_v53 = vmax.f32 %v15608_v36, 0.0  ;;  %vm15648_vm1 = vnez %v15376_v30 }
 0x452   : > { %v5037_v12 = vmax.f32 %v4914_v42, %v5036_v16  ;;  %v15612_v42 = vld [vmem:[#allocation245_spill] sm:$0xff] }
 0x453   : > { %v4923_v45 = vsel %vm15611_vm8, %v15609_v53, 0.0  ;;  %v15613_v16 = vmax.f32 %v15612_v42, 0.0  ;;  %v15646_v53 = vld [vmem:[#allocation252_spill] sm:$0xff]  ;;  %v15649_v42 = vld [vmem:[#allocation254_spill] sm:$0xff] }
 0x454   : > { %v5038_v59 = vmax.f32 %v4915_v8, %v5037_v12  ;;  %v15616_v8 = vmax.f32 %v15615_v17, 0.0  ;;  %v15617_v12 = vld [vmem:[#allocation283_spill] sm:$0xff]  ;;  %v15647_v51 = vmax.f32 %v15646_v53, 0.0  ;;  %v15653_v17 = vld [vmem:[#allocation257_spill] sm:$0xff] }
 0x455   : > { %v4924_v25 = vsel %vm15614_vm4, %v15613_v16, 0.0  ;;  %vm15618_vm13 = vnez %v15617_v12  ;;  %v15650_v16 = vmax.f32 %v15649_v42, 0.0  ;;  %vm15655_vm4 = vnez %v15385_v9 }
 0x456   : > { %v5039_v3 = vmax.f32 %v4916_v43, %v5038_v59  ;;  %v4925_v41 = vsel %vm15618_vm13, %v15616_v8, 0.0  ;;  %v15620_v43 = vmax.f32 %v15619_v11, 0.0  ;;  %v15654_v8 = vmax.f32 %v15653_v17, 0.0  ;;  %v15658_v11 = vld [vmem:[#allocation288_spill] sm:$0xff] }
 0x457   : > { %vm15659_vm13 = vnez %v15658_v11 }
 0x458   : > { %v5040_v61 = vmax.f32 %v4917_v7, %v5039_v3  ;;  %v4926_v59 = vsel %vm15621_vm0, %v15620_v43, 0.0  ;;  %v15624_v7 = vld [vmem:[#allocation284_spill] sm:$0xff]  ;;  %v4936_v12 = vsel %vm15655_vm4, %v15654_v8, 0.0  ;;  %vm15663_vm0 = vnez %v15662_v33 }
 0x459   : > { %vm15625_vm5 = vnez %v15624_v7 }
 0x45a   : > { %v5041_v28 = vmax.f32 %v4918_v37, %v5040_v61  ;;  %v4927_v3 = vsel %vm15625_vm5, %v15623_v26, 0.0  ;;  %v4928_v37 = vsel %vm15628_vm11, %v15627_v48, 0.0  ;;  %vm15667_vm5 = vnez %v15666_v21 }
 0x45c   : > { %v5042_v4 = vmax.f32 %v4919_v56, %v5041_v28  ;;  %v4929_v56 = vsel %vm15632_vm6, %v15630_v13, 0.0  ;;  %v15633_v28 = vld [vmem:[#allocation248_spill] sm:$0xff] }
 0x45d   : > { %v15634_v15 = vmax.f32 %v15633_v28, 0.0 }
 0x45e   : > { %v5043_v32 = vmax.f32 %v4920_v44, %v5042_v4  ;;  %v15636_v4 = vld [vmem:[#allocation250_spill] sm:$0xff] }
 0x45f   : > { %v4930_v40 = vsel %vm15635_vm10, %v15634_v15, 0.0  ;;  %v15637_v22 = vmax.f32 %v15636_v4, 0.0 }
 0x460   : > { %v5044_v1 = vmax.f32 %v4921_v63, %v5043_v32  ;;  %v15640_v63 = vld [vmem:[#allocation253_spill] sm:$0xff] }
 0x461   : > { %v4931_v0 = vsel %vm15639_vm12, %v15637_v22, 0.0  ;;  %v15641_v32 = vmax.f32 %v15640_v63, 0.0 }
 0x462   : > { %v5045_v62 = vmax.f32 %v4922_v55, %v5044_v1  ;;  %v15643_v55 = vld [vmem:[#allocation255_spill] sm:$0xff] }
 0x463   : > { %v4932_v5 = vsel %vm15642_vm9, %v15641_v32, 0.0  ;;  %v15644_v1 = vmax.f32 %v15643_v55, 0.0 }
 0x464   : > { %v5046_v20 = vmax.f32 %v4923_v45, %v5045_v62  ;;  %v4934_v45 = vsel %vm15648_vm1, %v15647_v51, 0.0 }
 0x465   : > { %v4933_v36 = vsel %vm15645_vm7, %v15644_v1, 0.0 }
 0x466   : > { %v5047_v23 = vmax.f32 %v4924_v25, %v5046_v20  ;;  %v15651_v25 = vld [vmem:[#allocation287_spill] sm:$0xff] }
 0x467   : > { %vm15652_vm8 = vnez %v15651_v25  ;;  %v5077_v25 = vld [vmem:[#allocation4] sm:$0x1] }
 0x468   : > { %v5048_v52 = vmax.f32 %v4925_v41, %v5047_v23  ;;  %v4935_v20 = vsel %vm15652_vm8, %v15650_v16, 0.0  ;;  %v15656_v41 = vld [vmem:[#allocation259_spill] sm:$0xff] }
 0x469   : > { %v15657_v23 = vmax.f32 %v15656_v41, 0.0 }
 0x46a   : > { %v5049_v29 = vmax.f32 %v4926_v59, %v5048_v52  ;;  %v15660_v59 = vld [vmem:[#allocation256_spill] sm:$0xff] }
 0x46b   : > { %v4937_v43 = vsel %vm15659_vm13, %v15657_v23, 0.0  ;;  %v15661_v52 = vmax.f32 %v15660_v59, 0.0 }
 0x46c   : > { %v5050_v61 = vmax.f32 %v4927_v3, %v5049_v29  ;;  %v15664_v3 = vld [vmem:[#allocation258_spill] sm:$0xff] }
 0x46d   : > { %v4938_v26 = vsel %vm15663_vm0, %v15661_v52, 0.0  ;;  %v15665_v29 = vmax.f32 %v15664_v3, 0.0 }
 0x46e   : > { %v5051_v49 = vmax.f32 %v4928_v37, %v5050_v61  ;;  %v15668_v37 = vld [vmem:[#allocation261_spill] sm:$0xff] }
 0x46f   : > { %v4939_v48 = vsel %vm15667_vm5, %v15665_v29, 0.0  ;;  %v15669_v61 = vmax.f32 %v15668_v37, 0.0 }
 0x470   : > { %v5052_v44 = vmax.f32 %v4929_v56, %v5051_v49  ;;  %v15671_v56 = vld [vmem:[#allocation263_spill] sm:$0xff] }
 0x471   : > { %v4940_v13 = vsel %vm11489_vm3, %v15669_v61, 0.0  ;;  %v15672_v49 = vmax.f32 %v15671_v56, 0.0 }
 0x472   : > { %v5053_v27 = vmax.f32 %v4930_v40, %v5052_v44  ;;  %v15674_v44 = vld [vmem:[#allocation260_spill] sm:$0xff] }
 0x473   : > { %v4941_v15 = vsel %vm11493_vm2, %v15672_v49, 0.0  ;;  %v15675_v4 = vmax.f32 %v15674_v44, 0.0 }
 0x474   : > { %v5054_v34 = vmax.f32 %v4931_v0, %v5053_v27  ;;  %v15677_v27 = vld [vmem:[#allocation262_spill] sm:$0xff] }
 0x475   : > { %v4942_v19 = vsel %vm11501_vm14, %v15675_v4, 0.0  ;;  %v15678_v63 = vmax.f32 %v15677_v27, 0.0 }
 0x476   : > { %v5055_v14 = vmax.f32 %v4932_v5, %v5054_v34 }
 0x477   : > { %v4943_v5 = vsel %vm11505_vm15, %v15678_v63, 0.0 }
 0x478   : > { %v5056_v62 = vmax.f32 %v4933_v36, %v5055_v14 }
 0x47a   : > { %v5057_v46 = vmax.f32 %v4934_v45, %v5056_v62 }
 0x47c   : > { %v5058_v35 = vmax.f32 %v4935_v20, %v5057_v46 }
 0x47e   : > { %v5059_v30 = vmax.f32 %v4936_v12, %v5058_v35 }
 0x480   : > { %v5060_v7 = vmax.f32 %v4937_v43, %v5059_v30 }
 0x482   : > { %v5061_v9 = vmax.f32 %v4938_v26, %v5060_v7 }
 0x484   : > { %v5062_v39 = vmax.f32 %v4939_v48, %v5061_v9 }
 0x486   : > { %v5063_v40 = vmax.f32 %v4940_v13, %v5062_v39 }
 0x488   : > { %v5064_v0 = vmax.f32 %v4941_v15, %v5063_v40 }
 0x48a   : > { %v5065_v34 = vmax.f32 %v4942_v19, %v5064_v0 }
 0x48c   : > { %v5066_v55 = vmax.f32 %v4943_v5, %v5065_v34 }
 0x48e   : > { %v5067_v1 = vmax.f32 %v4944_v10, %v5066_v55 }
 0x490   : > { %v5068_v36 = vmax.f32 %v4945_v60, %v5067_v1 }
 0x492   : > { %v5069_v14 = vmax.f32 %v4946_v24, %v5068_v36 }
 0x494   : > { %v5070_v53 = vmax.f32 %v4947_v58, %v5069_v14 }
 0x496   : > { %v5071_v51 = vrot.slane %v5070_v53, 4 }
 0x498   : > { %v5072_v45 = vmax.f32 %v5070_v53, %v5071_v51 }
 0x49a   : > { %v5073_v62 = vrot.slane %v5072_v45, 2 }
 0x49c   : > { %v5074_v42 = vmax.f32 %v5072_v45, %v5073_v62 }
 0x49e   : > { %v5075_v16 = vrot.slane %v5074_v42, 1 }
 0x4a0   : > { %v5076_v2 = vmax.f32 %v5074_v42, %v5075_v16 }
 0x4a2   : > { %v5078_v50 = vmax.f32 %v5077_v25, %v5076_v2 }
 0x4a4   : > { %5079 = vst [vmem:[#allocation4] sm:$0x1] %v5078_v50 }
 0x4a5 PF: > { %s6344_s20 = sld [smem:[#allocation3 + $0x1]] }
 0x4a6   : > { %s6345_s21 = sld [smem:[#allocation3 + $0x2]] }
 0x4ab   : > { %p5082_p0 = scmp.lt.s32.totalorder %s6344_s20, %s4167_s15 }
 0x4ac   : > { %p5083_p1 = scmp.gt.s32.totalorder %s6345_s21, %s8703_s14 }
 0x4ae   : > { %p5084_p2 = pnand %p5083_p1, %p5082_p0 }
 0x4b0   : > { %5087 = sbr.rel (%p5084_p2) target bundleno = 1524 (0x5f4), region = 60 }
 0x4b5   : > { %v11864_v57 = vstv %s6344_s20  ;;  %v15680_v38 = vld [vmem:[#allocation167_spill] sm:$0xff]  ;;  %v15681_v10 = vld [vmem:[#allocation168_spill] sm:$0xff]  ;;  %v11870_v47 = vstv %s6345_s21  ;;  %v15682_v6 = vld [vmem:[#allocation169_spill] sm:$0xff]  ;;  %v15684_v31 = vmov 0  ;;  %v15687_v24 = vmov 0 }
 0x4b6   : > { %vm5089_vm15 = vcmp.ge.s32.totalorder %v15680_v38, %v11864_v57  ;;  %vm5090_vm3 = vcmp.ge.s32.totalorder %v15681_v10, %v11864_v57  ;;  %vm5091_vm2 = vcmp.ge.s32.totalorder %v15682_v6, %v11864_v57  ;;  %vm5218_vm14 = vcmp.lt.s32.totalorder %v15680_v38, %v11870_v47  ;;  %v15683_v60 = vld [vmem:[#allocation170_spill] sm:$0xff]  ;;  %v15686_v18 = vld [vmem:[#allocation172_spill] sm:$0xff]  ;;  %v15689_v58 = vld [vmem:[#allocation173_spill] sm:$0xff] }
 0x4b7   : > { %vm5219_vm11 = vcmp.lt.s32.totalorder %v15681_v10, %v11870_v47  ;;  %vm5220_vm6 = vcmp.lt.s32.totalorder %v15682_v6, %v11870_v47  ;;  %vm5092_vm10 = vcmp.ge.s32.totalorder %v15683_v60, %v11864_v57  ;;  %vm5221_vm12 = vcmp.lt.s32.totalorder %v15683_v60, %v11870_v47  ;;  %vm11884_vm9 = vmand %vm5089_vm15, %vm5218_vm14  ;;  %v15692_v46 = vld [vmem:[#allocation174_spill] sm:$0xff]  ;;  %v15695_v8 = vld [vmem:[#allocation175_spill] sm:$0xff] }
 0x4b8   : > { %v15685_v31 = vsel %vm11884_vm9, 4294967295, %v15684_v31  ;;  %vm5093_vm7 = vcmp.ge.s32.totalorder %v15686_v18, %v11864_v57  ;;  %vm5222_vm1 = vcmp.lt.s32.totalorder %v15686_v18, %v11870_v47  ;;  %vm11892_vm8 = vmand %vm5090_vm3, %vm5219_vm11  ;;  %vm5094_vm4 = vcmp.ge.s32.totalorder %v15689_v58, %v11864_v57  ;;  %v15704_v11 = vld [vmem:[#allocation176_spill] sm:$0xff]  ;;  %v15705_v43 = vld [vmem:[#allocation177_spill] sm:$0xff] }
 0x4b9   : > { %v15688_v24 = vsel %vm11892_vm8, 4294967295, %v15687_v24  ;;  %vm5223_vm13 = vcmp.lt.s32.totalorder %v15689_v58, %v11870_v47  ;;  %vm11900_vm0 = vmand %vm5091_vm2, %vm5220_vm6  ;;  %v15690_v20 = vmov 0  ;;  %vm5095_vm5 = vcmp.ge.s32.totalorder %v15692_v46, %v11864_v57  ;;  %v15706_v30 = vld [vmem:[#allocation179_spill] sm:$0xff]  ;;  %v15709_v52 = vld [vmem:[#allocation180_spill] sm:$0xff] }
 0x4ba   : > { %v15691_v20 = vsel %vm11900_vm0, 4294967295, %v15690_v20  ;;  %vm5224_vm15 = vcmp.lt.s32.totalorder %v15692_v46, %v11870_v47  ;;  %vm11908_vm3 = vmand %vm5092_vm10, %vm5221_vm12  ;;  %v15693_v17 = vmov 0  ;;  %vm5096_vm14 = vcmp.ge.s32.totalorder %v15695_v8, %v11864_v57  ;;  %v15710_v33 = vld [vmem:[#allocation181_spill] sm:$0xff]  ;;  %v15711_v26 = vld [vmem:[#allocation182_spill] sm:$0xff] }
 0x4bb   : > { %v15694_v17 = vsel %vm11908_vm3, 4294967295, %v15693_v17  ;;  %vm5225_vm11 = vcmp.lt.s32.totalorder %v15695_v8, %v11870_v47  ;;  %vm11916_vm2 = vmand %vm5093_vm7, %vm5222_vm1  ;;  %v15696_v12 = vmov 0  ;;  %v15698_v35 = vmov 0  ;;  %v15712_v7 = vld [vmem:[#allocation183_spill] sm:$0xff]  ;;  %v15713_v3 = vld [vmem:[#allocation184_spill] sm:$0xff] }
 0x4bc   : > { %v15697_v12 = vsel %vm11916_vm2, 4294967295, %v15696_v12  ;;  %vm11920_vm6 = vmand %vm5094_vm4, %vm5223_vm13  ;;  %v15700_v41 = vmov 0  ;;  %v15702_v23 = vmov 0  ;;  %vm5097_vm12 = vcmp.ge.s32.totalorder %v15704_v11, %v11864_v57  ;;  %v15716_v21 = vld [vmem:[#allocation17_spill] sm:$0xff]  ;;  %v15718_v37 = vld [vmem:[#allocation19_spill] sm:$0xff] }
 0x4bd   : > { %v15699_v35 = vsel %vm11920_vm6, 4294967295, %v15698_v35  ;;  %vm11924_vm0 = vmand %vm5095_vm5, %vm5224_vm15  ;;  %vm5226_vm7 = vcmp.lt.s32.totalorder %v15704_v11, %v11870_v47  ;;  %vm5098_vm1 = vcmp.ge.s32.totalorder %v15705_v43, %v11864_v57  ;;  %vm5227_vm4 = vcmp.lt.s32.totalorder %v15705_v43, %v11870_v47  ;;  %v15720_v13 = vld [vmem:[#allocation16_spill] sm:$0xff]  ;;  %v15722_v49 = vld [vmem:[#allocation186_spill] sm:$0xff] }
 0x4be   : > { %v15701_v41 = vsel %vm11924_vm0, 4294967295, %v15700_v41  ;;  %vm11928_vm10 = vmand %vm5096_vm14, %vm5225_vm11  ;;  %vm5099_vm13 = vcmp.ge.s32.totalorder %v15706_v30, %v11864_v57  ;;  %vm5228_vm5 = vcmp.lt.s32.totalorder %v15706_v30, %v11870_v47  ;;  %vm5100_vm14 = vcmp.ge.s32.totalorder %v15709_v52, %v11864_v57  ;;  %v15725_v40 = vld [vmem:[#allocation187_spill] sm:$0xff]  ;;  %v15728_v4 = vld [vmem:[#allocation18_spill] sm:$0xff] }
 0x4bf   : > { %v15703_v23 = vsel %vm11928_vm10, 4294967295, %v15702_v23  ;;  %vm11944_vm15 = vmand %vm5097_vm12, %vm5226_vm7  ;;  %vm5229_vm11 = vcmp.lt.s32.totalorder %v15709_v52, %v11870_v47  ;;  %vm5101_vm3 = vcmp.ge.s32.totalorder %v15710_v33, %v11864_v57  ;;  %vm5230_vm0 = vcmp.lt.s32.totalorder %v15710_v33, %v11870_v47  ;;  %v15730_v0 = vld [vmem:[#allocation188_spill] sm:$0xff]  ;;  %v15733_v32 = vld [vmem:[#allocation189_spill] sm:$0xff] }
 0x4c0   : > { %vm5355_vm10 = vmand %vm5098_vm1, %vm5227_vm4  ;;  %vm5102_vm12 = vcmp.ge.s32.totalorder %v15711_v26, %v11864_v57  ;;  %vm5231_vm7 = vcmp.lt.s32.totalorder %v15711_v26, %v11870_v47  ;;  %vm5103_vm8 = vcmp.ge.s32.totalorder %v15712_v7, %v11864_v57  ;;  %vm5104_vm2 = vcmp.ge.s32.totalorder %v15713_v3, %v11864_v57  ;;  %v15736_v34 = vld [vmem:[#allocation21_spill] sm:$0xff]  ;;  %v15738_v36 = vld [vmem:[#allocation190_spill] sm:$0xff] }
 0x4c1   : > { %vm5356_vm6 = vmand %vm5099_vm13, %vm5228_vm5  ;;  %vm5232_vm1 = vcmp.lt.s32.totalorder %v15712_v7, %v11870_v47  ;;  %vm5233_vm9 = vcmp.lt.s32.totalorder %v15713_v3, %v11870_v47  ;;  %v15717_v48 = vmax.f32 %v15716_v21, 0.0  ;;  %v15719_v61 = vmax.f32 %v15718_v37, 0.0  ;;  %v15739_v14 = vld [vmem:[#allocation215_spill] sm:$0xff]  ;;  %v15742_v45 = vld [vmem:[#allocation216_spill] sm:$0xff] }
 0x4c2   : > { %vm5357_vm4 = vmand %vm5100_vm14, %vm5229_vm11  ;;  %v15721_v39 = vmax.f32 %v15720_v13, 0.0  ;;  %vm5105_vm5 = vcmp.ge.s32.totalorder %v15722_v49, %v11864_v57  ;;  %v15729_v22 = vmax.f32 %v15728_v4, 0.0  ;;  %vm5107_vm14 = vcmp.ge.s32.totalorder %v15730_v0, %v11864_v57  ;;  %v15745_v42 = vld [vmem:[#allocation23_spill] sm:$0xff]  ;;  %v15748_v50 = vld [vmem:[#allocation217_spill] sm:$0xff] }
 0x4c3   : > { %vm11968_vm13 = vmand %vm5101_vm3, %vm5230_vm0  ;;  %v5738_v9 = vsel %vm11944_vm15, %v15717_v48, 0.0  ;;  %v5739_v54 = vsel %vm5355_vm10, %v15719_v61, 0.0  ;;  %vm5234_vm0 = vcmp.lt.s32.totalorder %v15722_v49, %v11870_v47  ;;  %vm5106_vm15 = vcmp.ge.s32.totalorder %v15725_v40, %v11864_v57  ;;  %v15747_v2 = vld [vmem:[#allocation191_spill] sm:$0xff]  ;;  %v15751_v6 = vld [vmem:[#allocation218_spill] sm:$0xff] }
 0x4c4   : > { %v5740_v56 = vsel %vm5356_vm6, %v15721_v39, 0.0  ;;  %vm11984_vm3 = vmand %vm5102_vm12, %vm5231_vm7  ;;  %v5862_v15 = vmax.f32 %v5739_v54, %v5738_v9  ;;  %vm5235_vm10 = vcmp.lt.s32.totalorder %v15725_v40, %v11870_v47  ;;  %v5741_v19 = vsel %vm5357_vm4, %v15729_v22, 0.0  ;;  %v15754_v18 = vld [vmem:[#allocation20_spill] sm:$0xff]  ;;  %v15756_v8 = vld [vmem:[#allocation193_spill] sm:$0xff] }
 0x4c5   : > { %vm11995_vm6 = vmand %vm5103_vm8, %vm5232_vm1  ;;  %vm5236_vm11 = vcmp.lt.s32.totalorder %v15730_v0, %v11870_v47  ;;  %vm5108_vm8 = vcmp.ge.s32.totalorder %v15733_v32, %v11864_v57  ;;  %vm5237_vm7 = vcmp.lt.s32.totalorder %v15733_v32, %v11870_v47  ;;  %v15737_v55 = vmax.f32 %v15736_v34, 0.0  ;;  %v15757_v11 = vld [vmem:[#allocation219_spill] sm:$0xff]  ;;  %v15765_v52 = vld [vmem:[#allocation221_spill] sm:$0xff] }
 0x4c6   : > { %vm12011_vm12 = vmand %vm5104_vm2, %vm5233_vm9  ;;  %v5863_v63 = vmax.f32 %v5740_v56, %v5862_v15  ;;  %vm5130_vm2 = vcmp.ge.s32.totalorder %v15739_v14, %v11864_v57  ;;  %vm5259_vm4 = vcmp.lt.s32.totalorder %v15739_v14, %v11870_v47  ;;  %v15746_v16 = vmax.f32 %v15745_v42, 0.0  ;;  %v15768_v26 = vld [vmem:[#allocation22_spill] sm:$0xff]  ;;  %v15779_v61 = vld [vmem:[#allocation223_spill] sm:$0xff] }
 0x4c7   : > { %vm12019_vm1 = vmand %vm5105_vm5, %vm5234_vm0  ;;  %v5742_v1 = vsel %vm11968_vm13, %v15737_v55, 0.0  ;;  %vm5238_vm0 = vcmp.lt.s32.totalorder %v15738_v36, %v11870_v47  ;;  %vm5132_vm13 = vcmp.ge.s32.totalorder %v15748_v50, %v11864_v57  ;;  %vm5261_vm9 = vcmp.lt.s32.totalorder %v15748_v50, %v11870_v47  ;;  %v15770_v29 = vld [vmem:[#allocation194_spill] sm:$0xff]  ;;  %v15784_v13 = vld [vmem:[#allocation25_spill] sm:$0xff] }
 0x4c8   : > { %vm12036_vm5 = vmand %vm5106_vm15, %vm5235_vm10  ;;  %v5864_v51 = vmax.f32 %v5741_v19, %v5863_v63  ;;  %v5743_v25 = vsel %vm11984_vm3, %v15746_v16, 0.0  ;;  %v15752_v60 = vmov 0  ;;  %v15755_v58 = vmax.f32 %v15754_v18, 0.0  ;;  %v15771_v21 = vld [vmem:[#allocation222_spill] sm:$0xff]  ;;  %v15786_v49 = vld [vmem:[#allocation195_spill] sm:$0xff] }
 0x4c9   : > { %vm12052_vm15 = vmand %vm5107_vm14, %vm5236_vm11  ;;  %vm5239_vm11 = vcmp.lt.s32.totalorder %v15747_v2, %v11870_v47  ;;  %v15763_v30 = vmov 0  ;;  %v15766_v33 = vmov 0  ;;  %v15769_v7 = vmax.f32 %v15768_v26, 0.0  ;;  %v15787_v28 = vld [vmem:[#allocation224_spill] sm:$0xff]  ;;  %v15796_v4 = vld [vmem:[#allocation225_spill] sm:$0xff] }
 0x4ca   : > { %vm12072_vm14 = vmand %vm5108_vm8, %vm5237_vm7  ;;  %v5865_v10 = vmax.f32 %v5742_v1, %v5864_v51  ;;  %v5744_v46 = vsel %vm11995_vm6, %v15755_v58, 0.0  ;;  %vm15761_vm6 = vcmp.lt.s32.totalorder %v15742_v45, %v11870_v47  ;;  %vm15762_vm7 = vcmp.ge.s32.totalorder %v15742_v45, %v11864_v57  ;;  %v15801_v19 = vld [vmem:[#allocation27_spill] sm:$0xff]  ;;  %v15803_v63 = vld [vmem:[#allocation196_spill] sm:$0xff] }
 0x4cb   : > { %vm12088_vm8 = vmand %vm5130_vm2, %vm5259_vm4  ;;  %vm15758_vm2 = vcmp.ge.s32.totalorder %v15738_v36, %v11864_v57  ;;  %v5745_v3 = vsel %vm12011_vm12, %v15769_v7, 0.0  ;;  %vm15775_vm12 = vcmp.lt.s32.totalorder %v15751_v6, %v11870_v47  ;;  %v15777_v9 = vmov 0  ;;  %v15804_v32 = vld [vmem:[#allocation226_spill] sm:$0xff]  ;;  %v15813_v1 = vld [vmem:[#allocation228_spill] sm:$0xff] }
 0x4cc   : > { %v15753_v60 = vsel %vm12088_vm8, 4294967295, %v15752_v60  ;;  %vm12108_vm4 = vmand %vm15758_vm2, %vm5238_vm0  ;;  %v5866_v59 = vmax.f32 %v5743_v25, %v5865_v10  ;;  %vm15780_vm0 = vcmp.lt.s32.totalorder %v15757_v11, %v11870_v47  ;;  %v15782_v54 = vmov 0  ;;  %v15818_v14 = vld [vmem:[#allocation24_spill] sm:$0xff]  ;;  %v15820_v45 = vld [vmem:[#allocation197_spill] sm:$0xff] }
 0x4cd   : > { %vm12118_vm3 = vmand %vm15762_vm7, %vm15761_vm6  ;;  %vm15776_vm6 = vcmp.ge.s32.totalorder %v15751_v6, %v11864_v57  ;;  %v15785_v39 = vmax.f32 %v15784_v13, 0.0  ;;  %v15794_v40 = vmov 0  ;;  %v15799_v22 = vmov 0  ;;  %v15821_v42 = vld [vmem:[#allocation80_spill] sm:$0xff]  ;;  %v15835_v10 = vld [vmem:[#allocation26_spill] sm:$0xff] }
 0x4ce   : > { %v15764_v30 = vsel %vm12118_vm3, 4294967295, %v15763_v30  ;;  %vm12134_vm7 = vmand %vm5132_vm13, %vm5261_vm9  ;;  %vm15772_vm9 = vcmp.ge.s32.totalorder %v15747_v2, %v11864_v57  ;;  %v5867_v37 = vmax.f32 %v5744_v46, %v5866_v59  ;;  %v15802_v0 = vmax.f32 %v15801_v19, 0.0  ;;  %v15830_v2 = vld [vmem:[#allocation81_spill] sm:$0xff]  ;;  %v15837_v58 = vld [vmem:[#allocation198_spill] sm:$0xff] }
 0x4cf   : > { %v15767_v33 = vsel %vm12134_vm7, 4294967295, %v15766_v33  ;;  %vm12154_vm13 = vmand %vm15772_vm9, %vm5239_vm11  ;;  %vm15781_vm7 = vcmp.ge.s32.totalorder %v15757_v11, %v11864_v57  ;;  %v5746_v56 = vsel %vm12019_vm1, %v15785_v39, 0.0  ;;  %vm15792_vm1 = vcmp.lt.s32.totalorder %v15765_v52, %v11870_v47  ;;  %v15838_v46 = vld [vmem:[#allocation83_spill] sm:$0xff]  ;;  %v15847_v59 = vld [vmem:[#allocation84_spill] sm:$0xff] }
 0x4d0   : > { %vm12164_vm10 = vmand %vm15776_vm6, %vm15775_vm12  ;;  %vm15793_vm12 = vcmp.ge.s32.totalorder %v15765_v52, %v11864_v57  ;;  %v5868_v44 = vmax.f32 %v5745_v3, %v5867_v37  ;;  %v5747_v27 = vsel %vm12036_vm5, %v15802_v0, 0.0  ;;  %vm15809_vm5 = vcmp.lt.s32.totalorder %v15779_v61, %v11870_v47  ;;  %v15852_v26 = vld [vmem:[#allocation29_spill] sm:$0xff]  ;;  %v15864_v13 = vld [vmem:[#allocation86_spill] sm:$0xff] }
 0x4d1   : > { %v15778_v9 = vsel %vm12164_vm10, 4294967295, %v15777_v9  ;;  %vm12180_vm6 = vmand %vm15781_vm7, %vm15780_vm0  ;;  %vm15788_vm0 = vcmp.lt.s32.totalorder %v15756_v8, %v11870_v47  ;;  %vm15789_vm7 = vcmp.ge.s32.totalorder %v15756_v8, %v11864_v57  ;;  %vm15798_vm10 = vcmp.ge.s32.totalorder %v15771_v21, %v11864_v57 }
 0x4d2   : > { %v15783_v54 = vsel %vm12180_vm6, 4294967295, %v15782_v54  ;;  %vm12200_vm11 = vmand %vm15789_vm7, %vm15788_vm0  ;;  %vm15797_vm6 = vcmp.lt.s32.totalorder %v15771_v21, %v11870_v47  ;;  %v15811_v34 = vmov 0  ;;  %v5869_v55 = vmax.f32 %v5746_v56, %v5868_v44  ;;  %v15855_v21 = vld [vmem:[#allocation85_spill] sm:$0xff]  ;;  %v15869_v56 = vld [vmem:[#allocation31_spill] sm:$0xff] }
 0x4d3   : > { %vm12210_vm2 = vmand %vm15793_vm12, %vm15792_vm1  ;;  %vm15810_vm1 = vcmp.ge.s32.totalorder %v15779_v61, %v11864_v57  ;;  %v15816_v36 = vmov 0  ;;  %v15819_v53 = vmax.f32 %v15818_v14, 0.0  ;;  %v15828_v62 = vmov 0  ;;  %v15871_v44 = vld [vmem:[#allocation201_spill] sm:$0xff]  ;;  %v15888_v14 = vld [vmem:[#allocation202_spill] sm:$0xff] }
 0x4d4   : > { %v15795_v40 = vsel %vm12210_vm2, 4294967295, %v15794_v40  ;;  %vm12226_vm12 = vmand %vm15798_vm10, %vm15797_vm6  ;;  %vm15805_vm10 = vcmp.lt.s32.totalorder %v15770_v29, %v11870_v47  ;;  %vm15806_vm6 = vcmp.ge.s32.totalorder %v15770_v29, %v11864_v57  ;;  %vm15815_vm2 = vcmp.ge.s32.totalorder %v15787_v28, %v11864_v57  ;;  %v15854_v29 = vld [vmem:[#allocation200_spill] sm:$0xff] }
 0x4d5   : > { %v15800_v22 = vsel %vm12226_vm12, 4294967295, %v15799_v22  ;;  %vm12246_vm0 = vmand %vm15806_vm6, %vm15805_vm10  ;;  %vm15814_vm12 = vcmp.lt.s32.totalorder %v15787_v28, %v11870_v47  ;;  %v5748_v51 = vsel %vm12052_vm15, %v15819_v53, 0.0  ;;  %vm15826_vm15 = vcmp.lt.s32.totalorder %v15796_v4, %v11870_v47  ;;  %v15889_v53 = vld [vmem:[#allocation90_spill] sm:$0xff] }
 0x4d6   : > { %vm12256_vm9 = vmand %vm15810_vm1, %vm15809_vm5  ;;  %vm15827_vm5 = vcmp.ge.s32.totalorder %v15796_v4, %v11864_v57  ;;  %v5870_v25 = vmax.f32 %v5747_v27, %v5869_v55  ;;  %v15833_v50 = vmov 0  ;;  %v15836_v6 = vmax.f32 %v15835_v10, 0.0  ;;  %v15872_v4 = vld [vmem:[#allocation87_spill] sm:$0xff]  ;;  %v15881_v27 = vld [vmem:[#allocation88_spill] sm:$0xff] }
 0x4d7   : > { %v15812_v34 = vsel %vm12256_vm9, 4294967295, %v15811_v34  ;;  %vm12272_vm1 = vmand %vm15815_vm2, %vm15814_vm12  ;;  %vm15822_vm2 = vcmp.lt.s32.totalorder %v15786_v49, %v11870_v47  ;;  %vm15823_vm12 = vcmp.ge.s32.totalorder %v15786_v49, %v11864_v57  ;;  %vm15832_vm9 = vcmp.ge.s32.totalorder %v15804_v32, %v11864_v57 }
 0x4d8   : > { %v15817_v36 = vsel %vm12272_vm1, 4294967295, %v15816_v36  ;;  %vm12292_vm10 = vmand %vm15823_vm12, %vm15822_vm2  ;;  %vm15831_vm1 = vcmp.lt.s32.totalorder %v15804_v32, %v11870_v47  ;;  %v5749_v18 = vsel %vm12072_vm14, %v15836_v6, 0.0  ;;  %vm15843_vm14 = vcmp.lt.s32.totalorder %v15813_v1, %v11870_v47  ;;  %v15886_v32 = vld [vmem:[#allocation28_spill] sm:$0xff] }
 0x4d9   : > { %vm12302_vm7 = vmand %vm15827_vm5, %vm15826_vm15  ;;  %vm15844_vm15 = vcmp.ge.s32.totalorder %v15813_v1, %v11864_v57  ;;  %v15845_v38 = vmov 0  ;;  %v5871_v11 = vmax.f32 %v5748_v51, %v5870_v25  ;;  %v15850_v52 = vmov 0 }
 0x4da   : > { %v15829_v62 = vsel %vm12302_vm7, 4294967295, %v15828_v62  ;;  %vm12318_vm5 = vmand %vm15832_vm9, %vm15831_vm1  ;;  %vm15839_vm9 = vcmp.lt.s32.totalorder %v15803_v63, %v11870_v47  ;;  %vm15840_vm1 = vcmp.ge.s32.totalorder %v15803_v63, %v11864_v57  ;;  %vm15849_vm7 = vcmp.ge.s32.totalorder %v15821_v42, %v11864_v57 }
 0x4db   : > { %v15834_v50 = vsel %vm12318_vm5, 4294967295, %v15833_v50  ;;  %vm12338_vm2 = vmand %vm15840_vm1, %vm15839_vm9  ;;  %vm15848_vm5 = vcmp.lt.s32.totalorder %v15821_v42, %v11870_v47  ;;  %v15853_v7 = vmax.f32 %v15852_v26, 0.0  ;;  %v15862_v43 = vmov 0  ;;  %v15898_v42 = vld [vmem:[#allocation91_spill] sm:$0xff] }
 0x4dc   : > { %vm12348_vm6 = vmand %vm15844_vm15, %vm15843_vm14  ;;  %vm15861_vm14 = vcmp.ge.s32.totalorder %v15830_v2, %v11864_v57  ;;  %v5872_v61 = vmax.f32 %v5749_v18, %v5871_v11  ;;  %v15867_v39 = vmov 0  ;;  %v15870_v49 = vmax.f32 %v15869_v56, 0.0  ;;  %v15905_v18 = vld [vmem:[#allocation203_spill] sm:$0xff] }
 0x4dd   : > { %v15846_v38 = vsel %vm12348_vm6, 4294967295, %v15845_v38  ;;  %vm12364_vm15 = vmand %vm15849_vm7, %vm15848_vm5  ;;  %v5750_v3 = vsel %vm12108_vm4, %v15853_v7, 0.0  ;;  %vm15856_vm7 = vcmp.lt.s32.totalorder %v15820_v45, %v11870_v47  ;;  %vm15857_vm5 = vcmp.ge.s32.totalorder %v15820_v45, %v11864_v57  ;;  %v15920_v7 = vld [vmem:[#allocation33_spill] sm:$0xff] }
 0x4de   : > { %v15851_v52 = vsel %vm12364_vm15, 4294967295, %v15850_v52  ;;  %vm12384_vm9 = vmand %vm15857_vm5, %vm15856_vm7  ;;  %vm15860_vm4 = vcmp.lt.s32.totalorder %v15830_v2, %v11870_v47  ;;  %vm15865_vm15 = vcmp.lt.s32.totalorder %v15838_v46, %v11870_v47  ;;  %vm15866_vm6 = vcmp.ge.s32.totalorder %v15838_v46, %v11864_v57  ;;  %v15903_v2 = vld [vmem:[#allocation30_spill] sm:$0xff] }
 0x4df   : > { %vm12394_vm12 = vmand %vm15861_vm14, %vm15860_vm4  ;;  %v5751_v28 = vsel %vm12154_vm13, %v15870_v49, 0.0  ;;  %vm15877_vm13 = vcmp.lt.s32.totalorder %v15847_v59, %v11870_v47  ;;  %vm15878_vm4 = vcmp.ge.s32.totalorder %v15847_v59, %v11864_v57  ;;  %v15879_v48 = vmov 0  ;;  %v15915_v59 = vld [vmem:[#allocation93_spill] sm:$0xff]  ;;  %v15932_v49 = vld [vmem:[#allocation95_spill] sm:$0xff] }
 0x4e0   : > { %v15863_v43 = vsel %vm12394_vm12, 4294967295, %v15862_v43  ;;  %vm12410_vm14 = vmand %vm15866_vm6, %vm15865_vm15  ;;  %vm15873_vm6 = vcmp.lt.s32.totalorder %v15837_v58, %v11870_v47  ;;  %vm15874_vm15 = vcmp.ge.s32.totalorder %v15837_v58, %v11864_v57  ;;  %v5873_v0 = vmax.f32 %v5750_v3, %v5872_v61  ;;  %v15906_v58 = vld [vmem:[#allocation92_spill] sm:$0xff]  ;;  %v15923_v61 = vld [vmem:[#allocation94_spill] sm:$0xff] }
 0x4e1   : > { %v15868_v39 = vsel %vm12410_vm14, 4294967295, %v15867_v39  ;;  %vm12430_vm7 = vmand %vm15874_vm15, %vm15873_vm6  ;;  %vm15882_vm14 = vcmp.lt.s32.totalorder %v15855_v21, %v11870_v47  ;;  %vm15883_vm12 = vcmp.ge.s32.totalorder %v15855_v21, %v11864_v57  ;;  %v15884_v63 = vmov 0  ;;  %v15922_v21 = vld [vmem:[#allocation204_spill] sm:$0xff] }
 0x4e2   : > { %vm12440_vm1 = vmand %vm15878_vm4, %vm15877_vm13  ;;  %v15887_v55 = vmax.f32 %v15886_v32, 0.0  ;;  %vm15895_vm13 = vcmp.ge.s32.totalorder %v15864_v13, %v11864_v57  ;;  %v15896_v15 = vmov 0  ;;  %v5874_v45 = vmax.f32 %v5751_v28, %v5873_v0  ;;  %v15940_v32 = vld [vmem:[#allocation97_spill] sm:$0xff] }
 0x4e3   : > { %v15880_v48 = vsel %vm12440_vm1, 4294967295, %v15879_v48  ;;  %vm12456_vm4 = vmand %vm15883_vm12, %vm15882_vm14  ;;  %vm15890_vm12 = vcmp.lt.s32.totalorder %v15854_v29, %v11870_v47  ;;  %vm15891_vm14 = vcmp.ge.s32.totalorder %v15854_v29, %v11864_v57  ;;  %vm15900_vm1 = vcmp.ge.s32.totalorder %v15872_v4, %v11864_v57 }
 0x4e4   : > { %v15885_v63 = vsel %vm12456_vm4, 4294967295, %v15884_v63  ;;  %v5752_v1 = vsel %vm12200_vm11, %v15887_v55, 0.0  ;;  %vm12476_vm6 = vmand %vm15891_vm14, %vm15890_vm12  ;;  %vm15894_vm11 = vcmp.lt.s32.totalorder %v15864_v13, %v11870_v47  ;;  %vm15899_vm4 = vcmp.lt.s32.totalorder %v15872_v4, %v11870_v47 }
 0x4e5   : > { %vm12486_vm5 = vmand %vm15895_vm13, %vm15894_vm11  ;;  %v15901_v25 = vmov 0  ;;  %v15904_v10 = vmax.f32 %v15903_v2, 0.0  ;;  %vm15912_vm11 = vcmp.ge.s32.totalorder %v15881_v27, %v11864_v57  ;;  %v15913_v5 = vmov 0 }
 0x4e6   : > { %v15897_v15 = vsel %vm12486_vm5, 4294967295, %v15896_v15  ;;  %vm12502_vm13 = vmand %vm15900_vm1, %vm15899_vm4  ;;  %vm15907_vm1 = vcmp.lt.s32.totalorder %v15871_v44, %v11870_v47  ;;  %vm15908_vm4 = vcmp.ge.s32.totalorder %v15871_v44, %v11864_v57  ;;  %v5875_v11 = vmax.f32 %v5752_v1, %v5874_v45  ;;  %v15937_v44 = vld [vmem:[#allocation35_spill] sm:$0xff]  ;;  %v15954_v45 = vld [vmem:[#allocation32_spill] sm:$0xff] }
 0x4e7   : > { %v15902_v25 = vsel %vm12502_vm13, 4294967295, %v15901_v25  ;;  %v5753_v6 = vsel %vm12246_vm0, %v15904_v10, 0.0  ;;  %vm12522_vm12 = vmand %vm15908_vm4, %vm15907_vm1  ;;  %vm15911_vm0 = vcmp.lt.s32.totalorder %v15881_v27, %v11870_v47  ;;  %vm15916_vm13 = vcmp.lt.s32.totalorder %v15889_v53, %v11870_v47  ;;  %v15939_v27 = vld [vmem:[#allocation205_spill] sm:$0xff]  ;;  %v15956_v10 = vld [vmem:[#allocation207_spill] sm:$0xff] }
 0x4e8   : > { %vm12532_vm15 = vmand %vm15912_vm11, %vm15911_vm0  ;;  %vm15917_vm5 = vcmp.ge.s32.totalorder %v15889_v53, %v11864_v57  ;;  %v15918_v26 = vmov 0  ;;  %v15921_v3 = vmax.f32 %v15920_v7, 0.0  ;;  %vm15929_vm0 = vcmp.ge.s32.totalorder %v15898_v42, %v11864_v57  ;;  %v15971_v7 = vld [vmem:[#allocation34_spill] sm:$0xff] }
 0x4e9   : > { %v15914_v5 = vsel %vm12532_vm15, 4294967295, %v15913_v5  ;;  %vm12548_vm11 = vmand %vm15917_vm5, %vm15916_vm13  ;;  %vm15924_vm5 = vcmp.lt.s32.totalorder %v15888_v14, %v11870_v47  ;;  %vm15925_vm13 = vcmp.ge.s32.totalorder %v15888_v14, %v11864_v57  ;;  %v15930_v16 = vmov 0  ;;  %v15949_v14 = vld [vmem:[#allocation98_spill] sm:$0xff] }
 0x4ea   : > { %v15919_v26 = vsel %vm12548_vm11, 4294967295, %v15918_v26  ;;  %v5754_v29 = vsel %vm12292_vm10, %v15921_v3, 0.0  ;;  %vm12568_vm1 = vmand %vm15925_vm13, %vm15924_vm5  ;;  %vm15928_vm10 = vcmp.lt.s32.totalorder %v15898_v42, %v11870_v47  ;;  %v5876_v56 = vmax.f32 %v5753_v6, %v5875_v11  ;;  %v15957_v6 = vld [vmem:[#allocation99_spill] sm:$0xff]  ;;  %v15966_v11 = vld [vmem:[#allocation100_spill] sm:$0xff] }
 0x4eb   : > { %vm12578_vm14 = vmand %vm15929_vm0, %vm15928_vm10  ;;  %vm15933_vm11 = vcmp.lt.s32.totalorder %v15906_v58, %v11870_v47  ;;  %vm15934_vm15 = vcmp.ge.s32.totalorder %v15906_v58, %v11864_v57  ;;  %v15935_v28 = vmov 0  ;;  %v15938_v4 = vmax.f32 %v15937_v44, 0.0  ;;  %v15983_v44 = vld [vmem:[#allocation102_spill] sm:$0xff] }
 0x4ec   : > { %v15931_v16 = vsel %vm12578_vm14, 4294967295, %v15930_v16  ;;  %vm12594_vm0 = vmand %vm15934_vm15, %vm15933_vm11  ;;  %vm15941_vm15 = vcmp.lt.s32.totalorder %v15905_v18, %v11870_v47  ;;  %vm15942_vm11 = vcmp.ge.s32.totalorder %v15905_v18, %v11864_v57  ;;  %vm15946_vm10 = vcmp.ge.s32.totalorder %v15915_v59, %v11864_v57 }
 0x4ed   : > { %v15936_v28 = vsel %vm12594_vm0, 4294967295, %v15935_v28  ;;  %v5755_v0 = vsel %vm12338_vm2, %v15938_v4, 0.0  ;;  %vm12614_vm5 = vmand %vm15942_vm11, %vm15941_vm15  ;;  %vm15945_vm2 = vcmp.lt.s32.totalorder %v15915_v59, %v11870_v47  ;;  %v15947_v8 = vmov 0 }
 0x4ee   : > { %vm12624_vm4 = vmand %vm15946_vm10, %vm15945_vm2  ;;  %v5877_v1 = vmax.f32 %v5754_v29, %v5876_v56  ;;  %vm15950_vm0 = vcmp.lt.s32.totalorder %v15923_v61, %v11870_v47  ;;  %vm15951_vm14 = vcmp.ge.s32.totalorder %v15923_v61, %v11864_v57  ;;  %v15952_v53 = vmov 0  ;;  %v15974_v61 = vld [vmem:[#allocation101_spill] sm:$0xff] }
 0x4ef   : > { %v15948_v8 = vsel %vm12624_vm4, 4294967295, %v15947_v8  ;;  %vm12640_vm10 = vmand %vm15951_vm14, %vm15950_vm0  ;;  %v15955_v42 = vmax.f32 %v15954_v45, 0.0  ;;  %vm15958_vm14 = vcmp.lt.s32.totalorder %v15922_v21, %v11870_v47  ;;  %vm15959_vm0 = vcmp.ge.s32.totalorder %v15922_v21, %v11864_v57  ;;  %v15973_v21 = vld [vmem:[#allocation208_spill] sm:$0xff] }
 0x4f0   : > { %v15953_v53 = vsel %vm12640_vm10, 4294967295, %v15952_v53  ;;  %vm12660_vm15 = vmand %vm15959_vm0, %vm15958_vm14  ;;  %vm15963_vm2 = vcmp.ge.s32.totalorder %v15932_v49, %v11864_v57  ;;  %v15964_v37 = vmov 0  ;;  %v5878_v58 = vmax.f32 %v5755_v0, %v5877_v1  ;;  %v15988_v0 = vld [vmem:[#allocation37_spill] sm:$0xff] }
 0x4f1   : > { %v5756_v2 = vsel %vm12384_vm9, %v15955_v42, 0.0  ;;  %vm15962_vm9 = vcmp.lt.s32.totalorder %v15932_v49, %v11870_v47  ;;  %vm15967_vm10 = vcmp.lt.s32.totalorder %v15940_v32, %v11870_v47  ;;  %vm15968_vm4 = vcmp.ge.s32.totalorder %v15940_v32, %v11864_v57  ;;  %v15990_v1 = vld [vmem:[#allocation209_spill] sm:$0xff] }
 0x4f2   : > { %vm12670_vm13 = vmand %vm15963_vm2, %vm15962_vm9  ;;  %v15969_v59 = vmov 0  ;;  %v15972_v3 = vmax.f32 %v15971_v7, 0.0  ;;  %vm15980_vm9 = vcmp.ge.s32.totalorder %v15949_v14, %v11864_v57  ;;  %v15981_v19 = vmov 0  ;;  %v16007_v7 = vld [vmem:[#allocation210_spill] sm:$0xff] }
 0x4f3   : > { %v15965_v37 = vsel %vm12670_vm13, 4294967295, %v15964_v37  ;;  %vm12686_vm2 = vmand %vm15968_vm4, %vm15967_vm10  ;;  %vm15975_vm4 = vcmp.lt.s32.totalorder %v15939_v27, %v11870_v47  ;;  %vm15976_vm10 = vcmp.ge.s32.totalorder %v15939_v27, %v11864_v57  ;;  %v5879_v49 = vmax.f32 %v5756_v2, %v5878_v58  ;;  %v16000_v2 = vld [vmem:[#allocation105_spill] sm:$0xff] }
 0x4f4   : > { %v15970_v59 = vsel %vm12686_vm2, 4294967295, %v15969_v59  ;;  %v5757_v29 = vsel %vm12430_vm7, %v15972_v3, 0.0  ;;  %vm12706_vm14 = vmand %vm15976_vm10, %vm15975_vm4  ;;  %vm15979_vm7 = vcmp.lt.s32.totalorder %v15949_v14, %v11870_v47  ;;  %vm15984_vm2 = vcmp.lt.s32.totalorder %v15957_v6, %v11870_v47  ;;  %v15991_v14 = vld [vmem:[#allocation104_spill] sm:$0xff]  ;;  %v16008_v3 = vld [vmem:[#allocation106_spill] sm:$0xff] }
 0x4f5   : > { %vm12716_vm11 = vmand %vm15980_vm9, %vm15979_vm7  ;;  %vm15985_vm13 = vcmp.ge.s32.totalorder %v15957_v6, %v11864_v57  ;;  %v15986_v4 = vmov 0  ;;  %v15989_v27 = vmax.f32 %v15988_v0, 0.0  ;;  %vm15997_vm7 = vcmp.ge.s32.totalorder %v15966_v11, %v11864_v57  ;;  %v16005_v6 = vld [vmem:[#allocation39_spill] sm:$0xff] }
 0x4f6   : > { %v15982_v19 = vsel %vm12716_vm11, 4294967295, %v15981_v19  ;;  %vm12732_vm9 = vmand %vm15985_vm13, %vm15984_vm2  ;;  %vm15992_vm13 = vcmp.lt.s32.totalorder %v15956_v10, %v11870_v47  ;;  %vm15993_vm2 = vcmp.ge.s32.totalorder %v15956_v10, %v11864_v57  ;;  %v15998_v51 = vmov 0 }
 0x4f7   : > { %v15987_v4 = vsel %vm12732_vm9, 4294967295, %v15986_v4  ;;  %v5758_v32 = vsel %vm12476_vm6, %v15989_v27, 0.0  ;;  %vm12752_vm4 = vmand %vm15993_vm2, %vm15992_vm13  ;;  %vm15996_vm6 = vcmp.lt.s32.totalorder %v15966_v11, %v11870_v47  ;;  %v5880_v42 = vmax.f32 %v5757_v29, %v5879_v49  ;;  %v16017_v49 = vld [vmem:[#allocation107_spill] sm:$0xff] }
 0x4f8   : > { %vm12762_vm0 = vmand %vm15997_vm7, %vm15996_vm6  ;;  %vm16001_vm9 = vcmp.lt.s32.totalorder %v15974_v61, %v11870_v47  ;;  %vm16002_vm11 = vcmp.ge.s32.totalorder %v15974_v61, %v11864_v57  ;;  %v16003_v10 = vmov 0  ;;  %v16006_v58 = vmax.f32 %v16005_v6, 0.0 }
 0x4f9   : > { %v15999_v51 = vsel %vm12762_vm0, 4294967295, %v15998_v51  ;;  %vm12778_vm7 = vmand %vm16002_vm11, %vm16001_vm9  ;;  %vm16009_vm11 = vcmp.lt.s32.totalorder %v15973_v21, %v11870_v47  ;;  %vm16010_vm9 = vcmp.ge.s32.totalorder %v15973_v21, %v11864_v57  ;;  %vm16014_vm6 = vcmp.ge.s32.totalorder %v15983_v44, %v11864_v57 }
 0x4fa   : > { %v16004_v10 = vsel %vm12778_vm7, 4294967295, %v16003_v10  ;;  %v5759_v11 = vsel %vm12522_vm12, %v16006_v58, 0.0  ;;  %vm12798_vm13 = vmand %vm16010_vm9, %vm16009_vm11  ;;  %vm16013_vm12 = vcmp.lt.s32.totalorder %v15983_v44, %v11870_v47  ;;  %v16015_v46 = vmov 0  ;;  %v16022_v44 = vld [vmem:[#allocation36_spill] sm:$0xff]  ;;  %v16034_v58 = vld [vmem:[#allocation109_spill] sm:$0xff] }
 0x4fb   : > { %vm12808_vm10 = vmand %vm16014_vm6, %vm16013_vm12  ;;  %v5881_v61 = vmax.f32 %v5758_v32, %v5880_v42  ;;  %vm16018_vm7 = vcmp.lt.s32.totalorder %v15991_v14, %v11870_v47  ;;  %vm16019_vm0 = vcmp.ge.s32.totalorder %v15991_v14, %v11864_v57  ;;  %v16020_v21 = vmov 0  ;;  %v16024_v32 = vld [vmem:[#allocation211_spill] sm:$0xff]  ;;  %v16025_v42 = vld [vmem:[#allocation108_spill] sm:$0xff] }
 0x4fc   : > { %v16016_v46 = vsel %vm12808_vm10, 4294967295, %v16015_v46  ;;  %vm12824_vm6 = vmand %vm16019_vm0, %vm16018_vm7  ;;  %v16023_v0 = vmax.f32 %v16022_v44, 0.0  ;;  %vm16026_vm0 = vcmp.lt.s32.totalorder %v15990_v1, %v11870_v47  ;;  %vm16027_vm7 = vcmp.ge.s32.totalorder %v15990_v1, %v11864_v57  ;;  %v16042_v44 = vld [vmem:[#allocation212_spill] sm:$0xff] }
 0x4fd   : > { %v16021_v21 = vsel %vm12824_vm6, 4294967295, %v16020_v21  ;;  %vm12844_vm11 = vmand %vm16027_vm7, %vm16026_vm0  ;;  %vm16031_vm12 = vcmp.ge.s32.totalorder %v16000_v2, %v11864_v57  ;;  %v16032_v13 = vmov 0  ;;  %v5882_v6 = vmax.f32 %v5759_v11, %v5881_v61 }
 0x4fe   : > { %v5760_v27 = vsel %vm12568_vm1, %v16023_v0, 0.0  ;;  %vm16030_vm1 = vcmp.lt.s32.totalorder %v16000_v2, %v11870_v47  ;;  %vm16035_vm6 = vcmp.lt.s32.totalorder %v16008_v3, %v11870_v47  ;;  %vm16036_vm10 = vcmp.ge.s32.totalorder %v16008_v3, %v11864_v57  ;;  %v16040_v2 = vld [vmem:[#allocation38_spill] sm:$0xff]  ;;  %v16043_v0 = vld [vmem:[#allocation111_spill] sm:$0xff] }
 0x4ff   : > { %vm12854_vm2 = vmand %vm16031_vm12, %vm16030_vm1  ;;  %v16037_v1 = vmov 0  ;;  %v16041_v11 = vmax.f32 %v16040_v2, 0.0  ;;  %vm16049_vm1 = vcmp.ge.s32.totalorder %v16017_v49, %v11864_v57  ;;  %v16050_v55 = vmov 0 }
 0x500   : > { %v16033_v13 = vsel %vm12854_vm2, 4294967295, %v16032_v13  ;;  %vm12870_vm12 = vmand %vm16036_vm10, %vm16035_vm6  ;;  %vm16044_vm10 = vcmp.lt.s32.totalorder %v16007_v7, %v11870_v47  ;;  %vm16045_vm6 = vcmp.ge.s32.totalorder %v16007_v7, %v11864_v57  ;;  %v5883_v2 = vmax.f32 %v5760_v27, %v5882_v6 }
 0x501   : > { %v16038_v1 = vsel %vm12870_vm12, 4294967295, %v16037_v1  ;;  %v5761_v61 = vsel %vm12614_vm5, %v16041_v11, 0.0  ;;  %vm12890_vm0 = vmand %vm16045_vm6, %vm16044_vm10  ;;  %vm16048_vm5 = vcmp.lt.s32.totalorder %v16017_v49, %v11870_v47  ;;  %v16053_v11 = vld [vmem:[#allocation112_spill] sm:$0xff]  ;;  %vm16054_vm12 = vcmp.lt.s32.totalorder %v16025_v42, %v11870_v47  ;;  %v16058_v49 = vld [vmem:[#allocation41_spill] sm:$0xff] }
 0x502   : > { %16039 = vst [vmem:[#allocation295_spill] sm:$0xff] %v16038_v1  ;;  %vm12900_vm9 = vmand %vm16049_vm1, %vm16048_vm5  ;;  %vm16055_vm2 = vcmp.ge.s32.totalorder %v16025_v42, %v11864_v57  ;;  %v16056_v7 = vmov 0  ;;  %v16059_v27 = vmax.f32 %v16058_v49, 0.0  ;;  %v16061_v1 = vld [vmem:[#allocation113_spill] sm:$0xff]  ;;  %vm16067_vm5 = vcmp.ge.s32.totalorder %v16034_v58, %v11864_v57 }
 0x503   : > { %v16051_v55 = vsel %vm12900_vm9, 4294967295, %v16050_v55  ;;  %vm12916_vm1 = vmand %vm16055_vm2, %vm16054_vm12  ;;  %vm16062_vm2 = vcmp.lt.s32.totalorder %v16024_v32, %v11870_v47  ;;  %vm16063_vm12 = vcmp.ge.s32.totalorder %v16024_v32, %v11864_v57  ;;  %v16068_v18 = vmov 0 }
 0x504   : > { %16052 = vst [vmem:[#allocation296_spill] sm:$0xff] %v16051_v55  ;;  %v16057_v7 = vsel %vm12916_vm1, 4294967295, %v16056_v7  ;;  %v5762_v6 = vsel %vm12660_vm15, %v16059_v27, 0.0  ;;  %v16060_v55 = vld [vmem:[#allocation214_spill] sm:$0xff]  ;;  %vm12936_vm10 = vmand %vm16063_vm12, %vm16062_vm2  ;;  %vm16066_vm15 = vcmp.lt.s32.totalorder %v16034_v58, %v11870_v47  ;;  %v5884_v49 = vmax.f32 %v5761_v61, %v5883_v2  ;;  %v16077_v58 = vld [vmem:[#allocation43_spill] sm:$0xff] }
 0x505   : > { %vm12946_vm7 = vmand %vm16067_vm5, %vm16066_vm15  ;;  %v16071_v27 = vld [vmem:[#allocation114_spill] sm:$0xff]  ;;  %vm16072_vm1 = vcmp.lt.s32.totalorder %v16043_v0, %v11870_v47  ;;  %vm16073_vm9 = vcmp.ge.s32.totalorder %v16043_v0, %v11864_v57  ;;  %v16074_v32 = vmov 0  ;;  %v16078_v61 = vmax.f32 %v16077_v58, 0.0 }
 0x506   : > { %v16069_v18 = vsel %vm12946_vm7, 4294967295, %v16068_v18  ;;  %vm12962_vm5 = vmand %vm16073_vm9, %vm16072_vm1  ;;  %vm16080_vm12 = vcmp.lt.s32.totalorder %v16042_v44, %v11870_v47  ;;  %vm16081_vm9 = vcmp.ge.s32.totalorder %v16042_v44, %v11864_v57  ;;  %vm16084_vm2 = vcmp.lt.s32.totalorder %v16053_v11, %v11870_v47 }
 0x507   : > { %16070 = vst [vmem:[#allocation297_spill] sm:$0xff] %v16069_v18  ;;  %v16075_v32 = vsel %vm12962_vm5, 4294967295, %v16074_v32  ;;  %v5763_v2 = vsel %vm12706_vm14, %v16078_v61, 0.0  ;;  %v16079_v18 = vld [vmem:[#allocation115_spill] sm:$0xff]  ;;  %vm12980_vm1 = vmand %vm16081_vm9, %vm16080_vm12  ;;  %vm16085_vm14 = vcmp.ge.s32.totalorder %v16053_v11, %v11864_v57  ;;  %v16086_v56 = vmov 0  ;;  %v16088_v61 = vld [vmem:[#allocation116_spill] sm:$0xff] }
 0x508   : > { %16076 = vst [vmem:[#allocation298_spill] sm:$0xff] %v16075_v32  ;;  %vm12990_vm15 = vmand %vm16085_vm14, %vm16084_vm2  ;;  %v5885_v58 = vmax.f32 %v5762_v6, %v5884_v49  ;;  %vm5302_vm12 = vcmp.lt.s32.totalorder %v16088_v61, %v11870_v47  ;;  %vm16089_vm9 = vcmp.lt.s32.totalorder %v16061_v1, %v11870_v47  ;;  %vm16090_vm5 = vcmp.ge.s32.totalorder %v16061_v1, %v11864_v57  ;;  %v16094_v11 = vld [vmem:[#allocation40_spill] sm:$0xff]  ;;  %v16096_v49 = vld [vmem:[#allocation118_spill] sm:$0xff] }
 0x509   : > { %v16087_v56 = vsel %vm12990_vm15, 4294967295, %v16086_v56  ;;  %vm13004_vm7 = vmand %vm16090_vm5, %vm16089_vm9  ;;  %v16091_v44 = vmov 0  ;;  %v16095_v32 = vmax.f32 %v16094_v11, 0.0  ;;  %vm5303_vm14 = vcmp.lt.s32.totalorder %v16096_v49, %v11870_v47  ;;  %v16105_v11 = vld [vmem:[#allocation119_spill] sm:$0xff] }
 0x50a   : > { %v16092_v44 = vsel %vm13004_vm7, 4294967295, %v16091_v44  ;;  %vm16097_vm6 = vcmp.lt.s32.totalorder %v16060_v55, %v11870_v47  ;;  %vm16098_vm5 = vcmp.ge.s32.totalorder %v16060_v55, %v11864_v57  ;;  %v16099_v1 = vmov 0 }
 0x50b   : > { %16093 = vst [vmem:[#allocation299_spill] sm:$0xff] %v16092_v44  ;;  %v5764_v6 = vsel %vm12752_vm4, %v16095_v32, 0.0  ;;  %vm13022_vm9 = vmand %vm16098_vm5, %vm16097_vm6  ;;  %vm16101_vm7 = vcmp.lt.s32.totalorder %v16071_v27, %v11870_v47  ;;  %vm16102_vm4 = vcmp.ge.s32.totalorder %v16071_v27, %v11864_v57  ;;  %v16103_v45 = vmov 0  ;;  %v16111_v27 = vld [vmem:[#allocation42_spill] sm:$0xff] }
 0x50c   : > { %v16100_v1 = vsel %vm13022_vm9, 4294967295, %v16099_v1  ;;  %vm13032_vm2 = vmand %vm16102_vm4, %vm16101_vm7  ;;  %v5886_v32 = vmax.f32 %v5763_v2, %v5885_v58  ;;  %vm5175_vm15 = vcmp.ge.s32.totalorder %v16105_v11, %v11864_v57  ;;  %vm5304_vm6 = vcmp.lt.s32.totalorder %v16105_v11, %v11870_v47  ;;  %v16113_v58 = vld [vmem:[#allocation120_spill] sm:$0xff] }
 0x50d   : > { %v16104_v45 = vsel %vm13032_vm2, 4294967295, %v16103_v45  ;;  %vm16106_vm5 = vcmp.lt.s32.totalorder %v16079_v18, %v11870_v47  ;;  %vm16107_vm3 = vcmp.ge.s32.totalorder %v16079_v18, %v11864_v57  ;;  %v16108_v55 = vmov 0 }
 0x50e   : > { %vm13046_vm8 = vmand %vm16107_vm3, %vm16106_vm5  ;;  %v16112_v44 = vmax.f32 %v16111_v27, 0.0  ;;  %vm5176_vm7 = vcmp.ge.s32.totalorder %v16113_v58, %v11864_v57  ;;  %vm5305_vm4 = vcmp.lt.s32.totalorder %v16113_v58, %v11870_v47  ;;  %vm16114_vm2 = vcmp.ge.s32.totalorder %v16088_v61, %v11864_v57  ;;  %v16130_v58 = vld [vmem:[#allocation47_spill] sm:$0xff] }
 0x50f   : > { %v16109_v55 = vsel %vm13046_vm8, 4294967295, %v16108_v55  ;;  %vm13061_vm9 = vmand %vm16114_vm2, %vm5302_vm12  ;;  %v16115_v18 = vmov 0  ;;  %v5887_v11 = vmax.f32 %v5764_v6, %v5886_v32  ;;  %vm16118_vm5 = vcmp.ge.s32.totalorder %v16096_v49, %v11864_v57  ;;  %v16123_v6 = vld [vmem:[#allocation122_spill] sm:$0xff] }
 0x510   : > { %16110 = vst [vmem:[#allocation300_spill] sm:$0xff] %v16109_v55  ;;  %v5765_v2 = vsel %vm12798_vm13, %v16112_v44, 0.0  ;;  %v16116_v18 = vsel %vm13061_vm9, 4294967295, %v16115_v18  ;;  %v16117_v55 = vld [vmem:[#allocation121_spill] sm:$0xff]  ;;  %vm13072_vm8 = vmand %vm16118_vm5, %vm5303_vm14  ;;  %v16119_v29 = vmov 0  ;;  %vm5178_vm12 = vcmp.ge.s32.totalorder %v16123_v6, %v11864_v57 }
 0x511   : > { %vm5177_vm3 = vcmp.ge.s32.totalorder %v16117_v55, %v11864_v57  ;;  %vm5306_vm13 = vcmp.lt.s32.totalorder %v16117_v55, %v11870_v47  ;;  %v16120_v29 = vsel %vm13072_vm8, 4294967295, %v16119_v29  ;;  %v16121_v44 = vld [vmem:[#allocation45_spill] sm:$0xff]  ;;  %vm5307_vm2 = vcmp.lt.s32.totalorder %v16123_v6, %v11870_v47  ;;  %vm13084_vm9 = vmand %vm5175_vm15, %vm5304_vm6  ;;  %v16126_v55 = vld [vmem:[#allocation123_spill] sm:$0xff] }
 0x512   : > { %v16122_v61 = vmax.f32 %v16121_v44, 0.0  ;;  %v5888_v49 = vmax.f32 %v5765_v2, %v5887_v11  ;;  %vm5179_vm14 = vcmp.ge.s32.totalorder %v16126_v55, %v11864_v57  ;;  %vm5308_vm5 = vcmp.lt.s32.totalorder %v16126_v55, %v11870_v47  ;;  %vm13092_vm8 = vmand %vm5176_vm7, %vm5305_vm4  ;;  %v16132_v6 = vld [vmem:[#allocation125_spill] sm:$0xff]  ;;  %v16135_v55 = vld [vmem:[#allocation126_spill] sm:$0xff] }
 0x513   : > { %v16127_v14 = vmov 0  ;;  %v16131_v44 = vmax.f32 %v16130_v58, 0.0  ;;  %vm5309_vm15 = vcmp.lt.s32.totalorder %v16132_v6, %v11870_v47  ;;  %vm13104_vm6 = vmand %vm5177_vm3, %vm5306_vm13  ;;  %vm5181_vm7 = vcmp.ge.s32.totalorder %v16135_v55, %v11864_v57  ;;  %v16139_v58 = vld [vmem:[#allocation44_spill] sm:$0xff] }
 0x514   : > { %v5766_v27 = vsel %vm12844_vm11, %v16122_v61, 0.0  ;;  %v16128_v14 = vsel %vm13092_vm8, 4294967295, %v16127_v14  ;;  %vm5180_vm11 = vcmp.ge.s32.totalorder %v16132_v6, %v11864_v57  ;;  %vm5310_vm4 = vcmp.lt.s32.totalorder %v16135_v55, %v11870_v47  ;;  %vm13112_vm8 = vmand %vm5178_vm12, %vm5307_vm2  ;;  %v16144_v55 = vld [vmem:[#allocation128_spill] sm:$0xff] }
 0x515   : > { %16129 = vst [vmem:[#allocation301_spill] sm:$0xff] %v16128_v14  ;;  %v5767_v61 = vsel %vm12890_vm0, %v16131_v44, 0.0  ;;  %v5889_v11 = vmax.f32 %v5766_v27, %v5888_v49  ;;  %v16136_v3 = vmov 0  ;;  %v16140_v44 = vmax.f32 %v16139_v58, 0.0  ;;  %v16141_v14 = vld [vmem:[#allocation127_spill] sm:$0xff]  ;;  %vm13124_vm13 = vmand %vm5179_vm14, %vm5308_vm5  ;;  %v16148_v58 = vld [vmem:[#allocation46_spill] sm:$0xff] }
 0x516   : > { %v16137_v3 = vsel %vm13112_vm8, 4294967295, %v16136_v3  ;;  %vm5182_vm0 = vcmp.ge.s32.totalorder %v16141_v14, %v11864_v57  ;;  %vm5311_vm3 = vcmp.lt.s32.totalorder %v16141_v14, %v11870_v47  ;;  %vm5183_vm12 = vcmp.ge.s32.totalorder %v16144_v55, %v11864_v57  ;;  %vm13132_vm8 = vmand %vm5180_vm11, %vm5309_vm15 }
 0x517   : > { %16138 = vst [vmem:[#allocation302_spill] sm:$0xff] %v16137_v3  ;;  %v5768_v6 = vsel %vm12936_vm10, %v16140_v44, 0.0  ;;  %v5890_v49 = vmax.f32 %v5767_v61, %v5889_v11  ;;  %vm5312_vm2 = vcmp.lt.s32.totalorder %v16144_v55, %v11870_v47  ;;  %v16145_v42 = vmov 0  ;;  %v16150_v3 = vld [vmem:[#allocation129_spill] sm:$0xff]  ;;  %vm13144_vm5 = vmand %vm5181_vm7, %vm5310_vm4  ;;  %v16153_v55 = vld [vmem:[#allocation130_spill] sm:$0xff] }
 0x518   : > { %v16146_v42 = vsel %vm13132_vm8, 4294967295, %v16145_v42  ;;  %v16149_v44 = vmax.f32 %v16148_v58, 0.0  ;;  %vm5184_vm10 = vcmp.ge.s32.totalorder %v16150_v3, %v11864_v57  ;;  %vm5313_vm14 = vcmp.lt.s32.totalorder %v16150_v3, %v11870_v47  ;;  %vm13152_vm8 = vmand %vm5182_vm0, %vm5311_vm3  ;;  %v16157_v58 = vld [vmem:[#allocation49_spill] sm:$0xff] }
 0x519   : > { %16147 = vst [vmem:[#allocation303_spill] sm:$0xff] %v16146_v42  ;;  %v16151_v61 = vmov 0  ;;  %v5891_v11 = vmax.f32 %v5768_v6, %v5890_v49  ;;  %vm5185_vm11 = vcmp.ge.s32.totalorder %v16153_v55, %v11864_v57  ;;  %vm5314_vm15 = vcmp.lt.s32.totalorder %v16153_v55, %v11870_v47  ;;  %v16160_v42 = vld [vmem:[#allocation132_spill] sm:$0xff]  ;;  %v16163_v55 = vld [vmem:[#allocation133_spill] sm:$0xff] }
 0x51a   : > { %v5769_v14 = vsel %vm12980_vm1, %v16149_v44, 0.0  ;;  %v16152_v61 = vsel %vm13144_vm5, 4294967295, %v16151_v61  ;;  %v16154_v0 = vmov 0  ;;  %v16158_v44 = vmax.f32 %v16157_v58, 0.0  ;;  %vm13164_vm5 = vmand %vm5183_vm12, %vm5312_vm2  ;;  %v16167_v58 = vld [vmem:[#allocation51_spill] sm:$0xff] }
 0x51b   : > { %v16155_v0 = vsel %vm13152_vm8, 4294967295, %v16154_v0  ;;  %vm16159_vm1 = vnez %v16100_v1  ;;  %vm5186_vm7 = vcmp.ge.s32.totalorder %v16160_v42, %v11864_v57  ;;  %vm5315_vm4 = vcmp.lt.s32.totalorder %v16160_v42, %v11870_v47  ;;  %vm13172_vm8 = vmand %vm5184_vm10, %vm5313_vm14 }
 0x51c   : > { %16156 = vst [vmem:[#allocation304_spill] sm:$0xff] %v16155_v0  ;;  %v5770_v3 = vsel %vm16159_vm1, %v16158_v44, 0.0  ;;  %v16161_v6 = vmov 0  ;;  %v5892_v49 = vmax.f32 %v5769_v14, %v5891_v11  ;;  %vm5187_vm0 = vcmp.ge.s32.totalorder %v16163_v55, %v11864_v57  ;;  %v16170_v0 = vld [vmem:[#allocation134_spill] sm:$0xff] }
 0x51d   : > { %v16162_v6 = vsel %vm13164_vm5, 4294967295, %v16161_v6  ;;  %vm5316_vm3 = vcmp.lt.s32.totalorder %v16163_v55, %v11870_v47  ;;  %v16164_v1 = vmov 0  ;;  %v16168_v44 = vmax.f32 %v16167_v58, 0.0  ;;  %vm13184_vm5 = vmand %vm5185_vm11, %vm5314_vm15  ;;  %v16173_v55 = vld [vmem:[#allocation135_spill] sm:$0xff]  ;;  %v16177_v58 = vld [vmem:[#allocation48_spill] sm:$0xff] }
 0x51e   : > { %v16165_v1 = vsel %vm13172_vm8, 4294967295, %v16164_v1  ;;  %vm16169_vm1 = vnez %v15753_v60  ;;  %vm5188_vm12 = vcmp.ge.s32.totalorder %v16170_v0, %v11864_v57  ;;  %vm5317_vm2 = vcmp.lt.s32.totalorder %v16170_v0, %v11870_v47  ;;  %vm13192_vm8 = vmand %vm5186_vm7, %vm5315_vm4 }
 0x51f   : > { %16166 = vst [vmem:[#allocation305_spill] sm:$0xff] %v16165_v1  ;;  %v5771_v42 = vsel %vm16169_vm1, %v16168_v44, 0.0  ;;  %v16171_v14 = vmov 0  ;;  %v5893_v11 = vmax.f32 %v5770_v3, %v5892_v49  ;;  %vm5189_vm10 = vcmp.ge.s32.totalorder %v16173_v55, %v11864_v57  ;;  %v16180_v1 = vld [vmem:[#allocation136_spill] sm:$0xff] }
 0x520   : > { %v16172_v14 = vsel %vm13184_vm5, 4294967295, %v16171_v14  ;;  %vm5318_vm14 = vcmp.lt.s32.totalorder %v16173_v55, %v11870_v47  ;;  %v16174_v60 = vmov 0  ;;  %v16178_v44 = vmax.f32 %v16177_v58, 0.0  ;;  %vm13204_vm5 = vmand %vm5187_vm0, %vm5316_vm3  ;;  %v16183_v55 = vld [vmem:[#allocation137_spill] sm:$0xff]  ;;  %v16187_v58 = vld [vmem:[#allocation50_spill] sm:$0xff] }
 0x521   : > { %v16175_v60 = vsel %vm13192_vm8, 4294967295, %v16174_v60  ;;  %vm16179_vm1 = vnez %v15764_v30  ;;  %vm5190_vm11 = vcmp.ge.s32.totalorder %v16180_v1, %v11864_v57  ;;  %vm5319_vm15 = vcmp.lt.s32.totalorder %v16180_v1, %v11870_v47  ;;  %vm13212_vm8 = vmand %vm5188_vm12, %vm5317_vm2 }
 0x522   : > { %16176 = vst [vmem:[#allocation306_spill] sm:$0xff] %v16175_v60  ;;  %v5772_v0 = vsel %vm16179_vm1, %v16178_v44, 0.0  ;;  %v16181_v3 = vmov 0  ;;  %v5894_v49 = vmax.f32 %v5771_v42, %v5893_v11  ;;  %vm5191_vm7 = vcmp.ge.s32.totalorder %v16183_v55, %v11864_v57  ;;  %v16190_v60 = vld [vmem:[#allocation139_spill] sm:$0xff] }
 0x523   : > { %v16182_v3 = vsel %vm13204_vm5, 4294967295, %v16181_v3  ;;  %vm5320_vm4 = vcmp.lt.s32.totalorder %v16183_v55, %v11870_v47  ;;  %v16184_v30 = vmov 0  ;;  %v16188_v44 = vmax.f32 %v16187_v58, 0.0  ;;  %vm13224_vm5 = vmand %vm5189_vm10, %vm5318_vm14  ;;  %v16193_v55 = vld [vmem:[#allocation140_spill] sm:$0xff]  ;;  %v16197_v58 = vld [vmem:[#allocation53_spill] sm:$0xff] }
 0x524   : > { %v16185_v30 = vsel %vm13212_vm8, 4294967295, %v16184_v30  ;;  %vm16189_vm1 = vnez %v15767_v33  ;;  %vm5192_vm0 = vcmp.ge.s32.totalorder %v16190_v60, %v11864_v57  ;;  %vm5321_vm3 = vcmp.lt.s32.totalorder %v16190_v60, %v11870_v47  ;;  %vm13232_vm8 = vmand %vm5190_vm11, %vm5319_vm15 }
 0x525   : > { %16186 = vst [vmem:[#allocation307_spill] sm:$0xff] %v16185_v30  ;;  %v5773_v1 = vsel %vm16189_vm1, %v16188_v44, 0.0  ;;  %v16191_v42 = vmov 0  ;;  %v5895_v11 = vmax.f32 %v5772_v0, %v5894_v49  ;;  %vm5193_vm12 = vcmp.ge.s32.totalorder %v16193_v55, %v11864_v57  ;;  %v16200_v30 = vld [vmem:[#allocation141_spill] sm:$0xff] }
 0x526   : > { %v16192_v42 = vsel %vm13224_vm5, 4294967295, %v16191_v42  ;;  %vm5322_vm2 = vcmp.lt.s32.totalorder %v16193_v55, %v11870_v47  ;;  %v16194_v33 = vmov 0  ;;  %v16198_v44 = vmax.f32 %v16197_v58, 0.0  ;;  %vm13244_vm5 = vmand %vm5191_vm7, %vm5320_vm4  ;;  %v16203_v55 = vld [vmem:[#allocation142_spill] sm:$0xff]  ;;  %v16207_v58 = vld [vmem:[#allocation55_spill] sm:$0xff] }
 0x527   : > { %v16195_v33 = vsel %vm13232_vm8, 4294967295, %v16194_v33  ;;  %vm16199_vm1 = vnez %v15778_v9  ;;  %vm5194_vm10 = vcmp.ge.s32.totalorder %v16200_v30, %v11864_v57  ;;  %vm5323_vm14 = vcmp.lt.s32.totalorder %v16200_v30, %v11870_v47  ;;  %vm13252_vm8 = vmand %vm5192_vm0, %vm5321_vm3 }
 0x528   : > { %16196 = vst [vmem:[#allocation308_spill] sm:$0xff] %v16195_v33  ;;  %v5774_v60 = vsel %vm16199_vm1, %v16198_v44, 0.0  ;;  %v16201_v0 = vmov 0  ;;  %v5896_v49 = vmax.f32 %v5773_v1, %v5895_v11  ;;  %vm5195_vm11 = vcmp.ge.s32.totalorder %v16203_v55, %v11864_v57  ;;  %v16210_v33 = vld [vmem:[#allocation143_spill] sm:$0xff] }
 0x529   : > { %v16202_v0 = vsel %vm13244_vm5, 4294967295, %v16201_v0  ;;  %vm5324_vm15 = vcmp.lt.s32.totalorder %v16203_v55, %v11870_v47  ;;  %v16204_v9 = vmov 0  ;;  %v16208_v44 = vmax.f32 %v16207_v58, 0.0  ;;  %vm13264_vm5 = vmand %vm5193_vm12, %vm5322_vm2  ;;  %v16213_v55 = vld [vmem:[#allocation144_spill] sm:$0xff] }
 0x52a   : > { %v16205_v9 = vsel %vm13252_vm8, 4294967295, %v16204_v9  ;;  %vm16209_vm1 = vnez %v15783_v54  ;;  %vm5196_vm7 = vcmp.ge.s32.totalorder %v16210_v33, %v11864_v57  ;;  %vm5325_vm4 = vcmp.lt.s32.totalorder %v16210_v33, %v11870_v47  ;;  %vm13272_vm8 = vmand %vm5194_vm10, %vm5323_vm14  ;;  %v16217_v58 = vld [vmem:[#allocation52_spill] sm:$0xff] }
 0x52b   : > { %16206 = vst [vmem:[#allocation309_spill] sm:$0xff] %v16205_v9  ;;  %v5775_v30 = vsel %vm16209_vm1, %v16208_v44, 0.0  ;;  %v16211_v1 = vmov 0  ;;  %v5897_v11 = vmax.f32 %v5774_v60, %v5896_v49  ;;  %vm5197_vm0 = vcmp.ge.s32.totalorder %v16213_v55, %v11864_v57  ;;  %v16220_v9 = vld [vmem:[#allocation146_spill] sm:$0xff] }
 0x52c   : > { %v16212_v1 = vsel %vm13264_vm5, 4294967295, %v16211_v1  ;;  %vm5326_vm3 = vcmp.lt.s32.totalorder %v16213_v55, %v11870_v47  ;;  %v16214_v54 = vmov 0  ;;  %v16218_v44 = vmax.f32 %v16217_v58, 0.0  ;;  %vm13284_vm5 = vmand %vm5195_vm11, %vm5324_vm15  ;;  %v16223_v55 = vld [vmem:[#allocation147_spill] sm:$0xff]  ;;  %v16227_v58 = vld [vmem:[#allocation54_spill] sm:$0xff] }
 0x52d   : > { %v16215_v54 = vsel %vm13272_vm8, 4294967295, %v16214_v54  ;;  %vm16219_vm1 = vnez %v15795_v40  ;;  %vm5198_vm12 = vcmp.ge.s32.totalorder %v16220_v9, %v11864_v57  ;;  %vm5327_vm2 = vcmp.lt.s32.totalorder %v16220_v9, %v11870_v47  ;;  %vm13292_vm8 = vmand %vm5196_vm7, %vm5325_vm4 }
 0x52e   : > { %16216 = vst [vmem:[#allocation310_spill] sm:$0xff] %v16215_v54  ;;  %v5776_v33 = vsel %vm16219_vm1, %v16218_v44, 0.0  ;;  %v16221_v60 = vmov 0  ;;  %v5898_v49 = vmax.f32 %v5775_v30, %v5897_v11  ;;  %vm5199_vm10 = vcmp.ge.s32.totalorder %v16223_v55, %v11864_v57  ;;  %v16230_v54 = vld [vmem:[#allocation148_spill] sm:$0xff] }
 0x52f   : > { %v16222_v60 = vsel %vm13284_vm5, 4294967295, %v16221_v60  ;;  %vm5328_vm14 = vcmp.lt.s32.totalorder %v16223_v55, %v11870_v47  ;;  %v16224_v40 = vmov 0  ;;  %v16228_v44 = vmax.f32 %v16227_v58, 0.0  ;;  %vm13304_vm5 = vmand %vm5197_vm0, %vm5326_vm3  ;;  %v16233_v55 = vld [vmem:[#allocation149_spill] sm:$0xff] }
 0x530   : > { %v16225_v40 = vsel %vm13292_vm8, 4294967295, %v16224_v40  ;;  %vm16229_vm1 = vnez %v15800_v22  ;;  %vm5200_vm11 = vcmp.ge.s32.totalorder %v16230_v54, %v11864_v57  ;;  %vm5329_vm15 = vcmp.lt.s32.totalorder %v16230_v54, %v11870_v47  ;;  %vm13312_vm8 = vmand %vm5198_vm12, %vm5327_vm2  ;;  %v16237_v58 = vld [vmem:[#allocation57_spill] sm:$0xff] }
 0x531   : > { %16226 = vst [vmem:[#allocation311_spill] sm:$0xff] %v16225_v40  ;;  %v5777_v9 = vsel %vm16229_vm1, %v16228_v44, 0.0  ;;  %v16231_v30 = vmov 0  ;;  %v5899_v11 = vmax.f32 %v5776_v33, %v5898_v49  ;;  %vm5201_vm7 = vcmp.ge.s32.totalorder %v16233_v55, %v11864_v57  ;;  %v16240_v40 = vld [vmem:[#allocation150_spill] sm:$0xff] }
 0x532   : > { %v16232_v30 = vsel %vm13304_vm5, 4294967295, %v16231_v30  ;;  %vm5330_vm4 = vcmp.lt.s32.totalorder %v16233_v55, %v11870_v47  ;;  %v16234_v22 = vmov 0  ;;  %v16238_v44 = vmax.f32 %v16237_v58, 0.0  ;;  %vm13324_vm5 = vmand %vm5199_vm10, %vm5328_vm14  ;;  %v16243_v55 = vld [vmem:[#allocation151_spill] sm:$0xff] }
 0x533   : > { %v16235_v22 = vsel %vm13312_vm8, 4294967295, %v16234_v22  ;;  %vm16239_vm1 = vnez %v15812_v34  ;;  %vm5202_vm0 = vcmp.ge.s32.totalorder %v16240_v40, %v11864_v57  ;;  %vm5331_vm3 = vcmp.lt.s32.totalorder %v16240_v40, %v11870_v47  ;;  %vm13332_vm8 = vmand %vm5200_vm11, %vm5329_vm15  ;;  %v16247_v58 = vld [vmem:[#allocation59_spill] sm:$0xff] }
 0x534   : > { %16236 = vst [vmem:[#allocation312_spill] sm:$0xff] %v16235_v22  ;;  %v5778_v54 = vsel %vm16239_vm1, %v16238_v44, 0.0  ;;  %v16241_v33 = vmov 0  ;;  %v5900_v49 = vmax.f32 %v5777_v9, %v5899_v11  ;;  %vm5203_vm12 = vcmp.ge.s32.totalorder %v16243_v55, %v11864_v57  ;;  %v16250_v22 = vld [vmem:[#allocation153_spill] sm:$0xff] }
 0x535   : > { %v16242_v33 = vsel %vm13324_vm5, 4294967295, %v16241_v33  ;;  %vm5332_vm2 = vcmp.lt.s32.totalorder %v16243_v55, %v11870_v47  ;;  %v16244_v34 = vmov 0  ;;  %v16248_v44 = vmax.f32 %v16247_v58, 0.0  ;;  %vm13344_vm5 = vmand %vm5201_vm7, %vm5330_vm4  ;;  %v16253_v55 = vld [vmem:[#allocation154_spill] sm:$0xff]  ;;  %v16257_v58 = vld [vmem:[#allocation56_spill] sm:$0xff] }
 0x536   : > { %v16245_v34 = vsel %vm13332_vm8, 4294967295, %v16244_v34  ;;  %vm16249_vm1 = vnez %v15817_v36  ;;  %vm5204_vm10 = vcmp.ge.s32.totalorder %v16250_v22, %v11864_v57  ;;  %vm5333_vm14 = vcmp.lt.s32.totalorder %v16250_v22, %v11870_v47  ;;  %vm13352_vm8 = vmand %vm5202_vm0, %vm5331_vm3 }
 0x537   : > { %16246 = vst [vmem:[#allocation313_spill] sm:$0xff] %v16245_v34  ;;  %v5779_v40 = vsel %vm16249_vm1, %v16248_v44, 0.0  ;;  %v16251_v9 = vmov 0  ;;  %v5901_v11 = vmax.f32 %v5778_v54, %v5900_v49  ;;  %vm5205_vm11 = vcmp.ge.s32.totalorder %v16253_v55, %v11864_v57  ;;  %v16260_v34 = vld [vmem:[#allocation155_spill] sm:$0xff] }
 0x538   : > { %v16252_v9 = vsel %vm13344_vm5, 4294967295, %v16251_v9  ;;  %vm5334_vm15 = vcmp.lt.s32.totalorder %v16253_v55, %v11870_v47  ;;  %v16254_v36 = vmov 0  ;;  %v16258_v44 = vmax.f32 %v16257_v58, 0.0  ;;  %vm13364_vm5 = vmand %vm5203_vm12, %vm5332_vm2  ;;  %v16263_v55 = vld [vmem:[#allocation156_spill] sm:$0xff]  ;;  %v16267_v58 = vld [vmem:[#allocation58_spill] sm:$0xff] }
 0x539   : > { %v16255_v36 = vsel %vm13352_vm8, 4294967295, %v16254_v36  ;;  %vm16259_vm1 = vnez %v15829_v62  ;;  %vm5206_vm7 = vcmp.ge.s32.totalorder %v16260_v34, %v11864_v57  ;;  %vm5335_vm4 = vcmp.lt.s32.totalorder %v16260_v34, %v11870_v47  ;;  %vm13372_vm8 = vmand %vm5204_vm10, %vm5333_vm14 }
 0x53a   : > { %16256 = vst [vmem:[#allocation314_spill] sm:$0xff] %v16255_v36  ;;  %v5780_v22 = vsel %vm16259_vm1, %v16258_v44, 0.0  ;;  %v16261_v54 = vmov 0  ;;  %v5902_v49 = vmax.f32 %v5779_v40, %v5901_v11  ;;  %vm5207_vm0 = vcmp.ge.s32.totalorder %v16263_v55, %v11864_v57  ;;  %v16270_v36 = vld [vmem:[#allocation157_spill] sm:$0xff] }
 0x53b   : > { %v16262_v54 = vsel %vm13364_vm5, 4294967295, %v16261_v54  ;;  %vm5336_vm3 = vcmp.lt.s32.totalorder %v16263_v55, %v11870_v47  ;;  %v16264_v62 = vmov 0  ;;  %v16268_v44 = vmax.f32 %v16267_v58, 0.0  ;;  %vm13384_vm5 = vmand %vm5205_vm11, %vm5334_vm15  ;;  %v16273_v55 = vld [vmem:[#allocation158_spill] sm:$0xff]  ;;  %v16277_v58 = vld [vmem:[#allocation61_spill] sm:$0xff] }
 0x53c   : > { %v16265_v62 = vsel %vm13372_vm8, 4294967295, %v16264_v62  ;;  %vm16269_vm1 = vnez %v15834_v50  ;;  %vm5208_vm12 = vcmp.ge.s32.totalorder %v16270_v36, %v11864_v57  ;;  %vm5337_vm2 = vcmp.lt.s32.totalorder %v16270_v36, %v11870_v47  ;;  %vm13392_vm8 = vmand %vm5206_vm7, %vm5335_vm4 }
 0x53d   : > { %16266 = vst [vmem:[#allocation315_spill] sm:$0xff] %v16265_v62  ;;  %v5781_v34 = vsel %vm16269_vm1, %v16268_v44, 0.0  ;;  %v16271_v40 = vmov 0  ;;  %v5903_v11 = vmax.f32 %v5780_v22, %v5902_v49  ;;  %vm5209_vm10 = vcmp.ge.s32.totalorder %v16273_v55, %v11864_v57  ;;  %v16280_v62 = vld [vmem:[#allocation160_spill] sm:$0xff] }
 0x53e   : > { %v16272_v40 = vsel %vm13384_vm5, 4294967295, %v16271_v40  ;;  %vm5338_vm14 = vcmp.lt.s32.totalorder %v16273_v55, %v11870_v47  ;;  %v16274_v50 = vmov 0  ;;  %v16278_v44 = vmax.f32 %v16277_v58, 0.0  ;;  %vm13404_vm5 = vmand %vm5207_vm0, %vm5336_vm3  ;;  %v16283_v55 = vld [vmem:[#allocation161_spill] sm:$0xff]  ;;  %v16287_v58 = vld [vmem:[#allocation63_spill] sm:$0xff] }
 0x53f   : > { %v16275_v50 = vsel %vm13392_vm8, 4294967295, %v16274_v50  ;;  %vm16279_vm1 = vnez %v15846_v38  ;;  %vm5210_vm11 = vcmp.ge.s32.totalorder %v16280_v62, %v11864_v57  ;;  %vm5339_vm15 = vcmp.lt.s32.totalorder %v16280_v62, %v11870_v47  ;;  %vm13412_vm8 = vmand %vm5208_vm12, %vm5337_vm2 }
 0x540   : > { %16276 = vst [vmem:[#allocation316_spill] sm:$0xff] %v16275_v50  ;;  %v5782_v36 = vsel %vm16279_vm1, %v16278_v44, 0.0  ;;  %v16281_v22 = vmov 0  ;;  %v5904_v49 = vmax.f32 %v5781_v34, %v5903_v11  ;;  %vm5211_vm7 = vcmp.ge.s32.totalorder %v16283_v55, %v11864_v57  ;;  %v16290_v50 = vld [vmem:[#allocation162_spill] sm:$0xff] }
 0x541   : > { %v16282_v22 = vsel %vm13404_vm5, 4294967295, %v16281_v22  ;;  %vm5340_vm4 = vcmp.lt.s32.totalorder %v16283_v55, %v11870_v47  ;;  %v16284_v38 = vmov 0  ;;  %v16288_v44 = vmax.f32 %v16287_v58, 0.0  ;;  %vm13424_vm5 = vmand %vm5209_vm10, %vm5338_vm14  ;;  %v16294_v55 = vld [vmem:[#allocation163_spill] sm:$0xff]  ;;  %v16298_v58 = vld [vmem:[#allocation60_spill] sm:$0xff] }
 0x542   : > { %v16285_v38 = vsel %vm13412_vm8, 4294967295, %v16284_v38  ;;  %vm16289_vm1 = vnez %v15851_v52  ;;  %vm5212_vm0 = vcmp.ge.s32.totalorder %v16290_v50, %v11864_v57  ;;  %vm5341_vm3 = vcmp.lt.s32.totalorder %v16290_v50, %v11870_v47  ;;  %vm13432_vm8 = vmand %vm5210_vm11, %vm5339_vm15 }
 0x543   : > { %16286 = vst [vmem:[#allocation317_spill] sm:$0xff] %v16285_v38  ;;  %v5783_v62 = vsel %vm16289_vm1, %v16288_v44, 0.0  ;;  %v16291_v34 = vmov 0  ;;  %v5905_v11 = vmax.f32 %v5782_v36, %v5904_v49  ;;  %vm5213_vm12 = vcmp.ge.s32.totalorder %v16294_v55, %v11864_v57  ;;  %v16301_v38 = vld [vmem:[#allocation164_spill] sm:$0xff] }
 0x544   : > { %v16292_v34 = vsel %vm13424_vm5, 4294967295, %v16291_v34  ;;  %vm5342_vm2 = vcmp.lt.s32.totalorder %v16294_v55, %v11870_v47  ;;  %v16295_v52 = vmov 0  ;;  %v16299_v44 = vmax.f32 %v16298_v58, 0.0  ;;  %vm13444_vm5 = vmand %vm5211_vm7, %vm5340_vm4  ;;  %v16305_v55 = vld [vmem:[#allocation241_spill] sm:$0xff]  ;;  %v16309_v58 = vld [vmem:[#allocation62_spill] sm:$0xff] }
 0x545   : > { %16293 = vst [vmem:[#allocation318_spill] sm:$0xff] %v16292_v34  ;;  %v16296_v52 = vsel %vm13432_vm8, 4294967295, %v16295_v52  ;;  %vm16300_vm1 = vnez %v15863_v43  ;;  %vm5214_vm10 = vcmp.ge.s32.totalorder %v16301_v38, %v11864_v57  ;;  %vm5343_vm14 = vcmp.lt.s32.totalorder %v16301_v38, %v11870_v47  ;;  %vm13452_vm8 = vmand %vm5212_vm0, %vm5341_vm3 }
 0x546   : > { %16297 = vst [vmem:[#allocation319_spill] sm:$0xff] %v16296_v52  ;;  %v5784_v50 = vsel %vm16300_vm1, %v16299_v44, 0.0  ;;  %v16302_v36 = vmov 0  ;;  %v5906_v49 = vmax.f32 %v5783_v62, %v5905_v11  ;;  %vm5215_vm11 = vcmp.ge.s32.totalorder %v16305_v55, %v11864_v57  ;;  %v16312_v52 = vld [vmem:[#allocation166_spill] sm:$0xff]  ;;  %vm13468_vm0 = vmand %vm5214_vm10, %vm5343_vm14 }
 0x547   : > { %v16303_v36 = vsel %vm13444_vm5, 4294967295, %v16302_v36  ;;  %vm5344_vm15 = vcmp.lt.s32.totalorder %v16305_v55, %v11870_v47  ;;  %v16306_v43 = vmov 0  ;;  %v16310_v44 = vmax.f32 %v16309_v58, 0.0  ;;  %vm13464_vm5 = vmand %vm5213_vm12, %vm5342_vm2 }
 0x548   : > { %16304 = vst [vmem:[#allocation320_spill] sm:$0xff] %v16303_v36  ;;  %v16307_v43 = vsel %vm13452_vm8, 4294967295, %v16306_v43  ;;  %vm16311_vm1 = vnez %v15868_v39  ;;  %vm5216_vm7 = vcmp.ge.s32.totalorder %v16312_v52, %v11864_v57  ;;  %vm5345_vm4 = vcmp.lt.s32.totalorder %v16312_v52, %v11870_v47  ;;  %v16328_v52 = vld [vmem:[#allocation67_spill] sm:$0xff]  ;;  %v16334_v36 = vld [vmem:[#allocation66_spill] sm:$0xff] }
 0x549   : > { %16308 = vst [vmem:[#allocation321_spill] sm:$0xff] %v16307_v43  ;;  %v5785_v38 = vsel %vm16311_vm1, %v16310_v44, 0.0  ;;  %v16313_v62 = vmov 0  ;;  %v5907_v11 = vmax.f32 %v5784_v50, %v5906_v49  ;;  %v16316_v55 = vmov 0  ;;  %v16319_v43 = vld [vmem:[#allocation65_spill] sm:$0xff]  ;;  %vm13476_vm1 = vmand %vm5215_vm11, %vm5344_vm15 }
 0x54a   : > { %v16314_v62 = vsel %vm13464_vm5, 4294967295, %v16313_v62  ;;  %v16317_v55 = vsel %vm13468_vm0, 4294967295, %v16316_v55  ;;  %v16320_v58 = vmax.f32 %v16319_v43, 0.0  ;;  %vm16321_vm3 = vnez %v15880_v48  ;;  %vm13480_vm8 = vmand %vm5216_vm7, %vm5345_vm4 }
 0x54b   : > { %16315 = vst [vmem:[#allocation322_spill] sm:$0xff] %v16314_v62  ;;  %16318 = vst [vmem:[#allocation323_spill] sm:$0xff] %v16317_v55  ;;  %v16322_v44 = vmov 0  ;;  %v5908_v57 = vmax.f32 %v5785_v38, %v5907_v11  ;;  %v16325_v47 = vmov 0  ;;  %v16329_v50 = vmax.f32 %v16328_v52, 0.0  ;;  %v16331_v62 = vld [vmem:[#allocation64_spill] sm:$0xff] }
 0x54c   : > { %v5786_v39 = vsel %vm16321_vm3, %v16320_v58, 0.0  ;;  %v16323_v44 = vsel %vm13476_vm1, 4294967295, %v16322_v44  ;;  %v16326_v47 = vsel %vm13480_vm8, 4294967295, %v16325_v47  ;;  %vm16330_vm12 = vnez %v15885_v63 }
 0x54d   : > { %16324 = vst [vmem:[#allocation324_spill] sm:$0xff] %v16323_v44  ;;  %16327 = vst [vmem:[#allocation325_spill] sm:$0xff] %v16326_v47  ;;  %v5787_v49 = vsel %vm16330_vm12, %v16329_v50, 0.0  ;;  %v5909_v55 = vmax.f32 %v5786_v39, %v5908_v57  ;;  %v16332_v43 = vmax.f32 %v16331_v62, 0.0  ;;  %vm16333_vm2 = vnez %v15897_v15  ;;  %v16337_v44 = vld [vmem:[#allocation69_spill] sm:$0xff]  ;;  %v16340_v50 = vld [vmem:[#allocation71_spill] sm:$0xff] }
 0x54e   : > { %v16335_v34 = vmax.f32 %v16334_v36, 0.0  ;;  %vm16336_vm10 = vnez %v15902_v25  ;;  %v16338_v47 = vmax.f32 %v16337_v44, 0.0  ;;  %vm16339_vm14 = vnez %v15914_v5  ;;  %v16343_v57 = vld [vmem:[#allocation68_spill] sm:$0xff]  ;;  %v16349_v5 = vld [vmem:[#allocation13_spill] sm:$0xff] }
 0x54f   : > { %v5788_v48 = vsel %vm16333_vm2, %v16332_v43, 0.0  ;;  %v5910_v58 = vmax.f32 %v5787_v49, %v5909_v55  ;;  %v16341_v39 = vmax.f32 %v16340_v50, 0.0  ;;  %vm16342_vm11 = vnez %v15919_v26  ;;  %v16352_v26 = vld [vmem:[#allocation70_spill] sm:$0xff] }
 0x550   : > { %v5789_v38 = vsel %vm16336_vm10, %v16335_v34, 0.0  ;;  %v5790_v52 = vsel %vm16339_vm14, %v16338_v47, 0.0  ;;  %v16344_v55 = vmax.f32 %v16343_v57, 0.0  ;;  %vm16345_vm15 = vnez %v15931_v16  ;;  %v16346_v34 = vld [vmem:[#allocation9_spill] sm:$0xff]  ;;  %v16364_v57 = vld [vmem:[#allocation8_spill] sm:$0xff] }
 0x551   : > { %v5911_v11 = vmax.f32 %v5788_v48, %v5910_v58  ;;  %v5791_v62 = vsel %vm16342_vm11, %v16341_v39, 0.0  ;;  %v16347_v49 = vmax.f32 %v16346_v34, 0.0  ;;  %vm16348_vm7 = vnez %v15685_v31  ;;  %v16358_v31 = vld [vmem:[#allocation15_spill] sm:$0xff] }
 0x552   : > { %v5792_v36 = vsel %vm16345_vm15, %v16344_v55, 0.0  ;;  %v16350_v47 = vmax.f32 %v16349_v5, 0.0  ;;  %vm16351_vm4 = vnez %v15697_v12  ;;  %v16353_v48 = vmax.f32 %v16352_v26, 0.0  ;;  %v16361_v12 = vld [vmem:[#allocation73_spill] sm:$0xff]  ;;  %v16370_v34 = vld [vmem:[#allocation75_spill] sm:$0xff]  ;;  %v16373_v26 = vld [vmem:[#allocation10_spill] sm:$0xff] }
 0x553   : > { %v5912_v63 = vmax.f32 %v5789_v38, %v5911_v11  ;;  %v13512_v44 = vsel %vm16348_vm7, %v16347_v49, 0.0  ;;  %vm16354_vm3 = vnez %v15936_v28  ;;  %v16355_v38 = vld [vmem:[#allocation11_spill] sm:$0xff]  ;;  %vm16357_vm12 = vnez %v15688_v24 }
 0x554   : > { %v13518_v43 = vsel %vm16351_vm4, %v16350_v47, 0.0  ;;  %v5793_v58 = vsel %vm16354_vm3, %v16353_v48, 0.0  ;;  %v16356_v11 = vmax.f32 %v16355_v38, 0.0  ;;  %vm16360_vm2 = vnez %v15699_v35  ;;  %v16379_v38 = vld [vmem:[#allocation72_spill] sm:$0xff] }
 0x555   : > { %v5913_v15 = vmax.f32 %v5790_v52, %v5912_v63  ;;  %v16359_v63 = vmax.f32 %v16358_v31, 0.0  ;;  %v16362_v39 = vmax.f32 %v16361_v12, 0.0  ;;  %vm16363_vm10 = vnez %v15948_v8  ;;  %v16382_v12 = vld [vmem:[#allocation74_spill] sm:$0xff] }
 0x556   : > { %v13528_v52 = vsel %vm16357_vm12, %v16356_v11, 0.0  ;;  %v16365_v55 = vmax.f32 %v16364_v57, 0.0  ;;  %vm16366_vm14 = vnez %v15691_v20  ;;  %vm16369_vm11 = vnez %v15701_v41 }
 0x557   : > { %v5914_v25 = vmax.f32 %v5791_v62, %v5913_v15  ;;  %v13534_v50 = vsel %vm16360_vm2, %v16359_v63, 0.0  ;;  %v5794_v62 = vsel %vm16363_vm10, %v16362_v39, 0.0  ;;  %v5858_v15 = vmax.f32 %v13512_v44, %v13518_v43 }
 0x558   : > { %v13546_v24 = vsel %vm16366_vm14, %v16365_v55, 0.0  ;;  %v16371_v49 = vmax.f32 %v16370_v34, 0.0  ;;  %vm16372_vm15 = vnez %v15953_v53  ;;  %v5859_v47 = vmax.f32 %v13528_v52, %v13534_v50 }
 0x559   : > { %v5915_v16 = vmax.f32 %v5792_v36, %v5914_v25  ;;  %v16367_v36 = vld [vmem:[#allocation12_spill] sm:$0xff]  ;;  %v16374_v48 = vmax.f32 %v16373_v26, 0.0  ;;  %vm16375_vm7 = vnez %v15694_v17  ;;  %vm16378_vm4 = vnez %v15703_v23 }
 0x55a   : > { %v16368_v25 = vmax.f32 %v16367_v36, 0.0  ;;  %v5795_v8 = vsel %vm16372_vm15, %v16371_v49, 0.0  ;;  %v16380_v11 = vmax.f32 %v16379_v38, 0.0  ;;  %vm16381_vm3 = vnez %v15965_v37  ;;  %v16388_v36 = vld [vmem:[#allocation79_spill] sm:$0xff]  ;;  %v16397_v38 = vld [vmem:[#allocation89_spill] sm:$0xff] }
 0x55b   : > { %v5916_v28 = vmax.f32 %v5793_v58, %v5915_v16  ;;  %v13564_v20 = vsel %vm16375_vm7, %v16374_v48, 0.0  ;;  %v16376_v58 = vld [vmem:[#allocation14_spill] sm:$0xff]  ;;  %v16383_v39 = vmax.f32 %v16382_v12, 0.0  ;;  %vm16384_vm12 = vnez %v15970_v59 }
 0x55c   : > { %v13552_v35 = vsel %vm16369_vm11, %v16368_v25, 0.0  ;;  %v16377_v16 = vmax.f32 %v16376_v58, 0.0  ;;  %v5796_v53 = vsel %vm16381_vm3, %v16380_v11, 0.0  ;;  %vm16387_vm2 = vnez %v15982_v19  ;;  %v16394_v48 = vld [vmem:[#allocation78_spill] sm:$0xff] }
 0x55d   : > { %v5917_v5 = vmax.f32 %v5794_v62, %v5916_v28  ;;  %v5860_v63 = vmax.f32 %v13546_v24, %v13552_v35  ;;  %v5797_v17 = vsel %vm16384_vm12, %v16383_v39, 0.0  ;;  %v16385_v28 = vld [vmem:[#allocation77_spill] sm:$0xff]  ;;  %v16389_v25 = vmax.f32 %v16388_v36, 0.0 }
 0x55e   : > { %v13570_v41 = vsel %vm16378_vm4, %v16377_v16, 0.0  ;;  %v16386_v57 = vmax.f32 %v16385_v28, 0.0  ;;  %vm16390_vm10 = vnez %v15987_v4  ;;  %vm16393_vm14 = vnez %v15999_v51 }
 0x55f   : > { %v5918_v31 = vmax.f32 %v5795_v8, %v5917_v5  ;;  %v5861_v23 = vmax.f32 %v13564_v20, %v13570_v41  ;;  %v5799_v34 = vsel %vm16390_vm10, %v16389_v25, 0.0  ;;  %v16391_v8 = vld [vmem:[#allocation76_spill] sm:$0xff]  ;;  %v16395_v58 = vmax.f32 %v16394_v48, 0.0  ;;  %v16410_v25 = vld [vmem:[#allocation117_spill] sm:$0xff]  ;;  %v16417_v48 = vld [vmem:[#allocation110_spill] sm:$0xff] }
 0x560   : > { %v5798_v55 = vsel %vm16387_vm2, %v16386_v57, 0.0  ;;  %v16392_v5 = vmax.f32 %v16391_v8, 0.0  ;;  %vm16396_vm11 = vnez %v16004_v10  ;;  %v16398_v11 = vmax.f32 %v16397_v38, 0.0  ;;  %v16406_v57 = vld [vmem:[#allocation96_spill] sm:$0xff] }
 0x561   : > { %v5919_v62 = vmax.f32 %v5796_v53, %v5918_v31  ;;  %v5801_v16 = vsel %vm16396_vm11, %v16395_v58, 0.0  ;;  %vm16399_vm15 = vnez %v16016_v46  ;;  %v16400_v31 = vld [vmem:[#allocation103_spill] sm:$0xff]  ;;  %vm16402_vm7 = vnez %v16021_v21 }
 0x562   : > { %v5800_v59 = vsel %vm16393_vm14, %v16392_v5, 0.0  ;;  %v5802_v53 = vsel %vm16399_vm15, %v16398_v11, 0.0  ;;  %v16401_v12 = vmax.f32 %v16400_v31, 0.0  ;;  %vm16405_vm4 = vnez %v16033_v13  ;;  %v16414_v5 = vld [vmem:[#allocation131_spill] sm:$0xff]  ;;  %v16421_v11 = vld [vmem:[#allocation124_spill] sm:$0xff] }
 0x563   : > { %v5920_v37 = vmax.f32 %v5797_v17, %v5919_v62  ;;  %v16403_v17 = vld [vmem:[#allocation82_spill] sm:$0xff]  ;;  %vm16416_vm2 = vnez %v16057_v7  ;;  %v16418_v58 = vmax.f32 %v16417_v48, 0.0  ;;  %vm16427_vm11 = vnez %v16087_v56  ;;  %v16442_v48 = vld [vmem:[#allocation185_spill] sm:$0xff] }
 0x564   : > { %v5803_v39 = vsel %vm16402_vm7, %v16401_v12, 0.0  ;;  %v16404_v62 = vmax.f32 %v16403_v17, 0.0  ;;  %vm16434_vm7 = vnez %v16104_v45 }
 0x565   : > { %v5921_v49 = vmax.f32 %v5798_v55, %v5920_v37  ;;  %v16407_v55 = vmax.f32 %v16406_v57, 0.0  ;;  %v16408_v37 = vld [vmem:[#allocation295_spill] sm:$0xff] }
 0x566   : > { %v5804_v28 = vsel %vm16405_vm4, %v16404_v62, 0.0  ;;  %vm16409_vm3 = vnez %v16408_v37  ;;  %v16428_v62 = vld [vmem:[#allocation159_spill] sm:$0xff]  ;;  %v16432_v37 = vld [vmem:[#allocation138_spill] sm:$0xff] }
 0x567   : > { %v5922_v26 = vmax.f32 %v5799_v34, %v5921_v49  ;;  %v5805_v36 = vsel %vm16409_vm3, %v16407_v55, 0.0  ;;  %v16411_v34 = vmax.f32 %v16410_v25, 0.0  ;;  %v16412_v49 = vld [vmem:[#allocation296_spill] sm:$0xff]  ;;  %vm16441_vm3 = vnez %v16116_v18 }
 0x568   : > { %vm16413_vm12 = vnez %v16412_v49 }
 0x569   : > { %v5923_v19 = vmax.f32 %v5800_v59, %v5922_v26  ;;  %v5806_v8 = vsel %vm16413_vm12, %v16411_v34, 0.0  ;;  %v16415_v59 = vmax.f32 %v16414_v5, 0.0  ;;  %v16435_v34 = vld [vmem:[#allocation152_spill] sm:$0xff]  ;;  %v16439_v5 = vld [vmem:[#allocation171_spill] sm:$0xff]  ;;  %vm16444_vm12 = vnez %v16120_v29 }
 0x56a   : > { %v16436_v49 = vmax.f32 %v16435_v34, 0.0 }
 0x56b   : > { %v5924_v4 = vmax.f32 %v5801_v16, %v5923_v19  ;;  %v5807_v26 = vsel %vm16416_vm2, %v16415_v59, 0.0  ;;  %v16419_v16 = vld [vmem:[#allocation297_spill] sm:$0xff]  ;;  %v16440_v59 = vmax.f32 %v16439_v5, 0.0 }
 0x56c   : > { %vm16420_vm10 = vnez %v16419_v16 }
 0x56d   : > { %v5925_v51 = vmax.f32 %v5802_v53, %v5924_v4  ;;  %v5808_v19 = vsel %vm16420_vm10, %v16418_v58, 0.0  ;;  %v16422_v53 = vmax.f32 %v16421_v11, 0.0  ;;  %v16423_v4 = vld [vmem:[#allocation298_spill] sm:$0xff]  ;;  %v16443_v58 = vmax.f32 %v16442_v48, 0.0  ;;  %v16468_v48 = vld [vmem:[#allocation304_spill] sm:$0xff] }
 0x56e   : > { %vm16424_vm14 = vnez %v16423_v4  ;;  %v16447_v4 = vld [vmem:[#allocation178_spill] sm:$0xff] }
 0x56f   : > { %v5926_v10 = vmax.f32 %v5803_v39, %v5925_v51  ;;  %v5809_v31 = vsel %vm16424_vm14, %v16422_v53, 0.0  ;;  %v16425_v39 = vld [vmem:[#allocation145_spill] sm:$0xff]  ;;  %v5815_v16 = vsel %vm16444_vm12, %v16443_v58, 0.0  ;;  %vm16469_vm14 = vnez %v16468_v48 }
 0x570   : > { %v16426_v51 = vmax.f32 %v16425_v39, 0.0  ;;  %vm16493_vm12 = vnez %v16192_v42 }
 0x571   : > { %v5927_v46 = vmax.f32 %v5804_v28, %v5926_v10  ;;  %v16429_v28 = vmax.f32 %v16428_v62, 0.0  ;;  %v16430_v10 = vld [vmem:[#allocation299_spill] sm:$0xff]  ;;  %v16453_v62 = vld [vmem:[#allocation213_spill] sm:$0xff] }
 0x572   : > { %v5810_v17 = vsel %vm16427_vm11, %v16426_v51, 0.0  ;;  %vm16431_vm15 = vnez %v16430_v10  ;;  %v16451_v51 = vld [vmem:[#allocation199_spill] sm:$0xff] }
 0x573   : > { %v5928_v21 = vmax.f32 %v5805_v36, %v5927_v46  ;;  %v5811_v57 = vsel %vm16431_vm15, %v16429_v28, 0.0  ;;  %v16433_v36 = vmax.f32 %v16432_v37, 0.0  ;;  %v16454_v28 = vmax.f32 %v16453_v62, 0.0  ;;  %v16455_v10 = vld [vmem:[#allocation302_spill] sm:$0xff] }
 0x574   : > { %vm16456_vm10 = vnez %v16455_v10  ;;  %vm16479_vm15 = vnez %v16172_v14 }
 0x575   : > { %v5929_v13 = vmax.f32 %v5806_v8, %v5928_v21  ;;  %v5812_v46 = vsel %vm16434_vm7, %v16433_v36, 0.0  ;;  %v16437_v8 = vld [vmem:[#allocation300_spill] sm:$0xff] }
 0x576   : > { %vm16438_vm4 = vnez %v16437_v8 }
 0x577   : > { %v5930_v38 = vmax.f32 %v5807_v26, %v5929_v13  ;;  %v5813_v21 = vsel %vm16438_vm4, %v16436_v49, 0.0  ;;  %v5814_v26 = vsel %vm16441_vm3, %v16440_v59, 0.0  ;;  %v16461_v49 = vld [vmem:[#allocation303_spill] sm:$0xff]  ;;  %vm16486_vm4 = vnez %v16182_v3 }
 0x579   : > { %v5931_v12 = vmax.f32 %v5808_v19, %v5930_v38  ;;  %v16445_v19 = vld [vmem:[#allocation165_spill] sm:$0xff] }
 0x57a   : > { %v16446_v38 = vmax.f32 %v16445_v19, 0.0 }
 0x57b   : > { %v5932_v7 = vmax.f32 %v5809_v31, %v5931_v12  ;;  %v16448_v31 = vmax.f32 %v16447_v4, 0.0  ;;  %v16449_v12 = vld [vmem:[#allocation301_spill] sm:$0xff] }
 0x57c   : > { %v5816_v11 = vsel %vm13084_vm9, %v16446_v38, 0.0  ;;  %vm16450_vm2 = vnez %v16449_v12  ;;  %vm16462_vm9 = vnez %v16461_v49  ;;  %v16475_v4 = vld [vmem:[#allocation305_spill] sm:$0xff]  ;;  %v16477_v12 = vld [vmem:[#allocation232_spill] sm:$0xff] }
 0x57d   : > { %v5933_v55 = vmax.f32 %v5810_v17, %v5932_v7  ;;  %v5817_v39 = vsel %vm16450_vm2, %v16448_v31, 0.0  ;;  %v16452_v17 = vmax.f32 %v16451_v51, 0.0  ;;  %vm16476_vm11 = vnez %v16475_v4  ;;  %v16508_v4 = vld [vmem:[#allocation243_spill] sm:$0xff] }
 0x57f   : > { %v5934_v25 = vmax.f32 %v5811_v57, %v5933_v55  ;;  %v5818_v7 = vsel %vm13104_vm6, %v16452_v17, 0.0  ;;  %v5819_v57 = vsel %vm16456_vm10, %v16454_v28, 0.0  ;;  %v16457_v55 = vld [vmem:[#allocation192_spill] sm:$0xff]  ;;  %vm16465_vm6 = vnez %v16152_v61  ;;  %v16480_v17 = vld [vmem:[#allocation234_spill] sm:$0xff]  ;;  %v16484_v28 = vld [vmem:[#allocation231_spill] sm:$0xff] }
 0x580   : > { %v16458_v37 = vmax.f32 %v16457_v55, 0.0  ;;  %v16485_v10 = vmax.f32 %v16484_v28, 0.0  ;;  %v16487_v55 = vld [vmem:[#allocation233_spill] sm:$0xff]  ;;  %vm16500_vm10 = vnez %v16202_v0 }
 0x581   : > { %v5935_v56 = vmax.f32 %v5812_v46, %v5934_v25  ;;  %v16459_v25 = vld [vmem:[#allocation206_spill] sm:$0xff]  ;;  %v16519_v28 = vld [vmem:[#allocation245_spill] sm:$0xff] }
 0x582   : > { %v5820_v36 = vsel %vm13124_vm13, %v16458_v37, 0.0  ;;  %v16460_v34 = vmax.f32 %v16459_v25, 0.0  ;;  %vm16472_vm13 = vnez %v16162_v6  ;;  %v16488_v37 = vmax.f32 %v16487_v55, 0.0  ;;  %v16491_v25 = vld [vmem:[#allocation236_spill] sm:$0xff]  ;;  %v16522_v55 = vld [vmem:[#allocation247_spill] sm:$0xff] }
 0x583   : > { %v5936_v13 = vmax.f32 %v5813_v21, %v5935_v56  ;;  %v16463_v21 = vld [vmem:[#allocation227_spill] sm:$0xff] }
 0x584   : > { %v5821_v8 = vsel %vm16462_vm9, %v16460_v34, 0.0  ;;  %v16464_v56 = vmax.f32 %v16463_v21, 0.0  ;;  %v16492_v34 = vmax.f32 %v16491_v25, 0.0 }
 0x585   : > { %v5937_v45 = vmax.f32 %v5814_v26, %v5936_v13  ;;  %v16466_v26 = vld [vmem:[#allocation230_spill] sm:$0xff] }
 0x586   : > { %v5822_v5 = vsel %vm16465_vm6, %v16464_v56, 0.0  ;;  %v16467_v13 = vmax.f32 %v16466_v26, 0.0  ;;  %v5830_v49 = vsel %vm16493_vm12, %v16492_v34, 0.0  ;;  %v16496_v56 = vld [vmem:[#allocation308_spill] sm:$0xff]  ;;  %vm16507_vm6 = vnez %v16212_v1 }
 0x587   : > { %v5938_v53 = vmax.f32 %v5815_v16, %v5937_v45  ;;  %v16470_v16 = vld [vmem:[#allocation220_spill] sm:$0xff]  ;;  %vm16497_vm2 = vnez %v16496_v56  ;;  %vm16535_vm12 = vnez %v16252_v9 }
 0x588   : > { %v5823_v58 = vsel %vm16469_vm14, %v16467_v13, 0.0  ;;  %v16471_v45 = vmax.f32 %v16470_v16, 0.0  ;;  %v16503_v16 = vld [vmem:[#allocation309_spill] sm:$0xff] }
 0x589   : > { %v5939_v18 = vmax.f32 %v5816_v11, %v5938_v53  ;;  %v16473_v11 = vld [vmem:[#allocation229_spill] sm:$0xff]  ;;  %vm16504_vm9 = vnez %v16503_v16  ;;  %v16540_v16 = vld [vmem:[#allocation248_spill] sm:$0xff] }
 0x58a   : > { %v5824_v19 = vsel %vm16472_vm13, %v16471_v45, 0.0  ;;  %v16474_v53 = vmax.f32 %v16473_v11, 0.0  ;;  %vm16514_vm13 = vnez %v16222_v60 }
 0x58b   : > { %v5940_v29 = vmax.f32 %v5817_v39, %v5939_v18  ;;  %v16478_v39 = vmax.f32 %v16477_v12, 0.0 }
 0x58c   : > { %v5825_v31 = vsel %vm16476_vm11, %v16474_v53, 0.0 }
 0x58d   : > { %v5941_v32 = vmax.f32 %v5818_v7, %v5940_v29  ;;  %v5826_v18 = vsel %vm16479_vm15, %v16478_v39, 0.0  ;;  %v16481_v7 = vmax.f32 %v16480_v17, 0.0  ;;  %v16482_v29 = vld [vmem:[#allocation306_spill] sm:$0xff]  ;;  %vm16521_vm15 = vnez %v16232_v30 }
 0x58e   : > { %vm16483_vm7 = vnez %v16482_v29  ;;  %v16512_v39 = vld [vmem:[#allocation239_spill] sm:$0xff] }
 0x58f   : > { %v5942_v46 = vmax.f32 %v5819_v57, %v5941_v32  ;;  %v5827_v62 = vsel %vm16483_vm7, %v16481_v7, 0.0  ;;  %v5828_v57 = vsel %vm16486_vm4, %v16485_v10, 0.0  ;;  %v16515_v7 = vld [vmem:[#allocation242_spill] sm:$0xff]  ;;  %v16520_v10 = vmax.f32 %v16519_v28, 0.0 }
 0x590   : > { %v16516_v29 = vmax.f32 %v16515_v7, 0.0  ;;  %vm16528_vm4 = vnez %v16242_v33  ;;  %v16554_v7 = vld [vmem:[#allocation252_spill] sm:$0xff] }
 0x591   : > { %v5943_v2 = vmax.f32 %v5820_v36, %v5942_v46  ;;  %v16489_v36 = vld [vmem:[#allocation307_spill] sm:$0xff] }
 0x592   : > { %vm16490_vm3 = vnez %v16489_v36  ;;  %v16524_v36 = vld [vmem:[#allocation312_spill] sm:$0xff] }
 0x593   : > { %v5944_v59 = vmax.f32 %v5821_v8, %v5943_v2  ;;  %v5829_v46 = vsel %vm16490_vm3, %v16488_v37, 0.0  ;;  %v16494_v2 = vld [vmem:[#allocation238_spill] sm:$0xff]  ;;  %v16523_v37 = vmax.f32 %v16522_v55, 0.0  ;;  %vm16525_vm7 = vnez %v16524_v36 }
 0x594   : > { %v16495_v21 = vmax.f32 %v16494_v2, 0.0 }
 0x595   : > { %v5945_v27 = vmax.f32 %v5822_v5, %v5944_v59  ;;  %v16498_v59 = vld [vmem:[#allocation235_spill] sm:$0xff] }
 0x596   : > { %v5831_v5 = vsel %vm16497_vm2, %v16495_v21, 0.0  ;;  %v16499_v26 = vmax.f32 %v16498_v59, 0.0  ;;  %v16531_v21 = vld [vmem:[#allocation313_spill] sm:$0xff] }
 0x597   : > { %v5946_v38 = vmax.f32 %v5823_v58, %v5945_v27  ;;  %v16501_v58 = vld [vmem:[#allocation237_spill] sm:$0xff]  ;;  %vm16532_vm3 = vnez %v16531_v21 }
 0x598   : > { %v5832_v13 = vsel %vm16500_vm10, %v16499_v26, 0.0  ;;  %v16502_v27 = vmax.f32 %v16501_v58, 0.0  ;;  %v16538_v58 = vld [vmem:[#allocation314_spill] sm:$0xff]  ;;  %vm16542_vm10 = vnez %v16262_v54 }
 0x599   : > { %v5947_v61 = vmax.f32 %v5824_v19, %v5946_v38  ;;  %v16505_v19 = vld [vmem:[#allocation240_spill] sm:$0xff]  ;;  %vm16539_vm2 = vnez %v16538_v58 }
 0x59a   : > { %v5833_v45 = vsel %vm16504_vm9, %v16502_v27, 0.0  ;;  %v16506_v38 = vmax.f32 %v16505_v19, 0.0 }
 0x59b   : > { %v5948_v51 = vmax.f32 %v5825_v31, %v5947_v61  ;;  %v16509_v31 = vmax.f32 %v16508_v4, 0.0  ;;  %v16510_v61 = vld [vmem:[#allocation310_spill] sm:$0xff] }
 0x59c   : > { %v5834_v11 = vsel %vm16507_vm6, %v16506_v38, 0.0  ;;  %vm16511_vm14 = vnez %v16510_v61  ;;  %v16543_v38 = vld [vmem:[#allocation250_spill] sm:$0xff]  ;;  %vm16549_vm6 = vnez %v16272_v40 }
 0x59d   : > { %v5949_v6 = vmax.f32 %v5826_v18, %v5948_v51  ;;  %v5835_v12 = vsel %vm16511_vm14, %v16509_v31, 0.0  ;;  %v16513_v18 = vmax.f32 %v16512_v39, 0.0  ;;  %v16547_v31 = vld [vmem:[#allocation253_spill] sm:$0xff]  ;;  %v16550_v39 = vld [vmem:[#allocation255_spill] sm:$0xff] }
 0x59e   : > { %v16548_v61 = vmax.f32 %v16547_v31, 0.0 }
 0x59f   : > { %v5950_v32 = vmax.f32 %v5827_v62, %v5949_v6  ;;  %v5836_v51 = vsel %vm16514_vm13, %v16513_v18, 0.0  ;;  %v16517_v62 = vld [vmem:[#allocation311_spill] sm:$0xff]  ;;  %v16551_v18 = vmax.f32 %v16550_v39, 0.0  ;;  %vm16556_vm13 = vnez %v16282_v22 }
 0x5a0   : > { %vm16518_vm11 = vnez %v16517_v62 }
 0x5a1   : > { %v5951_v14 = vmax.f32 %v5828_v57, %v5950_v32  ;;  %v5837_v6 = vsel %vm16518_vm11, %v16516_v29, 0.0  ;;  %v5838_v57 = vsel %vm16521_vm15, %v16520_v10, 0.0  ;;  %v16555_v29 = vmax.f32 %v16554_v7, 0.0  ;;  %v16559_v10 = vld [vmem:[#allocation317_spill] sm:$0xff] }
 0x5a2   : > { %vm16560_vm11 = vnez %v16559_v10 }
 0x5a3   : > { %v5952_v8 = vmax.f32 %v5829_v46, %v5951_v14  ;;  %v5839_v46 = vsel %vm16525_vm7, %v16523_v37, 0.0  ;;  %v16526_v14 = vld [vmem:[#allocation244_spill] sm:$0xff]  ;;  %v5848_v62 = vsel %vm16556_vm13, %v16555_v29, 0.0  ;;  %v16563_v37 = vld [vmem:[#allocation318_spill] sm:$0xff] }
 0x5a4   : > { %v16527_v25 = vmax.f32 %v16526_v14, 0.0  ;;  %vm16564_vm15 = vnez %v16563_v37 }
 0x5a5   : > { %v5953_v3 = vmax.f32 %v5830_v49, %v5952_v8  ;;  %v16529_v8 = vld [vmem:[#allocation246_spill] sm:$0xff] }
 0x5a6   : > { %v5840_v34 = vsel %vm16528_vm4, %v16527_v25, 0.0  ;;  %v16530_v2 = vmax.f32 %v16529_v8, 0.0  ;;  %v16567_v25 = vld [vmem:[#allocation319_spill] sm:$0xff] }
 0x5a7   : > { %v5954_v48 = vmax.f32 %v5831_v5, %v5953_v3  ;;  %v16533_v5 = vld [vmem:[#allocation249_spill] sm:$0xff]  ;;  %vm16568_vm7 = vnez %v16567_v25 }
 0x5a8   : > { %v5841_v56 = vsel %vm16532_vm3, %v16530_v2, 0.0  ;;  %v16534_v3 = vmax.f32 %v16533_v5, 0.0  ;;  %v16571_v2 = vld [vmem:[#allocation320_spill] sm:$0xff] }
 0x5a9   : > { %v5955_v42 = vmax.f32 %v5832_v13, %v5954_v48  ;;  %v16536_v13 = vld [vmem:[#allocation251_spill] sm:$0xff]  ;;  %vm16572_vm4 = vnez %v16571_v2 }
 0x5aa   : > { %v5842_v59 = vsel %vm16535_vm12, %v16534_v3, 0.0  ;;  %v16537_v48 = vmax.f32 %v16536_v13, 0.0  ;;  %v16575_v3 = vld [vmem:[#allocation321_spill] sm:$0xff]  ;;  %v16577_v13 = vld [vmem:[#allocation261_spill] sm:$0xff] }
 0x5ab   : > { %v5956_v53 = vmax.f32 %v5833_v45, %v5955_v42  ;;  %v16541_v45 = vmax.f32 %v16540_v16, 0.0  ;;  %vm16576_vm3 = vnez %v16575_v3  ;;  %v16580_v16 = vld [vmem:[#allocation263_spill] sm:$0xff] }
 0x5ac   : > { %v5843_v27 = vsel %vm16539_vm2, %v16537_v48, 0.0  ;;  %v16578_v48 = vmax.f32 %v16577_v13, 0.0 }
 0x5ad   : > { %v5957_v0 = vmax.f32 %v5834_v11, %v5956_v53  ;;  %v5844_v42 = vsel %vm16542_vm10, %v16541_v45, 0.0  ;;  %v16544_v11 = vmax.f32 %v16543_v38, 0.0  ;;  %v16545_v53 = vld [vmem:[#allocation315_spill] sm:$0xff]  ;;  %v16581_v45 = vmax.f32 %v16580_v16, 0.0 }
 0x5ae   : > { %vm16546_vm9 = vnez %v16545_v53 }
 0x5af   : > { %v5958_v17 = vmax.f32 %v5835_v12, %v5957_v0  ;;  %v5845_v4 = vsel %vm16546_vm9, %v16544_v11, 0.0  ;;  %v5846_v12 = vsel %vm16549_vm6, %v16548_v61, 0.0  ;;  %v16583_v11 = vld [vmem:[#allocation260_spill] sm:$0xff]  ;;  %v16586_v61 = vld [vmem:[#allocation262_spill] sm:$0xff] }
 0x5b0   : > { %v16584_v53 = vmax.f32 %v16583_v11, 0.0 }
 0x5b1   : > { %v5959_v1 = vmax.f32 %v5836_v51, %v5958_v17  ;;  %v16552_v51 = vld [vmem:[#allocation316_spill] sm:$0xff] }
 0x5b2   : > { %vm16553_vm14 = vnez %v16552_v51 }
 0x5b3   : > { %v5960_v32 = vmax.f32 %v5837_v6, %v5959_v1  ;;  %v5847_v17 = vsel %vm16553_vm14, %v16551_v18, 0.0  ;;  %v16557_v1 = vld [vmem:[#allocation254_spill] sm:$0xff] }
 0x5b4   : > { %v16558_v28 = vmax.f32 %v16557_v1, 0.0 }
 0x5b5   : > { %v5961_v60 = vmax.f32 %v5838_v57, %v5960_v32  ;;  %v16561_v32 = vld [vmem:[#allocation257_spill] sm:$0xff] }
 0x5b6   : > { %v5849_v57 = vsel %vm16560_vm11, %v16558_v28, 0.0  ;;  %v16562_v55 = vmax.f32 %v16561_v32, 0.0 }
 0x5b7   : > { %v5962_v49 = vmax.f32 %v5839_v46, %v5961_v60  ;;  %v16565_v60 = vld [vmem:[#allocation259_spill] sm:$0xff] }
 0x5b8   : > { %v5850_v36 = vsel %vm16564_vm15, %v16562_v55, 0.0  ;;  %v16566_v14 = vmax.f32 %v16565_v60, 0.0 }
 0x5b9   : > { %v5963_v30 = vmax.f32 %v5840_v34, %v5962_v49  ;;  %v16569_v49 = vld [vmem:[#allocation256_spill] sm:$0xff] }
 0x5ba   : > { %v5851_v34 = vsel %vm16568_vm7, %v16566_v14, 0.0  ;;  %v16570_v8 = vmax.f32 %v16569_v49, 0.0 }
 0x5bb   : > { %v5964_v26 = vmax.f32 %v5841_v56, %v5963_v30  ;;  %v16573_v30 = vld [vmem:[#allocation258_spill] sm:$0xff] }
 0x5bc   : > { %v5852_v21 = vsel %vm16572_vm4, %v16570_v8, 0.0  ;;  %v16574_v5 = vmax.f32 %v16573_v30, 0.0 }
 0x5bd   : > { %v5965_v33 = vmax.f32 %v5842_v59, %v5964_v26 }
 0x5be   : > { %v5853_v59 = vsel %vm16576_vm3, %v16574_v5, 0.0 }
 0x5bf   : > { %v5966_v19 = vmax.f32 %v5843_v27, %v5965_v33  ;;  %v5854_v27 = vsel %vm13464_vm5, %v16578_v48, 0.0 }
 0x5c1   : > { %v5967_v9 = vmax.f32 %v5844_v42, %v5966_v19  ;;  %v5855_v19 = vsel %vm13468_vm0, %v16581_v45, 0.0 }
 0x5c3   : > { %v5968_v0 = vmax.f32 %v5845_v4, %v5967_v9  ;;  %v5856_v9 = vsel %vm13476_vm1, %v16584_v53, 0.0 }
 0x5c5   : > { %v5969_v54 = vmax.f32 %v5846_v12, %v5968_v0  ;;  %v16587_v12 = vmax.f32 %v16586_v61, 0.0 }
 0x5c7   : > { %v5970_v6 = vmax.f32 %v5847_v17, %v5969_v54  ;;  %v5857_v39 = vsel %vm13480_vm8, %v16587_v12, 0.0 }
 0x5c9   : > { %v5971_v40 = vmax.f32 %v5848_v62, %v5970_v6 }
 0x5cb   : > { %v5972_v46 = vmax.f32 %v5849_v57, %v5971_v40  ;;  %v5991_v57 = vld [vmem:[#allocation4 + $0x1] sm:$0x1] }
 0x5cd   : > { %v5973_v22 = vmax.f32 %v5850_v36, %v5972_v46 }
 0x5cf   : > { %v5974_v56 = vmax.f32 %v5851_v34, %v5973_v22 }
 0x5d1   : > { %v5975_v26 = vmax.f32 %v5852_v21, %v5974_v56 }
 0x5d3   : > { %v5976_v33 = vmax.f32 %v5853_v59, %v5975_v26 }
 0x5d5   : > { %v5977_v38 = vmax.f32 %v5854_v27, %v5976_v33 }
 0x5d7   : > { %v5978_v31 = vmax.f32 %v5855_v19, %v5977_v38 }
 0x5d9   : > { %v5979_v18 = vmax.f32 %v5856_v9, %v5978_v31 }
 0x5db   : > { %v5980_v51 = vmax.f32 %v5857_v39, %v5979_v18 }
 0x5dd   : > { %v5981_v17 = vmax.f32 %v5858_v15, %v5980_v51 }
 0x5df   : > { %v5982_v54 = vmax.f32 %v5859_v47, %v5981_v17 }
 0x5e1   : > { %v5983_v7 = vmax.f32 %v5860_v63, %v5982_v54 }
 0x5e3   : > { %v5984_v29 = vmax.f32 %v5861_v23, %v5983_v7 }
 0x5e5   : > { %v5985_v62 = vrot.slane %v5984_v29, 4 }
 0x5e7   : > { %v5986_v6 = vmax.f32 %v5984_v29, %v5985_v62 }
 0x5e9   : > { %v5987_v1 = vrot.slane %v5986_v6, 2 }
 0x5eb   : > { %v5988_v28 = vmax.f32 %v5986_v6, %v5987_v1 }
 0x5ed   : > { %v5989_v10 = vrot.slane %v5988_v28, 1 }
 0x5ef   : > { %v5990_v44 = vmax.f32 %v5988_v28, %v5989_v10 }
 0x5f1   : > { %v5992_v43 = vmax.f32 %v5991_v57, %v5990_v44 }
 0x5f3   : > { %5993 = vst [vmem:[#allocation4 + $0x1] sm:$0x1] %v5992_v43 }
 0x5f4 PF: > { %p13838_p3 = scmp.eq.s32.totalorder %s6065_s0, 4  ;;  %s7325_s23 = smov [#allocation4]  }
 0x5f5   : > { %s6003_s24 = sshll.u32 %s7325_s23, 4  ;;  %s6004_s24 = int_to_ptr.vmem [resolvable:$true] %s6003_s24 }
 0x5f6   : > { %s7269_s25 = scalar_lea.vmem %s6004_s24, 128  ;;  %p7276_p7 = scmp.lt.s32.totalorder %s6004_s24, %s6004_s24 }
 0x5f7   : > { %p7270_p4 = scmp.ne.s32.totalorder %s6004_s24, %s7269_s25  ;;  %p7277_p8 = scmp.lt.s32.totalorder %s7269_s25, %s7269_s25 }
 0x5f9   : > { %p7271_p5 = pnand %p7270_p4, %p13838_p3  ;;  %p7278_p9 = por %p7277_p8, %p7276_p7 }
 0x5fb   : > { %p7272_p6 = pneg %p7271_p5 }
 0x5fd   : > { %p7279_p10 = pnand %p7278_p9, %p7272_p6 }
 0x5ff   : > { %7282 = shalt.err (!%p7279_p10)
}
 0x600   : > { %7215 = dma.vmem_to_hbm [thread:$0]  (%p13838_p3), %s6004_s24, 128, %s13870_s8, [#allocation5]  }
 0x601   : > { %7308 = dma.done.wait (%p13838_p3), [#allocation5], 128  }
 0x602   : > { %7310 = vsyncadd (%p13838_p3), [#allocation5], 4294967168 }
 0x603 PF: > { %s25_s12 = sadd.s32 1, %s7321_s12   ;;  %s16590_s10 = smov %s7317_s11 }
 0x604   : > { %p22_p11 = scmp.ge.s32.totalorder %s25_s12, 7   ;;  %s16591_s11 = smov %s16593_s13 }
 0x606   :  { %24 = sbr.rel (!%p22_p11) target bundleno = 17 (0x11), region = 91 }
 0x60b   :  { %6016 = vsyncpa [#allocation5], 1 }
 0x60c   :  { %6018 = vsyncpa [#allocation5 + $0x1], 1 }

</bundles_post_ra>
